<compile_context>
chip_gen: v7x
topology: tpu7x:2x2x1
jax: 0.10.0
libtpu: 0.0.40
codegen_flags: <defaults>
</compile_context>

<pallas_src>
import jax
import jax.numpy as jnp
from jax.experimental import pallas as pl
from jax.experimental.pallas import tpu as pltpu

# ---- module constants (from LSTMTagger) ----
WORD_EMBEDDING_DIM = 200
CHAR_EMBEDDING_DIM = 10
HIDDEN_DIM = 200
K = 3
L = 32                         # number of char-CNN filters
KD = K * CHAR_EMBEDDING_DIM    # 30

# ---- padded / fused kernel dims (128-lane multiples) ----
HP = 256                       # HIDDEN_DIM padded
DWP = 256                      # word-embedding dim padded
KDP = 128                      # char window width padded
LP = 128                       # char-CNN filter count padded
G = 4 * HP                     # fused gate width (i, f, g, o)
TP = 128                       # tagset padded


# ----------------------------------------------------------------------------
# Stage 1: char-CNN + input projection + one BiLSTM direction per grid step
# ----------------------------------------------------------------------------
def bilstm_kernel(win_ref, word_ref, cnn_w_ref, cnn_b_ref,
                  wih_w_ref, wih_c_ref, b_ref, whh_hbm_ref,
                  outs_ref,
                  zx_ref, whh_vmem_ref, dma_sem):
    f32 = jnp.float32
    bf16 = jnp.bfloat16

    d = pl.program_id(0)                         # 0 = forward, 1 = backward direction
    S, B, G4 = zx_ref.shape
    Hp = G4 // 4
    BS = B * S
    C = win_ref.shape[0] // BS                   # char window positions per word

    # ---- start this direction's recurrent-weight DMA; hidden behind the matmuls below ----
    whh_cp = pltpu.make_async_copy(whh_hbm_ref.at[d], whh_vmem_ref, dma_sem)
    whh_cp.start()

    # ---- char CNN: one MXU matmul over all (window, token) rows, max over windows ----
    phi = jnp.dot(win_ref[...], cnn_w_ref[...],
                  preferred_element_type=f32) + cnn_b_ref[...]        # (C*BS, Lp)
    char = phi[0:BS]
    for c in range(1, C):
        char = jnp.maximum(char, phi[c * BS:(c + 1) * BS])            # (BS, Lp)
    char_bf = char.astype(bf16)

    # ---- hoisted, gate-fused input projection for THIS direction ----
    # word/char rows are in flat (b, s) order == flat row r; `.view(seq, batch, -1)` is a
    # pure row re-label, row r -> (t, b') = (r // B, r % B), so timestep t consumes rows
    # [t*B, (t+1)*B).  Store time-major so per-step reads are leading-dim indexed.
    z = (jnp.dot(word_ref[...], wih_w_ref[0], preferred_element_type=f32)
         + jnp.dot(char_bf, wih_c_ref[0], preferred_element_type=f32)
         + b_ref[0])                                                  # (BS, 4Hp)
    for t in range(S):
        zx_ref[t] = z[t * B:(t + 1) * B, :]

    whh_cp.wait()    # recurrent weight now resident in VMEM scratch

    def cell(zz, c_prev):
        i = jax.nn.sigmoid(zz[:, 0 * Hp:1 * Hp])
        f = jax.nn.sigmoid(zz[:, 1 * Hp:2 * Hp])
        g = jnp.tanh(zz[:, 2 * Hp:3 * Hp])
        o = jax.nn.sigmoid(zz[:, 3 * Hp:4 * Hp])
        c_new = f * c_prev + i * g
        h_new = o * jnp.tanh(c_new)
        return h_new, c_new

    def run_direction(reverse):
        h = jnp.zeros((B, Hp), f32)
        c = jnp.zeros((B, Hp), f32)
        # fully unrolled: S is small & static; weight ref read inside the loop so no big
        # weight value lives across the recurrence; cell math kept f32 (v5e-friendly).
        for step in range(S):
            t = (S - 1 - step) if reverse else step
            zz = zx_ref[t] + jnp.dot(h.astype(bf16), whh_vmem_ref[...],
                                     preferred_element_type=f32)
            h, c = cell(zz, c)
            outs_ref[t * B:(t + 1) * B, :] = h.astype(bf16)           # bf16 per-step store

    @pl.when(d == 0)
    def _():
        run_direction(False)

    @pl.when(d == 1)
    def _():
        run_direction(True)


# ----------------------------------------------------------------------------
# Stage 2: hidden2tag + log_softmax over dim=1 (sequence axis, as in the original forward)
# ----------------------------------------------------------------------------
def head_kernel(outs_ref, h2t_w_ref, h2t_b_ref, out_ref):
    f32 = jnp.float32
    B, S, Tp = out_ref.shape

    # outs_ref[d] rows are flat r = t*B + b' (lstm_out flat row order), bf16.
    logits = (jnp.dot(outs_ref[0], h2t_w_ref[0], preferred_element_type=f32)
              + jnp.dot(outs_ref[1], h2t_w_ref[1], preferred_element_type=f32)
              + h2t_b_ref[...])                                       # (S*B, Tp), lane-dense

    # lstm_out.view(B, S, -1) re-labels flat row r as (r // S, r % S).
    for b in range(B):
        lb = logits[b * S:(b + 1) * S, :]                             # tag_space[b, :, :]
        m = jnp.max(lb, axis=0, keepdims=True)
        lse = jnp.log(jnp.sum(jnp.exp(lb - m), axis=0, keepdims=True)) + m
        out_ref[b] = lb - lse


def tagger_fused(win, word, p, B, S):
    BS = B * S
    C_BS = win.shape[0]

    # Stage 1: grid=(2,) over direction, "parallel" -> the two recurrences split across
    # v7x's 2 TensorCores; single-core chips just run a 2-iteration loop.
    outs = pl.pallas_call(
        bilstm_kernel,
        out_shape=jax.ShapeDtypeStruct((2, BS, HP), jnp.bfloat16),
        grid=(2,),
        in_specs=[
            pl.BlockSpec((C_BS, KDP), lambda d: (0, 0)),       # char windows (shared)
            pl.BlockSpec((BS, DWP), lambda d: (0, 0)),         # word embeddings (shared)
            pl.BlockSpec((KDP, LP), lambda d: (0, 0)),         # cnn weight
            pl.BlockSpec((1, LP), lambda d: (0, 0)),           # cnn bias
            pl.BlockSpec((1, DWP, G), lambda d: (d, 0, 0)),    # W_ih word rows (per direction)
            pl.BlockSpec((1, LP, G), lambda d: (d, 0, 0)),     # W_ih char rows (per direction)
            pl.BlockSpec((1, 1, G), lambda d: (d, 0, 0)),      # fused bias (per direction)
            pl.BlockSpec(memory_space=pl.ANY),                 # whh stays in HBM; manual DMA
        ],
        out_specs=pl.BlockSpec((None, BS, HP), lambda d: (d, 0, 0)),
        scratch_shapes=[
            pltpu.VMEM((S, B, G), jnp.float32),                # time-major Zx
            pltpu.VMEM((HP, G), jnp.bfloat16),                 # resident whh (this direction)
            pltpu.SemaphoreType.DMA(()),
        ],
        compiler_params=pltpu.CompilerParams(
            dimension_semantics=("parallel",),
            vmem_limit_bytes=32 * 1024 * 1024),
    )(win, word, p["cnn_w"], p["cnn_b"], p["wih_w"], p["wih_c"], p["b"], p["whh"])

    # Stage 2: tiny tail.
    vmem = pl.BlockSpec(memory_space=pltpu.MemorySpace.VMEM)
    return pl.pallas_call(
        head_kernel,
        out_shape=jax.ShapeDtypeStruct((B, S, TP), jnp.float32),
        in_specs=[vmem, vmem, vmem],
        out_specs=vmem,
    )(outs, p["h2t_w"], p["h2t_b"])


# ----------------------------------------------------------------------------
# Forward pass (embedding gathers + im2col in plain JAX glue, compute in the kernels)
# ----------------------------------------------------------------------------
def lstm_tagger_forward(params, sentences_chars, sentences_seq, tagset_size):
    B, S = sentences_seq.shape
    Wc = sentences_chars.shape[2] - (K - 1)
    BS = B * S

    # char embedding lookup + K-char window extraction (XLA glue: data-dependent gather)
    ce = params["char_emb"][sentences_chars]                          # (B, S, Wc+K-1, Dc)
    win = jnp.stack([ce[:, :, i:i + K, :].reshape(BS, KD) for i in range(Wc)],
                    axis=0).reshape(Wc * BS, KD)                      # rows: c-major, then (b,s)
    win = jnp.pad(win, ((0, 0), (0, KDP - KD))).astype(jnp.bfloat16)  # (Wc*BS, KDp)

    # word embedding lookup (XLA glue)
    we = params["word_emb"][sentences_seq].reshape(BS, WORD_EMBEDDING_DIM)
    word = jnp.pad(we, ((0, 0), (0, DWP - WORD_EMBEDDING_DIM))).astype(jnp.bfloat16)

    out_p = tagger_fused(win, word, params, B, S)                     # (B, S, Tp)
    return out_p[:, :, :tagset_size]                                  # (B, S, T)


# ----------------------------------------------------------------------------
# Deterministic parameter init: raw PyTorch-shaped params packed into padded,
# gate-fused, bf16 kernel layouts (biases stay f32).
# ----------------------------------------------------------------------------
def init_params(key, vocab_size, tagset_size, alphabet_size):
    H = HIDDEN_DIM
    D_in = WORD_EMBEDDING_DIM + L
    ks = jax.random.split(key, 10)

    def u(k, shape, scale):
        return jax.random.uniform(k, shape, jnp.float32, -scale, scale)

    kH = 1.0 / float(H) ** 0.5
    kc = 1.0 / float(KD) ** 0.5
    kt = 1.0 / float(2 * H) ** 0.5

    word_emb = jax.random.normal(ks[0], (vocab_size, WORD_EMBEDDING_DIM), jnp.float32)
    char_emb = jax.random.normal(ks[1], (alphabet_size, CHAR_EMBEDDING_DIM), jnp.float32)

    cnn_w = u(ks[2], (KD, L), kc)                 # Conv1d(1, L, K*Dc) weight, transposed
    cnn_b = u(ks[3], (L,), kc)
    wih = u(ks[4], (2, 4, D_in, H), kH)           # [direction, gate(i,f,g,o), D_in, H]
    whh = u(ks[5], (2, 4, H, H), kH)
    bl = u(ks[6], (2, 4, H), kH) + u(ks[7], (2, 4, H), kH)   # b_ih + b_hh folded
    h2t_w = u(ks[8], (2 * H, tagset_size), kt)
    h2t_b = u(ks[9], (tagset_size,), kt)

    # ---- pack into padded / gate-fused layouts ----
    cnn_w_p = jnp.zeros((KDP, LP), jnp.float32).at[:KD, :L].set(cnn_w)
    cnn_b_p = jnp.zeros((1, LP), jnp.float32).at[0, :L].set(cnn_b)

    wih_w_p = jnp.zeros((2, DWP, G), jnp.float32)   # word-feature rows of W_ih
    wih_c_p = jnp.zeros((2, LP, G), jnp.float32)    # char-feature rows of W_ih
    whh_p = jnp.zeros((2, HP, G), jnp.float32)
    b_p = jnp.zeros((2, 1, G), jnp.float32)
    for g in range(4):
        col = g * HP
        wih_w_p = wih_w_p.at[:, :WORD_EMBEDDING_DIM, col:col + H].set(
            wih[:, g, :WORD_EMBEDDING_DIM, :])
        wih_c_p = wih_c_p.at[:, :L, col:col + H].set(wih[:, g, WORD_EMBEDDING_DIM:, :])
        whh_p = whh_p.at[:, :H, col:col + H].set(whh[:, g])
        b_p = b_p.at[:, 0, col:col + H].set(bl[:, g])

    h2t_w_p = jnp.zeros((2, HP, TP), jnp.float32)
    h2t_w_p = h2t_w_p.at[0, :H, :tagset_size].set(h2t_w[:H])      # forward half
    h2t_w_p = h2t_w_p.at[1, :H, :tagset_size].set(h2t_w[H:])      # backward half
    h2t_b_p = jnp.zeros((1, TP), jnp.float32).at[0, :tagset_size].set(h2t_b)

    return dict(
        word_emb=word_emb,
        char_emb=char_emb,
        cnn_w=cnn_w_p.astype(jnp.bfloat16),
        cnn_b=cnn_b_p,
        wih_w=wih_w_p.astype(jnp.bfloat16),
        wih_c=wih_c_p.astype(jnp.bfloat16),
        whh=whh_p.astype(jnp.bfloat16),
        b=b_p,
        h2t_w=h2t_w_p.astype(jnp.bfloat16),
        h2t_b=h2t_b_p,
    )


if __name__ == "__main__":
    key = jax.random.PRNGKey(0)
    B, S, Wc = 2, 6, 5                     # sentences, words/sentence, chars/word
    vocab_size, tagset_size, alphabet_size = 50, 8, 30

    k_params, k_seq, k_chars = jax.random.split(key, 3)
    params = init_params(k_params, vocab_size, tagset_size, alphabet_size)

    sentences_seq = jax.random.randint(k_seq, (B, S), 0, vocab_size, dtype=jnp.int32)
    chars = jax.random.randint(k_chars, (B, S, Wc), 1, alphabet_size, dtype=jnp.int32)
    pad = (K - 1) // 2
    sentences_chars = jnp.pad(chars, ((0, 0), (0, 0), (pad, pad)), constant_values=0)

    fwd = jax.jit(lstm_tagger_forward, static_argnums=(3,))
    out = fwd(params, sentences_chars, sentences_seq, tagset_size)
    out = jax.block_until_ready(out)
    assert out.shape == (B, S, tagset_size)
    assert bool(jnp.all(jnp.isfinite(out)))
    print("KERNEL_OK")
</pallas_src>

<mosaic_0001>
module attributes {stable_mosaic.version = 11 : i64} {
  func.func @head_kernel(%arg0: memref<2x12x256xbf16, #tpu.memory_space<vmem>>, %arg1: memref<2x256x128xbf16, #tpu.memory_space<vmem>>, %arg2: memref<1x128xf32, #tpu.memory_space<vmem>>, %arg3: memref<2x6x128xf32, #tpu.memory_space<vmem>>) attributes {dimension_semantics = [], scalar_prefetch = 0 : i64, scratch_operands = 0 : i64, tpu.core_type = #tpu.core_type<tc>} {
    %c0 = arith.constant 0 : index
    %c0_0 = arith.constant 0 : index
    %c0_1 = arith.constant 0 : index
    %0 = vector.load %arg0[%c0, %c0_0, %c0_1] : memref<2x12x256xbf16, #tpu.memory_space<vmem>>, vector<1x12x256xbf16>
    %1 = vector.shape_cast %0 : vector<1x12x256xbf16> to vector<12x256xbf16>
    %c0_2 = arith.constant 0 : index
    %c0_3 = arith.constant 0 : index
    %c0_4 = arith.constant 0 : index
    %2 = vector.load %arg1[%c0_2, %c0_3, %c0_4] : memref<2x256x128xbf16, #tpu.memory_space<vmem>>, vector<1x256x128xbf16>
    %3 = vector.shape_cast %2 : vector<1x256x128xbf16> to vector<256x128xbf16>
    %cst = arith.constant dense<0.000000e+00> : vector<12x128xf32>
    %4 = tpu.matmul %1, %3, %cst {dimension_numbers = #tpu.dot_dimension_numbers<[1], [0], [0], [1], [0, 0, 1, 1], [], []>} : vector<12x256xbf16>, vector<256x128xbf16>, vector<12x128xf32> -> vector<12x128xf32>
    %c1 = arith.constant 1 : index
    %c0_5 = arith.constant 0 : index
    %c0_6 = arith.constant 0 : index
    %5 = vector.load %arg0[%c1, %c0_5, %c0_6] : memref<2x12x256xbf16, #tpu.memory_space<vmem>>, vector<1x12x256xbf16>
    %6 = vector.shape_cast %5 : vector<1x12x256xbf16> to vector<12x256xbf16>
    %c1_7 = arith.constant 1 : index
    %c0_8 = arith.constant 0 : index
    %c0_9 = arith.constant 0 : index
    %7 = vector.load %arg1[%c1_7, %c0_8, %c0_9] : memref<2x256x128xbf16, #tpu.memory_space<vmem>>, vector<1x256x128xbf16>
    %8 = vector.shape_cast %7 : vector<1x256x128xbf16> to vector<256x128xbf16>
    %cst_10 = arith.constant dense<0.000000e+00> : vector<12x128xf32>
    %9 = tpu.matmul %6, %8, %cst_10 {dimension_numbers = #tpu.dot_dimension_numbers<[1], [0], [0], [1], [0, 0, 1, 1], [], []>} : vector<12x256xbf16>, vector<256x128xbf16>, vector<12x128xf32> -> vector<12x128xf32>
    %10 = arith.addf %4, %9 : vector<12x128xf32>
    %c0_11 = arith.constant 0 : index
    %c0_12 = arith.constant 0 : index
    %11 = vector.load %arg2[%c0_11, %c0_12] : memref<1x128xf32, #tpu.memory_space<vmem>>, vector<1x128xf32>
    %12 = vector.broadcast %11 : vector<1x128xf32> to vector<12x128xf32>
    %13 = arith.addf %10, %12 : vector<12x128xf32>
    %14 = vector.extract_strided_slice %13 {offsets = [0, 0], sizes = [6, 128], strides = [1, 1]} : vector<12x128xf32> to vector<6x128xf32>
    %cst_13 = arith.constant dense<0xFF800000> : vector<128xf32>
    %15 = vector.multi_reduction <maximumf>, %14, %cst_13 [0] : vector<6x128xf32> to vector<128xf32>
    %16 = vector.shape_cast %15 : vector<128xf32> to vector<1x128xf32>
    %17 = vector.broadcast %16 : vector<1x128xf32> to vector<6x128xf32>
    %18 = arith.subf %14, %17 : vector<6x128xf32>
    %19 = math.exp %18 : vector<6x128xf32>
    %cst_14 = arith.constant dense<0.000000e+00> : vector<128xf32>
    %20 = vector.multi_reduction <add>, %19, %cst_14 [0] : vector<6x128xf32> to vector<128xf32>
    %21 = vector.shape_cast %20 : vector<128xf32> to vector<1x128xf32>
    %22 = math.log %21 : vector<1x128xf32>
    %23 = arith.addf %22, %16 : vector<1x128xf32>
    %24 = vector.broadcast %23 : vector<1x128xf32> to vector<6x128xf32>
    %25 = arith.subf %14, %24 : vector<6x128xf32>
    %c0_15 = arith.constant 0 : index
    %c0_16 = arith.constant 0 : index
    %c0_17 = arith.constant 0 : index
    %26 = vector.load %arg3[%c0_15, %c0_16, %c0_17] : memref<2x6x128xf32, #tpu.memory_space<vmem>>, vector<1x6x128xf32>
    %27 = vector.shape_cast %26 : vector<1x6x128xf32> to vector<6x128xf32>
    %28 = vector.shape_cast %25 : vector<6x128xf32> to vector<1x6x128xf32>
    tpu.vector_store %arg3[%c0_15, %c0_16, %c0_17], %28 {strides = array<i32>} : memref<2x6x128xf32, #tpu.memory_space<vmem>>, vector<1x6x128xf32>,
    %29 = vector.extract_strided_slice %13 {offsets = [6, 0], sizes = [6, 128], strides = [1, 1]} : vector<12x128xf32> to vector<6x128xf32>
    %cst_18 = arith.constant dense<0xFF800000> : vector<128xf32>
    %30 = vector.multi_reduction <maximumf>, %29, %cst_18 [0] : vector<6x128xf32> to vector<128xf32>
    %31 = vector.shape_cast %30 : vector<128xf32> to vector<1x128xf32>
    %32 = vector.broadcast %31 : vector<1x128xf32> to vector<6x128xf32>
    %33 = arith.subf %29, %32 : vector<6x128xf32>
    %34 = math.exp %33 : vector<6x128xf32>
    %cst_19 = arith.constant dense<0.000000e+00> : vector<128xf32>
    %35 = vector.multi_reduction <add>, %34, %cst_19 [0] : vector<6x128xf32> to vector<128xf32>
    %36 = vector.shape_cast %35 : vector<128xf32> to vector<1x128xf32>
    %37 = math.log %36 : vector<1x128xf32>
    %38 = arith.addf %37, %31 : vector<1x128xf32>
    %39 = vector.broadcast %38 : vector<1x128xf32> to vector<6x128xf32>
    %40 = arith.subf %29, %39 : vector<6x128xf32>
    %c1_20 = arith.constant 1 : index
    %c0_21 = arith.constant 0 : index
    %c0_22 = arith.constant 0 : index
    %41 = vector.load %arg3[%c1_20, %c0_21, %c0_22] : memref<2x6x128xf32, #tpu.memory_space<vmem>>, vector<1x6x128xf32>
    %42 = vector.shape_cast %41 : vector<1x6x128xf32> to vector<6x128xf32>
    %43 = vector.shape_cast %40 : vector<6x128xf32> to vector<1x6x128xf32>
    tpu.vector_store %arg3[%c1_20, %c0_21, %c0_22], %43 {strides = array<i32>} : memref<2x6x128xf32, #tpu.memory_space<vmem>>, vector<1x6x128xf32>,
    return
  }
}

module attributes {stable_mosaic.version = 11 : i64} {
  func.func @bilstm_kernel(%arg0: i32, %arg1: memref<60x128xbf16, #tpu.memory_space<vmem>>, %arg2: memref<12x256xbf16, #tpu.memory_space<vmem>>, %arg3: memref<128x128xbf16, #tpu.memory_space<vmem>>, %arg4: memref<1x128xf32, #tpu.memory_space<vmem>>, %arg5: memref<1x256x1024xbf16, #tpu.memory_space<vmem>>, %arg6: memref<1x128x1024xbf16, #tpu.memory_space<vmem>>, %arg7: memref<1x1x1024xf32, #tpu.memory_space<vmem>>, %arg8: memref<2x256x1024xbf16, #tpu.memory_space<any>>, %arg9: memref<1x12x256xbf16, #tpu.memory_space<vmem>>, %arg10: memref<6x2x1024xf32, #tpu.memory_space<vmem>>, %arg11: memref<256x1024xbf16, #tpu.memory_space<vmem>>, %arg12: memref<!tpu.dma_semaphore, #tpu.memory_space<semaphore_mem>>) attributes {dimension_semantics = [#tpu.dimension_semantics<parallel>], iteration_bounds = array<i64: 2>, scalar_prefetch = 0 : i64, scratch_operands = 3 : i64, tpu.core_type = #tpu.core_type<tc>, window_params = [{pipeline_mode = #tpu.pipeline_mode<synchronous>, transform_indices = @transform_0, window_bounds = array<i64: 60, 128>}, {pipeline_mode = #tpu.pipeline_mode<synchronous>, transform_indices = @transform_1, window_bounds = array<i64: 12, 256>}, {pipeline_mode = #tpu.pipeline_mode<synchronous>, transform_indices = @transform_2, window_bounds = array<i64: 128, 128>}, {pipeline_mode = #tpu.pipeline_mode<synchronous>, transform_indices = @transform_3, window_bounds = array<i64: 1, 128>}, {transform_indices = @transform_4, window_bounds = array<i64: 1, 256, 1024>}, {transform_indices = @transform_5, window_bounds = array<i64: 1, 128, 1024>}, {transform_indices = @transform_6, window_bounds = array<i64: 1, 1, 1024>}, {}, {transform_indices = @transform_8, window_bounds = array<i64: 1, 12, 256>}]} {
    %c0_i32 = arith.constant 0 : i32
    %c0_i32_0 = arith.constant 0 : i32
    %0 = tpu.memref_slice %arg8[%arg0, %c0_i32, %c0_i32_0] : memref<2x256x1024xbf16, #tpu.memory_space<any>> -> memref<1x256x1024xbf16, #tpu.memory_space<any>>
    %1 = tpu.memref_squeeze %0 : memref<1x256x1024xbf16, #tpu.memory_space<any>> -> memref<256x1024xbf16, #tpu.memory_space<any>>
    tpu.enqueue_dma source(%1 : memref<256x1024xbf16, #tpu.memory_space<any>>) target(%arg11 : memref<256x1024xbf16, #tpu.memory_space<vmem>>) target_semaphore(%arg12 : memref<!tpu.dma_semaphore, #tpu.memory_space<semaphore_mem>>)
    %c0 = arith.constant 0 : index
    %c0_1 = arith.constant 0 : index
    %2 = vector.load %arg1[%c0, %c0_1] : memref<60x128xbf16, #tpu.memory_space<vmem>>, vector<60x128xbf16>
    %c0_2 = arith.constant 0 : index
    %c0_3 = arith.constant 0 : index
    %3 = vector.load %arg3[%c0_2, %c0_3] : memref<128x128xbf16, #tpu.memory_space<vmem>>, vector<128x128xbf16>
    %cst = arith.constant dense<0.000000e+00> : vector<60x128xf32>
    %4 = tpu.matmul %2, %3, %cst {dimension_numbers = #tpu.dot_dimension_numbers<[1], [0], [0], [1], [0, 0, 1, 1], [], []>} : vector<60x128xbf16>, vector<128x128xbf16>, vector<60x128xf32> -> vector<60x128xf32>
    %c0_4 = arith.constant 0 : index
    %c0_5 = arith.constant 0 : index
    %5 = vector.load %arg4[%c0_4, %c0_5] : memref<1x128xf32, #tpu.memory_space<vmem>>, vector<1x128xf32>
    %6 = vector.broadcast %5 : vector<1x128xf32> to vector<60x128xf32>
    %7 = arith.addf %4, %6 : vector<60x128xf32>
    %8 = vector.extract_strided_slice %7 {offsets = [0, 0], sizes = [12, 128], strides = [1, 1]} : vector<60x128xf32> to vector<12x128xf32>
    %9 = vector.extract_strided_slice %7 {offsets = [12, 0], sizes = [12, 128], strides = [1, 1]} : vector<60x128xf32> to vector<12x128xf32>
    %10 = arith.maximumf %8, %9 : vector<12x128xf32>
    %11 = vector.extract_strided_slice %7 {offsets = [24, 0], sizes = [12, 128], strides = [1, 1]} : vector<60x128xf32> to vector<12x128xf32>
    %12 = arith.maximumf %10, %11 : vector<12x128xf32>
    %13 = vector.extract_strided_slice %7 {offsets = [36, 0], sizes = [12, 128], strides = [1, 1]} : vector<60x128xf32> to vector<12x128xf32>
    %14 = arith.maximumf %12, %13 : vector<12x128xf32>
    %15 = vector.extract_strided_slice %7 {offsets = [48, 0], sizes = [12, 128], strides = [1, 1]} : vector<60x128xf32> to vector<12x128xf32>
    %16 = arith.maximumf %14, %15 : vector<12x128xf32>
    %17 = arith.truncf %16 : vector<12x128xf32> to vector<12x128xbf16>
    %c0_6 = arith.constant 0 : index
    %c0_7 = arith.constant 0 : index
    %18 = vector.load %arg2[%c0_6, %c0_7] : memref<12x256xbf16, #tpu.memory_space<vmem>>, vector<12x256xbf16>
    %c0_8 = arith.constant 0 : index
    %c0_9 = arith.constant 0 : index
    %c0_10 = arith.constant 0 : index
    %19 = vector.load %arg5[%c0_8, %c0_9, %c0_10] : memref<1x256x1024xbf16, #tpu.memory_space<vmem>>, vector<1x256x1024xbf16>
    %20 = vector.shape_cast %19 : vector<1x256x1024xbf16> to vector<256x1024xbf16>
    %cst_11 = arith.constant dense<0.000000e+00> : vector<12x1024xf32>
    %21 = tpu.matmul %18, %20, %cst_11 {dimension_numbers = #tpu.dot_dimension_numbers<[1], [0], [0], [1], [0, 0, 1, 1], [], []>} : vector<12x256xbf16>, vector<256x1024xbf16>, vector<12x1024xf32> -> vector<12x1024xf32>
    %c0_12 = arith.constant 0 : index
    %c0_13 = arith.constant 0 : index
    %c0_14 = arith.constant 0 : index
    %22 = vector.load %arg6[%c0_12, %c0_13, %c0_14] : memref<1x128x1024xbf16, #tpu.memory_space<vmem>>, vector<1x128x1024xbf16>
    %23 = vector.shape_cast %22 : vector<1x128x1024xbf16> to vector<128x1024xbf16>
    %cst_15 = arith.constant dense<0.000000e+00> : vector<12x1024xf32>
    %24 = tpu.matmul %17, %23, %cst_15 {dimension_numbers = #tpu.dot_dimension_numbers<[1], [0], [0], [1], [0, 0, 1, 1], [], []>} : vector<12x128xbf16>, vector<128x1024xbf16>, vector<12x1024xf32> -> vector<12x1024xf32>
    %25 = arith.addf %21, %24 : vector<12x1024xf32>
    %c0_16 = arith.constant 0 : index
    %c0_17 = arith.constant 0 : index
    %c0_18 = arith.constant 0 : index
    %26 = vector.load %arg7[%c0_16, %c0_17, %c0_18] : memref<1x1x1024xf32, #tpu.memory_space<vmem>>, vector<1x1x1024xf32>
    %27 = vector.shape_cast %26 : vector<1x1x1024xf32> to vector<1x1024xf32>
    %28 = vector.broadcast %27 : vector<1x1024xf32> to vector<12x1024xf32>
    %29 = arith.addf %25, %28 : vector<12x1024xf32>
    %30 = vector.extract_strided_slice %29 {offsets = [0, 0], sizes = [2, 1024], strides = [1, 1]} : vector<12x1024xf32> to vector<2x1024xf32>
    %c0_19 = arith.constant 0 : index
    %c0_20 = arith.constant 0 : index
    %c0_21 = arith.constant 0 : index
    %31 = vector.load %arg10[%c0_19, %c0_20, %c0_21] : memref<6x2x1024xf32, #tpu.memory_space<vmem>>, vector<1x2x1024xf32>
    %32 = vector.shape_cast %31 : vector<1x2x1024xf32> to vector<2x1024xf32>
    %33 = vector.shape_cast %30 : vector<2x1024xf32> to vector<1x2x1024xf32>
    tpu.vector_store %arg10[%c0_19, %c0_20, %c0_21], %33 {strides = array<i32>} : memref<6x2x1024xf32, #tpu.memory_space<vmem>>, vector<1x2x1024xf32>,
    %34 = vector.extract_strided_slice %29 {offsets = [2, 0], sizes = [2, 1024], strides = [1, 1]} : vector<12x1024xf32> to vector<2x1024xf32>
    %c1 = arith.constant 1 : index
    %c0_22 = arith.constant 0 : index
    %c0_23 = arith.constant 0 : index
    %35 = vector.load %arg10[%c1, %c0_22, %c0_23] : memref<6x2x1024xf32, #tpu.memory_space<vmem>>, vector<1x2x1024xf32>
    %36 = vector.shape_cast %35 : vector<1x2x1024xf32> to vector<2x1024xf32>
    %37 = vector.shape_cast %34 : vector<2x1024xf32> to vector<1x2x1024xf32>
    tpu.vector_store %arg10[%c1, %c0_22, %c0_23], %37 {strides = array<i32>} : memref<6x2x1024xf32, #tpu.memory_space<vmem>>, vector<1x2x1024xf32>,
    %38 = vector.extract_strided_slice %29 {offsets = [4, 0], sizes = [2, 1024], strides = [1, 1]} : vector<12x1024xf32> to vector<2x1024xf32>
    %c2 = arith.constant 2 : index
    %c0_24 = arith.constant 0 : index
    %c0_25 = arith.constant 0 : index
    %39 = vector.load %arg10[%c2, %c0_24, %c0_25] : memref<6x2x1024xf32, #tpu.memory_space<vmem>>, vector<1x2x1024xf32>
    %40 = vector.shape_cast %39 : vector<1x2x1024xf32> to vector<2x1024xf32>
    %41 = vector.shape_cast %38 : vector<2x1024xf32> to vector<1x2x1024xf32>
    tpu.vector_store %arg10[%c2, %c0_24, %c0_25], %41 {strides = array<i32>} : memref<6x2x1024xf32, #tpu.memory_space<vmem>>, vector<1x2x1024xf32>,
    %42 = vector.extract_strided_slice %29 {offsets = [6, 0], sizes = [2, 1024], strides = [1, 1]} : vector<12x1024xf32> to vector<2x1024xf32>
    %c3 = arith.constant 3 : index
    %c0_26 = arith.constant 0 : index
    %c0_27 = arith.constant 0 : index
    %43 = vector.load %arg10[%c3, %c0_26, %c0_27] : memref<6x2x1024xf32, #tpu.memory_space<vmem>>, vector<1x2x1024xf32>
    %44 = vector.shape_cast %43 : vector<1x2x1024xf32> to vector<2x1024xf32>
    %45 = vector.shape_cast %42 : vector<2x1024xf32> to vector<1x2x1024xf32>
    tpu.vector_store %arg10[%c3, %c0_26, %c0_27], %45 {strides = array<i32>} : memref<6x2x1024xf32, #tpu.memory_space<vmem>>, vector<1x2x1024xf32>,
    %46 = vector.extract_strided_slice %29 {offsets = [8, 0], sizes = [2, 1024], strides = [1, 1]} : vector<12x1024xf32> to vector<2x1024xf32>
    %c4 = arith.constant 4 : index
    %c0_28 = arith.constant 0 : index
    %c0_29 = arith.constant 0 : index
    %47 = vector.load %arg10[%c4, %c0_28, %c0_29] : memref<6x2x1024xf32, #tpu.memory_space<vmem>>, vector<1x2x1024xf32>
    %48 = vector.shape_cast %47 : vector<1x2x1024xf32> to vector<2x1024xf32>
    %49 = vector.shape_cast %46 : vector<2x1024xf32> to vector<1x2x1024xf32>
    tpu.vector_store %arg10[%c4, %c0_28, %c0_29], %49 {strides = array<i32>} : memref<6x2x1024xf32, #tpu.memory_space<vmem>>, vector<1x2x1024xf32>,
    %50 = vector.extract_strided_slice %29 {offsets = [10, 0], sizes = [2, 1024], strides = [1, 1]} : vector<12x1024xf32> to vector<2x1024xf32>
    %c5 = arith.constant 5 : index
    %c0_30 = arith.constant 0 : index
    %c0_31 = arith.constant 0 : index
    %51 = vector.load %arg10[%c5, %c0_30, %c0_31] : memref<6x2x1024xf32, #tpu.memory_space<vmem>>, vector<1x2x1024xf32>
    %52 = vector.shape_cast %51 : vector<1x2x1024xf32> to vector<2x1024xf32>
    %53 = vector.shape_cast %50 : vector<2x1024xf32> to vector<1x2x1024xf32>
    tpu.vector_store %arg10[%c5, %c0_30, %c0_31], %53 {strides = array<i32>} : memref<6x2x1024xf32, #tpu.memory_space<vmem>>, vector<1x2x1024xf32>,
    %c0_i32_32 = arith.constant 0 : i32
    %c0_i32_33 = arith.constant 0 : i32
    %54 = tpu.memref_slice %arg8[%arg0, %c0_i32_32, %c0_i32_33] : memref<2x256x1024xbf16, #tpu.memory_space<any>> -> memref<1x256x1024xbf16, #tpu.memory_space<any>>
    %55 = tpu.memref_squeeze %54 : memref<1x256x1024xbf16, #tpu.memory_space<any>> -> memref<256x1024xbf16, #tpu.memory_space<any>>
    tpu.wait_dma2 semaphore(%arg12 : memref<!tpu.dma_semaphore, #tpu.memory_space<semaphore_mem>>) src(%55 : memref<256x1024xbf16, #tpu.memory_space<any>>) dst(%arg11 : memref<256x1024xbf16, #tpu.memory_space<vmem>>)
    %c0_i32_34 = arith.constant 0 : i32
    %56 = arith.cmpi eq, %arg0, %c0_i32_34 : i32
    %57 = arith.extui %56 : i1 to i32
    %c0_i32_35 = arith.constant 0 : i32
    %58 = arith.cmpi ne, %57, %c0_i32_35 : i32
    scf.if %58 {
      %cst_37 = arith.constant 0.000000e+00 : f32
      %62 = vector.broadcast %cst_37 : f32 to vector<2x256xf32>
      %cst_38 = arith.constant 0.000000e+00 : f32
      %63 = vector.broadcast %cst_38 : f32 to vector<2x256xf32>
      %c0_39 = arith.constant 0 : index
      %c0_40 = arith.constant 0 : index
      %c0_41 = arith.constant 0 : index
      %64 = vector.load %arg10[%c0_39, %c0_40, %c0_41] : memref<6x2x1024xf32, #tpu.memory_space<vmem>>, vector<1x2x1024xf32>
      %65 = vector.shape_cast %64 : vector<1x2x1024xf32> to vector<2x1024xf32>
      %66 = arith.truncf %62 : vector<2x256xf32> to vector<2x256xbf16>
      %c0_42 = arith.constant 0 : index
      %c0_43 = arith.constant 0 : index
      %67 = vector.load %arg11[%c0_42, %c0_43] : memref<256x1024xbf16, #tpu.memory_space<vmem>>, vector<256x1024xbf16>
      %cst_44 = arith.constant dense<0.000000e+00> : vector<2x1024xf32>
      %68 = tpu.matmul %66, %67, %cst_44 {dimension_numbers = #tpu.dot_dimension_numbers<[1], [0], [0], [1], [0, 0, 1, 1], [], []>} : vector<2x256xbf16>, vector<256x1024xbf16>, vector<2x1024xf32> -> vector<2x1024xf32>
      %69 = arith.addf %65, %68 : vector<2x1024xf32>
      %70 = vector.extract_strided_slice %69 {offsets = [0, 0], sizes = [2, 256], strides = [1, 1]} : vector<2x1024xf32> to vector<2x256xf32>
      %71 = arith.negf %70 : vector<2x256xf32>
      %72 = math.exp %71 : vector<2x256xf32>
      %cst_45 = arith.constant 1.000000e+00 : f32
      %73 = vector.broadcast %cst_45 : f32 to vector<2x256xf32>
      %74 = arith.addf %73, %72 : vector<2x256xf32>
      %75 = arith.divf %73, %74 : vector<2x256xf32>
      %76 = vector.extract_strided_slice %69 {offsets = [0, 256], sizes = [2, 256], strides = [1, 1]} : vector<2x1024xf32> to vector<2x256xf32>
      %77 = arith.negf %76 : vector<2x256xf32>
      %78 = math.exp %77 : vector<2x256xf32>
      %cst_46 = arith.constant 1.000000e+00 : f32
      %79 = vector.broadcast %cst_46 : f32 to vector<2x256xf32>
      %80 = arith.addf %79, %78 : vector<2x256xf32>
      %81 = arith.divf %79, %80 : vector<2x256xf32>
      %82 = vector.extract_strided_slice %69 {offsets = [0, 512], sizes = [2, 256], strides = [1, 1]} : vector<2x1024xf32> to vector<2x256xf32>
      %83 = math.tanh %82 : vector<2x256xf32>
      %84 = vector.extract_strided_slice %69 {offsets = [0, 768], sizes = [2, 256], strides = [1, 1]} : vector<2x1024xf32> to vector<2x256xf32>
      %85 = arith.negf %84 : vector<2x256xf32>
      %86 = math.exp %85 : vector<2x256xf32>
      %cst_47 = arith.constant 1.000000e+00 : f32
      %87 = vector.broadcast %cst_47 : f32 to vector<2x256xf32>
      %88 = arith.addf %87, %86 : vector<2x256xf32>
      %89 = arith.divf %87, %88 : vector<2x256xf32>
      %90 = arith.mulf %81, %63 : vector<2x256xf32>
      %91 = arith.mulf %75, %83 : vector<2x256xf32>
      %92 = arith.addf %90, %91 : vector<2x256xf32>
      %93 = math.tanh %92 : vector<2x256xf32>
      %94 = arith.mulf %89, %93 : vector<2x256xf32>
      %95 = arith.truncf %94 : vector<2x256xf32> to vector<2x256xbf16>
      %c0_48 = arith.constant 0 : index
      %c0_49 = arith.constant 0 : index
      %c0_50 = arith.constant 0 : index
      %96 = vector.load %arg9[%c0_48, %c0_49, %c0_50] : memref<1x12x256xbf16, #tpu.memory_space<vmem>>, vector<1x2x256xbf16>
      %97 = vector.shape_cast %96 : vector<1x2x256xbf16> to vector<2x256xbf16>
      %98 = vector.shape_cast %95 : vector<2x256xbf16> to vector<1x2x256xbf16>
      tpu.vector_store %arg9[%c0_48, %c0_49, %c0_50], %98 {strides = array<i32>} : memref<1x12x256xbf16, #tpu.memory_space<vmem>>, vector<1x2x256xbf16>,
      %c1_51 = arith.constant 1 : index
      %c0_52 = arith.constant 0 : index
      %c0_53 = arith.constant 0 : index
      %99 = vector.load %arg10[%c1_51, %c0_52, %c0_53] : memref<6x2x1024xf32, #tpu.memory_space<vmem>>, vector<1x2x1024xf32>
      %100 = vector.shape_cast %99 : vector<1x2x1024xf32> to vector<2x1024xf32>
      %101 = arith.truncf %94 : vector<2x256xf32> to vector<2x256xbf16>
      %c0_54 = arith.constant 0 : index
      %c0_55 = arith.constant 0 : index
      %102 = vector.load %arg11[%c0_54, %c0_55] : memref<256x1024xbf16, #tpu.memory_space<vmem>>, vector<256x1024xbf16>
      %cst_56 = arith.constant dense<0.000000e+00> : vector<2x1024xf32>
      %103 = tpu.matmul %101, %102, %cst_56 {dimension_numbers = #tpu.dot_dimension_numbers<[1], [0], [0], [1], [0, 0, 1, 1], [], []>} : vector<2x256xbf16>, vector<256x1024xbf16>, vector<2x1024xf32> -> vector<2x1024xf32>
      %104 = arith.addf %100, %103 : vector<2x1024xf32>
      %105 = vector.extract_strided_slice %104 {offsets = [0, 0], sizes = [2, 256], strides = [1, 1]} : vector<2x1024xf32> to vector<2x256xf32>
      %106 = arith.negf %105 : vector<2x256xf32>
      %107 = math.exp %106 : vector<2x256xf32>
      %cst_57 = arith.constant 1.000000e+00 : f32
      %108 = vector.broadcast %cst_57 : f32 to vector<2x256xf32>
      %109 = arith.addf %108, %107 : vector<2x256xf32>
      %110 = arith.divf %108, %109 : vector<2x256xf32>
      %111 = vector.extract_strided_slice %104 {offsets = [0, 256], sizes = [2, 256], strides = [1, 1]} : vector<2x1024xf32> to vector<2x256xf32>
      %112 = arith.negf %111 : vector<2x256xf32>
      %113 = math.exp %112 : vector<2x256xf32>
      %cst_58 = arith.constant 1.000000e+00 : f32
      %114 = vector.broadcast %cst_58 : f32 to vector<2x256xf32>
      %115 = arith.addf %114, %113 : vector<2x256xf32>
      %116 = arith.divf %114, %115 : vector<2x256xf32>
      %117 = vector.extract_strided_slice %104 {offsets = [0, 512], sizes = [2, 256], strides = [1, 1]} : vector<2x1024xf32> to vector<2x256xf32>
      %118 = math.tanh %117 : vector<2x256xf32>
      %119 = vector.extract_strided_slice %104 {offsets = [0, 768], sizes = [2, 256], strides = [1, 1]} : vector<2x1024xf32> to vector<2x256xf32>
      %120 = arith.negf %119 : vector<2x256xf32>
      %121 = math.exp %120 : vector<2x256xf32>
      %cst_59 = arith.constant 1.000000e+00 : f32
      %122 = vector.broadcast %cst_59 : f32 to vector<2x256xf32>
      %123 = arith.addf %122, %121 : vector<2x256xf32>
      %124 = arith.divf %122, %123 : vector<2x256xf32>
      %125 = arith.mulf %116, %92 : vector<2x256xf32>
      %126 = arith.mulf %110, %118 : vector<2x256xf32>
      %127 = arith.addf %125, %126 : vector<2x256xf32>
      %128 = math.tanh %127 : vector<2x256xf32>
      %129 = arith.mulf %124, %128 : vector<2x256xf32>
      %130 = arith.truncf %129 : vector<2x256xf32> to vector<2x256xbf16>
      %c0_60 = arith.constant 0 : index
      %c2_61 = arith.constant 2 : index
      %c0_62 = arith.constant 0 : index
      %131 = vector.load %arg9[%c0_60, %c2_61, %c0_62] : memref<1x12x256xbf16, #tpu.memory_space<vmem>>, vector<1x2x256xbf16>
      %132 = vector.shape_cast %131 : vector<1x2x256xbf16> to vector<2x256xbf16>
      %133 = vector.shape_cast %130 : vector<2x256xbf16> to vector<1x2x256xbf16>
      tpu.vector_store %arg9[%c0_60, %c2_61, %c0_62], %133 {strides = array<i32>} : memref<1x12x256xbf16, #tpu.memory_space<vmem>>, vector<1x2x256xbf16>,
      %c2_63 = arith.constant 2 : index
      %c0_64 = arith.constant 0 : index
      %c0_65 = arith.constant 0 : index
      %134 = vector.load %arg10[%c2_63, %c0_64, %c0_65] : memref<6x2x1024xf32, #tpu.memory_space<vmem>>, vector<1x2x1024xf32>
      %135 = vector.shape_cast %134 : vector<1x2x1024xf32> to vector<2x1024xf32>
      %136 = arith.truncf %129 : vector<2x256xf32> to vector<2x256xbf16>
      %c0_66 = arith.constant 0 : index
      %c0_67 = arith.constant 0 : index
      %137 = vector.load %arg11[%c0_66, %c0_67] : memref<256x1024xbf16, #tpu.memory_space<vmem>>, vector<256x1024xbf16>
      %cst_68 = arith.constant dense<0.000000e+00> : vector<2x1024xf32>
      %138 = tpu.matmul %136, %137, %cst_68 {dimension_numbers = #tpu.dot_dimension_numbers<[1], [0], [0], [1], [0, 0, 1, 1], [], []>} : vector<2x256xbf16>, vector<256x1024xbf16>, vector<2x1024xf32> -> vector<2x1024xf32>
      %139 = arith.addf %135, %138 : vector<2x1024xf32>
      %140 = vector.extract_strided_slice %139 {offsets = [0, 0], sizes = [2, 256], strides = [1, 1]} : vector<2x1024xf32> to vector<2x256xf32>
      %141 = arith.negf %140 : vector<2x256xf32>
      %142 = math.exp %141 : vector<2x256xf32>
      %cst_69 = arith.constant 1.000000e+00 : f32
      %143 = vector.broadcast %cst_69 : f32 to vector<2x256xf32>
      %144 = arith.addf %143, %142 : vector<2x256xf32>
      %145 = arith.divf %143, %144 : vector<2x256xf32>
      %146 = vector.extract_strided_slice %139 {offsets = [0, 256], sizes = [2, 256], strides = [1, 1]} : vector<2x1024xf32> to vector<2x256xf32>
      %147 = arith.negf %146 : vector<2x256xf32>
      %148 = math.exp %147 : vector<2x256xf32>
      %cst_70 = arith.constant 1.000000e+00 : f32
      %149 = vector.broadcast %cst_70 : f32 to vector<2x256xf32>
      %150 = arith.addf %149, %148 : vector<2x256xf32>
      %151 = arith.divf %149, %150 : vector<2x256xf32>
      %152 = vector.extract_strided_slice %139 {offsets = [0, 512], sizes = [2, 256], strides = [1, 1]} : vector<2x1024xf32> to vector<2x256xf32>
      %153 = math.tanh %152 : vector<2x256xf32>
      %154 = vector.extract_strided_slice %139 {offsets = [0, 768], sizes = [2, 256], strides = [1, 1]} : vector<2x1024xf32> to vector<2x256xf32>
      %155 = arith.negf %154 : vector<2x256xf32>
      %156 = math.exp %155 : vector<2x256xf32>
      %cst_71 = arith.constant 1.000000e+00 : f32
      %157 = vector.broadcast %cst_71 : f32 to vector<2x256xf32>
      %158 = arith.addf %157, %156 : vector<2x256xf32>
      %159 = arith.divf %157, %158 : vector<2x256xf32>
      %160 = arith.mulf %151, %127 : vector<2x256xf32>
      %161 = arith.mulf %145, %153 : vector<2x256xf32>
      %162 = arith.addf %160, %161 : vector<2x256xf32>
      %163 = math.tanh %162 : vector<2x256xf32>
      %164 = arith.mulf %159, %163 : vector<2x256xf32>
      %165 = arith.truncf %164 : vector<2x256xf32> to vector<2x256xbf16>
      %c0_72 = arith.constant 0 : index
      %c4_73 = arith.constant 4 : index
      %c0_74 = arith.constant 0 : index
      %166 = vector.load %arg9[%c0_72, %c4_73, %c0_74] : memref<1x12x256xbf16, #tpu.memory_space<vmem>>, vector<1x2x256xbf16>
      %167 = vector.shape_cast %166 : vector<1x2x256xbf16> to vector<2x256xbf16>
      %168 = vector.shape_cast %165 : vector<2x256xbf16> to vector<1x2x256xbf16>
      tpu.vector_store %arg9[%c0_72, %c4_73, %c0_74], %168 {strides = array<i32>} : memref<1x12x256xbf16, #tpu.memory_space<vmem>>, vector<1x2x256xbf16>,
      %c3_75 = arith.constant 3 : index
      %c0_76 = arith.constant 0 : index
      %c0_77 = arith.constant 0 : index
      %169 = vector.load %arg10[%c3_75, %c0_76, %c0_77] : memref<6x2x1024xf32, #tpu.memory_space<vmem>>, vector<1x2x1024xf32>
      %170 = vector.shape_cast %169 : vector<1x2x1024xf32> to vector<2x1024xf32>
      %171 = arith.truncf %164 : vector<2x256xf32> to vector<2x256xbf16>
      %c0_78 = arith.constant 0 : index
      %c0_79 = arith.constant 0 : index
      %172 = vector.load %arg11[%c0_78, %c0_79] : memref<256x1024xbf16, #tpu.memory_space<vmem>>, vector<256x1024xbf16>
      %cst_80 = arith.constant dense<0.000000e+00> : vector<2x1024xf32>
      %173 = tpu.matmul %171, %172, %cst_80 {dimension_numbers = #tpu.dot_dimension_numbers<[1], [0], [0], [1], [0, 0, 1, 1], [], []>} : vector<2x256xbf16>, vector<256x1024xbf16>, vector<2x1024xf32> -> vector<2x1024xf32>
      %174 = arith.addf %170, %173 : vector<2x1024xf32>
      %175 = vector.extract_strided_slice %174 {offsets = [0, 0], sizes = [2, 256], strides = [1, 1]} : vector<2x1024xf32> to vector<2x256xf32>
      %176 = arith.negf %175 : vector<2x256xf32>
      %177 = math.exp %176 : vector<2x256xf32>
      %cst_81 = arith.constant 1.000000e+00 : f32
      %178 = vector.broadcast %cst_81 : f32 to vector<2x256xf32>
      %179 = arith.addf %178, %177 : vector<2x256xf32>
      %180 = arith.divf %178, %179 : vector<2x256xf32>
      %181 = vector.extract_strided_slice %174 {offsets = [0, 256], sizes = [2, 256], strides = [1, 1]} : vector<2x1024xf32> to vector<2x256xf32>
      %182 = arith.negf %181 : vector<2x256xf32>
      %183 = math.exp %182 : vector<2x256xf32>
      %cst_82 = arith.constant 1.000000e+00 : f32
      %184 = vector.broadcast %cst_82 : f32 to vector<2x256xf32>
      %185 = arith.addf %184, %183 : vector<2x256xf32>
      %186 = arith.divf %184, %185 : vector<2x256xf32>
      %187 = vector.extract_strided_slice %174 {offsets = [0, 512], sizes = [2, 256], strides = [1, 1]} : vector<2x1024xf32> to vector<2x256xf32>
      %188 = math.tanh %187 : vector<2x256xf32>
      %189 = vector.extract_strided_slice %174 {offsets = [0, 768], sizes = [2, 256], strides = [1, 1]} : vector<2x1024xf32> to vector<2x256xf32>
      %190 = arith.negf %189 : vector<2x256xf32>
      %191 = math.exp %190 : vector<2x256xf32>
      %cst_83 = arith.constant 1.000000e+00 : f32
      %192 = vector.broadcast %cst_83 : f32 to vector<2x256xf32>
      %193 = arith.addf %192, %191 : vector<2x256xf32>
      %194 = arith.divf %192, %193 : vector<2x256xf32>
      %195 = arith.mulf %186, %162 : vector<2x256xf32>
      %196 = arith.mulf %180, %188 : vector<2x256xf32>
      %197 = arith.addf %195, %196 : vector<2x256xf32>
      %198 = math.tanh %197 : vector<2x256xf32>
      %199 = arith.mulf %194, %198 : vector<2x256xf32>
      %200 = arith.truncf %199 : vector<2x256xf32> to vector<2x256xbf16>
      %c0_84 = arith.constant 0 : index
      %c6 = arith.constant 6 : index
      %c0_85 = arith.constant 0 : index
      %201 = vector.load %arg9[%c0_84, %c6, %c0_85] : memref<1x12x256xbf16, #tpu.memory_space<vmem>>, vector<1x2x256xbf16>
      %202 = vector.shape_cast %201 : vector<1x2x256xbf16> to vector<2x256xbf16>
      %203 = vector.shape_cast %200 : vector<2x256xbf16> to vector<1x2x256xbf16>
      tpu.vector_store %arg9[%c0_84, %c6, %c0_85], %203 {strides = array<i32>} : memref<1x12x256xbf16, #tpu.memory_space<vmem>>, vector<1x2x256xbf16>,
      %c4_86 = arith.constant 4 : index
      %c0_87 = arith.constant 0 : index
      %c0_88 = arith.constant 0 : index
      %204 = vector.load %arg10[%c4_86, %c0_87, %c0_88] : memref<6x2x1024xf32, #tpu.memory_space<vmem>>, vector<1x2x1024xf32>
      %205 = vector.shape_cast %204 : vector<1x2x1024xf32> to vector<2x1024xf32>
      %206 = arith.truncf %199 : vector<2x256xf32> to vector<2x256xbf16>
      %c0_89 = arith.constant 0 : index
      %c0_90 = arith.constant 0 : index
      %207 = vector.load %arg11[%c0_89, %c0_90] : memref<256x1024xbf16, #tpu.memory_space<vmem>>, vector<256x1024xbf16>
      %cst_91 = arith.constant dense<0.000000e+00> : vector<2x1024xf32>
      %208 = tpu.matmul %206, %207, %cst_91 {dimension_numbers = #tpu.dot_dimension_numbers<[1], [0], [0], [1], [0, 0, 1, 1], [], []>} : vector<2x256xbf16>, vector<256x1024xbf16>, vector<2x1024xf32> -> vector<2x1024xf32>
      %209 = arith.addf %205, %208 : vector<2x1024xf32>
      %210 = vector.extract_strided_slice %209 {offsets = [0, 0], sizes = [2, 256], strides = [1, 1]} : vector<2x1024xf32> to vector<2x256xf32>
      %211 = arith.negf %210 : vector<2x256xf32>
      %212 = math.exp %211 : vector<2x256xf32>
      %cst_92 = arith.constant 1.000000e+00 : f32
      %213 = vector.broadcast %cst_92 : f32 to vector<2x256xf32>
      %214 = arith.addf %213, %212 : vector<2x256xf32>
      %215 = arith.divf %213, %214 : vector<2x256xf32>
      %216 = vector.extract_strided_slice %209 {offsets = [0, 256], sizes = [2, 256], strides = [1, 1]} : vector<2x1024xf32> to vector<2x256xf32>
      %217 = arith.negf %216 : vector<2x256xf32>
      %218 = math.exp %217 : vector<2x256xf32>
      %cst_93 = arith.constant 1.000000e+00 : f32
      %219 = vector.broadcast %cst_93 : f32 to vector<2x256xf32>
      %220 = arith.addf %219, %218 : vector<2x256xf32>
      %221 = arith.divf %219, %220 : vector<2x256xf32>
      %222 = vector.extract_strided_slice %209 {offsets = [0, 512], sizes = [2, 256], strides = [1, 1]} : vector<2x1024xf32> to vector<2x256xf32>
      %223 = math.tanh %222 : vector<2x256xf32>
      %224 = vector.extract_strided_slice %209 {offsets = [0, 768], sizes = [2, 256], strides = [1, 1]} : vector<2x1024xf32> to vector<2x256xf32>
      %225 = arith.negf %224 : vector<2x256xf32>
      %226 = math.exp %225 : vector<2x256xf32>
      %cst_94 = arith.constant 1.000000e+00 : f32
      %227 = vector.broadcast %cst_94 : f32 to vector<2x256xf32>
      %228 = arith.addf %227, %226 : vector<2x256xf32>
      %229 = arith.divf %227, %228 : vector<2x256xf32>
      %230 = arith.mulf %221, %197 : vector<2x256xf32>
      %231 = arith.mulf %215, %223 : vector<2x256xf32>
      %232 = arith.addf %230, %231 : vector<2x256xf32>
      %233 = math.tanh %232 : vector<2x256xf32>
      %234 = arith.mulf %229, %233 : vector<2x256xf32>
      %235 = arith.truncf %234 : vector<2x256xf32> to vector<2x256xbf16>
      %c0_95 = arith.constant 0 : index
      %c8 = arith.constant 8 : index
      %c0_96 = arith.constant 0 : index
      %236 = vector.load %arg9[%c0_95, %c8, %c0_96] : memref<1x12x256xbf16, #tpu.memory_space<vmem>>, vector<1x2x256xbf16>
      %237 = vector.shape_cast %236 : vector<1x2x256xbf16> to vector<2x256xbf16>
      %238 = vector.shape_cast %235 : vector<2x256xbf16> to vector<1x2x256xbf16>
      tpu.vector_store %arg9[%c0_95, %c8, %c0_96], %238 {strides = array<i32>} : memref<1x12x256xbf16, #tpu.memory_space<vmem>>, vector<1x2x256xbf16>,
      %c5_97 = arith.constant 5 : index
      %c0_98 = arith.constant 0 : index
      %c0_99 = arith.constant 0 : index
      %239 = vector.load %arg10[%c5_97, %c0_98, %c0_99] : memref<6x2x1024xf32, #tpu.memory_space<vmem>>, vector<1x2x1024xf32>
      %240 = vector.shape_cast %239 : vector<1x2x1024xf32> to vector<2x1024xf32>
      %241 = arith.truncf %234 : vector<2x256xf32> to vector<2x256xbf16>
      %c0_100 = arith.constant 0 : index
      %c0_101 = arith.constant 0 : index
      %242 = vector.load %arg11[%c0_100, %c0_101] : memref<256x1024xbf16, #tpu.memory_space<vmem>>, vector<256x1024xbf16>
      %cst_102 = arith.constant dense<0.000000e+00> : vector<2x1024xf32>
      %243 = tpu.matmul %241, %242, %cst_102 {dimension_numbers = #tpu.dot_dimension_numbers<[1], [0], [0], [1], [0, 0, 1, 1], [], []>} : vector<2x256xbf16>, vector<256x1024xbf16>, vector<2x1024xf32> -> vector<2x1024xf32>
      %244 = arith.addf %240, %243 : vector<2x1024xf32>
      %245 = vector.extract_strided_slice %244 {offsets = [0, 0], sizes = [2, 256], strides = [1, 1]} : vector<2x1024xf32> to vector<2x256xf32>
      %246 = arith.negf %245 : vector<2x256xf32>
      %247 = math.exp %246 : vector<2x256xf32>
      %cst_103 = arith.constant 1.000000e+00 : f32
      %248 = vector.broadcast %cst_103 : f32 to vector<2x256xf32>
      %249 = arith.addf %248, %247 : vector<2x256xf32>
      %250 = arith.divf %248, %249 : vector<2x256xf32>
      %251 = vector.extract_strided_slice %244 {offsets = [0, 256], sizes = [2, 256], strides = [1, 1]} : vector<2x1024xf32> to vector<2x256xf32>
      %252 = arith.negf %251 : vector<2x256xf32>
      %253 = math.exp %252 : vector<2x256xf32>
      %cst_104 = arith.constant 1.000000e+00 : f32
      %254 = vector.broadcast %cst_104 : f32 to vector<2x256xf32>
      %255 = arith.addf %254, %253 : vector<2x256xf32>
      %256 = arith.divf %254, %255 : vector<2x256xf32>
      %257 = vector.extract_strided_slice %244 {offsets = [0, 512], sizes = [2, 256], strides = [1, 1]} : vector<2x1024xf32> to vector<2x256xf32>
      %258 = math.tanh %257 : vector<2x256xf32>
      %259 = vector.extract_strided_slice %244 {offsets = [0, 768], sizes = [2, 256], strides = [1, 1]} : vector<2x1024xf32> to vector<2x256xf32>
      %260 = arith.negf %259 : vector<2x256xf32>
      %261 = math.exp %260 : vector<2x256xf32>
      %cst_105 = arith.constant 1.000000e+00 : f32
      %262 = vector.broadcast %cst_105 : f32 to vector<2x256xf32>
      %263 = arith.addf %262, %261 : vector<2x256xf32>
      %264 = arith.divf %262, %263 : vector<2x256xf32>
      %265 = arith.mulf %256, %232 : vector<2x256xf32>
      %266 = arith.mulf %250, %258 : vector<2x256xf32>
      %267 = arith.addf %265, %266 : vector<2x256xf32>
      %268 = math.tanh %267 : vector<2x256xf32>
      %269 = arith.mulf %264, %268 : vector<2x256xf32>
      %270 = arith.truncf %269 : vector<2x256xf32> to vector<2x256xbf16>
      %c0_106 = arith.constant 0 : index
      %c10 = arith.constant 10 : index
      %c0_107 = arith.constant 0 : index
      %271 = vector.load %arg9[%c0_106, %c10, %c0_107] : memref<1x12x256xbf16, #tpu.memory_space<vmem>>, vector<1x2x256xbf16>
      %272 = vector.shape_cast %271 : vector<1x2x256xbf16> to vector<2x256xbf16>
      %273 = vector.shape_cast %270 : vector<2x256xbf16> to vector<1x2x256xbf16>
      tpu.vector_store %arg9[%c0_106, %c10, %c0_107], %273 {strides = array<i32>} : memref<1x12x256xbf16, #tpu.memory_space<vmem>>, vector<1x2x256xbf16>,
    } else {
    }
    %c1_i32 = arith.constant 1 : i32
    %59 = arith.cmpi eq, %arg0, %c1_i32 : i32
    %60 = arith.extui %59 : i1 to i32
    %c0_i32_36 = arith.constant 0 : i32
    %61 = arith.cmpi ne, %60, %c0_i32_36 : i32
    scf.if %61 {
      %cst_37 = arith.constant 0.000000e+00 : f32
      %62 = vector.broadcast %cst_37 : f32 to vector<2x256xf32>
      %cst_38 = arith.constant 0.000000e+00 : f32
      %63 = vector.broadcast %cst_38 : f32 to vector<2x256xf32>
      %c5_39 = arith.constant 5 : index
      %c0_40 = arith.constant 0 : index
      %c0_41 = arith.constant 0 : index
      %64 = vector.load %arg10[%c5_39, %c0_40, %c0_41] : memref<6x2x1024xf32, #tpu.memory_space<vmem>>, vector<1x2x1024xf32>
      %65 = vector.shape_cast %64 : vector<1x2x1024xf32> to vector<2x1024xf32>
      %66 = arith.truncf %62 : vector<2x256xf32> to vector<2x256xbf16>
      %c0_42 = arith.constant 0 : index
      %c0_43 = arith.constant 0 : index
      %67 = vector.load %arg11[%c0_42, %c0_43] : memref<256x1024xbf16, #tpu.memory_space<vmem>>, vector<256x1024xbf16>
      %cst_44 = arith.constant dense<0.000000e+00> : vector<2x1024xf32>
      %68 = tpu.matmul %66, %67, %cst_44 {dimension_numbers = #tpu.dot_dimension_numbers<[1], [0], [0], [1], [0, 0, 1, 1], [], []>} : vector<2x256xbf16>, vector<256x1024xbf16>, vector<2x1024xf32> -> vector<2x1024xf32>
      %69 = arith.addf %65, %68 : vector<2x1024xf32>
      %70 = vector.extract_strided_slice %69 {offsets = [0, 0], sizes = [2, 256], strides = [1, 1]} : vector<2x1024xf32> to vector<2x256xf32>
      %71 = arith.negf %70 : vector<2x256xf32>
      %72 = math.exp %71 : vector<2x256xf32>
      %cst_45 = arith.constant 1.000000e+00 : f32
      %73 = vector.broadcast %cst_45 : f32 to vector<2x256xf32>
      %74 = arith.addf %73, %72 : vector<2x256xf32>
      %75 = arith.divf %73, %74 : vector<2x256xf32>
      %76 = vector.extract_strided_slice %69 {offsets = [0, 256], sizes = [2, 256], strides = [1, 1]} : vector<2x1024xf32> to vector<2x256xf32>
      %77 = arith.negf %76 : vector<2x256xf32>
      %78 = math.exp %77 : vector<2x256xf32>
      %cst_46 = arith.constant 1.000000e+00 : f32
      %79 = vector.broadcast %cst_46 : f32 to vector<2x256xf32>
      %80 = arith.addf %79, %78 : vector<2x256xf32>
      %81 = arith.divf %79, %80 : vector<2x256xf32>
      %82 = vector.extract_strided_slice %69 {offsets = [0, 512], sizes = [2, 256], strides = [1, 1]} : vector<2x1024xf32> to vector<2x256xf32>
      %83 = math.tanh %82 : vector<2x256xf32>
      %84 = vector.extract_strided_slice %69 {offsets = [0, 768], sizes = [2, 256], strides = [1, 1]} : vector<2x1024xf32> to vector<2x256xf32>
      %85 = arith.negf %84 : vector<2x256xf32>
      %86 = math.exp %85 : vector<2x256xf32>
      %cst_47 = arith.constant 1.000000e+00 : f32
      %87 = vector.broadcast %cst_47 : f32 to vector<2x256xf32>
      %88 = arith.addf %87, %86 : vector<2x256xf32>
      %89 = arith.divf %87, %88 : vector<2x256xf32>
      %90 = arith.mulf %81, %63 : vector<2x256xf32>
      %91 = arith.mulf %75, %83 : vector<2x256xf32>
      %92 = arith.addf %90, %91 : vector<2x256xf32>
      %93 = math.tanh %92 : vector<2x256xf32>
      %94 = arith.mulf %89, %93 : vector<2x256xf32>
      %95 = arith.truncf %94 : vector<2x256xf32> to vector<2x256xbf16>
      %c0_48 = arith.constant 0 : index
      %c10 = arith.constant 10 : index
      %c0_49 = arith.constant 0 : index
      %96 = vector.load %arg9[%c0_48, %c10, %c0_49] : memref<1x12x256xbf16, #tpu.memory_space<vmem>>, vector<1x2x256xbf16>
      %97 = vector.shape_cast %96 : vector<1x2x256xbf16> to vector<2x256xbf16>
      %98 = vector.shape_cast %95 : vector<2x256xbf16> to vector<1x2x256xbf16>
      tpu.vector_store %arg9[%c0_48, %c10, %c0_49], %98 {strides = array<i32>} : memref<1x12x256xbf16, #tpu.memory_space<vmem>>, vector<1x2x256xbf16>,
      %c4_50 = arith.constant 4 : index
      %c0_51 = arith.constant 0 : index
      %c0_52 = arith.constant 0 : index
      %99 = vector.load %arg10[%c4_50, %c0_51, %c0_52] : memref<6x2x1024xf32, #tpu.memory_space<vmem>>, vector<1x2x1024xf32>
      %100 = vector.shape_cast %99 : vector<1x2x1024xf32> to vector<2x1024xf32>
      %101 = arith.truncf %94 : vector<2x256xf32> to vector<2x256xbf16>
      %c0_53 = arith.constant 0 : index
      %c0_54 = arith.constant 0 : index
      %102 = vector.load %arg11[%c0_53, %c0_54] : memref<256x1024xbf16, #tpu.memory_space<vmem>>, vector<256x1024xbf16>
      %cst_55 = arith.constant dense<0.000000e+00> : vector<2x1024xf32>
      %103 = tpu.matmul %101, %102, %cst_55 {dimension_numbers = #tpu.dot_dimension_numbers<[1], [0], [0], [1], [0, 0, 1, 1], [], []>} : vector<2x256xbf16>, vector<256x1024xbf16>, vector<2x1024xf32> -> vector<2x1024xf32>
      %104 = arith.addf %100, %103 : vector<2x1024xf32>
      %105 = vector.extract_strided_slice %104 {offsets = [0, 0], sizes = [2, 256], strides = [1, 1]} : vector<2x1024xf32> to vector<2x256xf32>
      %106 = arith.negf %105 : vector<2x256xf32>
      %107 = math.exp %106 : vector<2x256xf32>
      %cst_56 = arith.constant 1.000000e+00 : f32
      %108 = vector.broadcast %cst_56 : f32 to vector<2x256xf32>
      %109 = arith.addf %108, %107 : vector<2x256xf32>
      %110 = arith.divf %108, %109 : vector<2x256xf32>
      %111 = vector.extract_strided_slice %104 {offsets = [0, 256], sizes = [2, 256], strides = [1, 1]} : vector<2x1024xf32> to vector<2x256xf32>
      %112 = arith.negf %111 : vector<2x256xf32>
      %113 = math.exp %112 : vector<2x256xf32>
      %cst_57 = arith.constant 1.000000e+00 : f32
      %114 = vector.broadcast %cst_57 : f32 to vector<2x256xf32>
      %115 = arith.addf %114, %113 : vector<2x256xf32>
      %116 = arith.divf %114, %115 : vector<2x256xf32>
      %117 = vector.extract_strided_slice %104 {offsets = [0, 512], sizes = [2, 256], strides = [1, 1]} : vector<2x1024xf32> to vector<2x256xf32>
      %118 = math.tanh %117 : vector<2x256xf32>
      %119 = vector.extract_strided_slice %104 {offsets = [0, 768], sizes = [2, 256], strides = [1, 1]} : vector<2x1024xf32> to vector<2x256xf32>
      %120 = arith.negf %119 : vector<2x256xf32>
      %121 = math.exp %120 : vector<2x256xf32>
      %cst_58 = arith.constant 1.000000e+00 : f32
      %122 = vector.broadcast %cst_58 : f32 to vector<2x256xf32>
      %123 = arith.addf %122, %121 : vector<2x256xf32>
      %124 = arith.divf %122, %123 : vector<2x256xf32>
      %125 = arith.mulf %116, %92 : vector<2x256xf32>
      %126 = arith.mulf %110, %118 : vector<2x256xf32>
      %127 = arith.addf %125, %126 : vector<2x256xf32>
      %128 = math.tanh %127 : vector<2x256xf32>
      %129 = arith.mulf %124, %128 : vector<2x256xf32>
      %130 = arith.truncf %129 : vector<2x256xf32> to vector<2x256xbf16>
      %c0_59 = arith.constant 0 : index
      %c8 = arith.constant 8 : index
      %c0_60 = arith.constant 0 : index
      %131 = vector.load %arg9[%c0_59, %c8, %c0_60] : memref<1x12x256xbf16, #tpu.memory_space<vmem>>, vector<1x2x256xbf16>
      %132 = vector.shape_cast %131 : vector<1x2x256xbf16> to vector<2x256xbf16>
      %133 = vector.shape_cast %130 : vector<2x256xbf16> to vector<1x2x256xbf16>
      tpu.vector_store %arg9[%c0_59, %c8, %c0_60], %133 {strides = array<i32>} : memref<1x12x256xbf16, #tpu.memory_space<vmem>>, vector<1x2x256xbf16>,
      %c3_61 = arith.constant 3 : index
      %c0_62 = arith.constant 0 : index
      %c0_63 = arith.constant 0 : index
      %134 = vector.load %arg10[%c3_61, %c0_62, %c0_63] : memref<6x2x1024xf32, #tpu.memory_space<vmem>>, vector<1x2x1024xf32>
      %135 = vector.shape_cast %134 : vector<1x2x1024xf32> to vector<2x1024xf32>
      %136 = arith.truncf %129 : vector<2x256xf32> to vector<2x256xbf16>
      %c0_64 = arith.constant 0 : index
      %c0_65 = arith.constant 0 : index
      %137 = vector.load %arg11[%c0_64, %c0_65] : memref<256x1024xbf16, #tpu.memory_space<vmem>>, vector<256x1024xbf16>
      %cst_66 = arith.constant dense<0.000000e+00> : vector<2x1024xf32>
      %138 = tpu.matmul %136, %137, %cst_66 {dimension_numbers = #tpu.dot_dimension_numbers<[1], [0], [0], [1], [0, 0, 1, 1], [], []>} : vector<2x256xbf16>, vector<256x1024xbf16>, vector<2x1024xf32> -> vector<2x1024xf32>
      %139 = arith.addf %135, %138 : vector<2x1024xf32>
      %140 = vector.extract_strided_slice %139 {offsets = [0, 0], sizes = [2, 256], strides = [1, 1]} : vector<2x1024xf32> to vector<2x256xf32>
      %141 = arith.negf %140 : vector<2x256xf32>
      %142 = math.exp %141 : vector<2x256xf32>
      %cst_67 = arith.constant 1.000000e+00 : f32
      %143 = vector.broadcast %cst_67 : f32 to vector<2x256xf32>
      %144 = arith.addf %143, %142 : vector<2x256xf32>
      %145 = arith.divf %143, %144 : vector<2x256xf32>
      %146 = vector.extract_strided_slice %139 {offsets = [0, 256], sizes = [2, 256], strides = [1, 1]} : vector<2x1024xf32> to vector<2x256xf32>
      %147 = arith.negf %146 : vector<2x256xf32>
      %148 = math.exp %147 : vector<2x256xf32>
      %cst_68 = arith.constant 1.000000e+00 : f32
      %149 = vector.broadcast %cst_68 : f32 to vector<2x256xf32>
      %150 = arith.addf %149, %148 : vector<2x256xf32>
      %151 = arith.divf %149, %150 : vector<2x256xf32>
      %152 = vector.extract_strided_slice %139 {offsets = [0, 512], sizes = [2, 256], strides = [1, 1]} : vector<2x1024xf32> to vector<2x256xf32>
      %153 = math.tanh %152 : vector<2x256xf32>
      %154 = vector.extract_strided_slice %139 {offsets = [0, 768], sizes = [2, 256], strides = [1, 1]} : vector<2x1024xf32> to vector<2x256xf32>
      %155 = arith.negf %154 : vector<2x256xf32>
      %156 = math.exp %155 : vector<2x256xf32>
      %cst_69 = arith.constant 1.000000e+00 : f32
      %157 = vector.broadcast %cst_69 : f32 to vector<2x256xf32>
      %158 = arith.addf %157, %156 : vector<2x256xf32>
      %159 = arith.divf %157, %158 : vector<2x256xf32>
      %160 = arith.mulf %151, %127 : vector<2x256xf32>
      %161 = arith.mulf %145, %153 : vector<2x256xf32>
      %162 = arith.addf %160, %161 : vector<2x256xf32>
      %163 = math.tanh %162 : vector<2x256xf32>
      %164 = arith.mulf %159, %163 : vector<2x256xf32>
      %165 = arith.truncf %164 : vector<2x256xf32> to vector<2x256xbf16>
      %c0_70 = arith.constant 0 : index
      %c6 = arith.constant 6 : index
      %c0_71 = arith.constant 0 : index
      %166 = vector.load %arg9[%c0_70, %c6, %c0_71] : memref<1x12x256xbf16, #tpu.memory_space<vmem>>, vector<1x2x256xbf16>
      %167 = vector.shape_cast %166 : vector<1x2x256xbf16> to vector<2x256xbf16>
      %168 = vector.shape_cast %165 : vector<2x256xbf16> to vector<1x2x256xbf16>
      tpu.vector_store %arg9[%c0_70, %c6, %c0_71], %168 {strides = array<i32>} : memref<1x12x256xbf16, #tpu.memory_space<vmem>>, vector<1x2x256xbf16>,
      %c2_72 = arith.constant 2 : index
      %c0_73 = arith.constant 0 : index
      %c0_74 = arith.constant 0 : index
      %169 = vector.load %arg10[%c2_72, %c0_73, %c0_74] : memref<6x2x1024xf32, #tpu.memory_space<vmem>>, vector<1x2x1024xf32>
      %170 = vector.shape_cast %169 : vector<1x2x1024xf32> to vector<2x1024xf32>
      %171 = arith.truncf %164 : vector<2x256xf32> to vector<2x256xbf16>
      %c0_75 = arith.constant 0 : index
      %c0_76 = arith.constant 0 : index
      %172 = vector.load %arg11[%c0_75, %c0_76] : memref<256x1024xbf16, #tpu.memory_space<vmem>>, vector<256x1024xbf16>
      %cst_77 = arith.constant dense<0.000000e+00> : vector<2x1024xf32>
      %173 = tpu.matmul %171, %172, %cst_77 {dimension_numbers = #tpu.dot_dimension_numbers<[1], [0], [0], [1], [0, 0, 1, 1], [], []>} : vector<2x256xbf16>, vector<256x1024xbf16>, vector<2x1024xf32> -> vector<2x1024xf32>
      %174 = arith.addf %170, %173 : vector<2x1024xf32>
      %175 = vector.extract_strided_slice %174 {offsets = [0, 0], sizes = [2, 256], strides = [1, 1]} : vector<2x1024xf32> to vector<2x256xf32>
      %176 = arith.negf %175 : vector<2x256xf32>
      %177 = math.exp %176 : vector<2x256xf32>
      %cst_78 = arith.constant 1.000000e+00 : f32
      %178 = vector.broadcast %cst_78 : f32 to vector<2x256xf32>
      %179 = arith.addf %178, %177 : vector<2x256xf32>
      %180 = arith.divf %178, %179 : vector<2x256xf32>
      %181 = vector.extract_strided_slice %174 {offsets = [0, 256], sizes = [2, 256], strides = [1, 1]} : vector<2x1024xf32> to vector<2x256xf32>
      %182 = arith.negf %181 : vector<2x256xf32>
      %183 = math.exp %182 : vector<2x256xf32>
      %cst_79 = arith.constant 1.000000e+00 : f32
      %184 = vector.broadcast %cst_79 : f32 to vector<2x256xf32>
      %185 = arith.addf %184, %183 : vector<2x256xf32>
      %186 = arith.divf %184, %185 : vector<2x256xf32>
      %187 = vector.extract_strided_slice %174 {offsets = [0, 512], sizes = [2, 256], strides = [1, 1]} : vector<2x1024xf32> to vector<2x256xf32>
      %188 = math.tanh %187 : vector<2x256xf32>
      %189 = vector.extract_strided_slice %174 {offsets = [0, 768], sizes = [2, 256], strides = [1, 1]} : vector<2x1024xf32> to vector<2x256xf32>
      %190 = arith.negf %189 : vector<2x256xf32>
      %191 = math.exp %190 : vector<2x256xf32>
      %cst_80 = arith.constant 1.000000e+00 : f32
      %192 = vector.broadcast %cst_80 : f32 to vector<2x256xf32>
      %193 = arith.addf %192, %191 : vector<2x256xf32>
      %194 = arith.divf %192, %193 : vector<2x256xf32>
      %195 = arith.mulf %186, %162 : vector<2x256xf32>
      %196 = arith.mulf %180, %188 : vector<2x256xf32>
      %197 = arith.addf %195, %196 : vector<2x256xf32>
      %198 = math.tanh %197 : vector<2x256xf32>
      %199 = arith.mulf %194, %198 : vector<2x256xf32>
      %200 = arith.truncf %199 : vector<2x256xf32> to vector<2x256xbf16>
      %c0_81 = arith.constant 0 : index
      %c4_82 = arith.constant 4 : index
      %c0_83 = arith.constant 0 : index
      %201 = vector.load %arg9[%c0_81, %c4_82, %c0_83] : memref<1x12x256xbf16, #tpu.memory_space<vmem>>, vector<1x2x256xbf16>
      %202 = vector.shape_cast %201 : vector<1x2x256xbf16> to vector<2x256xbf16>
      %203 = vector.shape_cast %200 : vector<2x256xbf16> to vector<1x2x256xbf16>
      tpu.vector_store %arg9[%c0_81, %c4_82, %c0_83], %203 {strides = array<i32>} : memref<1x12x256xbf16, #tpu.memory_space<vmem>>, vector<1x2x256xbf16>,
      %c1_84 = arith.constant 1 : index
      %c0_85 = arith.constant 0 : index
      %c0_86 = arith.constant 0 : index
      %204 = vector.load %arg10[%c1_84, %c0_85, %c0_86] : memref<6x2x1024xf32, #tpu.memory_space<vmem>>, vector<1x2x1024xf32>
      %205 = vector.shape_cast %204 : vector<1x2x1024xf32> to vector<2x1024xf32>
      %206 = arith.truncf %199 : vector<2x256xf32> to vector<2x256xbf16>
      %c0_87 = arith.constant 0 : index
      %c0_88 = arith.constant 0 : index
      %207 = vector.load %arg11[%c0_87, %c0_88] : memref<256x1024xbf16, #tpu.memory_space<vmem>>, vector<256x1024xbf16>
      %cst_89 = arith.constant dense<0.000000e+00> : vector<2x1024xf32>
      %208 = tpu.matmul %206, %207, %cst_89 {dimension_numbers = #tpu.dot_dimension_numbers<[1], [0], [0], [1], [0, 0, 1, 1], [], []>} : vector<2x256xbf16>, vector<256x1024xbf16>, vector<2x1024xf32> -> vector<2x1024xf32>
      %209 = arith.addf %205, %208 : vector<2x1024xf32>
      %210 = vector.extract_strided_slice %209 {offsets = [0, 0], sizes = [2, 256], strides = [1, 1]} : vector<2x1024xf32> to vector<2x256xf32>
      %211 = arith.negf %210 : vector<2x256xf32>
      %212 = math.exp %211 : vector<2x256xf32>
      %cst_90 = arith.constant 1.000000e+00 : f32
      %213 = vector.broadcast %cst_90 : f32 to vector<2x256xf32>
      %214 = arith.addf %213, %212 : vector<2x256xf32>
      %215 = arith.divf %213, %214 : vector<2x256xf32>
      %216 = vector.extract_strided_slice %209 {offsets = [0, 256], sizes = [2, 256], strides = [1, 1]} : vector<2x1024xf32> to vector<2x256xf32>
      %217 = arith.negf %216 : vector<2x256xf32>
      %218 = math.exp %217 : vector<2x256xf32>
      %cst_91 = arith.constant 1.000000e+00 : f32
      %219 = vector.broadcast %cst_91 : f32 to vector<2x256xf32>
      %220 = arith.addf %219, %218 : vector<2x256xf32>
      %221 = arith.divf %219, %220 : vector<2x256xf32>
      %222 = vector.extract_strided_slice %209 {offsets = [0, 512], sizes = [2, 256], strides = [1, 1]} : vector<2x1024xf32> to vector<2x256xf32>
      %223 = math.tanh %222 : vector<2x256xf32>
      %224 = vector.extract_strided_slice %209 {offsets = [0, 768], sizes = [2, 256], strides = [1, 1]} : vector<2x1024xf32> to vector<2x256xf32>
      %225 = arith.negf %224 : vector<2x256xf32>
      %226 = math.exp %225 : vector<2x256xf32>
      %cst_92 = arith.constant 1.000000e+00 : f32
      %227 = vector.broadcast %cst_92 : f32 to vector<2x256xf32>
      %228 = arith.addf %227, %226 : vector<2x256xf32>
      %229 = arith.divf %227, %228 : vector<2x256xf32>
      %230 = arith.mulf %221, %197 : vector<2x256xf32>
      %231 = arith.mulf %215, %223 : vector<2x256xf32>
      %232 = arith.addf %230, %231 : vector<2x256xf32>
      %233 = math.tanh %232 : vector<2x256xf32>
      %234 = arith.mulf %229, %233 : vector<2x256xf32>
      %235 = arith.truncf %234 : vector<2x256xf32> to vector<2x256xbf16>
      %c0_93 = arith.constant 0 : index
      %c2_94 = arith.constant 2 : index
      %c0_95 = arith.constant 0 : index
      %236 = vector.load %arg9[%c0_93, %c2_94, %c0_95] : memref<1x12x256xbf16, #tpu.memory_space<vmem>>, vector<1x2x256xbf16>
      %237 = vector.shape_cast %236 : vector<1x2x256xbf16> to vector<2x256xbf16>
      %238 = vector.shape_cast %235 : vector<2x256xbf16> to vector<1x2x256xbf16>
      tpu.vector_store %arg9[%c0_93, %c2_94, %c0_95], %238 {strides = array<i32>} : memref<1x12x256xbf16, #tpu.memory_space<vmem>>, vector<1x2x256xbf16>,
      %c0_96 = arith.constant 0 : index
      %c0_97 = arith.constant 0 : index
      %c0_98 = arith.constant 0 : index
      %239 = vector.load %arg10[%c0_96, %c0_97, %c0_98] : memref<6x2x1024xf32, #tpu.memory_space<vmem>>, vector<1x2x1024xf32>
      %240 = vector.shape_cast %239 : vector<1x2x1024xf32> to vector<2x1024xf32>
      %241 = arith.truncf %234 : vector<2x256xf32> to vector<2x256xbf16>
      %c0_99 = arith.constant 0 : index
      %c0_100 = arith.constant 0 : index
      %242 = vector.load %arg11[%c0_99, %c0_100] : memref<256x1024xbf16, #tpu.memory_space<vmem>>, vector<256x1024xbf16>
      %cst_101 = arith.constant dense<0.000000e+00> : vector<2x1024xf32>
      %243 = tpu.matmul %241, %242, %cst_101 {dimension_numbers = #tpu.dot_dimension_numbers<[1], [0], [0], [1], [0, 0, 1, 1], [], []>} : vector<2x256xbf16>, vector<256x1024xbf16>, vector<2x1024xf32> -> vector<2x1024xf32>
      %244 = arith.addf %240, %243 : vector<2x1024xf32>
      %245 = vector.extract_strided_slice %244 {offsets = [0, 0], sizes = [2, 256], strides = [1, 1]} : vector<2x1024xf32> to vector<2x256xf32>
      %246 = arith.negf %245 : vector<2x256xf32>
      %247 = math.exp %246 : vector<2x256xf32>
      %cst_102 = arith.constant 1.000000e+00 : f32
      %248 = vector.broadcast %cst_102 : f32 to vector<2x256xf32>
      %249 = arith.addf %248, %247 : vector<2x256xf32>
      %250 = arith.divf %248, %249 : vector<2x256xf32>
      %251 = vector.extract_strided_slice %244 {offsets = [0, 256], sizes = [2, 256], strides = [1, 1]} : vector<2x1024xf32> to vector<2x256xf32>
      %252 = arith.negf %251 : vector<2x256xf32>
      %253 = math.exp %252 : vector<2x256xf32>
      %cst_103 = arith.constant 1.000000e+00 : f32
      %254 = vector.broadcast %cst_103 : f32 to vector<2x256xf32>
      %255 = arith.addf %254, %253 : vector<2x256xf32>
      %256 = arith.divf %254, %255 : vector<2x256xf32>
      %257 = vector.extract_strided_slice %244 {offsets = [0, 512], sizes = [2, 256], strides = [1, 1]} : vector<2x1024xf32> to vector<2x256xf32>
      %258 = math.tanh %257 : vector<2x256xf32>
      %259 = vector.extract_strided_slice %244 {offsets = [0, 768], sizes = [2, 256], strides = [1, 1]} : vector<2x1024xf32> to vector<2x256xf32>
      %260 = arith.negf %259 : vector<2x256xf32>
      %261 = math.exp %260 : vector<2x256xf32>
      %cst_104 = arith.constant 1.000000e+00 : f32
      %262 = vector.broadcast %cst_104 : f32 to vector<2x256xf32>
      %263 = arith.addf %262, %261 : vector<2x256xf32>
      %264 = arith.divf %262, %263 : vector<2x256xf32>
      %265 = arith.mulf %256, %232 : vector<2x256xf32>
      %266 = arith.mulf %250, %258 : vector<2x256xf32>
      %267 = arith.addf %265, %266 : vector<2x256xf32>
      %268 = math.tanh %267 : vector<2x256xf32>
      %269 = arith.mulf %264, %268 : vector<2x256xf32>
      %270 = arith.truncf %269 : vector<2x256xf32> to vector<2x256xbf16>
      %c0_105 = arith.constant 0 : index
      %c0_106 = arith.constant 0 : index
      %c0_107 = arith.constant 0 : index
      %271 = vector.load %arg9[%c0_105, %c0_106, %c0_107] : memref<1x12x256xbf16, #tpu.memory_space<vmem>>, vector<1x2x256xbf16>
      %272 = vector.shape_cast %271 : vector<1x2x256xbf16> to vector<2x256xbf16>
      %273 = vector.shape_cast %270 : vector<2x256xbf16> to vector<1x2x256xbf16>
      tpu.vector_store %arg9[%c0_105, %c0_106, %c0_107], %273 {strides = array<i32>} : memref<1x12x256xbf16, #tpu.memory_space<vmem>>, vector<1x2x256xbf16>,
    } else {
    }
    return
  }
  func.func @transform_0(%arg0: i32) -> (i32, i32) {
    %c0_i32 = arith.constant 0 : i32
    %c0_i32_0 = arith.constant 0 : i32
    %c0_i32_1 = arith.constant 0 : i32
    return %c0_i32, %c0_i32_0 : i32, i32
  }
  func.func @transform_1(%arg0: i32) -> (i32, i32) {
    %c0_i32 = arith.constant 0 : i32
    %c0_i32_0 = arith.constant 0 : i32
    %c0_i32_1 = arith.constant 0 : i32
    return %c0_i32, %c0_i32_0 : i32, i32
  }
  func.func @transform_2(%arg0: i32) -> (i32, i32) {
    %c0_i32 = arith.constant 0 : i32
    %c0_i32_0 = arith.constant 0 : i32
    %c0_i32_1 = arith.constant 0 : i32
    return %c0_i32, %c0_i32_0 : i32, i32
  }
  func.func @transform_3(%arg0: i32) -> (i32, i32) {
    %c0_i32 = arith.constant 0 : i32
    %c0_i32_0 = arith.constant 0 : i32
    %c0_i32_1 = arith.constant 0 : i32
    return %c0_i32, %c0_i32_0 : i32, i32
  }
  func.func @transform_4(%arg0: i32) -> (i32, i32, i32) {
    %c0_i32 = arith.constant 0 : i32
    %c0_i32_0 = arith.constant 0 : i32
    %c0_i32_1 = arith.constant 0 : i32
    return %arg0, %c0_i32, %c0_i32_0 : i32, i32, i32
  }
  func.func @transform_5(%arg0: i32) -> (i32, i32, i32) {
    %c0_i32 = arith.constant 0 : i32
    %c0_i32_0 = arith.constant 0 : i32
    %c0_i32_1 = arith.constant 0 : i32
    return %arg0, %c0_i32, %c0_i32_0 : i32, i32, i32
  }
  func.func @transform_6(%arg0: i32) -> (i32, i32, i32) {
    %c0_i32 = arith.constant 0 : i32
    %c0_i32_0 = arith.constant 0 : i32
    %c0_i32_1 = arith.constant 0 : i32
    return %arg0, %c0_i32, %c0_i32_0 : i32, i32, i32
  }
  func.func @transform_8(%arg0: i32) -> (i32, i32, i32) {
    %c0_i32 = arith.constant 0 : i32
    %c0_i32_0 = arith.constant 0 : i32
    %c0_i32_1 = arith.constant 0 : i32
    return %arg0, %c0_i32, %c0_i32_0 : i32, i32, i32
  }
}

</mosaic_0001>

<bundles_post_ra>
// kernel: lstm_tagger_forward.3
= control target key start
LH: loop header
LB: loop body
LE: loop exit
PB: predicated region body
PF: predicated region fallthrough
CT: control target
= control target key end

     0   :  { %vm388_vm0 = vcmask 1045504   ;;  %vm411_vm1 = vcmask 1047558   ;;  %vm413_vm2 = vcmask 1043456   ;;  %vm430_vm3 = vcmask 1041408   ;;  %s770_s1 = inlined_call_operand.vmem [shape: bf16[2,256,128], index: 1, kind: input, shape index: {}]   ;;  %s771_s0 = inlined_call_operand.vmem [shape: bf16[2,12,256], index: 0, kind: input, shape index: {}]   ;;  %s772_s2 = inlined_call_operand.vmem [shape: f32[1,128], index: 2, kind: input, shape index: {}]   ;;  %s773_s3 = inlined_call_operand.vmem [shape: f32[2,6,128], index: 3, kind: output, shape index: {}]  }
   0x1   :  { %v571_v0 = vld [vmem:[%s770_s1 + $0xc0] sm:$0xff]   ;;  %v575_v4 = vld [vmem:[%s770_s1 + $0xc8] sm:$0xff]   ;;  %v579_v8 = vld [vmem:[%s770_s1 + $0xd0] sm:$0xff]  }
   0x2   :  { %v572_v1 = vld [vmem:[%s770_s1 + $0x40] sm:$0xff]   ;;  %527 = vmatprep.subr.bf16.mxu0 %v571_v0  ;;  %v576_v5 = vld [vmem:[%s770_s1 + $0x48] sm:$0xff]   ;;  %v580_v9 = vld [vmem:[%s770_s1 + $0x50] sm:$0xff]  }
   0x3   :  { %v573_v2 = vld [vmem:[%s770_s1 + $0x80] sm:$0xff]   ;;  %549 = vmatprep.subr.bf16.mxu1 %v572_v1  ;;  %v577_v6 = vld [vmem:[%s770_s1 + $0x88] sm:$0xff]   ;;  %v581_v10 = vld [vmem:[%s770_s1 + $0x90] sm:$0xff]  }
   0x4   :  { %v574_v3 = vld [vmem:[%s770_s1] sm:$0xff]   ;;  %528 = vmatpush3.bf16.msra.mxu0 %v573_v2  ;;  %v578_v7 = vld [vmem:[%s770_s1 + $0x8] sm:$0xff]   ;;  %v582_v11 = vld [vmem:[%s770_s1 + $0x10] sm:$0xff]  }
   0x5   :  { %550 = vmatpush3.bf16.msra.mxu1 %v574_v3  ;;  %529 = vmatprep.subr.bf16.mxu0 %v575_v4  ;;  %v583_v12 = vld [vmem:[%s770_s1 + $0xd8] sm:$0xff]   ;;  %v587_v16 = vld [vmem:[%s770_s1 + $0xe0] sm:$0xff]   ;;  %v591_v20 = vld [vmem:[%s770_s1 + $0xe8] sm:$0xff]  }
   0x6   :  { %551 = vmatprep.subr.bf16.mxu1 %v576_v5  ;;  %v584_v13 = vld [vmem:[%s770_s1 + $0x58] sm:$0xff]   ;;  %v588_v17 = vld [vmem:[%s770_s1 + $0x60] sm:$0xff]   ;;  %v592_v21 = vld [vmem:[%s770_s1 + $0x68] sm:$0xff]  }
   0x7   :  { %v585_v14 = vld [vmem:[%s770_s1 + $0x98] sm:$0xff]   ;;  %v589_v18 = vld [vmem:[%s770_s1 + $0xa0] sm:$0xff]   ;;  %v593_v22 = vld [vmem:[%s770_s1 + $0xa8] sm:$0xff]  }
   0x8   :  { %530 = vmatpush3.bf16.msra.mxu0 %v577_v6  ;;  %v586_v15 = vld [vmem:[%s770_s1 + $0x18] sm:$0xff]   ;;  %v590_v19 = vld [vmem:[%s770_s1 + $0x20] sm:$0xff]   ;;  %v594_v23 = vld [vmem:[%s770_s1 + $0x28] sm:$0xff]  }
   0x9   :  { %552 = vmatpush3.bf16.msra.mxu1 %v578_v7  ;;  %531 = vmatprep.subr.bf16.mxu0 %v579_v8  ;;  %v595_v24 = vld [vmem:[%s770_s1 + $0xf0] sm:$0xff]   ;;  %v599_v28 = vld [vmem:[%s770_s1 + $0xf8] sm:$0xff]   ;;  %v606_v34 = vld [vmem:[%s771_s0] ss:$8 sps:$4 sm:$0x3f]  }
   0xa   :  { %553 = vmatprep.subr.bf16.mxu1 %v580_v9  ;;  %v596_v25 = vld [vmem:[%s770_s1 + $0x70] sm:$0xff]   ;;  %v600_v29 = vld [vmem:[%s770_s1 + $0x78] sm:$0xff]   ;;  %v608_v35 = vld [vmem:[%s771_s0 + $0x4] ss:$8 sps:$4 sm:$0x3f]  }
   0xb   :  { %v597_v26 = vld [vmem:[%s770_s1 + $0xb0] sm:$0xff]   ;;  %v601_v30 = vld [vmem:[%s770_s1 + $0xb8] sm:$0xff]   ;;  %370 = vmatprep.mubr.bf16.mxu1 %v608_v35  ;;  %v524_v45 = vld [vmem:[%s772_s2] ss:$0 sm:$0xff] }
   0xc   :  { %532 = vmatpush3.bf16.msra.mxu0 %v581_v10  ;;  %v598_v27 = vld [vmem:[%s770_s1 + $0x30] sm:$0xff]   ;;  %v602_v31 = vld [vmem:[%s770_s1 + $0x38] sm:$0xff]  }
   0xd   :  { %554 = vmatpush3.bf16.msra.mxu1 %v582_v11  ;;  %533 = vmatprep.subr.bf16.mxu0 %v583_v12  ;;  %v603_v32 = vld [vmem:[%s771_s0 + $0x10] ss:$8 sps:$4 sm:$0x3f]   ;;  %v605_v33 = vld [vmem:[%s771_s0 + $0x14] ss:$8 sps:$4 sm:$0x3f]  }
   0xe   :  { %555 = vmatprep.subr.bf16.mxu1 %v584_v13  ;;  %223 = vmatprep.mubr.bf16.mxu0 %v605_v33 }
  0x10   :  { %534 = vmatpush3.bf16.msra.mxu0 %v585_v14 }
  0x11   :  { %556 = vmatpush3.bf16.msra.mxu1 %v586_v15  ;;  %535 = vmatprep.subr.bf16.mxu0 %v587_v16 }
  0x12   :  { %557 = vmatprep.subr.bf16.mxu1 %v588_v17 }
  0x14   :  { %536 = vmatpush3.bf16.msra.mxu0 %v589_v18 }
  0x15   :  { %558 = vmatpush3.bf16.msra.mxu1 %v590_v19  ;;  %537 = vmatprep.subr.bf16.mxu0 %v591_v20 }
  0x16   :  { %559 = vmatprep.subr.bf16.mxu1 %v592_v21 }
  0x18   :  { %538 = vmatpush3.bf16.msra.mxu0 %v593_v22 }
  0x19   :  { %560 = vmatpush3.bf16.msra.mxu1 %v594_v23  ;;  %539 = vmatprep.subr.bf16.mxu0 %v595_v24 }
  0x1a   :  { %561 = vmatprep.subr.bf16.mxu1 %v596_v25 }
  0x1c   :  { %540 = vmatpush3.bf16.msra.mxu0 %v597_v26 }
  0x1d   :  { %562 = vmatpush3.bf16.msra.mxu1 %v598_v27  ;;  %541 = vmatprep.subr.bf16.mxu0 %v599_v28 }
  0x1e   :  { %563 = vmatprep.subr.bf16.mxu1 %v600_v29 }
  0x20   :  { %542 = vmatpush3.bf16.msra.mxu0 %v601_v30 }
  0x21   :  { %564 = vmatpush3.bf16.msra.mxu1 %v602_v31 }
  0x23   :  { %224 = vmatmul.mubr.bf16.vlgmr.msra.gmra.mrb[0].mxu0 %v603_v32 }
  0x24   :  { %371 = vmatmul.mubr.bf16.vlgmr.msra.gmra.mrb[0].mxu1 %v606_v34 }
  0xf6   :  { %v543_v36 = vpop.f32.mrb[0].mxu0 }
  0xf7   :  { %v565_v37 = vpop.f32.mrb[0].mxu1  ;;  %v544_v38 = vpop.f32.mrb[1].mxu0 }
  0xf8   :  { %v545_v39 = vadd.f32 %v544_v38, %v543_v36  ;;  %v566_v40 = vpop.f32.mrb[1].mxu1  ;;  %v546_v41 = vpop.f32.mrb[2].mxu0 }
  0xf9   :  { %v567_v42 = vadd.f32 %v566_v40, %v565_v37  ;;  %v568_v43 = vpop.f32.mrb[2].mxu1  ;;  %v547_v44 = vpop.f32.mrb[3].mxu0 }
  0xfa   :  { %v548_v46 = vadd.f32 %v547_v44, %v546_v41  ;;  %v569_v47 = vpop.f32.mrb[3].mxu1 }
  0xfb   :  { %v373_v48 = vadd.f32 %v567_v42, %v545_v39  ;;  %v570_v49 = vadd.f32 %v569_v47, %v568_v43 }
  0xfd   :  { %v750_v50 = vadd.f32 %v524_v45, %v373_v48  ;;  %v376_v51 = vadd.f32 %v570_v49, %v548_v46 }
  0xff   :  { %v387_v52 = vadd.f32 %v524_v45, %v376_v51  ;;  %v389_v53 = vsel %vm388_vm0, %v750_v50, -inf  ;;  %v412_v55 = vsel %vm411_vm1, %v750_v50, -inf }
 0x100   :  { %v390_v54 = vrot.slane %v389_v53, 4 }
 0x101   :  { %v414_v56 = vsel %vm413_vm2, %v387_v52, -inf }
 0x102   :  { %v391_v57 = vmax.f32 %v389_v53, %v390_v54  ;;  %v415_v58 = vmax.f32 %v412_v55, %v414_v56 }
 0x104   :  { %v392_v59 = vrot.slane %v391_v57, 2  ;;  %v416_v60 = vrot.slane %v415_v58, 4 }
 0x106   :  { %v393_v61 = vmax.f32 %v391_v57, %v392_v59  ;;  %v417_v62 = vmax.f32 %v415_v58, %v416_v60 }
 0x108   :  { %v394_v63 = vrot.slane %v393_v61, 1  ;;  %v418_v0 = vrot.slane %v417_v62, 2 }
 0x10a   :  { %v395_v1 = vmax.f32 %v393_v61, %v394_v63  ;;  %v419_v2 = vmax.f32 %v417_v62, %v418_v0 }
 0x10c   :  { %v396_v3 = vsub.f32 %v750_v50, %v395_v1  ;;  %v420_v4 = vrot.slane %v419_v2, 1 }
 0x10e   :  { %v397_v5 = vmul.f32 1.442695, %v396_v3  ;;  %v421_v6 = vmax.f32 %v419_v2, %v420_v4 }
 0x110   :  { %609 = vpow2.f32 %v397_v5  ;;  %v422_v7 = vsub.f32 %v750_v50, %v421_v6  ;;  %v423_v8 = vsub.f32 %v387_v52, %v421_v6 }
 0x112   :  { %v424_v9 = vmul.f32 1.442695, %v422_v7  ;;  %v426_v10 = vmul.f32 1.442695, %v423_v8 }
 0x114   :  { %611 = vpow2.f32 %v424_v9 }
 0x115   :  { %613 = vpow2.f32 %v426_v10 }
 0x11a   :  { %v610_v11 = vpop.eup %609 }
 0x11b   :  { %v399_v12 = vsel %vm388_vm0, %v610_v11, 0.0 }
 0x11c   :  { %v400_v13 = vrot.slane %v399_v12, 4 }
 0x11e   :  { %v612_v14 = vpop.eup %611  ;;  %v401_v15 = vadd.f32 %v400_v13, %v399_v12 }
 0x11f   :  { %v614_v16 = vpop.eup %613  ;;  %v431_v17 = vrot.slane %v612_v14, 6 }
 0x120   :  { %v402_v18 = vrot.slane %v401_v15, 2  ;;  %v432_v19 = vrot.slane %v614_v16, 6 }
 0x122   :  { %v403_v20 = vadd.f32 %v402_v18, %v401_v15  ;;  %v433_v21 = vsel %vm430_vm3, %v431_v17, %v432_v19 }
 0x123   :  { %v435_v22 = vsel %vm388_vm0, %v433_v21, 0.0 }
 0x124   :  { %v404_v23 = vrot.slane %v403_v20, 1  ;;  %v436_v24 = vrot.slane %v435_v22, 4 }
 0x126   :  { %v405_v25 = vadd.f32 %v404_v23, %v403_v20  ;;  %v437_v26 = vadd.f32 %v436_v24, %v435_v22 }
 0x128   :  { %615 = vlog2.f32 %v405_v25  ;;  %v438_v27 = vrot.slane %v437_v26, 2 }
 0x12a   :  { %v439_v28 = vadd.f32 %v438_v27, %v437_v26 }
 0x12c   :  { %v440_v29 = vrot.slane %v439_v28, 1 }
 0x12e   :  { %v441_v30 = vadd.f32 %v440_v29, %v439_v28 }
 0x130   :  { %617 = vlog2.f32 %v441_v30 }
 0x132   :  { %v616_v31 = vpop.eup %615 }
 0x133   :  { %v407_v32 = vmul.f32 0.6931472, %v616_v31 }
 0x135   :  { %v408_v33 = vadd.f32 %v407_v32, %v395_v1 }
 0x137   :  { %v409_v34 = vsub.f32 %v750_v50, %v408_v33 }
 0x139   :  { %410 = vst [vmem:[%s773_s3] sm:$0x3f] %v409_v34 }
 0x13a   :  { %v618_v35 = vpop.eup %617 }
 0x13b   :  { %v443_v36 = vmul.f32 0.6931472, %v618_v35 }
 0x13d   :  { %v444_v37 = vadd.f32 %v443_v36, %v421_v6 }
 0x13f   :  { %v445_v38 = vsub.f32 %v750_v50, %v444_v37  ;;  %v446_v39 = vsub.f32 %v387_v52, %v444_v37 }
 0x141   :  { %525 = vst [vmem:[%s773_s3 + $0x2] sm:$0xc0] %v445_v38  ;;  %526 = vst [vmem:[%s773_s3 + $0xa] sm:$0xf] %v446_v39 }

// kernel: lstm_tagger_forward.2
= control target key start
LH: loop header
LB: loop body
LE: loop exit
PB: predicated region body
PF: predicated region fallthrough
CT: control target
= control target key end

     0   :  { %13 = vsyncpa [#allocation6], 0  ;;  %s11509_s0 = inlined_call_operand.vmem [shape: bf16[60,128], index: 0, kind: input, shape index: {}]   ;;  %s11510_s1 = inlined_call_operand.vmem [shape: bf16[12,256], index: 1, kind: input, shape index: {}]   ;;  %s11511_s2 = inlined_call_operand.vmem [shape: bf16[128,128], index: 2, kind: input, shape index: {}]   ;;  %s11512_s3 = inlined_call_operand.vmem [shape: f32[1,128], index: 3, kind: input, shape index: {}]   ;;  %s11513_s4 = inlined_call_operand.vmem [shape: bf16[2,256,1024], index: 4, kind: input, shape index: {}]   ;;  %s11514_s5 = inlined_call_operand.hbm [shape: bf16[2,128,1024], index: 5, kind: input, shape index: {}]   ;;  %s11515_s6 = inlined_call_operand.vmem [shape: f32[2,1,1024], index: 6, kind: input, shape index: {}]   ;;  %s11516_s7 = inlined_call_operand.hbm [shape: bf16[2,256,1024], index: 7, kind: input, shape index: {}]   ;;  %s11517_s8 = inlined_call_operand.vmem [shape: bf16[2,12,256], index: 8, kind: output, shape index: {}]  }
   0x1   :  { %15 = vsyncpa [#allocation6 + $0x1], 0  ;;  %s7823_s27 = smov 0   ;;  %s7825_s28 = smov 0  }
   0x2   :  { %s7827_s29 = smov 0   ;;  %s7829_s30 = smov 0  }
   0x3 LB: > { %s7842_s9 = sadd.s32 4294967295, %s7759_s30   ;;  %s7845_s10 = sadd.s32 1, %s7759_s30   ;;  %s7759_s30 = sphi %s7829_s30, %s12730_s30   ;;  %s7755_s29 = sphi %s7827_s29, %s12729_s29   ;;  %s7751_s28 = sphi %s7825_s28, %s12728_s28   ;;  %s7747_s27 = sphi %s7823_s27, %s12727_s27  }
   0x4   : > { %s135_s11 = ssub.s32 %s7759_s30, %s7845_s10  ;;  %s138_s12 = sadd.s32 1, %s7755_s29 }
   0x5   : > { %p136_p0 = scmp.eq.s32.totalorder %s135_s11, 0  ;;  %p145_p1 = scmp.ne.s32.totalorder %s7755_s29, %s7751_s28 }
   0x6   : > { %p146_p2 = scmp.eq.s32.totalorder %s7759_s30, 0  ;;  %p151_p3 = scmp.ne.s32.totalorder %s7751_s28, %s7747_s27 }
   0x7   : > { %s7855_s13 = scalar_select %p136_p0, %s7755_s29, %s138_s12  }
   0x8   : > { %p147_p4 = por %p146_p2, %p145_p1  ;;  %p152_p5 = scmp.eq.s32.totalorder %s7842_s9, 0 }
   0x9   : > { %p7437_p6 = scmp.lt.s32.totalorder %s7759_s30, 2  ;;  %s247_s15 = sand.u32 1, %s7755_s29  }
   0xa   : > { %p7859_p7 = por %p152_p5, %p151_p3  ;;  %s7089_s16 = sshll.u32 %s247_s15, 9 }
   0xb   : > { %s7363_s17 = sshll.u32 %s7759_s30, 13  ;;  %s251_s21 = scalar_lea.vmem [#allocation5], %s7089_s16 }
   0xc   : > { %s7868_s20 = scalar_lea.hbm %s11514_s5, %s7363_s17  ;;  %s258_s22 = sshll.u32 %s251_s21, 4  ;;  %s7870_s22 = int_to_ptr.vmem [resolvable:$true] %s258_s22 }
   0xd   : > { %p7872_p8 = pnand %p7437_p6, %p147_p4  ;;  %s7877_s24 = scalar_lea.sflag [#allocation6], %s247_s15 }
   0xe   : > { %s7693_s25 = scalar_lea.hbm %s7868_s20, 8192  ;;  %s7698_s11 = scalar_lea.hbm %s11514_s5, 16384 }
   0xf   : > { %p7694_p10 = scmp.ne.s32.totalorder %s7868_s20, %s7693_s25  ;;  %p7695_p11 = pneg %p7872_p8 }
  0x10   : > { %p7699_p0 = scmp.lt.u32.totalorder %s7868_s20, %s11514_s5  ;;  %p7700_p1 = scmp.lt.u32.totalorder %s7698_s11, %s7693_s25 }
  0x11   : > { %p7696_p12 = pnand %p7695_p11, %p7694_p10  ;;  %p7702_p3 = scmp.lt.u32.totalorder %s7693_s25, %s7868_s20 }
  0x12   : > { %p7701_p2 = por %p7700_p1, %p7699_p0 }
  0x13   : > { %p7697_p13 = pneg %p7696_p12 }
  0x14   : > { %p7703_p4 = por %p7702_p3, %p7701_p2 }
  0x16   : > { %p7704_p5 = pnand %p7703_p4, %p7697_p13 }
  0x18   : > { %7707 = shalt.err (!%p7704_p5)
}
  0x19   : > { %s7708_s15 = scalar_lea.vmem %s7870_s22, 8192  ;;  %s7761_s17 = smov [#allocation5]  }
  0x1a   : > { %p7709_p6 = scmp.ne.s32.totalorder %s7870_s22, %s7708_s15  ;;  %s7713_s18 = sshll.u32 %s7761_s17, 4  ;;  %s7714_s18 = int_to_ptr.vmem [resolvable:$false] %s7713_s18 }
  0x1b   : > { %s7715_s19 = scalar_lea.vmem %s7714_s18, 16384  ;;  %p7716_p9 = scmp.lt.s32.totalorder %s7870_s22, %s7714_s18 }
  0x1c   : > { %p7711_p10 = pnand %p7709_p6, %p7695_p11  ;;  %p7717_p0 = scmp.lt.s32.totalorder %s7715_s19, %s7708_s15 }
  0x1e   : > { %p7712_p12 = pneg %p7711_p10  ;;  %p7718_p1 = por %p7717_p0, %p7716_p9 }
  0x20   : > { %p7719_p2 = pnand %p7718_p1, %p7712_p12 }
  0x22   : > { %7722 = shalt.err (!%p7719_p2)
}
  0x23   : > { %s7762_s21 = smov 512   ;;  %s7763_s25 = smov 32  }
  0x24   : > { %7436 = dma.hbm_to_vmem [thread:$0]  (!%p7872_p8), %s7868_s20, 8192, %s7870_s22, %s7877_s24, %s7762_s21, %s7762_s21, %s7763_s25  }
  0x25   : > { %p273_p11 = scmp.lt.s32.totalorder %s7759_s30, 3  ;;  %p11925_p13 = scmp.ge.s32.totalorder %s7759_s30, 1 }
  0x27   : > { %p274_p3 = pnand %p11925_p13, %p273_p11 }
  0x29   : > { %277 = sbr.rel (%p274_p3) target bundleno = 4733 (0x127d), region = 48 }
  0x30   : > { %s279_s26 = sand.u32 1, %s7751_s28  }
  0x31   : > { %s7093_s27 = sshll.u32 %s279_s26, 9  ;;  %s280_s11 = scalar_lea.sflag [#allocation6], %s279_s26 }
  0x32   : > { %s7909_s12 = scalar_lea.vmem [#allocation5], %s7093_s27 }
  0x33   : > { %7740 = dma.done.wait (%p7859_p7), %s280_s11, 8192  }
  0x34   : > { %7742 = vsyncadd (%p7859_p7), %s280_s11, 4294959104  ;;  %s345_s16 = sld [smem:[#allocation0]]   ;;  %s7764_s15 = smov 1024   ;;  %vm546_vm0 = vcmask 1043456  }
  0x35   : > { %357 = sst [smem:[#allocation8]] %s7764_s15  ;;  %s7765_s30 = smov 8  }
  0x36   : > { %359 = sst [smem:[#allocation8 + $0x1]] %s7764_s15  ;;  %s7766_s20 = smov 64  }
  0x37   : > { %361 = sst [smem:[#allocation8 + $0x2]] %s7765_s30  ;;  %s7767_s22 = smov 128  }
  0x38   : > { %363 = sst [smem:[#allocation8 + $0x3]] %s7766_s20  ;;  %s7768_s23 = smov 2  }
  0x39   : > { %365 = sst [smem:[#allocation8 + $0x4]] %s7767_s22  ;;  %s7769_s17 = smov 512  }
  0x3a   : > { %367 = sst [smem:[#allocation8 + $0x5]] %s7768_s23  ;;  %s7101_s24 = sshll.u32 %s345_s16, 26 }
  0x3b   : > { %369 = sst [smem:[#allocation8 + $0x6]] %s7769_s17  ;;  %s7102_s18 = sadd.s32 134217728, %s7101_s24 }
  0x3c   : > { %371 = sst [smem:[#allocation8 + $0x7]] %s7766_s20  ;;  %s7770_s14 = smov 4  }
  0x3d   : > { %373 = sst [smem:[#allocation8 + $0x8]] %s7770_s14  ;;  %s7366_s19 = sshll.u32 %s7842_s9, 14 }
  0x3e   : > { %s340_s26 = scalar_lea.hbm %s11516_s7, %s7366_s19  ;;  %s7771_s27 = smov [#allocation3]  }
  0x3f   : > { %s353_s11 = sshll.u32 %s7771_s27, 4  ;;  %s7772_s15 = smov [#allocation4]   ;;  %s354_s11 = int_to_ptr.vmem [resolvable:$true] %s353_s11 }
  0x40   : > { %s7773_s30 = smov [#allocation7]   ;;  %p323_p7 = scmp.lt.s32.totalorder %s7842_s9, 1 }
  0x41   : > { %375 = dma.general %s340_s26, 16384, %s354_s11, %s7772_s15, %s7773_s30, [#allocation8], %s7102_s18, 0  }
  0x42   : > { %v7486_v0 = vld [vmem:[%s11511_s2] sm:$0xff]   ;;  %v7487_v1 = vld [vmem:[%s11511_s2 + $0x8] sm:$0xff]   ;;  %v7488_v2 = vld [vmem:[%s11511_s2 + $0x10] sm:$0xff]   ;;  %s7999_s19 = scalar_select %p323_p7, %s7842_s9, 1 }
  0x43   : > { %7391 = vmatprep.subr.bf16.mxu0 %v7486_v0  ;;  %v7489_v3 = vld [vmem:[%s11511_s2 + $0x18] sm:$0xff]   ;;  %v7494_v4 = vld [vmem:[%s11509_s0] sm:$0xff]   ;;  %v7491_v15 = vld [vmem:[%s11511_s2 + $0x28] sm:$0xff]  }
  0x44   : > { %7392 = vmatpush3.bf16.msra.mxu0 %v7486_v0  ;;  %7407 = vmatprep.mubr.bf16.mxu0 %v7494_v4  ;;  %v7490_v5 = vld [vmem:[%s11511_s2 + $0x20] sm:$0xff]   ;;  %v7492_v18 = vld [vmem:[%s11511_s2 + $0x30] sm:$0xff]   ;;  %v7493_v20 = vld [vmem:[%s11511_s2 + $0x38] sm:$0xff]   ;;  %s7365_s21 = sshll.u32 %s7999_s19, 4  ;;  %s7364_s30 = sshll.u32 %s7999_s19, 10 }
  0x45   : > { %7393 = vmatprep.subr.bf16.mxu0 %v7487_v1  ;;  %v698_v6 = vld [vmem:[%s7909_s12] sm:$0xff]  ;;  %v699_v21 = vld [vmem:[%s7909_s12 + $0x8] sm:$0xff]  ;;  %v7496_v27 = vld [vmem:[%s11509_s0 + $0x10] sm:$0xff]   ;;  %s8005_s27 = scalar_lea.vmem %s11517_s8, %s7365_s21  ;;  %s8050_s20 = scalar_lea.vmem %s11513_s4, %s7364_s30 }
  0x46   : > { %v702_v7 = vld [vmem:[%s7909_s12 + $0x20] sm:$0xff]  ;;  %v703_v22 = vld [vmem:[%s7909_s12 + $0x28] sm:$0xff]  ;;  %v7497_v34 = vld [vmem:[%s11509_s0 + $0x18] sm:$0x3f]   ;;  %s7096_s18 = sshll.u32 %s7999_s19, 3 }
  0x47   : > { %v7117_v8 = vcombine.high %v698_v6, %v702_v7  ;;  %v7116_v9 = vcombine.low %v698_v6, %v702_v7  ;;  %v706_v10 = vld [vmem:[%s7909_s12 + $0x40] sm:$0xff]  ;;  %v7119_v23 = vcombine.high %v699_v21, %v703_v22  ;;  %v707_v24 = vld [vmem:[%s7909_s12 + $0x48] sm:$0xff]  ;;  %v7118_v28 = vcombine.low %v699_v21, %v703_v22  ;;  %s331_s25 = scalar_lea.vmem %s11515_s6, %s7096_s18 }
  0x48   : > { %7394 = vmatpush3.bf16.msra.mxu0 %v7487_v1  ;;  %v710_v11 = vld [vmem:[%s7909_s12 + $0x60] sm:$0xff]  ;;  %v711_v25 = vld [vmem:[%s7909_s12 + $0x68] sm:$0xff] }
  0x49   : > { %7395 = vmatprep.subr.bf16.mxu0 %v7488_v2  ;;  %v7125_v12 = vcombine.high %v706_v10, %v710_v11  ;;  %v714_v13 = vld [vmem:[%s7909_s12 + $0x80] sm:$0xff]  ;;  %1082 = vmatprep.subr.bf16.mxu1 %v7117_v8  ;;  %v7124_v16 = vcombine.low %v706_v10, %v710_v11  ;;  %v7495_v26 = vld [vmem:[%s11509_s0 + $0x8] sm:$0xff]   ;;  %v7127_v29 = vcombine.high %v707_v24, %v711_v25 }
  0x4a   : > { %v718_v14 = vld [vmem:[%s7909_s12 + $0xa0] sm:$0xff]  ;;  %1083 = vmatpush1.bf16.msra.mxu1 %v7116_v9  ;;  %v715_v30 = vld [vmem:[%s7909_s12 + $0x88] sm:$0xff]  ;;  %v7126_v32 = vcombine.low %v707_v24, %v711_v25 }
  0x4b   : > { %1084 = vmatprep.subr.bf16.mxu1 %v7125_v12  ;;  %v7133_v17 = vcombine.high %v714_v13, %v718_v14  ;;  %v7132_v19 = vcombine.low %v714_v13, %v718_v14  ;;  %v719_v31 = vld [vmem:[%s7909_s12 + $0xa8] sm:$0xff]  ;;  %v722_v36 = vld [vmem:[%s7909_s12 + $0xc0] sm:$0xff]  ;;  %v7988_v12 = vld [vmem:[%s7909_s12 + $0x10] sm:$0xff] }
  0x4c   : > { %7396 = vmatpush3.bf16.msra.mxu0 %v7488_v2  ;;  %v7135_v33 = vcombine.high %v715_v30, %v719_v31  ;;  %v7134_v35 = vcombine.low %v715_v30, %v719_v31  ;;  %v726_v37 = vld [vmem:[%s7909_s12 + $0xe0] sm:$0xff]  ;;  %v723_v38 = vld [vmem:[%s7909_s12 + $0xc8] sm:$0xff]  ;;  %v704_v13 = vld [vmem:[%s7909_s12 + $0x30] sm:$0xff] }
  0x4d   : > { %7397 = vmatprep.subr.bf16.mxu0 %v7489_v3  ;;  %v7141_v39 = vcombine.high %v722_v36, %v726_v37  ;;  %v727_v40 = vld [vmem:[%s7909_s12 + $0xe8] sm:$0xff]  ;;  %v7140_v43 = vcombine.low %v722_v36, %v726_v37  ;;  %v730_v44 = vld [vmem:[%s7909_s12 + $0x100] sm:$0xff]  ;;  %v701_v14 = vld [vmem:[%s7909_s12 + $0x18] sm:$0xff] }
  0x4e   : > { %1085 = vmatpush1.bf16.msra.mxu1 %v7124_v16  ;;  %v7142_v41 = vcombine.low %v723_v38, %v727_v40  ;;  %v7143_v42 = vcombine.high %v723_v38, %v727_v40  ;;  %v734_v45 = vld [vmem:[%s7909_s12 + $0x120] sm:$0xff]  ;;  %v731_v46 = vld [vmem:[%s7909_s12 + $0x108] sm:$0xff]  ;;  %v705_v16 = vld [vmem:[%s7909_s12 + $0x38] sm:$0xff] }
  0x4f   : > { %1086 = vmatprep.subr.bf16.mxu1 %v7133_v17  ;;  %v7149_v47 = vcombine.high %v730_v44, %v734_v45  ;;  %v735_v48 = vld [vmem:[%s7909_s12 + $0x128] sm:$0xff]  ;;  %v7148_v51 = vcombine.low %v730_v44, %v734_v45  ;;  %v738_v52 = vld [vmem:[%s7909_s12 + $0x140] sm:$0xff]  ;;  %v7120_v17 = vcombine.low %v7988_v12, %v704_v13 }
  0x50   : > { %7398 = vmatpush3.bf16.msra.mxu0 %v7489_v3  ;;  %v7150_v49 = vcombine.low %v731_v46, %v735_v48  ;;  %v7151_v50 = vcombine.high %v731_v46, %v735_v48  ;;  %v742_v53 = vld [vmem:[%s7909_s12 + $0x160] sm:$0xff]  ;;  %v739_v54 = vld [vmem:[%s7909_s12 + $0x148] sm:$0xff] }
  0x51   : > { %7399 = vmatprep.subr.bf16.mxu0 %v7490_v5  ;;  %v7157_v55 = vcombine.high %v738_v52, %v742_v53  ;;  %v743_v56 = vld [vmem:[%s7909_s12 + $0x168] sm:$0xff]  ;;  %v7156_v59 = vcombine.low %v738_v52, %v742_v53  ;;  %v746_v60 = vld [vmem:[%s7909_s12 + $0x180] sm:$0xff]  ;;  %v712_v52 = vld [vmem:[%s7909_s12 + $0x70] sm:$0xff] }
  0x52   : > { %1087 = vmatpush1.bf16.msra.mxu1 %v7132_v19  ;;  %v7158_v57 = vcombine.low %v739_v54, %v743_v56  ;;  %v7159_v58 = vcombine.high %v739_v54, %v743_v56  ;;  %v750_v61 = vld [vmem:[%s7909_s12 + $0x1a0] sm:$0xff]  ;;  %v747_v62 = vld [vmem:[%s7909_s12 + $0x188] sm:$0xff]  ;;  %v7123_v19 = vcombine.high %v701_v14, %v705_v16  ;;  %v709_v53 = vld [vmem:[%s7909_s12 + $0x58] sm:$0xff] }
  0x53   : > { %1088 = vmatprep.subr.bf16.mxu1 %v7141_v39  ;;  %v7165_v63 = vcombine.high %v746_v60, %v750_v61  ;;  %v751_v0 = vld [vmem:[%s7909_s12 + $0x1a8] sm:$0xff]  ;;  %v7164_v3 = vcombine.low %v746_v60, %v750_v61  ;;  %v754_v4 = vld [vmem:[%s7909_s12 + $0x1c0] sm:$0xff]  ;;  %v713_v54 = vld [vmem:[%s7909_s12 + $0x78] sm:$0xff] }
  0x54   : > { %7400 = vmatpush3.bf16.msra.mxu0 %v7490_v5  ;;  %v7166_v1 = vcombine.low %v747_v62, %v751_v0  ;;  %v7167_v2 = vcombine.high %v747_v62, %v751_v0  ;;  %v758_v5 = vld [vmem:[%s7909_s12 + $0x1e0] sm:$0xff]  ;;  %v755_v6 = vld [vmem:[%s7909_s12 + $0x1c8] sm:$0xff]  ;;  %v720_v60 = vld [vmem:[%s7909_s12 + $0xb0] sm:$0xff]  ;;  %v7130_v0 = vcombine.low %v709_v53, %v713_v54 }
  0x55   : > { %7401 = vmatprep.subr.bf16.mxu0 %v7491_v15  ;;  %v7173_v7 = vcombine.high %v754_v4, %v758_v5  ;;  %v759_v8 = vld [vmem:[%s7909_s12 + $0x1e8] sm:$0xff]  ;;  %v7172_v11 = vcombine.low %v754_v4, %v758_v5  ;;  %v7103_v21 = vld [vmem:[%s11512_s3] ss:$0 sm:$0xff]  ;;  %v717_v61 = vld [vmem:[%s7909_s12 + $0x98] sm:$0xff] }
  0x56   : > { %1089 = vmatpush1.bf16.msra.mxu1 %v7140_v43  ;;  %v7174_v9 = vcombine.low %v755_v6, %v759_v8  ;;  %v7175_v10 = vcombine.high %v755_v6, %v759_v8  ;;  %v721_v62 = vld [vmem:[%s7909_s12 + $0xb8] sm:$0xff]  ;;  %v728_v4 = vld [vmem:[%s7909_s12 + $0xf0] sm:$0xff] }
  0x57   : > { %1090 = vmatprep.subr.bf16.mxu1 %v7149_v47  ;;  %v725_v5 = vld [vmem:[%s7909_s12 + $0xd8] sm:$0xff]  ;;  %v7138_v8 = vcombine.low %v717_v61, %v721_v62 }
  0x58   : > { %7402 = vmatpush3.bf16.msra.mxu0 %v7491_v15  ;;  %v7121_v15 = vcombine.high %v7988_v12, %v704_v13  ;;  %v729_v6 = vld [vmem:[%s7909_s12 + $0xf8] sm:$0xff]  ;;  %v736_v12 = vld [vmem:[%s7909_s12 + $0x130] sm:$0xff] }
  0x59   : > { %7403 = vmatprep.subr.bf16.mxu0 %v7492_v18  ;;  %v733_v13 = vld [vmem:[%s7909_s12 + $0x118] sm:$0xff] }
  0x5a   : > { %1091 = vmatpush1.bf16.msra.mxu1 %v7148_v51 }
  0x5b   : > { %1092 = vmatprep.subr.bf16.mxu1 %v7157_v55 }
  0x5c   : > { %7404 = vmatpush3.bf16.msra.mxu0 %v7492_v18  ;;  %v7122_v18 = vcombine.low %v701_v14, %v705_v16  ;;  %v737_v14 = vld [vmem:[%s7909_s12 + $0x138] sm:$0xff]  ;;  %v7146_v16 = vcombine.low %v725_v5, %v729_v6 }
  0x5d   : > { %7405 = vmatprep.subr.bf16.mxu0 %v7493_v20 }
  0x5e   : > { %1093 = vmatpush1.bf16.msra.mxu1 %v7156_v59  ;;  %v716_v59 = vld [vmem:[%s7909_s12 + $0x90] sm:$0xff] }
  0x5f   : > { %1094 = vmatprep.subr.bf16.mxu1 %v7165_v63 }
  0x60   : > { %7406 = vmatpush3.bf16.msra.mxu0 %v7493_v20  ;;  %v7774_v20 = vmov 0  }
  0x61   : > { %1125 = vmatprep.subr.bf16.mxu0 %v7119_v23  ;;  %1114 = vmatprep.mubr.bf16.mxu1 %v7774_v20 }
  0x62   : > { %1095 = vmatpush1.bf16.msra.mxu1 %v7164_v3  ;;  %v724_v3 = vld [vmem:[%s7909_s12 + $0xd0] sm:$0xff] }
  0x63   : > { %7408 = vmatmul.mubr.bf16.vlgmr.msra.gmra.mrb[0].mxu0 %v7495_v26  ;;  %1096 = vmatprep.subr.bf16.mxu1 %v7173_v7  ;;  %v7136_v7 = vcombine.low %v716_v59, %v720_v60 }
  0x64   : > { %7411 = vmatprep.mubr.bf16.mxu0 %v7496_v27  ;;  %1126 = vmatpush1.bf16.msra.mxu0 %v7118_v28 }
  0x65   : > { %1127 = vmatprep.subr.bf16.mxu0 %v7127_v29 }
  0x66   : > { %1097 = vmatpush1.bf16.msra.mxu1 %v7172_v11  ;;  %v732_v11 = vld [vmem:[%s7909_s12 + $0x110] sm:$0xff] }
  0x67   : > { %1168 = vmatprep.subr.bf16.mxu1 %v7121_v15  ;;  %v7144_v15 = vcombine.low %v724_v3, %v728_v4 }
  0x68   : > { %1128 = vmatpush1.bf16.msra.mxu0 %v7126_v32 }
  0x69   : > { %1129 = vmatprep.subr.bf16.mxu0 %v7135_v33 }
  0x6b   : > { %7412 = vmatmul.mubr.bf16.gmra.mrb[4].mxu0 %v7497_v34 }
  0x6c   : > { %1130 = vmatpush1.bf16.msra.mxu0 %v7134_v35  ;;  %1157 = vmatprep.mubr.bf16.mxu0 %v7774_v20 }
  0x6d   : > { %1131 = vmatprep.subr.bf16.mxu0 %v7143_v42 }
  0x70   : > { %1132 = vmatpush1.bf16.msra.mxu0 %v7142_v41 }
  0x71   : > { %1133 = vmatprep.subr.bf16.mxu0 %v7151_v50  ;;  %v708_v50 = vld [vmem:[%s7909_s12 + $0x50] sm:$0xff] }
  0x72   : > { %v7128_v63 = vcombine.low %v708_v50, %v712_v52 }
  0x74   : > { %1134 = vmatpush1.bf16.msra.mxu0 %v7150_v49 }
  0x75   : > { %1135 = vmatprep.subr.bf16.mxu0 %v7159_v58  ;;  %v7131_v58 = vcombine.high %v709_v53, %v713_v54  ;;  %v579_v53 = vld [vmem:[%s8050_s20 + $0x48] sm:$0xff] }
  0x76   : > { %v583_v54 = vld [vmem:[%s8050_s20 + $0x68] sm:$0xff] }
  0x78   : > { %1136 = vmatpush1.bf16.msra.mxu0 %v7158_v57  ;;  %v7129_v57 = vcombine.high %v708_v50, %v712_v52  ;;  %v582_v52 = vld [vmem:[%s8050_s20 + $0x60] sm:$0xff] }
  0x79   : > { %1137 = vmatprep.subr.bf16.mxu0 %v7167_v2  ;;  %v7139_v2 = vcombine.high %v717_v61, %v721_v62  ;;  %v590_v61 = vld [vmem:[%s8050_s20 + $0xa0] sm:$0xff]  ;;  %v587_v62 = vld [vmem:[%s8050_s20 + $0x88] sm:$0xff] }
  0x7c   : > { %1138 = vmatpush1.bf16.msra.mxu0 %v7166_v1  ;;  %v7137_v1 = vcombine.high %v716_v59, %v720_v60  ;;  %v7193_v59 = vcombine.high %v579_v53, %v583_v54  ;;  %v586_v60 = vld [vmem:[%s8050_s20 + $0x80] sm:$0xff] }
  0x7d   : > { %1139 = vmatprep.subr.bf16.mxu0 %v7175_v10  ;;  %v7147_v10 = vcombine.high %v725_v5, %v729_v6  ;;  %v594_v5 = vld [vmem:[%s8050_s20 + $0xc0] sm:$0xff] }
  0x7e   : > { %v598_v6 = vld [vmem:[%s8050_s20 + $0xe0] sm:$0xff] }
  0x80   : > { %1140 = vmatpush1.bf16.msra.mxu0 %v7174_v9  ;;  %v7145_v9 = vcombine.high %v724_v3, %v728_v4  ;;  %v7199_v3 = vcombine.high %v586_v60, %v590_v61 }
  0x81   : > { %1211 = vmatprep.subr.bf16.mxu0 %v7123_v19  ;;  %v740_v19 = vld [vmem:[%s7909_s12 + $0x150] sm:$0xff] }
 0x136   : > { %v7409_v22 = vpop.f32.mrb[0].mxu0 }
 0x137   : > { %v522_v23 = vadd.f32 %v7409_v22, %v7103_v21  ;;  %v513_v24 = vpop.f32.mrb[1].mxu0  ;;  %v745_v22 = vld [vmem:[%s7909_s12 + $0x178] sm:$0xff] }
 0x138   : > { %v7410_v25 = vpop.f32.mrb[2].mxu0  ;;  %v514_v31 = vadd.f32 %v7103_v21, %v513_v24  ;;  %v7154_v24 = vcombine.low %v733_v13, %v737_v14 }
 0x139   : > { %v548_v26 = vrot.slane %v522_v23, 4  ;;  %v516_v27 = vpop.f32.mrb[3].mxu0  ;;  %v525_v34 = vadd.f32 %v7410_v25, %v7103_v21  ;;  %v7152_v23 = vcombine.low %v732_v11, %v736_v12 }
 0x13a   : > { %v517_v28 = vadd.f32 %v7103_v21, %v516_v27  ;;  %v748_v27 = vld [vmem:[%s7909_s12 + $0x190] sm:$0xff] }
 0x13c   : > { %v547_v29 = vrot.slane %v517_v28, 4  ;;  %v553_v30 = vmax.f32 %v517_v28, %v548_v26  ;;  %v752_v28 = vld [vmem:[%s7909_s12 + $0x1b0] sm:$0xff] }
 0x13e   : > { %v549_v32 = vsel %vm546_vm0, %v547_v29, %v548_v26  ;;  %v7413_v33 = vpop.f32.mrb[4].mxu0  ;;  %v749_v29 = vld [vmem:[%s7909_s12 + $0x198] sm:$0xff] }
 0x13f   : > { %v552_v35 = vmax.f32 %v514_v31, %v549_v32  ;;  %v529_v36 = vpop.f32.mrb[5].mxu0  ;;  %v538_v48 = vadd.f32 %v7413_v33, %v7103_v21  ;;  %v7169_v33 = vcombine.high %v748_v27, %v752_v28 }
 0x140   : > { %v530_v37 = vadd.f32 %v7103_v21, %v529_v36  ;;  %v7414_v38 = vpop.f32.mrb[6].mxu0  ;;  %v760_v36 = vld [vmem:[%s7909_s12 + $0x1f0] sm:$0xff] }
 0x141   : > { %v532_v39 = vpop.f32.mrb[7].mxu0  ;;  %v554_v40 = vmax.f32 %v552_v35, %v525_v34  ;;  %v541_v45 = vadd.f32 %v7414_v38, %v7103_v21  ;;  %v756_v35 = vld [vmem:[%s7909_s12 + $0x1d0] sm:$0xff]  ;;  %v761_v38 = vld [vmem:[%s7909_s12 + $0x1f8] sm:$0xff] }
 0x142   : > { %v555_v41 = vmax.f32 %v553_v30, %v530_v37  ;;  %v533_v42 = vadd.f32 %v7103_v21, %v532_v39  ;;  %v558_v43 = vrot.slane %v530_v37, 4  ;;  %v741_v21 = vld [vmem:[%s7909_s12 + $0x158] sm:$0xff]  ;;  %v7168_v39 = vcombine.low %v748_v27, %v752_v28  ;;  %v618_v28 = vld [vmem:[%s8050_s20 + $0x180] sm:$0xff] }
 0x143   : > { %v7163_v26 = vcombine.high %v741_v21, %v745_v22  ;;  %v753_v30 = vld [vmem:[%s7909_s12 + $0x1b8] sm:$0xff]  ;;  %v7162_v32 = vcombine.low %v741_v21, %v745_v22  ;;  %v614_v21 = vld [vmem:[%s8050_s20 + $0x160] sm:$0xff]  ;;  %v611_v22 = vld [vmem:[%s8050_s20 + $0x148] sm:$0xff] }
 0x144   : > { %v559_v44 = vrot.slane %v533_v42, 4  ;;  %v7171_v34 = vcombine.high %v749_v29, %v753_v30  ;;  %v757_v37 = vld [vmem:[%s7909_s12 + $0x1d8] sm:$0xff] }
 0x145   : > { %v7179_v42 = vcombine.high %v757_v37, %v761_v38 }
 0x146   : > { %v560_v46 = vsel %vm546_vm0, %v558_v43, %v559_v44  ;;  %v564_v47 = vmax.f32 %v555_v41, %v559_v44  ;;  %v7177_v41 = vcombine.high %v756_v35, %v760_v36  ;;  %v570_v43 = vld [vmem:[%s8050_s20] sm:$0xff] }
 0x147   : > { %v563_v49 = vmax.f32 %v554_v40, %v560_v46  ;;  %v7170_v40 = vcombine.low %v749_v29, %v753_v30  ;;  %v574_v44 = vld [vmem:[%s8050_s20 + $0x20] sm:$0xff]  ;;  %v575_v46 = vld [vmem:[%s8050_s20 + $0x28] sm:$0xff] }
 0x148   : > { %v566_v51 = vmax.f32 %v564_v47, %v541_v45  ;;  %v571_v45 = vld [vmem:[%s8050_s20 + $0x8] sm:$0xff]  ;;  %v7176_v47 = vcombine.low %v756_v35, %v760_v36  ;;  %v622_v29 = vld [vmem:[%s8050_s20 + $0x1a0] sm:$0xff] }
 0x149   : > { %v565_v55 = vmax.f32 %v563_v49, %v538_v48  ;;  %v7178_v48 = vcombine.low %v757_v37, %v761_v38  ;;  %v7183_v49 = vcombine.high %v570_v43, %v574_v44  ;;  %v7185_v50 = vcombine.high %v571_v45, %v575_v46  ;;  %v619_v30 = vld [vmem:[%s8050_s20 + $0x188] sm:$0xff]  ;;  %v626_v36 = vld [vmem:[%s8050_s20 + $0x1c0] sm:$0xff] }
 0x14a   : > { %v630_v37 = vld [vmem:[%s8050_s20 + $0x1e0] sm:$0xff]  ;;  %v627_v38 = vld [vmem:[%s8050_s20 + $0x1c8] sm:$0xff] }
 0x14b   : > { %v8016_v56 = vpack.c.bf16 %v566_v51, %v565_v55  ;;  %v578_v51 = vld [vmem:[%s8050_s20 + $0x40] sm:$0xff]  ;;  %v7182_v55 = vcombine.low %v570_v43, %v574_v44 }
 0x14c   : > { %v634_v44 = vld [vmem:[%s8050_s20 + $0x200] sm:$0xff] }
 0x14d   : > { %1115 = vmatmul.mubr.bf16.vlgmr.msra.gmra.mrb[0].mxu1 %v8016_v56  ;;  %1158 = vmatmul.mubr.bf16.vlgmr.msra.gmra.mrb[8].mxu0 %v8016_v56 }
 0x14e   : > { %1169 = vmatpush1.bf16.msra.mxu1 %v7120_v17  ;;  %1212 = vmatpush1.bf16.msra.mxu0 %v7122_v18  ;;  %v7153_v17 = vcombine.high %v732_v11, %v736_v12  ;;  %v7155_v18 = vcombine.high %v733_v13, %v737_v14  ;;  %v602_v12 = vld [vmem:[%s8050_s20 + $0x100] sm:$0xff]  ;;  %v603_v14 = vld [vmem:[%s8050_s20 + $0x108] sm:$0xff] }
 0x14f   : > { %1170 = vmatprep.subr.bf16.mxu1 %v7129_v57  ;;  %1213 = vmatprep.subr.bf16.mxu0 %v7131_v58  ;;  %v7184_v57 = vcombine.low %v571_v45, %v575_v46  ;;  %v7191_v58 = vcombine.high %v578_v51, %v582_v52  ;;  %v606_v13 = vld [vmem:[%s8050_s20 + $0x120] sm:$0xff]  ;;  %v635_v46 = vld [vmem:[%s8050_s20 + $0x208] sm:$0xff] }
 0x150   : > { %1200 = vmatprep.mubr.bf16.mxu1 %v7774_v20  ;;  %1243 = vmatprep.mubr.bf16.mxu0 %v7774_v20  ;;  %v744_v20 = vld [vmem:[%s7909_s12 + $0x170] sm:$0xff]  ;;  %v638_v45 = vld [vmem:[%s8050_s20 + $0x220] sm:$0xff] }
 0x151   : > { %v7161_v25 = vcombine.high %v740_v19, %v744_v20  ;;  %v7160_v31 = vcombine.low %v740_v19, %v744_v20  ;;  %v610_v20 = vld [vmem:[%s8050_s20 + $0x140] sm:$0xff] }
 0x152   : > { %1171 = vmatpush1.bf16.msra.mxu1 %v7128_v63  ;;  %1214 = vmatpush1.bf16.msra.mxu0 %v7130_v0  ;;  %v591_v63 = vld [vmem:[%s8050_s20 + $0xa8] sm:$0xff] }
 0x153   : > { %1172 = vmatprep.subr.bf16.mxu1 %v7137_v1  ;;  %1215 = vmatprep.subr.bf16.mxu0 %v7139_v2  ;;  %v8067_v0 = vld [vmem:[%s11510_s1 + $0x4] ss:$8 sps:$4 sm:$0x3f]   ;;  %v7190_v1 = vcombine.low %v578_v51, %v582_v52  ;;  %v7192_v2 = vcombine.low %v579_v53, %v583_v54  ;;  %v7201_v4 = vcombine.high %v587_v62, %v591_v63 }
 0x154   : > { %v642_v52 = vld [vmem:[%s8050_s20 + $0x240] sm:$0xff]  ;;  %v643_v54 = vld [vmem:[%s8050_s20 + $0x248] sm:$0xff] }
 0x155   : > { %v646_v53 = vld [vmem:[%s8050_s20 + $0x260] sm:$0xff] }
 0x156   : > { %1173 = vmatpush1.bf16.msra.mxu1 %v7136_v7  ;;  %1216 = vmatpush1.bf16.msra.mxu0 %v7138_v8  ;;  %v595_v7 = vld [vmem:[%s8050_s20 + $0xc8] sm:$0xff] }
 0x157   : > { %1174 = vmatprep.subr.bf16.mxu1 %v7145_v9  ;;  %1217 = vmatprep.subr.bf16.mxu0 %v7147_v10  ;;  %v599_v8 = vld [vmem:[%s8050_s20 + $0xe8] sm:$0xff]  ;;  %v7200_v9 = vcombine.low %v587_v62, %v591_v63  ;;  %v7207_v10 = vcombine.high %v594_v5, %v598_v6  ;;  %v654_v62 = vld [vmem:[%s8050_s20 + $0x2a0] sm:$0xff] }
 0x158   : > { %v7209_v11 = vcombine.high %v595_v7, %v599_v8  ;;  %v651_v63 = vld [vmem:[%s8050_s20 + $0x288] sm:$0xff] }
 0x15a   : > { %1175 = vmatpush1.bf16.msra.mxu1 %v7144_v15  ;;  %1218 = vmatpush1.bf16.msra.mxu0 %v7146_v16  ;;  %v607_v15 = vld [vmem:[%s8050_s20 + $0x128] sm:$0xff]  ;;  %v7206_v16 = vcombine.low %v594_v5, %v598_v6  ;;  %v658_v6 = vld [vmem:[%s8050_s20 + $0x2c0] sm:$0xff] }
 0x15b   : > { %1176 = vmatprep.subr.bf16.mxu1 %v7153_v17  ;;  %1219 = vmatprep.subr.bf16.mxu0 %v7155_v18  ;;  %v7208_v17 = vcombine.low %v595_v7, %v599_v8  ;;  %v7215_v18 = vcombine.high %v602_v12, %v606_v13  ;;  %v7217_v19 = vcombine.high %v603_v14, %v607_v15  ;;  %v662_v7 = vld [vmem:[%s8050_s20 + $0x2e0] sm:$0xff]  ;;  %v659_v8 = vld [vmem:[%s8050_s20 + $0x2c8] sm:$0xff] }
 0x15e   : > { %1177 = vmatpush1.bf16.msra.mxu1 %v7152_v23  ;;  %1220 = vmatpush1.bf16.msra.mxu0 %v7154_v24  ;;  %v615_v23 = vld [vmem:[%s8050_s20 + $0x168] sm:$0xff]  ;;  %v7214_v24 = vcombine.low %v602_v12, %v606_v13  ;;  %v666_v13 = vld [vmem:[%s8050_s20 + $0x300] sm:$0xff] }
 0x15f   : > { %1178 = vmatprep.subr.bf16.mxu1 %v7161_v25  ;;  %1221 = vmatprep.subr.bf16.mxu0 %v7163_v26  ;;  %v7216_v25 = vcombine.low %v603_v14, %v607_v15  ;;  %v7223_v26 = vcombine.high %v610_v20, %v614_v21  ;;  %v7225_v27 = vcombine.high %v611_v22, %v615_v23  ;;  %v670_v14 = vld [vmem:[%s8050_s20 + $0x320] sm:$0xff]  ;;  %v667_v15 = vld [vmem:[%s8050_s20 + $0x308] sm:$0xff] }
 0x162   : > { %1179 = vmatpush1.bf16.msra.mxu1 %v7160_v31  ;;  %1222 = vmatpush1.bf16.msra.mxu0 %v7162_v32  ;;  %v623_v31 = vld [vmem:[%s8050_s20 + $0x1a8] sm:$0xff]  ;;  %v7222_v32 = vcombine.low %v610_v20, %v614_v21  ;;  %v674_v21 = vld [vmem:[%s8050_s20 + $0x340] sm:$0xff] }
 0x163   : > { %1180 = vmatprep.subr.bf16.mxu1 %v7169_v33  ;;  %1223 = vmatprep.subr.bf16.mxu0 %v7171_v34  ;;  %v7224_v33 = vcombine.low %v611_v22, %v615_v23  ;;  %v7231_v34 = vcombine.high %v618_v28, %v622_v29  ;;  %v7233_v35 = vcombine.high %v619_v30, %v623_v31  ;;  %v678_v22 = vld [vmem:[%s8050_s20 + $0x360] sm:$0xff]  ;;  %v675_v23 = vld [vmem:[%s8050_s20 + $0x348] sm:$0xff] }
 0x166   : > { %1181 = vmatpush1.bf16.msra.mxu1 %v7168_v39  ;;  %1224 = vmatpush1.bf16.msra.mxu0 %v7170_v40  ;;  %v631_v39 = vld [vmem:[%s8050_s20 + $0x1e8] sm:$0xff]  ;;  %v7230_v40 = vcombine.low %v618_v28, %v622_v29  ;;  %v682_v29 = vld [vmem:[%s8050_s20 + $0x380] sm:$0xff] }
 0x167   : > { %1182 = vmatprep.subr.bf16.mxu1 %v7177_v41  ;;  %1225 = vmatprep.subr.bf16.mxu0 %v7179_v42  ;;  %v7232_v41 = vcombine.low %v619_v30, %v623_v31  ;;  %v7239_v42 = vcombine.high %v626_v36, %v630_v37  ;;  %v7241_v43 = vcombine.high %v627_v38, %v631_v39  ;;  %v686_v30 = vld [vmem:[%s8050_s20 + $0x3a0] sm:$0xff]  ;;  %v683_v31 = vld [vmem:[%s8050_s20 + $0x388] sm:$0xff] }
 0x16a   : > { %1183 = vmatpush1.bf16.msra.mxu1 %v7176_v47  ;;  %1226 = vmatpush1.bf16.msra.mxu0 %v7178_v48  ;;  %v639_v47 = vld [vmem:[%s8050_s20 + $0x228] sm:$0xff]  ;;  %v7238_v48 = vcombine.low %v626_v36, %v630_v37  ;;  %v690_v37 = vld [vmem:[%s8050_s20 + $0x3c0] sm:$0xff] }
 0x16b   : > { %1904 = vmatprep.subr.bf16.mxu1 %v7183_v49  ;;  %1947 = vmatprep.subr.bf16.mxu0 %v7185_v50  ;;  %v7240_v49 = vcombine.low %v627_v38, %v631_v39  ;;  %v7247_v50 = vcombine.high %v634_v44, %v638_v45  ;;  %v7249_v51 = vcombine.high %v635_v46, %v639_v47  ;;  %v694_v38 = vld [vmem:[%s8050_s20 + $0x3e0] sm:$0xff]  ;;  %v691_v39 = vld [vmem:[%s8050_s20 + $0x3c8] sm:$0xff] }
 0x16d   : > { %1201 = vmatmul.mubr.bf16.vlgmr.msra.gmra.mrb[4].mxu1 %v8016_v56  ;;  %1244 = vmatmul.mubr.bf16.vlgmr.msra.gmra.mrb[12].mxu0 %v8016_v56  ;;  %v7198_v56 = vcombine.low %v586_v60, %v590_v61  ;;  %v650_v61 = vld [vmem:[%s8050_s20 + $0x280] sm:$0xff] }
 0x16e   : > { %1905 = vmatpush1.bf16.msra.mxu1 %v7182_v55  ;;  %1948 = vmatpush1.bf16.msra.mxu0 %v7184_v57  ;;  %v647_v55 = vld [vmem:[%s8050_s20 + $0x268] sm:$0xff]  ;;  %v7246_v57 = vcombine.low %v634_v44, %v638_v45  ;;  %v572_v45 = vld [vmem:[%s8050_s20 + $0x10] sm:$0xff] }
 0x16f   : > { %1906 = vmatprep.subr.bf16.mxu1 %v7191_v58  ;;  %1949 = vmatprep.subr.bf16.mxu0 %v7193_v59  ;;  %v7248_v58 = vcombine.low %v635_v46, %v639_v47  ;;  %v7255_v59 = vcombine.high %v642_v52, %v646_v53  ;;  %v7257_v60 = vcombine.high %v643_v54, %v647_v55  ;;  %v576_v46 = vld [vmem:[%s8050_s20 + $0x30] sm:$0xff]  ;;  %v573_v47 = vld [vmem:[%s8050_s20 + $0x18] sm:$0xff] }
 0x170   : > { %1936 = vmatprep.mubr.bf16.mxu1 %v8067_v0  ;;  %1979 = vmatprep.mubr.bf16.mxu0 %v8067_v0 }
 0x172   : > { %1907 = vmatpush1.bf16.msra.mxu1 %v7190_v1  ;;  %1950 = vmatpush1.bf16.msra.mxu0 %v7192_v2  ;;  %v655_v1 = vld [vmem:[%s8050_s20 + $0x2a8] sm:$0xff]  ;;  %v7254_v2 = vcombine.low %v642_v52, %v646_v53  ;;  %v580_v53 = vld [vmem:[%s8050_s20 + $0x50] sm:$0xff] }
 0x173   : > { %1908 = vmatprep.subr.bf16.mxu1 %v7199_v3  ;;  %1951 = vmatprep.subr.bf16.mxu0 %v7201_v4  ;;  %v7256_v3 = vcombine.low %v643_v54, %v647_v55  ;;  %v7263_v4 = vcombine.high %v650_v61, %v654_v62  ;;  %v7265_v5 = vcombine.high %v651_v63, %v655_v1  ;;  %v584_v54 = vld [vmem:[%s8050_s20 + $0x70] sm:$0xff]  ;;  %v581_v55 = vld [vmem:[%s8050_s20 + $0x58] sm:$0xff] }
 0x176   : > { %1909 = vmatpush1.bf16.msra.mxu1 %v7198_v56  ;;  %1952 = vmatpush1.bf16.msra.mxu0 %v7200_v9  ;;  %v663_v56 = vld [vmem:[%s8050_s20 + $0x2e8] sm:$0xff]  ;;  %v7262_v9 = vcombine.low %v650_v61, %v654_v62  ;;  %v7195_v61 = vcombine.high %v580_v53, %v584_v54 }
 0x177   : > { %1910 = vmatprep.subr.bf16.mxu1 %v7207_v10  ;;  %1953 = vmatprep.subr.bf16.mxu0 %v7209_v11  ;;  %v7264_v10 = vcombine.low %v651_v63, %v655_v1  ;;  %v7271_v11 = vcombine.high %v658_v6, %v662_v7  ;;  %v7273_v12 = vcombine.high %v659_v8, %v663_v56  ;;  %v588_v63 = vld [vmem:[%s8050_s20 + $0x90] sm:$0xff] }
 0x178   : > { %v592_v1 = vld [vmem:[%s8050_s20 + $0xb0] sm:$0xff] }
 0x17a   : > { %1911 = vmatpush1.bf16.msra.mxu1 %v7206_v16  ;;  %1954 = vmatpush1.bf16.msra.mxu0 %v7208_v17  ;;  %v671_v16 = vld [vmem:[%s8050_s20 + $0x328] sm:$0xff]  ;;  %v7270_v17 = vcombine.low %v658_v6, %v662_v7  ;;  %v7203_v6 = vcombine.high %v588_v63, %v592_v1 }
 0x17b   : > { %1912 = vmatprep.subr.bf16.mxu1 %v7215_v18  ;;  %1955 = vmatprep.subr.bf16.mxu0 %v7217_v19  ;;  %v7272_v18 = vcombine.low %v659_v8, %v663_v56  ;;  %v7279_v19 = vcombine.high %v666_v13, %v670_v14  ;;  %v7281_v20 = vcombine.high %v667_v15, %v671_v16  ;;  %v596_v8 = vld [vmem:[%s8050_s20 + $0xd0] sm:$0xff] }
 0x17c   : > { %v600_v56 = vld [vmem:[%s8050_s20 + $0xf0] sm:$0xff] }
 0x17e   : > { %1913 = vmatpush1.bf16.msra.mxu1 %v7214_v24  ;;  %1956 = vmatpush1.bf16.msra.mxu0 %v7216_v25  ;;  %v679_v24 = vld [vmem:[%s8050_s20 + $0x368] sm:$0xff]  ;;  %v7278_v25 = vcombine.low %v666_v13, %v670_v14  ;;  %v7211_v13 = vcombine.high %v596_v8, %v600_v56 }
 0x17f   : > { %1914 = vmatprep.subr.bf16.mxu1 %v7223_v26  ;;  %1957 = vmatprep.subr.bf16.mxu0 %v7225_v27  ;;  %v7280_v26 = vcombine.low %v667_v15, %v671_v16  ;;  %v7287_v27 = vcombine.high %v674_v21, %v678_v22  ;;  %v7289_v28 = vcombine.high %v675_v23, %v679_v24  ;;  %v604_v15 = vld [vmem:[%s8050_s20 + $0x110] sm:$0xff] }
 0x180   : > { %v608_v16 = vld [vmem:[%s8050_s20 + $0x130] sm:$0xff] }
 0x182   : > { %1915 = vmatpush1.bf16.msra.mxu1 %v7222_v32  ;;  %1958 = vmatpush1.bf16.msra.mxu0 %v7224_v33  ;;  %v687_v32 = vld [vmem:[%s8050_s20 + $0x3a8] sm:$0xff]  ;;  %v7286_v33 = vcombine.low %v674_v21, %v678_v22  ;;  %v612_v22 = vld [vmem:[%s8050_s20 + $0x150] sm:$0xff] }
 0x183   : > { %1916 = vmatprep.subr.bf16.mxu1 %v7231_v34  ;;  %1959 = vmatprep.subr.bf16.mxu0 %v7233_v35  ;;  %v7288_v34 = vcombine.low %v675_v23, %v679_v24  ;;  %v7295_v35 = vcombine.high %v682_v29, %v686_v30  ;;  %v7297_v36 = vcombine.high %v683_v31, %v687_v32  ;;  %v616_v23 = vld [vmem:[%s8050_s20 + $0x170] sm:$0xff]  ;;  %v613_v24 = vld [vmem:[%s8050_s20 + $0x158] sm:$0xff] }
 0x186   : > { %1917 = vmatpush1.bf16.msra.mxu1 %v7230_v40  ;;  %1960 = vmatpush1.bf16.msra.mxu0 %v7232_v41  ;;  %v695_v40 = vld [vmem:[%s8050_s20 + $0x3e8] sm:$0xff]  ;;  %v7294_v41 = vcombine.low %v682_v29, %v686_v30  ;;  %v620_v30 = vld [vmem:[%s8050_s20 + $0x190] sm:$0xff] }
 0x187   : > { %1918 = vmatprep.subr.bf16.mxu1 %v7239_v42  ;;  %1961 = vmatprep.subr.bf16.mxu0 %v7241_v43  ;;  %v7296_v42 = vcombine.low %v683_v31, %v687_v32  ;;  %v7303_v43 = vcombine.high %v690_v37, %v694_v38  ;;  %v7305_v44 = vcombine.high %v691_v39, %v695_v40  ;;  %v624_v31 = vld [vmem:[%s8050_s20 + $0x1b0] sm:$0xff]  ;;  %v621_v32 = vld [vmem:[%s8050_s20 + $0x198] sm:$0xff] }
 0x18a   : > { %1919 = vmatpush1.bf16.msra.mxu1 %v7238_v48  ;;  %1962 = vmatpush1.bf16.msra.mxu0 %v7240_v49  ;;  %v577_v48 = vld [vmem:[%s8050_s20 + $0x38] sm:$0xff]  ;;  %v7302_v49 = vcombine.low %v690_v37, %v694_v38  ;;  %v628_v38 = vld [vmem:[%s8050_s20 + $0x1d0] sm:$0xff] }
 0x18b   : > { %1920 = vmatprep.subr.bf16.mxu1 %v7247_v50  ;;  %1963 = vmatprep.subr.bf16.mxu0 %v7249_v51  ;;  %v7304_v50 = vcombine.low %v691_v39, %v695_v40  ;;  %v7187_v51 = vcombine.high %v572_v45, %v576_v46  ;;  %v7189_v52 = vcombine.high %v573_v47, %v577_v48  ;;  %v632_v39 = vld [vmem:[%s8050_s20 + $0x1f0] sm:$0xff]  ;;  %v629_v40 = vld [vmem:[%s8050_s20 + $0x1d8] sm:$0xff] }
 0x18e   : > { %1921 = vmatpush1.bf16.msra.mxu1 %v7246_v57  ;;  %1964 = vmatpush1.bf16.msra.mxu0 %v7248_v58  ;;  %v585_v57 = vld [vmem:[%s8050_s20 + $0x78] sm:$0xff]  ;;  %v8136_v58 = vld [vmem:[%s11510_s1] ss:$8 sps:$4 sm:$0x3f]  }
 0x18f   : > { %1922 = vmatprep.subr.bf16.mxu1 %v7255_v59  ;;  %1965 = vmatprep.subr.bf16.mxu0 %v7257_v60  ;;  %v7186_v59 = vcombine.low %v572_v45, %v576_v46  ;;  %v7188_v60 = vcombine.low %v573_v47, %v577_v48  ;;  %v7197_v62 = vcombine.high %v581_v55, %v585_v57  ;;  %v636_v46 = vld [vmem:[%s8050_s20 + $0x210] sm:$0xff]  ;;  %v637_v48 = vld [vmem:[%s8050_s20 + $0x218] sm:$0xff] }
 0x190   : > { %v640_v47 = vld [vmem:[%s8050_s20 + $0x230] sm:$0xff] }
 0x192   : > { %1923 = vmatpush1.bf16.msra.mxu1 %v7254_v2  ;;  %1966 = vmatpush1.bf16.msra.mxu0 %v7256_v3  ;;  %v589_v2 = vld [vmem:[%s8050_s20 + $0x98] sm:$0xff] }
 0x193   : > { %1924 = vmatprep.subr.bf16.mxu1 %v7263_v4  ;;  %1967 = vmatprep.subr.bf16.mxu0 %v7265_v5  ;;  %v593_v3 = vld [vmem:[%s8050_s20 + $0xb8] sm:$0xff]  ;;  %v7194_v4 = vcombine.low %v580_v53, %v584_v54  ;;  %v7196_v5 = vcombine.low %v581_v55, %v585_v57  ;;  %v644_v54 = vld [vmem:[%s8050_s20 + $0x250] sm:$0xff] }
 0x194   : > { %v7205_v7 = vcombine.high %v589_v2, %v593_v3  ;;  %v648_v55 = vld [vmem:[%s8050_s20 + $0x270] sm:$0xff]  ;;  %v645_v57 = vld [vmem:[%s8050_s20 + $0x258] sm:$0xff] }
 0x196   : > { %1925 = vmatpush1.bf16.msra.mxu1 %v7262_v9  ;;  %1968 = vmatpush1.bf16.msra.mxu0 %v7264_v10  ;;  %v597_v9 = vld [vmem:[%s8050_s20 + $0xd8] sm:$0xff] }
 0x197   : > { %1926 = vmatprep.subr.bf16.mxu1 %v7271_v11  ;;  %1969 = vmatprep.subr.bf16.mxu0 %v7273_v12  ;;  %v601_v10 = vld [vmem:[%s8050_s20 + $0xf8] sm:$0xff]  ;;  %v7202_v11 = vcombine.low %v588_v63, %v592_v1  ;;  %v7204_v12 = vcombine.low %v589_v2, %v593_v3  ;;  %v652_v1 = vld [vmem:[%s8050_s20 + $0x290] sm:$0xff] }
 0x198   : > { %v7213_v14 = vcombine.high %v597_v9, %v601_v10  ;;  %v656_v2 = vld [vmem:[%s8050_s20 + $0x2b0] sm:$0xff]  ;;  %v653_v3 = vld [vmem:[%s8050_s20 + $0x298] sm:$0xff] }
 0x19a   : > { %1927 = vmatpush1.bf16.msra.mxu1 %v7270_v17  ;;  %1970 = vmatpush1.bf16.msra.mxu0 %v7272_v18  ;;  %v605_v17 = vld [vmem:[%s8050_s20 + $0x118] sm:$0xff] }
 0x19b   : > { %1928 = vmatprep.subr.bf16.mxu1 %v7279_v19  ;;  %1971 = vmatprep.subr.bf16.mxu0 %v7281_v20  ;;  %v609_v18 = vld [vmem:[%s8050_s20 + $0x138] sm:$0xff]  ;;  %v7210_v19 = vcombine.low %v596_v8, %v600_v56  ;;  %v7219_v20 = vcombine.high %v604_v15, %v608_v16  ;;  %v660_v56 = vld [vmem:[%s8050_s20 + $0x2d0] sm:$0xff] }
 0x19c   : > { %v7221_v21 = vcombine.high %v605_v17, %v609_v18 }
 0x19e   : > { %1929 = vmatpush1.bf16.msra.mxu1 %v7278_v25  ;;  %1972 = vmatpush1.bf16.msra.mxu0 %v7280_v26  ;;  %v617_v25 = vld [vmem:[%s8050_s20 + $0x178] sm:$0xff]  ;;  %v7218_v26 = vcombine.low %v604_v15, %v608_v16  ;;  %v668_v16 = vld [vmem:[%s8050_s20 + $0x310] sm:$0xff] }
 0x19f   : > { %1930 = vmatprep.subr.bf16.mxu1 %v7287_v27  ;;  %1973 = vmatprep.subr.bf16.mxu0 %v7289_v28  ;;  %v7220_v27 = vcombine.low %v605_v17, %v609_v18  ;;  %v7227_v28 = vcombine.high %v612_v22, %v616_v23  ;;  %v7229_v29 = vcombine.high %v613_v24, %v617_v25  ;;  %v672_v17 = vld [vmem:[%s8050_s20 + $0x330] sm:$0xff]  ;;  %v669_v18 = vld [vmem:[%s8050_s20 + $0x318] sm:$0xff] }
 0x1a2   : > { %1931 = vmatpush1.bf16.msra.mxu1 %v7286_v33  ;;  %1974 = vmatpush1.bf16.msra.mxu0 %v7288_v34  ;;  %v625_v33 = vld [vmem:[%s8050_s20 + $0x1b8] sm:$0xff]  ;;  %v7226_v34 = vcombine.low %v612_v22, %v616_v23  ;;  %v676_v23 = vld [vmem:[%s8050_s20 + $0x350] sm:$0xff] }
 0x1a3   : > { %1932 = vmatprep.subr.bf16.mxu1 %v7295_v35  ;;  %1975 = vmatprep.subr.bf16.mxu0 %v7297_v36  ;;  %v7228_v35 = vcombine.low %v613_v24, %v617_v25  ;;  %v7235_v36 = vcombine.high %v620_v30, %v624_v31  ;;  %v7237_v37 = vcombine.high %v621_v32, %v625_v33  ;;  %v680_v24 = vld [vmem:[%s8050_s20 + $0x370] sm:$0xff]  ;;  %v677_v25 = vld [vmem:[%s8050_s20 + $0x358] sm:$0xff] }
 0x1a6   : > { %1933 = vmatpush1.bf16.msra.mxu1 %v7294_v41  ;;  %1976 = vmatpush1.bf16.msra.mxu0 %v7296_v42  ;;  %v633_v41 = vld [vmem:[%s8050_s20 + $0x1f8] sm:$0xff]  ;;  %v7234_v42 = vcombine.low %v620_v30, %v624_v31  ;;  %v684_v31 = vld [vmem:[%s8050_s20 + $0x390] sm:$0xff] }
 0x1a7   : > { %1934 = vmatprep.subr.bf16.mxu1 %v7303_v43  ;;  %1977 = vmatprep.subr.bf16.mxu0 %v7305_v44  ;;  %v7236_v43 = vcombine.low %v621_v32, %v625_v33  ;;  %v7243_v44 = vcombine.high %v628_v38, %v632_v39  ;;  %v7245_v45 = vcombine.high %v629_v40, %v633_v41  ;;  %v688_v32 = vld [vmem:[%s8050_s20 + $0x3b0] sm:$0xff]  ;;  %v685_v33 = vld [vmem:[%s8050_s20 + $0x398] sm:$0xff] }
 0x1aa   : > { %1935 = vmatpush1.bf16.msra.mxu1 %v7302_v49  ;;  %1978 = vmatpush1.bf16.msra.mxu0 %v7304_v50  ;;  %v641_v49 = vld [vmem:[%s8050_s20 + $0x238] sm:$0xff]  ;;  %v7242_v50 = vcombine.low %v628_v38, %v632_v39  ;;  %v692_v39 = vld [vmem:[%s8050_s20 + $0x3d0] sm:$0xff] }
 0x1ab   : > { %1990 = vmatprep.subr.bf16.mxu1 %v7187_v51  ;;  %2033 = vmatprep.subr.bf16.mxu0 %v7189_v52  ;;  %v7244_v51 = vcombine.low %v629_v40, %v633_v41  ;;  %v7251_v52 = vcombine.high %v636_v46, %v640_v47  ;;  %v7253_v53 = vcombine.high %v637_v48, %v641_v49  ;;  %v696_v40 = vld [vmem:[%s8050_s20 + $0x3f0] sm:$0xff]  ;;  %v693_v41 = vld [vmem:[%s8050_s20 + $0x3d8] sm:$0xff] }
 0x1ad   : > { %1937 = vmatmul.mubr.bf16.vlgmr.msra.gmra.mrb[0].mxu1 %v8136_v58  ;;  %1980 = vmatmul.mubr.bf16.vlgmr.msra.gmra.mrb[8].mxu0 %v8136_v58 }
 0x1ae   : > { %1991 = vmatpush1.bf16.msra.mxu1 %v7186_v59  ;;  %2034 = vmatpush1.bf16.msra.mxu0 %v7188_v60  ;;  %v649_v59 = vld [vmem:[%s8050_s20 + $0x278] sm:$0xff]  ;;  %v7250_v60 = vcombine.low %v636_v46, %v640_v47  ;;  %v7306_v47 = vcombine.low %v692_v39, %v696_v40 }
 0x1af   : > { %1992 = vmatprep.subr.bf16.mxu1 %v7195_v61  ;;  %2035 = vmatprep.subr.bf16.mxu0 %v7197_v62  ;;  %v7252_v61 = vcombine.low %v637_v48, %v641_v49  ;;  %v7259_v62 = vcombine.high %v644_v54, %v648_v55  ;;  %v7261_v63 = vcombine.high %v645_v57, %v649_v59  ;;  %v2078_v49 = vlaneseq }
 0x1b0   : > { %2022 = vmatprep.mubr.bf16.mxu1 %v8067_v0  ;;  %2065 = vmatprep.mubr.bf16.mxu0 %v8067_v0  ;;  %v7212_v0 = vcombine.low %v597_v9, %v601_v10  ;;  %v664_v9 = vld [vmem:[%s8050_s20 + $0x2f0] sm:$0xff]  ;;  %v661_v10 = vld [vmem:[%s8050_s20 + $0x2d8] sm:$0xff] }
 0x1b2   : > { %1993 = vmatpush1.bf16.msra.mxu1 %v7194_v4  ;;  %2036 = vmatpush1.bf16.msra.mxu0 %v7196_v5  ;;  %v657_v4 = vld [vmem:[%s8050_s20 + $0x2b8] sm:$0xff]  ;;  %v7258_v5 = vcombine.low %v644_v54, %v648_v55 }
 0x1b3   : > { %1994 = vmatprep.subr.bf16.mxu1 %v7203_v6  ;;  %2037 = vmatprep.subr.bf16.mxu0 %v7205_v7  ;;  %v7260_v6 = vcombine.low %v645_v57, %v649_v59  ;;  %v7267_v7 = vcombine.high %v652_v1, %v656_v2  ;;  %v7269_v8 = vcombine.high %v653_v3, %v657_v4 }
 0x1b6   : > { %1995 = vmatpush1.bf16.msra.mxu1 %v7202_v11  ;;  %2038 = vmatpush1.bf16.msra.mxu0 %v7204_v12  ;;  %v665_v11 = vld [vmem:[%s8050_s20 + $0x2f8] sm:$0xff]  ;;  %v7266_v12 = vcombine.low %v652_v1, %v656_v2  ;;  %v7775_v1 = vmov 1983009808  }
 0x1b7   : > { %1996 = vmatprep.subr.bf16.mxu1 %v7211_v13  ;;  %2039 = vmatprep.subr.bf16.mxu0 %v7213_v14  ;;  %v7268_v13 = vcombine.low %v653_v3, %v657_v4  ;;  %v7275_v14 = vcombine.high %v660_v56, %v664_v9  ;;  %v7277_v15 = vcombine.high %v661_v10, %v665_v11  ;;  %v2145_v2 = vunpack.c.l.s4 %v7775_v1 }
 0x1ba   : > { %1997 = vmatpush1.bf16.msra.mxu1 %v7210_v19  ;;  %2040 = vmatpush1.bf16.msra.mxu0 %v7212_v0  ;;  %v673_v19 = vld [vmem:[%s8050_s20 + $0x338] sm:$0xff]  ;;  %v7274_v0 = vcombine.low %v660_v56, %v664_v9 }
 0x1bb   : > { %1998 = vmatprep.subr.bf16.mxu1 %v7219_v20  ;;  %2041 = vmatprep.subr.bf16.mxu0 %v7221_v21  ;;  %v7276_v20 = vcombine.low %v661_v10, %v665_v11  ;;  %v7283_v21 = vcombine.high %v668_v16, %v672_v17  ;;  %v7285_v22 = vcombine.high %v669_v18, %v673_v19 }
 0x1be   : > { %1999 = vmatpush1.bf16.msra.mxu1 %v7218_v26  ;;  %2042 = vmatpush1.bf16.msra.mxu0 %v7220_v27  ;;  %v681_v26 = vld [vmem:[%s8050_s20 + $0x378] sm:$0xff]  ;;  %v7282_v27 = vcombine.low %v668_v16, %v672_v17 }
 0x1bf   : > { %2000 = vmatprep.subr.bf16.mxu1 %v7227_v28  ;;  %2043 = vmatprep.subr.bf16.mxu0 %v7229_v29  ;;  %v7284_v28 = vcombine.low %v669_v18, %v673_v19  ;;  %v7291_v29 = vcombine.high %v676_v23, %v680_v24  ;;  %v7293_v30 = vcombine.high %v677_v25, %v681_v26 }
 0x1c2   : > { %2001 = vmatpush1.bf16.msra.mxu1 %v7226_v34  ;;  %2044 = vmatpush1.bf16.msra.mxu0 %v7228_v35  ;;  %v689_v34 = vld [vmem:[%s8050_s20 + $0x3b8] sm:$0xff]  ;;  %v7290_v35 = vcombine.low %v676_v23, %v680_v24 }
 0x1c3   : > { %2002 = vmatprep.subr.bf16.mxu1 %v7235_v36  ;;  %2045 = vmatprep.subr.bf16.mxu0 %v7237_v37  ;;  %v7292_v36 = vcombine.low %v677_v25, %v681_v26  ;;  %v7299_v37 = vcombine.high %v684_v31, %v688_v32  ;;  %v7301_v38 = vcombine.high %v685_v33, %v689_v34 }
 0x1c6   : > { %2003 = vmatpush1.bf16.msra.mxu1 %v7234_v42  ;;  %2046 = vmatpush1.bf16.msra.mxu0 %v7236_v43  ;;  %v697_v42 = vld [vmem:[%s8050_s20 + $0x3f8] sm:$0xff]  ;;  %v7298_v43 = vcombine.low %v684_v31, %v688_v32 }
 0x1c7   : > { %2004 = vmatprep.subr.bf16.mxu1 %v7243_v44  ;;  %2047 = vmatprep.subr.bf16.mxu0 %v7245_v45  ;;  %v7300_v44 = vcombine.low %v685_v33, %v689_v34  ;;  %v7307_v45 = vcombine.high %v692_v39, %v696_v40  ;;  %v7309_v46 = vcombine.high %v693_v41, %v697_v42 }
 0x1c8   : > { %v7308_v48 = vcombine.low %v693_v41, %v697_v42 }
 0x1ca   : > { %2005 = vmatpush1.bf16.msra.mxu1 %v7242_v50  ;;  %2048 = vmatpush1.bf16.msra.mxu0 %v7244_v51  ;;  %v2079_v50 = vshrl.u32 %v2078_v49, 7 }
 0x1cb   : > { %2006 = vmatprep.subr.bf16.mxu1 %v7251_v52  ;;  %2049 = vmatprep.subr.bf16.mxu0 %v7253_v53  ;;  %v2076_v53 = vld [vmem:[%s331_s25] sm:$0xff] }
 0x1cc   : > { %v2096_v51 = vsub.s32 4, %v2079_v50  ;;  %v2104_v52 = vsub.s32 6, %v2079_v50  ;;  %v2100_v54 = vsub.s32 5, %v2079_v50  ;;  %v2108_v55 = vsub.s32 7, %v2079_v50 }
 0x1cd   : > { %v2092_v3 = vsub.s32 3, %v2079_v50 }
 0x1ce   : > { %2007 = vmatpush1.bf16.msra.mxu1 %v7250_v60  ;;  %2050 = vmatpush1.bf16.msra.mxu0 %v7252_v61  ;;  %v8204_v57 = vrot.slane %v2076_v53, %v2096_v51  ;;  %v8206_v59 = vrot.slane %v2076_v53, %v2104_v52  ;;  %v8208_v60 = vrot.slane %v2076_v53, %v2100_v54 }
 0x1cf   : > { %2008 = vmatprep.subr.bf16.mxu1 %v7259_v62  ;;  %2051 = vmatprep.subr.bf16.mxu0 %v7261_v63  ;;  %v8210_v61 = vrot.slane %v2076_v53, %v2108_v55  ;;  %v2088_v62 = vsub.s32 2, %v2079_v50  ;;  %v2084_v63 = vsub.s32 1, %v2079_v50 }
 0x1d2   : > { %2009 = vmatpush1.bf16.msra.mxu1 %v7258_v5  ;;  %2052 = vmatpush1.bf16.msra.mxu0 %v7260_v6  ;;  %v2089_v5 = vrot.slane %v2076_v53, %v2088_v62  ;;  %v2085_v6 = vrot.slane %v2076_v53, %v2084_v63 }
 0x1d3   : > { %2010 = vmatprep.subr.bf16.mxu1 %v7267_v7  ;;  %2053 = vmatprep.subr.bf16.mxu0 %v7269_v8  ;;  %v2146_v7 = vunpack.c.0.s8 %v2145_v2  ;;  %v2093_v8 = vrot.slane %v2076_v53, %v2092_v3 }
 0x1d6   : > { %2011 = vmatpush1.bf16.msra.mxu1 %v7266_v12  ;;  %2054 = vmatpush1.bf16.msra.mxu0 %v7268_v13 }
 0x1d7   : > { %2012 = vmatprep.subr.bf16.mxu1 %v7275_v14  ;;  %2055 = vmatprep.subr.bf16.mxu0 %v7277_v15  ;;  %v8212_v15 = vsub.s32 %v2146_v7, %v2079_v50 }
 0x1d9   : > { %11926 = vst [vmem:[#allocation11_spill] sm:$0xff] %v8212_v15 }
 0x1da   : > { %2013 = vmatpush1.bf16.msra.mxu1 %v7274_v0  ;;  %2056 = vmatpush1.bf16.msra.mxu0 %v7276_v20 }
 0x1db   : > { %2014 = vmatprep.subr.bf16.mxu1 %v7283_v21  ;;  %2057 = vmatprep.subr.bf16.mxu0 %v7285_v22 }
 0x1de   : > { %2015 = vmatpush1.bf16.msra.mxu1 %v7282_v27  ;;  %2058 = vmatpush1.bf16.msra.mxu0 %v7284_v28 }
 0x1df   : > { %2016 = vmatprep.subr.bf16.mxu1 %v7291_v29  ;;  %2059 = vmatprep.subr.bf16.mxu0 %v7293_v30 }
 0x1e2   : > { %2017 = vmatpush1.bf16.msra.mxu1 %v7290_v35  ;;  %2060 = vmatpush1.bf16.msra.mxu0 %v7292_v36 }
 0x1e3   : > { %2018 = vmatprep.subr.bf16.mxu1 %v7299_v37  ;;  %2061 = vmatprep.subr.bf16.mxu0 %v7301_v38 }
 0x1e6   : > { %2019 = vmatpush1.bf16.msra.mxu1 %v7298_v43  ;;  %2062 = vmatpush1.bf16.msra.mxu0 %v7300_v44 }
 0x1e7   : > { %2020 = vmatprep.subr.bf16.mxu1 %v7307_v45  ;;  %2063 = vmatprep.subr.bf16.mxu0 %v7309_v46 }
 0x1ea   : > { %2021 = vmatpush1.bf16.msra.mxu1 %v7306_v47  ;;  %2064 = vmatpush1.bf16.msra.mxu0 %v7308_v48 }
 0x1ed   : > { %2023 = vmatmul.mubr.bf16.vlgmr.msra.gmra.mrb[4].mxu1 %v8136_v58  ;;  %2066 = vmatmul.mubr.bf16.vlgmr.msra.gmra.mrb[12].mxu0 %v8136_v58  ;;  %v2080_v58 = vsub.s32 0, %v2079_v50 }
 0x1ef   : > { %v2081_v4 = vrot.slane %v2076_v53, %v2080_v58 }
 0x280   : > { %v1938_v56 = vpop.f32.mrb[0].mxu1  ;;  %v1981_v9 = vpop.f32.mrb[8].mxu0 }
 0x281   : > { %v2118_v10 = vadd.f32 %v2081_v4, %v1938_v56  ;;  %v2120_v11 = vadd.f32 %v2089_v5, %v1981_v9  ;;  %v1940_v12 = vpop.f32.mrb[1].mxu1  ;;  %v1983_v13 = vpop.f32.mrb[9].mxu0 }
 0x282   : > { %v2119_v14 = vadd.f32 %v2085_v6, %v1940_v12  ;;  %v2121_v16 = vadd.f32 %v2093_v8, %v1983_v13  ;;  %v1942_v17 = vpop.f32.mrb[2].mxu1  ;;  %v1985_v18 = vpop.f32.mrb[10].mxu0 }
 0x283   : > { %v2126_v19 = vadd.f32 %v2081_v4, %v1942_v17  ;;  %v2128_v0 = vadd.f32 %v2089_v5, %v1985_v18  ;;  %v1944_v20 = vpop.f32.mrb[3].mxu1  ;;  %v1987_v21 = vpop.f32.mrb[11].mxu0 }
 0x284   : > { %v2142_v22 = vcombine.low %v2118_v10, %v2119_v14  ;;  %v2187_v23 = vcombine.high %v2118_v10, %v2119_v14  ;;  %v2143_v24 = vcombine.low %v2120_v11, %v2121_v16  ;;  %v2188_v25 = vcombine.high %v2120_v11, %v2121_v16 }
 0x285   : > { %v2127_v26 = vadd.f32 %v2085_v6, %v1944_v20  ;;  %v2129_v27 = vadd.f32 %v2093_v8, %v1987_v21 }
 0x286   : > { %v2150_v28 = vrot.slane %v2142_v22, %v8212_v15  ;;  %v2195_v29 = vrot.slane %v2187_v23, %v8212_v15  ;;  %v2157_v30 = vrot.slane %v2143_v24, %v8212_v15  ;;  %v2202_v31 = vrot.slane %v2188_v25, %v8212_v15 }
 0x287   : > { %v2241_v32 = vcombine.low %v2126_v19, %v2127_v26  ;;  %v2242_v33 = vcombine.low %v2128_v0, %v2129_v27 }
 0x288   : > { %v2158_v34 = vcombine.low %v2150_v28, %v2157_v30  ;;  %v2180_v35 = vcombine.high %v2150_v28, %v2157_v30  ;;  %v2203_v36 = vcombine.low %v2195_v29, %v2202_v31  ;;  %v2226_v37 = vcombine.high %v2195_v29, %v2202_v31 }
 0x289   : > { %v2249_v38 = vrot.slane %v2241_v32, %v8212_v15  ;;  %v2256_v39 = vrot.slane %v2242_v33, %v8212_v15 }
 0x28a   : > { %2178 = vst [vmem:[#allocation2] sm:$0xff] %v2158_v34  ;;  %2185 = vst [vmem:[#allocation2 + $0x10] sm:$0xff] %v2180_v35 }
 0x28b   : > { %2224 = vst [vmem:[#allocation2 + $0x20] sm:$0xff] %v2203_v36  ;;  %2231 = vst [vmem:[#allocation2 + $0x30] sm:$0xff] %v2226_v37  ;;  %v2257_v40 = vcombine.low %v2249_v38, %v2256_v39  ;;  %v2280_v41 = vcombine.high %v2249_v38, %v2256_v39 }
 0x28d   : > { %2278 = vst [vmem:[#allocation2 + $0x40] sm:$0xff] %v2257_v40  ;;  %2285 = vst [vmem:[#allocation2 + $0x50] sm:$0xff] %v2280_v41 }
 0x2c0   : > { %v2024_v42 = vpop.f32.mrb[4].mxu1  ;;  %v2067_v43 = vpop.f32.mrb[12].mxu0 }
 0x2c1   : > { %v2122_v44 = vadd.f32 %v8204_v57, %v2024_v42  ;;  %v2124_v45 = vadd.f32 %v8206_v59, %v2067_v43  ;;  %v2026_v46 = vpop.f32.mrb[5].mxu1  ;;  %v2069_v47 = vpop.f32.mrb[13].mxu0 }
 0x2c2   : > { %v2123_v48 = vadd.f32 %v8208_v60, %v2026_v46  ;;  %v2125_v49 = vadd.f32 %v8210_v61, %v2069_v47  ;;  %v2028_v50 = vpop.f32.mrb[6].mxu1  ;;  %v2071_v51 = vpop.f32.mrb[14].mxu0 }
 0x2c3   : > { %v2130_v52 = vadd.f32 %v8204_v57, %v2028_v50  ;;  %v2132_v53 = vadd.f32 %v8206_v59, %v2071_v51  ;;  %v2030_v54 = vpop.f32.mrb[7].mxu1  ;;  %v2073_v55 = vpop.f32.mrb[15].mxu0 }
 0x2c4   : > { %v2159_v58 = vcombine.low %v2122_v44, %v2123_v48  ;;  %v2204_v62 = vcombine.high %v2122_v44, %v2123_v48  ;;  %v2160_v63 = vcombine.low %v2124_v45, %v2125_v49  ;;  %v2205_v1 = vcombine.high %v2124_v45, %v2125_v49 }
 0x2c5   : > { %v2131_v2 = vadd.f32 %v8208_v60, %v2030_v54  ;;  %v2133_v3 = vadd.f32 %v8210_v61, %v2073_v55 }
 0x2c6   : > { %v2167_v4 = vrot.slane %v2159_v58, %v8212_v15  ;;  %v2212_v5 = vrot.slane %v2204_v62, %v8212_v15  ;;  %v2174_v6 = vrot.slane %v2160_v63, %v8212_v15  ;;  %v2219_v57 = vrot.slane %v2205_v1, %v8212_v15 }
 0x2c7   : > { %v2258_v7 = vcombine.low %v2130_v52, %v2131_v2  ;;  %v2259_v59 = vcombine.low %v2132_v53, %v2133_v3 }
 0x2c8   : > { %v2175_v8 = vcombine.low %v2167_v4, %v2174_v6  ;;  %v2181_v56 = vcombine.high %v2167_v4, %v2174_v6  ;;  %v2220_v9 = vcombine.low %v2212_v5, %v2219_v57  ;;  %v2227_v10 = vcombine.high %v2212_v5, %v2219_v57 }
 0x2c9   : > { %v2266_v11 = vrot.slane %v2258_v7, %v8212_v15  ;;  %v2273_v60 = vrot.slane %v2259_v59, %v8212_v15 }
 0x2ca   : > { %2179 = vst [vmem:[#allocation2 + $0x8] sm:$0xff] %v2175_v8  ;;  %2186 = vst [vmem:[#allocation2 + $0x18] sm:$0xff] %v2181_v56 }
 0x2cb   : > { %2225 = vst [vmem:[#allocation2 + $0x28] sm:$0xff] %v2220_v9  ;;  %2232 = vst [vmem:[#allocation2 + $0x38] sm:$0xff] %v2227_v10  ;;  %v2274_v61 = vcombine.low %v2266_v11, %v2273_v60  ;;  %v2281_v12 = vcombine.high %v2266_v11, %v2273_v60 }
 0x2cd   : > { %2279 = vst [vmem:[#allocation2 + $0x48] sm:$0xff] %v2274_v61  ;;  %2286 = vst [vmem:[#allocation2 + $0x58] sm:$0xff] %v2281_v12 }
 0x2ce   : > { %7743 = dma.done.wait [#allocation4], 16384 }
 0x2cf   : > { %7744 = vsyncadd [#allocation4], 4294950912  ;;  %p7310_p8 = scmp.ne.s32.totalorder %s7842_s9, 0 }
 0x2d1   : > { %2294 = sbr.rel (%p7310_p8) target bundleno = 2727 (0xaa7), region = 56 }
 0x2d8   : > { %v8235_v13 = vld [vmem:[#allocation3 + $0x8] sm:$0xff]  ;;  %v8237_v14 = vld [vmem:[#allocation3 + $0x18] sm:$0xff]  ;;  %v8239_v16 = vld [vmem:[#allocation3] sm:$0xff]  ;;  %v11518_v23 = vmov 0  }
 0x2d9   : > { %2425 = vmatprep.subr.bf16.mxu0 %v8235_v13  ;;  %2466 = vmatprep.subr.bf16.mxu1 %v8237_v14  ;;  %v8243_v17 = vld [vmem:[#allocation3 + $0x10] sm:$0xff]  ;;  %v8245_v18 = vld [vmem:[#allocation3 + $0x48] sm:$0xff]  ;;  %v8247_v19 = vld [vmem:[#allocation3 + $0x58] sm:$0xff] }
 0x2da   : > { %2426 = vmatpush1.bf16.msra.mxu0 %v8239_v16  ;;  %2467 = vmatpush1.bf16.msra.mxu1 %v8243_v17  ;;  %v8253_v0 = vld [vmem:[#allocation3 + $0x40] sm:$0xff]  ;;  %v8255_v20 = vld [vmem:[#allocation3 + $0x50] sm:$0xff]  ;;  %v8257_v21 = vld [vmem:[#allocation3 + $0x88] sm:$0xff] }
 0x2db   : > { %2427 = vmatprep.subr.bf16.mxu0 %v8245_v18  ;;  %2468 = vmatprep.subr.bf16.mxu1 %v8247_v19  ;;  %v8259_v22 = vld [vmem:[#allocation3 + $0x98] sm:$0xff]  ;;  %v8267_v24 = vld [vmem:[#allocation3 + $0x80] sm:$0xff]  ;;  %v8269_v25 = vld [vmem:[#allocation3 + $0x90] sm:$0xff] }
 0x2dc   : > { %2457 = vmatprep.mubr.bf16.mxu0 %v11518_v23  ;;  %2498 = vmatprep.mubr.bf16.mxu1 %v11518_v23  ;;  %v8271_v26 = vld [vmem:[#allocation3 + $0xc8] sm:$0xff]  ;;  %v8273_v27 = vld [vmem:[#allocation3 + $0xd8] sm:$0xff]  ;;  %v8279_v28 = vld [vmem:[#allocation3 + $0xc0] sm:$0xff] }
 0x2dd   : > { %v8281_v29 = vld [vmem:[#allocation3 + $0xd0] sm:$0xff]  ;;  %v8283_v30 = vld [vmem:[#allocation3 + $0x108] sm:$0xff]  ;;  %v8285_v31 = vld [vmem:[#allocation3 + $0x118] sm:$0xff] }
 0x2de   : > { %2428 = vmatpush1.bf16.msra.mxu0 %v8253_v0  ;;  %2469 = vmatpush1.bf16.msra.mxu1 %v8255_v20  ;;  %v8291_v32 = vld [vmem:[#allocation3 + $0x100] sm:$0xff]  ;;  %v8293_v33 = vld [vmem:[#allocation3 + $0x110] sm:$0xff]  ;;  %v8295_v34 = vld [vmem:[#allocation3 + $0x148] sm:$0xff] }
 0x2df   : > { %2429 = vmatprep.subr.bf16.mxu0 %v8257_v21  ;;  %2470 = vmatprep.subr.bf16.mxu1 %v8259_v22  ;;  %v8297_v35 = vld [vmem:[#allocation3 + $0x158] sm:$0xff]  ;;  %v8303_v36 = vld [vmem:[#allocation3 + $0x140] sm:$0xff]  ;;  %v8305_v37 = vld [vmem:[#allocation3 + $0x150] sm:$0xff] }
 0x2e0   : > { %v8307_v38 = vld [vmem:[#allocation3 + $0x188] sm:$0xff]  ;;  %v8309_v39 = vld [vmem:[#allocation3 + $0x198] sm:$0xff]  ;;  %v8315_v40 = vld [vmem:[#allocation3 + $0x180] sm:$0xff] }
 0x2e1   : > { %v8317_v41 = vld [vmem:[#allocation3 + $0x190] sm:$0xff]  ;;  %v8319_v42 = vld [vmem:[#allocation3 + $0x1c8] sm:$0xff]  ;;  %v8321_v43 = vld [vmem:[#allocation3 + $0x1d8] sm:$0xff] }
 0x2e2   : > { %2430 = vmatpush1.bf16.msra.mxu0 %v8267_v24  ;;  %2471 = vmatpush1.bf16.msra.mxu1 %v8269_v25  ;;  %v8327_v44 = vld [vmem:[#allocation3 + $0x1c0] sm:$0xff]  ;;  %v8329_v45 = vld [vmem:[#allocation3 + $0x1d0] sm:$0xff]  ;;  %v8331_v46 = vld [vmem:[#allocation3 + $0x208] sm:$0xff] }
 0x2e3   : > { %2431 = vmatprep.subr.bf16.mxu0 %v8271_v26  ;;  %2472 = vmatprep.subr.bf16.mxu1 %v8273_v27  ;;  %v8333_v47 = vld [vmem:[#allocation3 + $0x218] sm:$0xff]  ;;  %v8339_v48 = vld [vmem:[#allocation3 + $0x200] sm:$0xff]  ;;  %v8341_v49 = vld [vmem:[#allocation3 + $0x210] sm:$0xff] }
 0x2e4   : > { %v8343_v50 = vld [vmem:[#allocation3 + $0x248] sm:$0xff]  ;;  %v8345_v51 = vld [vmem:[#allocation3 + $0x258] sm:$0xff]  ;;  %v8351_v52 = vld [vmem:[#allocation3 + $0x240] sm:$0xff] }
 0x2e5   : > { %v8353_v53 = vld [vmem:[#allocation3 + $0x250] sm:$0xff]  ;;  %v8355_v54 = vld [vmem:[#allocation3 + $0x288] sm:$0xff]  ;;  %v8357_v55 = vld [vmem:[#allocation3 + $0x298] sm:$0xff] }
 0x2e6   : > { %2432 = vmatpush1.bf16.msra.mxu0 %v8279_v28  ;;  %2473 = vmatpush1.bf16.msra.mxu1 %v8281_v29  ;;  %v8363_v58 = vld [vmem:[#allocation3 + $0x280] sm:$0xff]  ;;  %v8365_v62 = vld [vmem:[#allocation3 + $0x290] sm:$0xff]  ;;  %v8367_v63 = vld [vmem:[#allocation3 + $0x2c8] sm:$0xff] }
 0x2e7   : > { %2433 = vmatprep.subr.bf16.mxu0 %v8283_v30  ;;  %2474 = vmatprep.subr.bf16.mxu1 %v8285_v31  ;;  %v8369_v1 = vld [vmem:[#allocation3 + $0x2d8] sm:$0xff]  ;;  %v8375_v2 = vld [vmem:[#allocation3 + $0x2c0] sm:$0xff]  ;;  %v8377_v3 = vld [vmem:[#allocation3 + $0x2d0] sm:$0xff] }
 0x2e8   : > { %v8379_v4 = vld [vmem:[#allocation3 + $0x308] sm:$0xff]  ;;  %v8381_v5 = vld [vmem:[#allocation3 + $0x318] sm:$0xff]  ;;  %v8387_v6 = vld [vmem:[#allocation3 + $0x300] sm:$0xff] }
 0x2e9   : > { %v8389_v57 = vld [vmem:[#allocation3 + $0x310] sm:$0xff]  ;;  %v8391_v7 = vld [vmem:[#allocation3 + $0x348] sm:$0xff]  ;;  %v8393_v59 = vld [vmem:[#allocation3 + $0x358] sm:$0xff] }
 0x2ea   : > { %2434 = vmatpush1.bf16.msra.mxu0 %v8291_v32  ;;  %2475 = vmatpush1.bf16.msra.mxu1 %v8293_v33  ;;  %v8399_v8 = vld [vmem:[#allocation3 + $0x340] sm:$0xff]  ;;  %v8401_v56 = vld [vmem:[#allocation3 + $0x350] sm:$0xff]  ;;  %v8403_v9 = vld [vmem:[#allocation3 + $0x388] sm:$0xff] }
 0x2eb   : > { %2435 = vmatprep.subr.bf16.mxu0 %v8295_v34  ;;  %2476 = vmatprep.subr.bf16.mxu1 %v8297_v35  ;;  %11927 = vst [vmem:[#allocation12_spill] sm:$0xff] %v8401_v56  ;;  %11928 = vst [vmem:[#allocation13_spill] sm:$0xff] %v8403_v9  ;;  %v8405_v10 = vld [vmem:[#allocation3 + $0x398] sm:$0xff]  ;;  %v8411_v11 = vld [vmem:[#allocation3 + $0x380] sm:$0xff] }
 0x2ec   : > { %11929 = vst [vmem:[#allocation14_spill] sm:$0xff] %v8405_v10  ;;  %11930 = vst [vmem:[#allocation15_spill] sm:$0xff] %v8411_v11  ;;  %v8413_v60 = vld [vmem:[#allocation3 + $0x390] sm:$0xff]  ;;  %v8415_v61 = vld [vmem:[#allocation3 + $0x3c8] sm:$0xff] }
 0x2ed   : > { %11931 = vst [vmem:[#allocation16_spill] sm:$0xff] %v8413_v60  ;;  %11932 = vst [vmem:[#allocation17_spill] sm:$0xff] %v8415_v61  ;;  %v8417_v12 = vld [vmem:[#allocation3 + $0x3d8] sm:$0xff]  ;;  %v8423_v23 = vld [vmem:[#allocation3 + $0x3c0] sm:$0xff] }
 0x2ee   : > { %2436 = vmatpush1.bf16.msra.mxu0 %v8303_v36  ;;  %2477 = vmatpush1.bf16.msra.mxu1 %v8305_v37  ;;  %11933 = vst [vmem:[#allocation18_spill] sm:$0xff] %v8417_v12  ;;  %11934 = vst [vmem:[#allocation19_spill] sm:$0xff] %v8423_v23  ;;  %v8425_v15 = vld [vmem:[#allocation3 + $0x3d0] sm:$0xff] }
 0x2ef   : > { %2437 = vmatprep.subr.bf16.mxu0 %v8307_v38  ;;  %2478 = vmatprep.subr.bf16.mxu1 %v8309_v39  ;;  %11935 = vst [vmem:[#allocation20_spill] sm:$0xff] %v8425_v15 }
 0x2f2   : > { %2438 = vmatpush1.bf16.msra.mxu0 %v8315_v40  ;;  %2479 = vmatpush1.bf16.msra.mxu1 %v8317_v41 }
 0x2f3   : > { %2439 = vmatprep.subr.bf16.mxu0 %v8319_v42  ;;  %2480 = vmatprep.subr.bf16.mxu1 %v8321_v43 }
 0x2f6   : > { %2440 = vmatpush1.bf16.msra.mxu0 %v8327_v44  ;;  %2481 = vmatpush1.bf16.msra.mxu1 %v8329_v45 }
 0x2f7   : > { %2441 = vmatprep.subr.bf16.mxu0 %v8331_v46  ;;  %2482 = vmatprep.subr.bf16.mxu1 %v8333_v47 }
 0x2fa   : > { %2442 = vmatpush1.bf16.msra.mxu0 %v8339_v48  ;;  %2483 = vmatpush1.bf16.msra.mxu1 %v8341_v49 }
 0x2fb   : > { %2443 = vmatprep.subr.bf16.mxu0 %v8343_v50  ;;  %2484 = vmatprep.subr.bf16.mxu1 %v8345_v51 }
 0x2fe   : > { %2444 = vmatpush1.bf16.msra.mxu0 %v8351_v52  ;;  %2485 = vmatpush1.bf16.msra.mxu1 %v8353_v53 }
 0x2ff   : > { %2445 = vmatprep.subr.bf16.mxu0 %v8355_v54  ;;  %2486 = vmatprep.subr.bf16.mxu1 %v8357_v55 }
 0x302   : > { %2446 = vmatpush1.bf16.msra.mxu0 %v8363_v58  ;;  %2487 = vmatpush1.bf16.msra.mxu1 %v8365_v62 }
 0x303   : > { %2447 = vmatprep.subr.bf16.mxu0 %v8367_v63  ;;  %2488 = vmatprep.subr.bf16.mxu1 %v8369_v1 }
 0x306   : > { %2448 = vmatpush1.bf16.msra.mxu0 %v8375_v2  ;;  %2489 = vmatpush1.bf16.msra.mxu1 %v8377_v3 }
 0x307   : > { %2449 = vmatprep.subr.bf16.mxu0 %v8379_v4  ;;  %2490 = vmatprep.subr.bf16.mxu1 %v8381_v5 }
 0x30a   : > { %2450 = vmatpush1.bf16.msra.mxu0 %v8387_v6  ;;  %2491 = vmatpush1.bf16.msra.mxu1 %v8389_v57 }
 0x30b   : > { %2451 = vmatprep.subr.bf16.mxu0 %v8391_v7  ;;  %2492 = vmatprep.subr.bf16.mxu1 %v8393_v59 }
 0x30e   : > { %2452 = vmatpush1.bf16.msra.mxu0 %v8399_v8  ;;  %2493 = vmatpush1.bf16.msra.mxu1 %v8401_v56  ;;  %v11942_v56 = vmov 0  }
 0x30f   : > { %2453 = vmatprep.subr.bf16.mxu0 %v8403_v9  ;;  %2494 = vmatprep.subr.bf16.mxu1 %v8405_v10  ;;  %v8427_v10 = vld [vmem:[#allocation3 + $0x28] sm:$0xff]  ;;  %v8429_v9 = vld [vmem:[#allocation3 + $0x38] sm:$0xff] }
 0x310   : > { %11936 = vst [vmem:[#allocation21_spill] sm:$0xff] %v8427_v10  ;;  %11937 = vst [vmem:[#allocation22_spill] sm:$0xff] %v8429_v9 }
 0x312   : > { %2454 = vmatpush1.bf16.msra.mxu0 %v8411_v11  ;;  %2495 = vmatpush1.bf16.msra.mxu1 %v8413_v60  ;;  %v8435_v60 = vld [vmem:[#allocation3 + $0x20] sm:$0xff]  ;;  %v8441_v11 = vld [vmem:[#allocation3 + $0x78] sm:$0xff] }
 0x313   : > { %2455 = vmatprep.subr.bf16.mxu0 %v8415_v61  ;;  %2496 = vmatprep.subr.bf16.mxu1 %v8417_v12  ;;  %11938 = vst [vmem:[#allocation23_spill] sm:$0xff] %v8435_v60  ;;  %v8437_v61 = vld [vmem:[#allocation3 + $0x30] sm:$0xff]  ;;  %v8439_v12 = vld [vmem:[#allocation3 + $0x68] sm:$0xff]  ;;  %11941 = vst [vmem:[#allocation26_spill] sm:$0xff] %v8441_v11 }
 0x314   : > { %11939 = vst [vmem:[#allocation24_spill] sm:$0xff] %v8437_v61  ;;  %11940 = vst [vmem:[#allocation25_spill] sm:$0xff] %v8439_v12 }
 0x316   : > { %2456 = vmatpush1.bf16.msra.mxu0 %v8423_v23  ;;  %2497 = vmatpush1.bf16.msra.mxu1 %v8425_v15  ;;  %v8453_v15 = vld [vmem:[#allocation3 + $0xa8] sm:$0xff]  ;;  %v8455_v23 = vld [vmem:[#allocation3 + $0xb8] sm:$0xff] }
 0x317   : > { %2507 = vmatprep.subr.bf16.mxu0 %v8427_v10  ;;  %2548 = vmatprep.subr.bf16.mxu1 %v8429_v9  ;;  %v8449_v9 = vld [vmem:[#allocation3 + $0x60] sm:$0xff]  ;;  %v8451_v10 = vld [vmem:[#allocation3 + $0x70] sm:$0xff]  ;;  %11945 = vst [vmem:[#allocation29_spill] sm:$0xff] %v8453_v15  ;;  %11946 = vst [vmem:[#allocation30_spill] sm:$0xff] %v8455_v23 }
 0x318   : > { %11943 = vst [vmem:[#allocation27_spill] sm:$0xff] %v8449_v9  ;;  %11944 = vst [vmem:[#allocation28_spill] sm:$0xff] %v8451_v10 }
 0x319   : > { %2458 = vmatmul.mubr.bf16.vlgmr.msra.gmra.mrb[0].mxu0 %v11942_v56  ;;  %2499 = vmatmul.mubr.bf16.vlgmr.msra.gmra.mrb[0].mxu1 %v11942_v56 }
 0x31a   : > { %2508 = vmatpush1.bf16.msra.mxu0 %v8435_v60  ;;  %2549 = vmatpush1.bf16.msra.mxu1 %v8437_v61  ;;  %v8467_v61 = vld [vmem:[#allocation3 + $0xe8] sm:$0xff]  ;;  %v8469_v60 = vld [vmem:[#allocation3 + $0xf8] sm:$0xff] }
 0x31b   : > { %2509 = vmatprep.subr.bf16.mxu0 %v8439_v12  ;;  %2550 = vmatprep.subr.bf16.mxu1 %v8441_v11  ;;  %v8463_v11 = vld [vmem:[#allocation3 + $0xa0] sm:$0xff]  ;;  %v8465_v12 = vld [vmem:[#allocation3 + $0xb0] sm:$0xff]  ;;  %11949 = vst [vmem:[#allocation33_spill] sm:$0xff] %v8467_v61  ;;  %11950 = vst [vmem:[#allocation34_spill] sm:$0xff] %v8469_v60 }
 0x31c   : > { %2539 = vmatprep.mubr.bf16.mxu0 %v11942_v56  ;;  %2580 = vmatprep.mubr.bf16.mxu1 %v11942_v56  ;;  %11947 = vst [vmem:[#allocation31_spill] sm:$0xff] %v8463_v11  ;;  %11948 = vst [vmem:[#allocation32_spill] sm:$0xff] %v8465_v12 }
 0x31e   : > { %2510 = vmatpush1.bf16.msra.mxu0 %v8449_v9  ;;  %2551 = vmatpush1.bf16.msra.mxu1 %v8451_v10  ;;  %v8475_v10 = vld [vmem:[#allocation3 + $0xe0] sm:$0xff]  ;;  %v8481_v9 = vld [vmem:[#allocation3 + $0x138] sm:$0xff] }
 0x31f   : > { %2511 = vmatprep.subr.bf16.mxu0 %v8453_v15  ;;  %2552 = vmatprep.subr.bf16.mxu1 %v8455_v23  ;;  %11951 = vst [vmem:[#allocation35_spill] sm:$0xff] %v8475_v10  ;;  %v8477_v15 = vld [vmem:[#allocation3 + $0xf0] sm:$0xff]  ;;  %v8479_v23 = vld [vmem:[#allocation3 + $0x128] sm:$0xff]  ;;  %11954 = vst [vmem:[#allocation38_spill] sm:$0xff] %v8481_v9 }
 0x320   : > { %11952 = vst [vmem:[#allocation36_spill] sm:$0xff] %v8477_v15  ;;  %11953 = vst [vmem:[#allocation37_spill] sm:$0xff] %v8479_v23 }
 0x322   : > { %2512 = vmatpush1.bf16.msra.mxu0 %v8463_v11  ;;  %2553 = vmatpush1.bf16.msra.mxu1 %v8465_v12  ;;  %v8487_v12 = vld [vmem:[#allocation3 + $0x120] sm:$0xff]  ;;  %v8493_v11 = vld [vmem:[#allocation3 + $0x178] sm:$0xff] }
 0x323   : > { %2513 = vmatprep.subr.bf16.mxu0 %v8467_v61  ;;  %2554 = vmatprep.subr.bf16.mxu1 %v8469_v60  ;;  %11955 = vst [vmem:[#allocation39_spill] sm:$0xff] %v8487_v12  ;;  %v8489_v61 = vld [vmem:[#allocation3 + $0x130] sm:$0xff]  ;;  %v8491_v60 = vld [vmem:[#allocation3 + $0x168] sm:$0xff]  ;;  %11958 = vst [vmem:[#allocation42_spill] sm:$0xff] %v8493_v11 }
 0x324   : > { %11956 = vst [vmem:[#allocation40_spill] sm:$0xff] %v8489_v61  ;;  %11957 = vst [vmem:[#allocation41_spill] sm:$0xff] %v8491_v60 }
 0x326   : > { %2514 = vmatpush1.bf16.msra.mxu0 %v8475_v10  ;;  %2555 = vmatpush1.bf16.msra.mxu1 %v8477_v15  ;;  %v8499_v15 = vld [vmem:[#allocation3 + $0x160] sm:$0xff]  ;;  %v8505_v10 = vld [vmem:[#allocation3 + $0x1b8] sm:$0xff] }
 0x327   : > { %2515 = vmatprep.subr.bf16.mxu0 %v8479_v23  ;;  %2556 = vmatprep.subr.bf16.mxu1 %v8481_v9  ;;  %11959 = vst [vmem:[#allocation43_spill] sm:$0xff] %v8499_v15  ;;  %v8501_v23 = vld [vmem:[#allocation3 + $0x170] sm:$0xff]  ;;  %v8503_v9 = vld [vmem:[#allocation3 + $0x1a8] sm:$0xff]  ;;  %11962 = vst [vmem:[#allocation46_spill] sm:$0xff] %v8505_v10 }
 0x328   : > { %11960 = vst [vmem:[#allocation44_spill] sm:$0xff] %v8501_v23  ;;  %11961 = vst [vmem:[#allocation45_spill] sm:$0xff] %v8503_v9 }
 0x32a   : > { %2516 = vmatpush1.bf16.msra.mxu0 %v8487_v12  ;;  %2557 = vmatpush1.bf16.msra.mxu1 %v8489_v61  ;;  %v8511_v61 = vld [vmem:[#allocation3 + $0x1a0] sm:$0xff]  ;;  %v8517_v12 = vld [vmem:[#allocation3 + $0x1f8] sm:$0xff] }
 0x32b   : > { %2517 = vmatprep.subr.bf16.mxu0 %v8491_v60  ;;  %2558 = vmatprep.subr.bf16.mxu1 %v8493_v11  ;;  %11963 = vst [vmem:[#allocation47_spill] sm:$0xff] %v8511_v61  ;;  %v8513_v60 = vld [vmem:[#allocation3 + $0x1b0] sm:$0xff]  ;;  %v8515_v11 = vld [vmem:[#allocation3 + $0x1e8] sm:$0xff]  ;;  %11966 = vst [vmem:[#allocation50_spill] sm:$0xff] %v8517_v12 }
 0x32c   : > { %11964 = vst [vmem:[#allocation48_spill] sm:$0xff] %v8513_v60  ;;  %11965 = vst [vmem:[#allocation49_spill] sm:$0xff] %v8515_v11 }
 0x32e   : > { %2518 = vmatpush1.bf16.msra.mxu0 %v8499_v15  ;;  %2559 = vmatpush1.bf16.msra.mxu1 %v8501_v23  ;;  %v8523_v23 = vld [vmem:[#allocation3 + $0x1e0] sm:$0xff]  ;;  %v8529_v15 = vld [vmem:[#allocation3 + $0x238] sm:$0xff] }
 0x32f   : > { %2519 = vmatprep.subr.bf16.mxu0 %v8503_v9  ;;  %2560 = vmatprep.subr.bf16.mxu1 %v8505_v10  ;;  %11967 = vst [vmem:[#allocation51_spill] sm:$0xff] %v8523_v23  ;;  %v8525_v9 = vld [vmem:[#allocation3 + $0x1f0] sm:$0xff]  ;;  %v8527_v10 = vld [vmem:[#allocation3 + $0x228] sm:$0xff]  ;;  %11970 = vst [vmem:[#allocation54_spill] sm:$0xff] %v8529_v15 }
 0x330   : > { %11968 = vst [vmem:[#allocation52_spill] sm:$0xff] %v8525_v9  ;;  %11969 = vst [vmem:[#allocation53_spill] sm:$0xff] %v8527_v10 }
 0x332   : > { %2520 = vmatpush1.bf16.msra.mxu0 %v8511_v61  ;;  %2561 = vmatpush1.bf16.msra.mxu1 %v8513_v60  ;;  %v8535_v60 = vld [vmem:[#allocation3 + $0x220] sm:$0xff]  ;;  %v8541_v61 = vld [vmem:[#allocation3 + $0x278] sm:$0xff] }
 0x333   : > { %2521 = vmatprep.subr.bf16.mxu0 %v8515_v11  ;;  %2562 = vmatprep.subr.bf16.mxu1 %v8517_v12  ;;  %11971 = vst [vmem:[#allocation55_spill] sm:$0xff] %v8535_v60  ;;  %v8537_v11 = vld [vmem:[#allocation3 + $0x230] sm:$0xff]  ;;  %v8539_v12 = vld [vmem:[#allocation3 + $0x268] sm:$0xff]  ;;  %11974 = vst [vmem:[#allocation58_spill] sm:$0xff] %v8541_v61 }
 0x334   : > { %11972 = vst [vmem:[#allocation56_spill] sm:$0xff] %v8537_v11  ;;  %11973 = vst [vmem:[#allocation57_spill] sm:$0xff] %v8539_v12 }
 0x336   : > { %2522 = vmatpush1.bf16.msra.mxu0 %v8523_v23  ;;  %2563 = vmatpush1.bf16.msra.mxu1 %v8525_v9  ;;  %v8547_v9 = vld [vmem:[#allocation3 + $0x260] sm:$0xff]  ;;  %v8553_v23 = vld [vmem:[#allocation3 + $0x2b8] sm:$0xff] }
 0x337   : > { %2523 = vmatprep.subr.bf16.mxu0 %v8527_v10  ;;  %2564 = vmatprep.subr.bf16.mxu1 %v8529_v15  ;;  %11975 = vst [vmem:[#allocation59_spill] sm:$0xff] %v8547_v9  ;;  %v8549_v10 = vld [vmem:[#allocation3 + $0x270] sm:$0xff]  ;;  %v8551_v15 = vld [vmem:[#allocation3 + $0x2a8] sm:$0xff]  ;;  %11978 = vst [vmem:[#allocation62_spill] sm:$0xff] %v8553_v23 }
 0x338   : > { %11976 = vst [vmem:[#allocation60_spill] sm:$0xff] %v8549_v10  ;;  %11977 = vst [vmem:[#allocation61_spill] sm:$0xff] %v8551_v15 }
 0x33a   : > { %2524 = vmatpush1.bf16.msra.mxu0 %v8535_v60  ;;  %2565 = vmatpush1.bf16.msra.mxu1 %v8537_v11  ;;  %v8559_v11 = vld [vmem:[#allocation3 + $0x2a0] sm:$0xff]  ;;  %v8565_v60 = vld [vmem:[#allocation3 + $0x2f8] sm:$0xff] }
 0x33b   : > { %2525 = vmatprep.subr.bf16.mxu0 %v8539_v12  ;;  %2566 = vmatprep.subr.bf16.mxu1 %v8541_v61  ;;  %11979 = vst [vmem:[#allocation63_spill] sm:$0xff] %v8559_v11  ;;  %v8561_v12 = vld [vmem:[#allocation3 + $0x2b0] sm:$0xff]  ;;  %v8563_v61 = vld [vmem:[#allocation3 + $0x2e8] sm:$0xff]  ;;  %11982 = vst [vmem:[#allocation66_spill] sm:$0xff] %v8565_v60 }
 0x33c   : > { %11980 = vst [vmem:[#allocation64_spill] sm:$0xff] %v8561_v12  ;;  %11981 = vst [vmem:[#allocation65_spill] sm:$0xff] %v8563_v61 }
 0x33e   : > { %2526 = vmatpush1.bf16.msra.mxu0 %v8547_v9  ;;  %2567 = vmatpush1.bf16.msra.mxu1 %v8549_v10  ;;  %v8571_v10 = vld [vmem:[#allocation3 + $0x2e0] sm:$0xff]  ;;  %v8577_v9 = vld [vmem:[#allocation3 + $0x338] sm:$0xff] }
 0x33f   : > { %2527 = vmatprep.subr.bf16.mxu0 %v8551_v15  ;;  %2568 = vmatprep.subr.bf16.mxu1 %v8553_v23  ;;  %11983 = vst [vmem:[#allocation67_spill] sm:$0xff] %v8571_v10  ;;  %v8573_v15 = vld [vmem:[#allocation3 + $0x2f0] sm:$0xff]  ;;  %v8575_v23 = vld [vmem:[#allocation3 + $0x328] sm:$0xff]  ;;  %11986 = vst [vmem:[#allocation70_spill] sm:$0xff] %v8577_v9 }
 0x340   : > { %11984 = vst [vmem:[#allocation68_spill] sm:$0xff] %v8573_v15  ;;  %11985 = vst [vmem:[#allocation69_spill] sm:$0xff] %v8575_v23 }
 0x342   : > { %2528 = vmatpush1.bf16.msra.mxu0 %v8559_v11  ;;  %2569 = vmatpush1.bf16.msra.mxu1 %v8561_v12  ;;  %v8583_v12 = vld [vmem:[#allocation3 + $0x320] sm:$0xff]  ;;  %v8589_v11 = vld [vmem:[#allocation3 + $0x378] sm:$0xff] }
 0x343   : > { %2529 = vmatprep.subr.bf16.mxu0 %v8563_v61  ;;  %2570 = vmatprep.subr.bf16.mxu1 %v8565_v60  ;;  %11987 = vst [vmem:[#allocation71_spill] sm:$0xff] %v8583_v12  ;;  %v8585_v61 = vld [vmem:[#allocation3 + $0x330] sm:$0xff]  ;;  %v8587_v60 = vld [vmem:[#allocation3 + $0x368] sm:$0xff]  ;;  %11990 = vst [vmem:[#allocation74_spill] sm:$0xff] %v8589_v11 }
 0x344   : > { %11988 = vst [vmem:[#allocation72_spill] sm:$0xff] %v8585_v61  ;;  %11989 = vst [vmem:[#allocation73_spill] sm:$0xff] %v8587_v60 }
 0x346   : > { %2530 = vmatpush1.bf16.msra.mxu0 %v8571_v10  ;;  %2571 = vmatpush1.bf16.msra.mxu1 %v8573_v15  ;;  %v8595_v15 = vld [vmem:[#allocation3 + $0x360] sm:$0xff]  ;;  %v8601_v10 = vld [vmem:[#allocation3 + $0x3b8] sm:$0xff] }
 0x347   : > { %2531 = vmatprep.subr.bf16.mxu0 %v8575_v23  ;;  %2572 = vmatprep.subr.bf16.mxu1 %v8577_v9  ;;  %v8597_v23 = vld [vmem:[#allocation3 + $0x370] sm:$0xff]  ;;  %v8599_v9 = vld [vmem:[#allocation3 + $0x3a8] sm:$0xff] }
 0x348   : > { %11991 = vst [vmem:[#allocation75_spill] sm:$0xff] %v8597_v23  ;;  %11992 = vst [vmem:[#allocation76_spill] sm:$0xff] %v8599_v9 }
 0x34a   : > { %2532 = vmatpush1.bf16.msra.mxu0 %v8583_v12  ;;  %2573 = vmatpush1.bf16.msra.mxu1 %v8585_v61  ;;  %v8607_v61 = vld [vmem:[#allocation3 + $0x3a0] sm:$0xff]  ;;  %v8613_v12 = vld [vmem:[#allocation3 + $0x3f8] sm:$0xff] }
 0x34b   : > { %2533 = vmatprep.subr.bf16.mxu0 %v8587_v60  ;;  %2574 = vmatprep.subr.bf16.mxu1 %v8589_v11  ;;  %v8609_v60 = vld [vmem:[#allocation3 + $0x3b0] sm:$0xff]  ;;  %v8611_v11 = vld [vmem:[#allocation3 + $0x3e8] sm:$0xff] }
 0x34e   : > { %2534 = vmatpush1.bf16.msra.mxu0 %v8595_v15  ;;  %2575 = vmatpush1.bf16.msra.mxu1 %v8597_v23  ;;  %v8619_v23 = vld [vmem:[#allocation3 + $0x3e0] sm:$0xff] }
 0x34f   : > { %2535 = vmatprep.subr.bf16.mxu0 %v8599_v9  ;;  %2576 = vmatprep.subr.bf16.mxu1 %v8601_v10  ;;  %v8621_v9 = vld [vmem:[#allocation3 + $0x3f0] sm:$0xff] }
 0x352   : > { %2536 = vmatpush1.bf16.msra.mxu0 %v8607_v61  ;;  %2577 = vmatpush1.bf16.msra.mxu1 %v8609_v60 }
 0x353   : > { %2537 = vmatprep.subr.bf16.mxu0 %v8611_v11  ;;  %2578 = vmatprep.subr.bf16.mxu1 %v8613_v12 }
 0x356   : > { %2538 = vmatpush1.bf16.msra.mxu0 %v8619_v23  ;;  %2579 = vmatpush1.bf16.msra.mxu1 %v8621_v9 }
 0x357   : > { %2815 = vmatprep.subr.bf16.mxu0 %v8235_v13  ;;  %2856 = vmatprep.subr.bf16.mxu1 %v8237_v14  ;;  %v11993_v13 = vld [vmem:[#allocation12_spill] sm:$0xff]  ;;  %v11994_v14 = vld [vmem:[#allocation13_spill] sm:$0xff] }
 0x359   : > { %2540 = vmatmul.mubr.bf16.vlgmr.msra.gmra.mrb[4].mxu0 %v11942_v56  ;;  %2581 = vmatmul.mubr.bf16.vlgmr.msra.gmra.mrb[4].mxu1 %v11942_v56 }
 0x35a   : > { %2816 = vmatpush1.bf16.msra.mxu0 %v8239_v16  ;;  %2857 = vmatpush1.bf16.msra.mxu1 %v8243_v17  ;;  %v11995_v16 = vld [vmem:[#allocation14_spill] sm:$0xff]  ;;  %v11996_v17 = vld [vmem:[#allocation15_spill] sm:$0xff] }
 0x35b   : > { %2817 = vmatprep.subr.bf16.mxu0 %v8245_v18  ;;  %2858 = vmatprep.subr.bf16.mxu1 %v8247_v19  ;;  %v11997_v18 = vld [vmem:[#allocation16_spill] sm:$0xff]  ;;  %v11998_v19 = vld [vmem:[#allocation17_spill] sm:$0xff] }
 0x35e   : > { %2818 = vmatpush1.bf16.msra.mxu0 %v8253_v0  ;;  %2859 = vmatpush1.bf16.msra.mxu1 %v8255_v20  ;;  %v11999_v0 = vld [vmem:[#allocation18_spill] sm:$0xff]  ;;  %v12000_v20 = vld [vmem:[#allocation19_spill] sm:$0xff] }
 0x35f   : > { %2819 = vmatprep.subr.bf16.mxu0 %v8257_v21  ;;  %2860 = vmatprep.subr.bf16.mxu1 %v8259_v22  ;;  %v12001_v21 = vld [vmem:[#allocation20_spill] sm:$0xff]  ;;  %v12002_v22 = vld [vmem:[#allocation21_spill] sm:$0xff] }
 0x362   : > { %2820 = vmatpush1.bf16.msra.mxu0 %v8267_v24  ;;  %2861 = vmatpush1.bf16.msra.mxu1 %v8269_v25  ;;  %v12003_v24 = vld [vmem:[#allocation22_spill] sm:$0xff] }
 0x363   : > { %2821 = vmatprep.subr.bf16.mxu0 %v8271_v26  ;;  %2862 = vmatprep.subr.bf16.mxu1 %v8273_v27 }
 0x366   : > { %2822 = vmatpush1.bf16.msra.mxu0 %v8279_v28  ;;  %2863 = vmatpush1.bf16.msra.mxu1 %v8281_v29 }
 0x367   : > { %2823 = vmatprep.subr.bf16.mxu0 %v8283_v30  ;;  %2864 = vmatprep.subr.bf16.mxu1 %v8285_v31 }
 0x36a   : > { %2824 = vmatpush1.bf16.msra.mxu0 %v8291_v32  ;;  %2865 = vmatpush1.bf16.msra.mxu1 %v8293_v33 }
 0x36b   : > { %2825 = vmatprep.subr.bf16.mxu0 %v8295_v34  ;;  %2866 = vmatprep.subr.bf16.mxu1 %v8297_v35  ;;  %v12004_v35 = vld [vmem:[#allocation11_spill] sm:$0xff] }
 0x36e   : > { %2826 = vmatpush1.bf16.msra.mxu0 %v8303_v36  ;;  %2867 = vmatpush1.bf16.msra.mxu1 %v8305_v37 }
 0x36f   : > { %2827 = vmatprep.subr.bf16.mxu0 %v8307_v38  ;;  %2868 = vmatprep.subr.bf16.mxu1 %v8309_v39  ;;  %v2295_v39 = vld [vmem:[#allocation2] sm:$0xff] }
 0x372   : > { %2828 = vmatpush1.bf16.msra.mxu0 %v8315_v40  ;;  %2869 = vmatpush1.bf16.msra.mxu1 %v8317_v41 }
 0x373   : > { %2829 = vmatprep.subr.bf16.mxu0 %v8319_v42  ;;  %2870 = vmatprep.subr.bf16.mxu1 %v8321_v43 }
 0x376   : > { %2830 = vmatpush1.bf16.msra.mxu0 %v8327_v44  ;;  %2871 = vmatpush1.bf16.msra.mxu1 %v8329_v45 }
 0x377   : > { %2831 = vmatprep.subr.bf16.mxu0 %v8331_v46  ;;  %2872 = vmatprep.subr.bf16.mxu1 %v8333_v47 }
 0x37a   : > { %2832 = vmatpush1.bf16.msra.mxu0 %v8339_v48  ;;  %2873 = vmatpush1.bf16.msra.mxu1 %v8341_v49 }
 0x37b   : > { %2833 = vmatprep.subr.bf16.mxu0 %v8343_v50  ;;  %2874 = vmatprep.subr.bf16.mxu1 %v8345_v51 }
 0x37e   : > { %2834 = vmatpush1.bf16.msra.mxu0 %v8351_v52  ;;  %2875 = vmatpush1.bf16.msra.mxu1 %v8353_v53 }
 0x37f   : > { %2835 = vmatprep.subr.bf16.mxu0 %v8355_v54  ;;  %2876 = vmatprep.subr.bf16.mxu1 %v8357_v55 }
 0x382   : > { %2836 = vmatpush1.bf16.msra.mxu0 %v8363_v58  ;;  %2877 = vmatpush1.bf16.msra.mxu1 %v8365_v62 }
 0x383   : > { %2837 = vmatprep.subr.bf16.mxu0 %v8367_v63  ;;  %2878 = vmatprep.subr.bf16.mxu1 %v8369_v1 }
 0x386   : > { %2838 = vmatpush1.bf16.msra.mxu0 %v8375_v2  ;;  %2879 = vmatpush1.bf16.msra.mxu1 %v8377_v3  ;;  %v2296_v2 = vld [vmem:[#allocation2 + $0x8] sm:$0xff] }
 0x387   : > { %2839 = vmatprep.subr.bf16.mxu0 %v8379_v4  ;;  %2880 = vmatprep.subr.bf16.mxu1 %v8381_v5 }
 0x38a   : > { %2840 = vmatpush1.bf16.msra.mxu0 %v8387_v6  ;;  %2881 = vmatpush1.bf16.msra.mxu1 %v8389_v57 }
 0x38b   : > { %2841 = vmatprep.subr.bf16.mxu0 %v8391_v7  ;;  %2882 = vmatprep.subr.bf16.mxu1 %v8393_v59 }
 0x38e   : > { %2842 = vmatpush1.bf16.msra.mxu0 %v8399_v8  ;;  %2883 = vmatpush1.bf16.msra.mxu1 %v11993_v13 }
 0x38f   : > { %2843 = vmatprep.subr.bf16.mxu0 %v11994_v14  ;;  %2884 = vmatprep.subr.bf16.mxu1 %v11995_v16 }
 0x392   : > { %2844 = vmatpush1.bf16.msra.mxu0 %v11996_v17  ;;  %2885 = vmatpush1.bf16.msra.mxu1 %v11997_v18 }
 0x393   : > { %2845 = vmatprep.subr.bf16.mxu0 %v11998_v19  ;;  %2886 = vmatprep.subr.bf16.mxu1 %v11999_v0 }
 0x396   : > { %2846 = vmatpush1.bf16.msra.mxu0 %v12000_v20  ;;  %2887 = vmatpush1.bf16.msra.mxu1 %v12001_v21 }
 0x397   : > { %2897 = vmatprep.subr.bf16.mxu0 %v12002_v22  ;;  %2938 = vmatprep.subr.bf16.mxu1 %v12003_v24 }
 0x3ec   : > { %v2459_v25 = vpop.f32.mrb[0].mxu0  ;;  %v2500_v26 = vpop.f32.mrb[0].mxu1 }
 0x3ed   : > { %v2461_v27 = vpop.f32.mrb[1].mxu0  ;;  %v2502_v28 = vpop.f32.mrb[1].mxu1 }
 0x3ee   : > { %v2597_v29 = vcombine.low %v2459_v25, %v2461_v27  ;;  %v2598_v30 = vcombine.low %v2500_v26, %v2502_v28  ;;  %v2463_v31 = vpop.f32.mrb[2].mxu0  ;;  %v2504_v32 = vpop.f32.mrb[2].mxu1  ;;  %v12005_v25 = vld [vmem:[#allocation23_spill] sm:$0xff]  ;;  %v12006_v26 = vld [vmem:[#allocation24_spill] sm:$0xff]  ;;  %v12007_v27 = vld [vmem:[#allocation25_spill] sm:$0xff] }
 0x3ef   : > { %v2464_v33 = vpop.f32.mrb[3].mxu0  ;;  %v2505_v34 = vpop.f32.mrb[3].mxu1  ;;  %v12008_v28 = vld [vmem:[#allocation26_spill] sm:$0xff]  ;;  %v12011_v31 = vld [vmem:[#allocation29_spill] sm:$0xff] }
 0x3f0   : > { %v2605_v36 = vrot.slane %v2597_v29, %v12004_v35  ;;  %v2612_v37 = vrot.slane %v2598_v30, %v12004_v35  ;;  %v12009_v29 = vld [vmem:[#allocation27_spill] sm:$0xff]  ;;  %v12010_v30 = vld [vmem:[#allocation28_spill] sm:$0xff]  ;;  %v12012_v32 = vld [vmem:[#allocation30_spill] sm:$0xff] }
 0x3f1   : > { %v12013_v33 = vld [vmem:[#allocation31_spill] sm:$0xff]  ;;  %v12014_v34 = vld [vmem:[#allocation32_spill] sm:$0xff] }
 0x3f2   : > { %v2613_v38 = vcombine.low %v2605_v36, %v2612_v37  ;;  %v12015_v36 = vld [vmem:[#allocation33_spill] sm:$0xff]  ;;  %v12016_v37 = vld [vmem:[#allocation34_spill] sm:$0xff] }
 0x3f4   : > { %v2633_v40 = vadd.f32 %v2613_v38, %v2295_v39  ;;  %v12017_v38 = vld [vmem:[#allocation35_spill] sm:$0xff]  ;;  %v12018_v39 = vld [vmem:[#allocation36_spill] sm:$0xff] }
 0x3f6   : > { %v2642_v41 = vrot.slane %v2633_v40, 4  ;;  %v7311_v43 = vmul.f32 -1.442695, %v2633_v40  ;;  %v12019_v40 = vld [vmem:[#allocation37_spill] sm:$0xff] }
 0x3f8   : > { %v7312_v42 = vmul.f32 -1.442695, %v2642_v41  ;;  %v12020_v41 = vld [vmem:[#allocation38_spill] sm:$0xff] }
 0x3fa   : > { %7501 = vpow2.f32 %v7312_v42  ;;  %v12021_v42 = vld [vmem:[#allocation39_spill] sm:$0xff] }
 0x3fb   : > { %7503 = vpow2.f32 %v7311_v43  ;;  %v12022_v43 = vld [vmem:[#allocation40_spill] sm:$0xff] }
 0x404   : > { %v7502_v46 = vpop.eup %7501 }
 0x405   : > { %v7504_v49 = vpop.eup %7503  ;;  %v2647_v58 = vadd.f32 1.0, %v7502_v46  ;;  %v12025_v46 = vld [vmem:[#allocation43_spill] sm:$0xff] }
 0x406   : > { %v2638_v1 = vadd.f32 1.0, %v7504_v49  ;;  %v12028_v49 = vld [vmem:[#allocation46_spill] sm:$0xff] }
 0x407   : > { %7505 = vrcp.f32 %v2647_v58  ;;  %v12035_v58 = vld [vmem:[#allocation53_spill] sm:$0xff] }
 0x408   : > { %7507 = vrcp.f32 %v2638_v1  ;;  %v12038_v1 = vld [vmem:[#allocation56_spill] sm:$0xff] }
 0x411   : > { %v7506_v57 = vpop.eup %7505 }
 0x412   : > { %v7508_v7 = vpop.eup %7507  ;;  %v2660_v8 = vmul.f32 0.0, %v7506_v57  ;;  %v12044_v57 = vld [vmem:[#allocation62_spill] sm:$0xff] }
 0x42c   : > { %v2541_v44 = vpop.f32.mrb[4].mxu0  ;;  %v2582_v45 = vpop.f32.mrb[4].mxu1 }
 0x42d   : > { %v2543_v47 = vpop.f32.mrb[5].mxu0  ;;  %v2584_v48 = vpop.f32.mrb[5].mxu1 }
 0x42e   : > { %v2614_v50 = vcombine.low %v2541_v44, %v2543_v47  ;;  %v2615_v51 = vcombine.low %v2582_v45, %v2584_v48  ;;  %v2545_v52 = vpop.f32.mrb[6].mxu0  ;;  %v2586_v53 = vpop.f32.mrb[6].mxu1  ;;  %v12023_v44 = vld [vmem:[#allocation41_spill] sm:$0xff]  ;;  %v12024_v45 = vld [vmem:[#allocation42_spill] sm:$0xff]  ;;  %v12026_v47 = vld [vmem:[#allocation44_spill] sm:$0xff] }
 0x42f   : > { %v2546_v54 = vpop.f32.mrb[7].mxu0  ;;  %v2587_v55 = vpop.f32.mrb[7].mxu1  ;;  %v12027_v48 = vld [vmem:[#allocation45_spill] sm:$0xff]  ;;  %v12032_v53 = vld [vmem:[#allocation50_spill] sm:$0xff] }
 0x430   : > { %v2622_v62 = vrot.slane %v2614_v50, %v12004_v35  ;;  %v2629_v63 = vrot.slane %v2615_v51, %v12004_v35  ;;  %v12029_v50 = vld [vmem:[#allocation47_spill] sm:$0xff]  ;;  %v12030_v51 = vld [vmem:[#allocation48_spill] sm:$0xff]  ;;  %v12031_v52 = vld [vmem:[#allocation49_spill] sm:$0xff] }
 0x431   : > { %v12033_v54 = vld [vmem:[#allocation51_spill] sm:$0xff]  ;;  %v12034_v55 = vld [vmem:[#allocation52_spill] sm:$0xff] }
 0x432   : > { %v2630_v3 = vcombine.low %v2622_v62, %v2629_v63  ;;  %v12036_v62 = vld [vmem:[#allocation54_spill] sm:$0xff]  ;;  %v12037_v63 = vld [vmem:[#allocation55_spill] sm:$0xff] }
 0x434   : > { %v2634_v4 = vadd.f32 %v2630_v3, %v2296_v2  ;;  %v12039_v2 = vld [vmem:[#allocation57_spill] sm:$0xff]  ;;  %v12040_v3 = vld [vmem:[#allocation58_spill] sm:$0xff] }
 0x436   : > { %7509 = vtanh.f32 %v2634_v4  ;;  %v2652_v5 = vrot.slane %v2634_v4, 4  ;;  %v12041_v4 = vld [vmem:[#allocation59_spill] sm:$0xff] }
 0x438   : > { %v7313_v6 = vmul.f32 -1.442695, %v2652_v5  ;;  %v12042_v5 = vld [vmem:[#allocation60_spill] sm:$0xff] }
 0x43a   : > { %7511 = vpow2.f32 %v7313_v6  ;;  %v12043_v6 = vld [vmem:[#allocation61_spill] sm:$0xff] }
 0x440   : > { %v7510_v59 = vpop.eup %7509 }
 0x441   : > { %v2661_v56 = vmul.f32 %v7510_v59, %v7508_v7  ;;  %v12045_v7 = vld [vmem:[#allocation63_spill] sm:$0xff]  ;;  %v12046_v59 = vld [vmem:[#allocation64_spill] sm:$0xff] }
 0x443   : > { %v8697_v13 = vadd.f32 %v2661_v56, %v2660_v8  ;;  %v12047_v8 = vld [vmem:[#allocation65_spill] sm:$0xff]  ;;  %v12048_v56 = vld [vmem:[#allocation66_spill] sm:$0xff] }
 0x444   : > { %v7512_v14 = vpop.eup %7511 }
 0x445   : > { %v2657_v16 = vadd.f32 1.0, %v7512_v14  ;;  %7513 = vtanh.f32 %v8697_v13  ;;  %v12049_v14 = vld [vmem:[#allocation67_spill] sm:$0xff] }
 0x447   : > { %7515 = vrcp.f32 %v2657_v16  ;;  %v12050_v16 = vld [vmem:[#allocation68_spill] sm:$0xff] }
 0x44f   : > { %v7514_v17 = vpop.eup %7513 }
 0x451   : > { %v7516_v18 = vpop.eup %7515 }
 0x452   : > { %v2664_v19 = vmul.f32 %v7516_v18, %v7514_v17  ;;  %v12051_v17 = vld [vmem:[#allocation69_spill] sm:$0xff]  ;;  %v12052_v18 = vld [vmem:[#allocation70_spill] sm:$0xff] }
 0x454   : > { %v2672_v0 = vrot.slane %v2664_v19, %v12004_v35  ;;  %v12053_v19 = vld [vmem:[#allocation71_spill] sm:$0xff] }
 0x456   : > { %v2673_v20 = vcombine.high %v2672_v0, %v2672_v0  ;;  %v8701_v24 = vpack.c.bf16 %v2672_v0, %v2672_v0 }
 0x458   : > { %v2677_v21 = vpack.c.bf16 %v2673_v20, %v2673_v20  ;;  %v7367_v22 = vpack.c.bf16 %v2673_v20, %v2672_v0  ;;  %v12054_v0 = vld [vmem:[#allocation72_spill] sm:$0xff]  ;;  %v12055_v20 = vld [vmem:[#allocation73_spill] sm:$0xff] }
 0x45a   : > { %2684 = vst [vmem:[%s8005_s27] sm:$0x11] %v7367_v22  ;;  %2847 = vmatprep.mubr.bf16.mxu0 %v2677_v21  ;;  %2888 = vmatprep.mubr.bf16.mxu1 %v2677_v21  ;;  %v12057_v22 = vld [vmem:[#allocation75_spill] sm:$0xff] }
 0x45b   : > { %2848 = vmatmul.mubr.bf16.vlgmr.msra.gmra.mrb[8].mxu0 %v8701_v24  ;;  %2889 = vmatmul.mubr.bf16.vlgmr.msra.gmra.mrb[8].mxu1 %v8701_v24 }
 0x45c   : > { %2898 = vmatpush1.bf16.msra.mxu0 %v12005_v25  ;;  %2939 = vmatpush1.bf16.msra.mxu1 %v12006_v26  ;;  %v12058_v25 = vld [vmem:[#allocation76_spill] sm:$0xff]  ;;  %v8772_v26 = vld [vmem:[#allocation3 + $0x18] sm:$0xff] }
 0x45d   : > { %2929 = vmatprep.mubr.bf16.mxu0 %v2677_v21  ;;  %2970 = vmatprep.mubr.bf16.mxu1 %v2677_v21  ;;  %v12056_v21 = vld [vmem:[#allocation74_spill] sm:$0xff] }
 0x45e   : > { %2899 = vmatprep.subr.bf16.mxu0 %v12007_v27  ;;  %2940 = vmatprep.subr.bf16.mxu1 %v12008_v28  ;;  %v8800_v27 = vld [vmem:[#allocation3 + $0x80] sm:$0xff]  ;;  %v8802_v28 = vld [vmem:[#allocation3 + $0x90] sm:$0xff] }
 0x460   : > { %2900 = vmatpush1.bf16.msra.mxu0 %v12009_v29  ;;  %2941 = vmatpush1.bf16.msra.mxu1 %v12010_v30  ;;  %v8804_v29 = vld [vmem:[#allocation3 + $0xc8] sm:$0xff]  ;;  %v8806_v30 = vld [vmem:[#allocation3 + $0xd8] sm:$0xff] }
 0x461   : > { %2901 = vmatprep.subr.bf16.mxu0 %v12011_v31  ;;  %2942 = vmatprep.subr.bf16.mxu1 %v12012_v32  ;;  %v8812_v31 = vld [vmem:[#allocation3 + $0xc0] sm:$0xff]  ;;  %v8814_v32 = vld [vmem:[#allocation3 + $0xd0] sm:$0xff] }
 0x464   : > { %2902 = vmatpush1.bf16.msra.mxu0 %v12013_v33  ;;  %2943 = vmatpush1.bf16.msra.mxu1 %v12014_v34  ;;  %v8816_v33 = vld [vmem:[#allocation3 + $0x108] sm:$0xff]  ;;  %v8818_v34 = vld [vmem:[#allocation3 + $0x118] sm:$0xff] }
 0x465   : > { %2903 = vmatprep.subr.bf16.mxu0 %v12015_v36  ;;  %2944 = vmatprep.subr.bf16.mxu1 %v12016_v37  ;;  %v8824_v36 = vld [vmem:[#allocation3 + $0x100] sm:$0xff]  ;;  %v8826_v37 = vld [vmem:[#allocation3 + $0x110] sm:$0xff] }
 0x468   : > { %2904 = vmatpush1.bf16.msra.mxu0 %v12017_v38  ;;  %2945 = vmatpush1.bf16.msra.mxu1 %v12018_v39  ;;  %v8830_v38 = vld [vmem:[#allocation3 + $0x148] sm:$0xff]  ;;  %v8832_v39 = vld [vmem:[#allocation3 + $0x158] sm:$0xff] }
 0x469   : > { %2905 = vmatprep.subr.bf16.mxu0 %v12019_v40  ;;  %2946 = vmatprep.subr.bf16.mxu1 %v12020_v41  ;;  %v8836_v40 = vld [vmem:[#allocation3 + $0x140] sm:$0xff]  ;;  %v8838_v41 = vld [vmem:[#allocation3 + $0x150] sm:$0xff] }
 0x46c   : > { %2906 = vmatpush1.bf16.msra.mxu0 %v12021_v42  ;;  %2947 = vmatpush1.bf16.msra.mxu1 %v12022_v43  ;;  %v8842_v42 = vld [vmem:[#allocation3 + $0x188] sm:$0xff]  ;;  %v8844_v43 = vld [vmem:[#allocation3 + $0x198] sm:$0xff] }
 0x46d   : > { %2907 = vmatprep.subr.bf16.mxu0 %v12023_v44  ;;  %2948 = vmatprep.subr.bf16.mxu1 %v12024_v45  ;;  %v8848_v44 = vld [vmem:[#allocation3 + $0x180] sm:$0xff]  ;;  %v8850_v45 = vld [vmem:[#allocation3 + $0x190] sm:$0xff] }
 0x470   : > { %2908 = vmatpush1.bf16.msra.mxu0 %v12025_v46  ;;  %2949 = vmatpush1.bf16.msra.mxu1 %v12026_v47  ;;  %v8854_v46 = vld [vmem:[#allocation3 + $0x1c8] sm:$0xff]  ;;  %v8856_v47 = vld [vmem:[#allocation3 + $0x1d8] sm:$0xff] }
 0x471   : > { %2909 = vmatprep.subr.bf16.mxu0 %v12027_v48  ;;  %2950 = vmatprep.subr.bf16.mxu1 %v12028_v49  ;;  %v8860_v48 = vld [vmem:[#allocation3 + $0x1c0] sm:$0xff]  ;;  %v8862_v49 = vld [vmem:[#allocation3 + $0x1d0] sm:$0xff] }
 0x474   : > { %2910 = vmatpush1.bf16.msra.mxu0 %v12029_v50  ;;  %2951 = vmatpush1.bf16.msra.mxu1 %v12030_v51  ;;  %v8866_v50 = vld [vmem:[#allocation3 + $0x208] sm:$0xff]  ;;  %v8868_v51 = vld [vmem:[#allocation3 + $0x218] sm:$0xff] }
 0x475   : > { %2911 = vmatprep.subr.bf16.mxu0 %v12031_v52  ;;  %2952 = vmatprep.subr.bf16.mxu1 %v12032_v53  ;;  %v8872_v52 = vld [vmem:[#allocation3 + $0x200] sm:$0xff]  ;;  %v8874_v53 = vld [vmem:[#allocation3 + $0x210] sm:$0xff] }
 0x478   : > { %2912 = vmatpush1.bf16.msra.mxu0 %v12033_v54  ;;  %2953 = vmatpush1.bf16.msra.mxu1 %v12034_v55  ;;  %v8878_v54 = vld [vmem:[#allocation3 + $0x248] sm:$0xff]  ;;  %v8880_v55 = vld [vmem:[#allocation3 + $0x258] sm:$0xff] }
 0x479   : > { %2913 = vmatprep.subr.bf16.mxu0 %v12035_v58  ;;  %2954 = vmatprep.subr.bf16.mxu1 %v12036_v62  ;;  %v8884_v58 = vld [vmem:[#allocation3 + $0x240] sm:$0xff]  ;;  %v8886_v62 = vld [vmem:[#allocation3 + $0x250] sm:$0xff] }
 0x47c   : > { %2914 = vmatpush1.bf16.msra.mxu0 %v12037_v63  ;;  %2955 = vmatpush1.bf16.msra.mxu1 %v12038_v1  ;;  %v8890_v63 = vld [vmem:[#allocation3 + $0x288] sm:$0xff]  ;;  %v8892_v1 = vld [vmem:[#allocation3 + $0x298] sm:$0xff] }
 0x47d   : > { %2915 = vmatprep.subr.bf16.mxu0 %v12039_v2  ;;  %2956 = vmatprep.subr.bf16.mxu1 %v12040_v3  ;;  %12059 = vst [vmem:[#allocation12_spill] sm:$0xff] %v8892_v1  ;;  %v8896_v2 = vld [vmem:[#allocation3 + $0x280] sm:$0xff]  ;;  %v8898_v3 = vld [vmem:[#allocation3 + $0x290] sm:$0xff] }
 0x47e   : > { %12060 = vst [vmem:[#allocation13_spill] sm:$0xff] %v8896_v2  ;;  %12061 = vst [vmem:[#allocation14_spill] sm:$0xff] %v8898_v3 }
 0x480   : > { %2916 = vmatpush1.bf16.msra.mxu0 %v12041_v4  ;;  %2957 = vmatpush1.bf16.msra.mxu1 %v12042_v5  ;;  %v8902_v4 = vld [vmem:[#allocation3 + $0x2c8] sm:$0xff]  ;;  %v8904_v5 = vld [vmem:[#allocation3 + $0x2d8] sm:$0xff] }
 0x481   : > { %2917 = vmatprep.subr.bf16.mxu0 %v12043_v6  ;;  %2958 = vmatprep.subr.bf16.mxu1 %v12044_v57  ;;  %12062 = vst [vmem:[#allocation15_spill] sm:$0xff] %v8902_v4  ;;  %12063 = vst [vmem:[#allocation16_spill] sm:$0xff] %v8904_v5  ;;  %v8908_v6 = vld [vmem:[#allocation3 + $0x2c0] sm:$0xff]  ;;  %v8910_v57 = vld [vmem:[#allocation3 + $0x2d0] sm:$0xff] }
 0x482   : > { %12064 = vst [vmem:[#allocation17_spill] sm:$0xff] %v8908_v6  ;;  %12065 = vst [vmem:[#allocation18_spill] sm:$0xff] %v8910_v57 }
 0x484   : > { %2918 = vmatpush1.bf16.msra.mxu0 %v12045_v7  ;;  %2959 = vmatpush1.bf16.msra.mxu1 %v12046_v59  ;;  %v8914_v7 = vld [vmem:[#allocation3 + $0x308] sm:$0xff]  ;;  %v8916_v59 = vld [vmem:[#allocation3 + $0x318] sm:$0xff] }
 0x485   : > { %2919 = vmatprep.subr.bf16.mxu0 %v12047_v8  ;;  %2960 = vmatprep.subr.bf16.mxu1 %v12048_v56  ;;  %12066 = vst [vmem:[#allocation19_spill] sm:$0xff] %v8914_v7  ;;  %12067 = vst [vmem:[#allocation20_spill] sm:$0xff] %v8916_v59  ;;  %v8920_v8 = vld [vmem:[#allocation3 + $0x300] sm:$0xff]  ;;  %v8922_v56 = vld [vmem:[#allocation3 + $0x310] sm:$0xff] }
 0x486   : > { %12068 = vst [vmem:[#allocation21_spill] sm:$0xff] %v8920_v8  ;;  %12069 = vst [vmem:[#allocation22_spill] sm:$0xff] %v8922_v56 }
 0x488   : > { %2920 = vmatpush1.bf16.msra.mxu0 %v12049_v14  ;;  %2961 = vmatpush1.bf16.msra.mxu1 %v12050_v16  ;;  %v8924_v14 = vld [vmem:[#allocation3 + $0x348] sm:$0xff]  ;;  %v8926_v16 = vld [vmem:[#allocation3 + $0x358] sm:$0xff] }
 0x489   : > { %2921 = vmatprep.subr.bf16.mxu0 %v12051_v17  ;;  %2962 = vmatprep.subr.bf16.mxu1 %v12052_v18  ;;  %12070 = vst [vmem:[#allocation23_spill] sm:$0xff] %v8924_v14  ;;  %12071 = vst [vmem:[#allocation24_spill] sm:$0xff] %v8926_v16  ;;  %v8932_v17 = vld [vmem:[#allocation3 + $0x340] sm:$0xff]  ;;  %v8934_v18 = vld [vmem:[#allocation3 + $0x350] sm:$0xff] }
 0x48a   : > { %12072 = vst [vmem:[#allocation25_spill] sm:$0xff] %v8932_v17  ;;  %12073 = vst [vmem:[#allocation26_spill] sm:$0xff] %v8934_v18 }
 0x48c   : > { %2922 = vmatpush1.bf16.msra.mxu0 %v12053_v19  ;;  %2963 = vmatpush1.bf16.msra.mxu1 %v12054_v0  ;;  %v8936_v19 = vld [vmem:[#allocation3 + $0x388] sm:$0xff]  ;;  %v8938_v0 = vld [vmem:[#allocation3 + $0x398] sm:$0xff] }
 0x48d   : > { %2923 = vmatprep.subr.bf16.mxu0 %v12055_v20  ;;  %2964 = vmatprep.subr.bf16.mxu1 %v12056_v21  ;;  %12074 = vst [vmem:[#allocation27_spill] sm:$0xff] %v8936_v19  ;;  %12075 = vst [vmem:[#allocation28_spill] sm:$0xff] %v8938_v0  ;;  %v8944_v20 = vld [vmem:[#allocation3 + $0x380] sm:$0xff]  ;;  %v8946_v21 = vld [vmem:[#allocation3 + $0x390] sm:$0xff] }
 0x48e   : > { %12076 = vst [vmem:[#allocation29_spill] sm:$0xff] %v8944_v20  ;;  %12077 = vst [vmem:[#allocation30_spill] sm:$0xff] %v8946_v21 }
 0x490   : > { %2924 = vmatpush1.bf16.msra.mxu0 %v8595_v15  ;;  %2965 = vmatpush1.bf16.msra.mxu1 %v12057_v22  ;;  %v8770_v15 = vld [vmem:[#allocation3 + $0x8] sm:$0xff] }
 0x491   : > { %2925 = vmatprep.subr.bf16.mxu0 %v12058_v25  ;;  %2966 = vmatprep.subr.bf16.mxu1 %v8601_v10  ;;  %v8774_v10 = vld [vmem:[#allocation3] sm:$0xff]  ;;  %v8948_v22 = vld [vmem:[#allocation3 + $0x3c8] sm:$0xff]  ;;  %v8950_v25 = vld [vmem:[#allocation3 + $0x3d8] sm:$0xff] }
 0x492   : > { %12078 = vst [vmem:[#allocation31_spill] sm:$0xff] %v8948_v22  ;;  %12079 = vst [vmem:[#allocation32_spill] sm:$0xff] %v8950_v25 }
 0x494   : > { %2926 = vmatpush1.bf16.msra.mxu0 %v8607_v61  ;;  %2967 = vmatpush1.bf16.msra.mxu1 %v8609_v60  ;;  %v8780_v60 = vld [vmem:[#allocation3 + $0x48] sm:$0xff]  ;;  %v8790_v61 = vld [vmem:[#allocation3 + $0x50] sm:$0xff] }
 0x495   : > { %2927 = vmatprep.subr.bf16.mxu0 %v8611_v11  ;;  %2968 = vmatprep.subr.bf16.mxu1 %v8613_v12  ;;  %v8778_v11 = vld [vmem:[#allocation3 + $0x10] sm:$0xff]  ;;  %v8792_v12 = vld [vmem:[#allocation3 + $0x88] sm:$0xff] }
 0x498   : > { %2928 = vmatpush1.bf16.msra.mxu0 %v8619_v23  ;;  %2969 = vmatpush1.bf16.msra.mxu1 %v8621_v9  ;;  %v8782_v23 = vld [vmem:[#allocation3 + $0x58] sm:$0xff]  ;;  %v8788_v9 = vld [vmem:[#allocation3 + $0x40] sm:$0xff] }
 0x499   : > { %3206 = vmatprep.subr.bf16.mxu0 %v8770_v15  ;;  %3247 = vmatprep.subr.bf16.mxu1 %v8772_v26 }
 0x49b   : > { %2930 = vmatmul.mubr.bf16.vlgmr.msra.gmra.mrb[12].mxu0 %v8701_v24  ;;  %2971 = vmatmul.mubr.bf16.vlgmr.msra.gmra.mrb[12].mxu1 %v8701_v24  ;;  %v8794_v24 = vld [vmem:[#allocation3 + $0x98] sm:$0xff] }
 0x49c   : > { %3207 = vmatpush1.bf16.msra.mxu0 %v8774_v10  ;;  %3248 = vmatpush1.bf16.msra.mxu1 %v8778_v11 }
 0x49d   : > { %3208 = vmatprep.subr.bf16.mxu0 %v8780_v60  ;;  %3249 = vmatprep.subr.bf16.mxu1 %v8782_v23 }
 0x4a0   : > { %3209 = vmatpush1.bf16.msra.mxu0 %v8788_v9  ;;  %3250 = vmatpush1.bf16.msra.mxu1 %v8790_v61 }
 0x4a1   : > { %3210 = vmatprep.subr.bf16.mxu0 %v8792_v12  ;;  %3251 = vmatprep.subr.bf16.mxu1 %v8794_v24 }
 0x4a4   : > { %3211 = vmatpush1.bf16.msra.mxu0 %v8800_v27  ;;  %3252 = vmatpush1.bf16.msra.mxu1 %v8802_v28 }
 0x4a5   : > { %3212 = vmatprep.subr.bf16.mxu0 %v8804_v29  ;;  %3253 = vmatprep.subr.bf16.mxu1 %v8806_v30 }
 0x4a8   : > { %3213 = vmatpush1.bf16.msra.mxu0 %v8812_v31  ;;  %3254 = vmatpush1.bf16.msra.mxu1 %v8814_v32 }
 0x4a9   : > { %3214 = vmatprep.subr.bf16.mxu0 %v8816_v33  ;;  %3255 = vmatprep.subr.bf16.mxu1 %v8818_v34 }
 0x4ac   : > { %3215 = vmatpush1.bf16.msra.mxu0 %v8824_v36  ;;  %3256 = vmatpush1.bf16.msra.mxu1 %v8826_v37 }
 0x4ad   : > { %3216 = vmatprep.subr.bf16.mxu0 %v8830_v38  ;;  %3257 = vmatprep.subr.bf16.mxu1 %v8832_v39 }
 0x4b0   : > { %3217 = vmatpush1.bf16.msra.mxu0 %v8836_v40  ;;  %3258 = vmatpush1.bf16.msra.mxu1 %v8838_v41 }
 0x4b1   : > { %3218 = vmatprep.subr.bf16.mxu0 %v8842_v42  ;;  %3259 = vmatprep.subr.bf16.mxu1 %v8844_v43 }
 0x4b4   : > { %3219 = vmatpush1.bf16.msra.mxu0 %v8848_v44  ;;  %3260 = vmatpush1.bf16.msra.mxu1 %v8850_v45 }
 0x4b5   : > { %3220 = vmatprep.subr.bf16.mxu0 %v8854_v46  ;;  %3261 = vmatprep.subr.bf16.mxu1 %v8856_v47 }
 0x4b8   : > { %3221 = vmatpush1.bf16.msra.mxu0 %v8860_v48  ;;  %3262 = vmatpush1.bf16.msra.mxu1 %v8862_v49 }
 0x4b9   : > { %3222 = vmatprep.subr.bf16.mxu0 %v8866_v50  ;;  %3263 = vmatprep.subr.bf16.mxu1 %v8868_v51 }
 0x4bc   : > { %3223 = vmatpush1.bf16.msra.mxu0 %v8872_v52  ;;  %3264 = vmatpush1.bf16.msra.mxu1 %v8874_v53 }
 0x4bd   : > { %3224 = vmatprep.subr.bf16.mxu0 %v8878_v54  ;;  %3265 = vmatprep.subr.bf16.mxu1 %v8880_v55 }
 0x4c0   : > { %3225 = vmatpush1.bf16.msra.mxu0 %v8884_v58  ;;  %3266 = vmatpush1.bf16.msra.mxu1 %v8886_v62 }
 0x4c1   : > { %3226 = vmatprep.subr.bf16.mxu0 %v8890_v63  ;;  %3267 = vmatprep.subr.bf16.mxu1 %v8892_v1 }
 0x4c4   : > { %3227 = vmatpush1.bf16.msra.mxu0 %v8896_v2  ;;  %3268 = vmatpush1.bf16.msra.mxu1 %v8898_v3 }
 0x4c5   : > { %3228 = vmatprep.subr.bf16.mxu0 %v8902_v4  ;;  %3269 = vmatprep.subr.bf16.mxu1 %v8904_v5 }
 0x4c8   : > { %3229 = vmatpush1.bf16.msra.mxu0 %v8908_v6  ;;  %3270 = vmatpush1.bf16.msra.mxu1 %v8910_v57  ;;  %v2685_v6 = vld [vmem:[#allocation2 + $0x10] sm:$0xff] }
 0x4c9   : > { %3230 = vmatprep.subr.bf16.mxu0 %v8914_v7  ;;  %3271 = vmatprep.subr.bf16.mxu1 %v8916_v59 }
 0x4cc   : > { %3231 = vmatpush1.bf16.msra.mxu0 %v8920_v8  ;;  %3272 = vmatpush1.bf16.msra.mxu1 %v8922_v56 }
 0x4cd   : > { %3232 = vmatprep.subr.bf16.mxu0 %v8924_v14  ;;  %3273 = vmatprep.subr.bf16.mxu1 %v8926_v16 }
 0x4d0   : > { %3233 = vmatpush1.bf16.msra.mxu0 %v8932_v17  ;;  %3274 = vmatpush1.bf16.msra.mxu1 %v8934_v18  ;;  %v8956_v18 = vld [vmem:[#allocation3 + $0x3c0] sm:$0xff]  ;;  %v8964_v17 = vld [vmem:[#allocation3 + $0x38] sm:$0xff] }
 0x4d1   : > { %3234 = vmatprep.subr.bf16.mxu0 %v8936_v19  ;;  %3275 = vmatprep.subr.bf16.mxu1 %v8938_v0  ;;  %12080 = vst [vmem:[#allocation33_spill] sm:$0xff] %v8956_v18  ;;  %v8958_v19 = vld [vmem:[#allocation3 + $0x3d0] sm:$0xff]  ;;  %v8962_v0 = vld [vmem:[#allocation3 + $0x28] sm:$0xff]  ;;  %12083 = vst [vmem:[#allocation36_spill] sm:$0xff] %v8964_v17 }
 0x4d2   : > { %12081 = vst [vmem:[#allocation34_spill] sm:$0xff] %v8958_v19  ;;  %12082 = vst [vmem:[#allocation35_spill] sm:$0xff] %v8962_v0 }
 0x4d4   : > { %3235 = vmatpush1.bf16.msra.mxu0 %v8944_v20  ;;  %3276 = vmatpush1.bf16.msra.mxu1 %v8946_v21 }
 0x4d5   : > { %3236 = vmatprep.subr.bf16.mxu0 %v8948_v22  ;;  %3277 = vmatprep.subr.bf16.mxu1 %v8950_v25 }
 0x4d8   : > { %3237 = vmatpush1.bf16.msra.mxu0 %v8956_v18  ;;  %3278 = vmatpush1.bf16.msra.mxu1 %v8958_v19 }
 0x4d9   : > { %3288 = vmatprep.subr.bf16.mxu0 %v8962_v0  ;;  %3329 = vmatprep.subr.bf16.mxu1 %v8964_v17 }
 0x52e   : > { %v2849_v21 = vpop.f32.mrb[8].mxu0  ;;  %v2890_v22 = vpop.f32.mrb[8].mxu1 }
 0x52f   : > { %v2851_v20 = vpop.f32.mrb[9].mxu0  ;;  %v2892_v25 = vpop.f32.mrb[9].mxu1 }
 0x530   : > { %v2987_v16 = vcombine.low %v2849_v21, %v2851_v20  ;;  %v2988_v14 = vcombine.low %v2890_v22, %v2892_v25  ;;  %v2853_v56 = vpop.f32.mrb[10].mxu0  ;;  %v2894_v8 = vpop.f32.mrb[10].mxu1 }
 0x531   : > { %v2854_v59 = vpop.f32.mrb[11].mxu0  ;;  %v2895_v18 = vpop.f32.mrb[11].mxu1 }
 0x532   : > { %v2995_v19 = vrot.slane %v2987_v16, %v12004_v35  ;;  %v3002_v7 = vrot.slane %v2988_v14, %v12004_v35 }
 0x534   : > { %v3003_v57 = vcombine.low %v2995_v19, %v3002_v7 }
 0x536   : > { %v3023_v5 = vadd.f32 %v3003_v57, %v2685_v6 }
 0x538   : > { %v3032_v0 = vrot.slane %v3023_v5, 4  ;;  %v7315_v17 = vmul.f32 -1.442695, %v3023_v5 }
 0x53a   : > { %v7316_v4 = vmul.f32 -1.442695, %v3032_v0 }
 0x53c   : > { %7517 = vpow2.f32 %v7316_v4  ;;  %v2686_v4 = vld [vmem:[#allocation2 + $0x18] sm:$0xff] }
 0x53d   : > { %7519 = vpow2.f32 %v7315_v17 }
 0x546   : > { %v7518_v20 = vpop.eup %7517 }
 0x547   : > { %v7520_v8 = vpop.eup %7519  ;;  %v3037_v7 = vadd.f32 1.0, %v7518_v20 }
 0x548   : > { %v3028_v5 = vadd.f32 1.0, %v7520_v8 }
 0x549   : > { %7521 = vrcp.f32 %v3037_v7 }
 0x54a   : > { %7523 = vrcp.f32 %v3028_v5  ;;  %v8981_v5 = vld [vmem:[#allocation3 + $0x30] sm:$0xff] }
 0x56e   : > { %v2931_v3 = vpop.f32.mrb[12].mxu0  ;;  %v2972_v2 = vpop.f32.mrb[12].mxu1 }
 0x56f   : > { %v2933_v21 = vpop.f32.mrb[13].mxu0  ;;  %v2974_v56 = vpop.f32.mrb[13].mxu1 }
 0x570   : > { %v3004_v59 = vcombine.low %v2931_v3, %v2933_v21  ;;  %v3005_v18 = vcombine.low %v2972_v2, %v2974_v56  ;;  %v2935_v22 = vpop.f32.mrb[14].mxu0  ;;  %v2976_v16 = vpop.f32.mrb[14].mxu1 }
 0x571   : > { %v2936_v25 = vpop.f32.mrb[15].mxu0  ;;  %v2977_v14 = vpop.f32.mrb[15].mxu1 }
 0x572   : > { %v3012_v6 = vrot.slane %v3004_v59, %v12004_v35  ;;  %v3019_v57 = vrot.slane %v3005_v18, %v12004_v35  ;;  %v7522_v2 = vpop.eup %7521 }
 0x573   : > { %v7524_v3 = vpop.eup %7523  ;;  %v3050_v56 = vmul.f32 %v7522_v2, %v8697_v13  ;;  %v8979_v13 = vld [vmem:[#allocation3 + $0x20] sm:$0xff]  ;;  %v8994_v2 = vld [vmem:[#allocation3 + $0x70] sm:$0xff] }
 0x574   : > { %v3020_v17 = vcombine.low %v3012_v6, %v3019_v57 }
 0x576   : > { %v3024_v19 = vadd.f32 %v3020_v17, %v2686_v4  ;;  %v8985_v17 = vld [vmem:[#allocation3 + $0x68] sm:$0xff] }
 0x578   : > { %7525 = vtanh.f32 %v3024_v19  ;;  %v3042_v0 = vrot.slane %v3024_v19, 4  ;;  %v8987_v19 = vld [vmem:[#allocation3 + $0x78] sm:$0xff] }
 0x57a   : > { %v7317_v1 = vmul.f32 -1.442695, %v3042_v0  ;;  %v8992_v0 = vld [vmem:[#allocation3 + $0x60] sm:$0xff] }
 0x57c   : > { %7527 = vpow2.f32 %v7317_v1 }
 0x582   : > { %v7526_v21 = vpop.eup %7525 }
 0x583   : > { %v3051_v20 = vmul.f32 %v7526_v21, %v7524_v3  ;;  %v8998_v3 = vld [vmem:[#allocation3 + $0xa8] sm:$0xff]  ;;  %v9000_v21 = vld [vmem:[#allocation3 + $0xb8] sm:$0xff] }
 0x585   : > { %v8973_v22 = vadd.f32 %v3051_v20, %v3050_v56  ;;  %v9006_v56 = vld [vmem:[#allocation3 + $0xa0] sm:$0xff]  ;;  %v9008_v20 = vld [vmem:[#allocation3 + $0xb0] sm:$0xff] }
 0x586   : > { %v7528_v59 = vpop.eup %7527 }
 0x587   : > { %v3047_v18 = vadd.f32 1.0, %v7528_v59  ;;  %7529 = vtanh.f32 %v8973_v22  ;;  %v9010_v59 = vld [vmem:[#allocation3 + $0xe8] sm:$0xff] }
 0x589   : > { %7531 = vrcp.f32 %v3047_v18  ;;  %v9012_v18 = vld [vmem:[#allocation3 + $0xf8] sm:$0xff] }
 0x591   : > { %v7530_v8 = vpop.eup %7529 }
 0x593   : > { %v7532_v16 = vpop.eup %7531 }
 0x594   : > { %v3054_v25 = vmul.f32 %v7532_v16, %v7530_v8  ;;  %v9018_v8 = vld [vmem:[#allocation3 + $0xe0] sm:$0xff]  ;;  %v9020_v16 = vld [vmem:[#allocation3 + $0xf0] sm:$0xff] }
 0x595   : > { %12084 = vst [vmem:[#allocation37_spill] sm:$0xff] %v9018_v8  ;;  %12085 = vst [vmem:[#allocation38_spill] sm:$0xff] %v9020_v16 }
 0x596   : > { %v3062_v14 = vrot.slane %v3054_v25, %v12004_v35  ;;  %v9022_v25 = vld [vmem:[#allocation3 + $0x128] sm:$0xff] }
 0x597   : > { %12086 = vst [vmem:[#allocation39_spill] sm:$0xff] %v9022_v25 }
 0x598   : > { %v3063_v1 = vcombine.high %v3062_v14, %v3062_v14  ;;  %v8977_v57 = vpack.c.bf16 %v3062_v14, %v3062_v14 }
 0x59a   : > { %v3067_v7 = vpack.c.bf16 %v3063_v1, %v3063_v1  ;;  %v7368_v6 = vpack.c.bf16 %v3063_v1, %v3062_v14  ;;  %v9024_v14 = vld [vmem:[#allocation3 + $0x138] sm:$0xff]  ;;  %v9030_v1 = vld [vmem:[#allocation3 + $0x120] sm:$0xff] }
 0x59b   : > { %12087 = vst [vmem:[#allocation40_spill] sm:$0xff] %v9024_v14  ;;  %12088 = vst [vmem:[#allocation41_spill] sm:$0xff] %v9030_v1 }
 0x59c   : > { %v3073_v4 = vrot.slane %v7368_v6, 7  ;;  %3238 = vmatprep.mubr.bf16.mxu0 %v3067_v7  ;;  %3279 = vmatprep.mubr.bf16.mxu1 %v3067_v7  ;;  %v9034_v6 = vld [vmem:[#allocation3 + $0x168] sm:$0xff] }
 0x59d   : > { %3239 = vmatmul.mubr.bf16.vlgmr.msra.gmra.mrb[16].mxu0 %v8977_v57  ;;  %3280 = vmatmul.mubr.bf16.vlgmr.msra.gmra.mrb[16].mxu1 %v8977_v57  ;;  %12090 = vst [vmem:[#allocation43_spill] sm:$0xff] %v9034_v6 }
 0x59e   : > { %3075 = vst [vmem:[%s8005_s27] sm:$0x22] %v3073_v4  ;;  %3289 = vmatpush1.bf16.msra.mxu0 %v8979_v13  ;;  %3330 = vmatpush1.bf16.msra.mxu1 %v8981_v5  ;;  %v9036_v4 = vld [vmem:[#allocation3 + $0x178] sm:$0xff] }
 0x59f   : > { %3320 = vmatprep.mubr.bf16.mxu0 %v3067_v7  ;;  %3361 = vmatprep.mubr.bf16.mxu1 %v3067_v7  ;;  %v9032_v7 = vld [vmem:[#allocation3 + $0x130] sm:$0xff]  ;;  %12091 = vst [vmem:[#allocation44_spill] sm:$0xff] %v9036_v4 }
 0x5a0   : > { %3290 = vmatprep.subr.bf16.mxu0 %v8985_v17  ;;  %3331 = vmatprep.subr.bf16.mxu1 %v8987_v19  ;;  %12089 = vst [vmem:[#allocation42_spill] sm:$0xff] %v9032_v7 }
 0x5a2   : > { %3291 = vmatpush1.bf16.msra.mxu0 %v8992_v0  ;;  %3332 = vmatpush1.bf16.msra.mxu1 %v8994_v2 }
 0x5a3   : > { %3292 = vmatprep.subr.bf16.mxu0 %v8998_v3  ;;  %3333 = vmatprep.subr.bf16.mxu1 %v9000_v21 }
 0x5a6   : > { %3293 = vmatpush1.bf16.msra.mxu0 %v9006_v56  ;;  %3334 = vmatpush1.bf16.msra.mxu1 %v9008_v20 }
 0x5a7   : > { %3294 = vmatprep.subr.bf16.mxu0 %v9010_v59  ;;  %3335 = vmatprep.subr.bf16.mxu1 %v9012_v18 }
 0x5aa   : > { %3295 = vmatpush1.bf16.msra.mxu0 %v9018_v8  ;;  %3336 = vmatpush1.bf16.msra.mxu1 %v9020_v16  ;;  %v9042_v16 = vld [vmem:[#allocation3 + $0x160] sm:$0xff]  ;;  %v9048_v8 = vld [vmem:[#allocation3 + $0x1b8] sm:$0xff] }
 0x5ab   : > { %3296 = vmatprep.subr.bf16.mxu0 %v9022_v25  ;;  %3337 = vmatprep.subr.bf16.mxu1 %v9024_v14  ;;  %12092 = vst [vmem:[#allocation45_spill] sm:$0xff] %v9042_v16  ;;  %v9044_v25 = vld [vmem:[#allocation3 + $0x170] sm:$0xff]  ;;  %v9046_v14 = vld [vmem:[#allocation3 + $0x1a8] sm:$0xff]  ;;  %12095 = vst [vmem:[#allocation48_spill] sm:$0xff] %v9048_v8 }
 0x5ac   : > { %12093 = vst [vmem:[#allocation46_spill] sm:$0xff] %v9044_v25  ;;  %12094 = vst [vmem:[#allocation47_spill] sm:$0xff] %v9046_v14 }
 0x5ae   : > { %3297 = vmatpush1.bf16.msra.mxu0 %v9030_v1  ;;  %3338 = vmatpush1.bf16.msra.mxu1 %v9032_v7  ;;  %v9054_v7 = vld [vmem:[#allocation3 + $0x1a0] sm:$0xff]  ;;  %v9060_v1 = vld [vmem:[#allocation3 + $0x1f8] sm:$0xff] }
 0x5af   : > { %3298 = vmatprep.subr.bf16.mxu0 %v9034_v6  ;;  %3339 = vmatprep.subr.bf16.mxu1 %v9036_v4  ;;  %12096 = vst [vmem:[#allocation49_spill] sm:$0xff] %v9054_v7  ;;  %v9056_v6 = vld [vmem:[#allocation3 + $0x1b0] sm:$0xff]  ;;  %v9058_v4 = vld [vmem:[#allocation3 + $0x1e8] sm:$0xff]  ;;  %12099 = vst [vmem:[#allocation52_spill] sm:$0xff] %v9060_v1 }
 0x5b0   : > { %12097 = vst [vmem:[#allocation50_spill] sm:$0xff] %v9056_v6  ;;  %12098 = vst [vmem:[#allocation51_spill] sm:$0xff] %v9058_v4 }
 0x5b2   : > { %3299 = vmatpush1.bf16.msra.mxu0 %v9042_v16  ;;  %3340 = vmatpush1.bf16.msra.mxu1 %v9044_v25  ;;  %v9066_v25 = vld [vmem:[#allocation3 + $0x1e0] sm:$0xff]  ;;  %v9072_v16 = vld [vmem:[#allocation3 + $0x238] sm:$0xff] }
 0x5b3   : > { %3300 = vmatprep.subr.bf16.mxu0 %v9046_v14  ;;  %3341 = vmatprep.subr.bf16.mxu1 %v9048_v8  ;;  %12100 = vst [vmem:[#allocation53_spill] sm:$0xff] %v9066_v25  ;;  %v9068_v14 = vld [vmem:[#allocation3 + $0x1f0] sm:$0xff]  ;;  %v9070_v8 = vld [vmem:[#allocation3 + $0x228] sm:$0xff]  ;;  %12103 = vst [vmem:[#allocation56_spill] sm:$0xff] %v9072_v16 }
 0x5b4   : > { %12101 = vst [vmem:[#allocation54_spill] sm:$0xff] %v9068_v14  ;;  %12102 = vst [vmem:[#allocation55_spill] sm:$0xff] %v9070_v8 }
 0x5b6   : > { %3301 = vmatpush1.bf16.msra.mxu0 %v9054_v7  ;;  %3342 = vmatpush1.bf16.msra.mxu1 %v9056_v6  ;;  %v9078_v6 = vld [vmem:[#allocation3 + $0x220] sm:$0xff]  ;;  %v9084_v7 = vld [vmem:[#allocation3 + $0x278] sm:$0xff] }
 0x5b7   : > { %3302 = vmatprep.subr.bf16.mxu0 %v9058_v4  ;;  %3343 = vmatprep.subr.bf16.mxu1 %v9060_v1  ;;  %12104 = vst [vmem:[#allocation57_spill] sm:$0xff] %v9078_v6  ;;  %v9080_v4 = vld [vmem:[#allocation3 + $0x230] sm:$0xff]  ;;  %v9082_v1 = vld [vmem:[#allocation3 + $0x268] sm:$0xff]  ;;  %12107 = vst [vmem:[#allocation60_spill] sm:$0xff] %v9084_v7 }
 0x5b8   : > { %12105 = vst [vmem:[#allocation58_spill] sm:$0xff] %v9080_v4  ;;  %12106 = vst [vmem:[#allocation59_spill] sm:$0xff] %v9082_v1 }
 0x5ba   : > { %3303 = vmatpush1.bf16.msra.mxu0 %v9066_v25  ;;  %3344 = vmatpush1.bf16.msra.mxu1 %v9068_v14  ;;  %v9090_v14 = vld [vmem:[#allocation3 + $0x260] sm:$0xff]  ;;  %v9096_v25 = vld [vmem:[#allocation3 + $0x2b8] sm:$0xff] }
 0x5bb   : > { %3304 = vmatprep.subr.bf16.mxu0 %v9070_v8  ;;  %3345 = vmatprep.subr.bf16.mxu1 %v9072_v16  ;;  %12108 = vst [vmem:[#allocation61_spill] sm:$0xff] %v9090_v14  ;;  %v9092_v8 = vld [vmem:[#allocation3 + $0x270] sm:$0xff]  ;;  %v9094_v16 = vld [vmem:[#allocation3 + $0x2a8] sm:$0xff]  ;;  %12111 = vst [vmem:[#allocation64_spill] sm:$0xff] %v9096_v25 }
 0x5bc   : > { %12109 = vst [vmem:[#allocation62_spill] sm:$0xff] %v9092_v8  ;;  %12110 = vst [vmem:[#allocation63_spill] sm:$0xff] %v9094_v16 }
 0x5be   : > { %3305 = vmatpush1.bf16.msra.mxu0 %v9078_v6  ;;  %3346 = vmatpush1.bf16.msra.mxu1 %v9080_v4  ;;  %v9102_v4 = vld [vmem:[#allocation3 + $0x2a0] sm:$0xff]  ;;  %v9108_v6 = vld [vmem:[#allocation3 + $0x2f8] sm:$0xff] }
 0x5bf   : > { %3306 = vmatprep.subr.bf16.mxu0 %v9082_v1  ;;  %3347 = vmatprep.subr.bf16.mxu1 %v9084_v7  ;;  %12112 = vst [vmem:[#allocation65_spill] sm:$0xff] %v9102_v4  ;;  %v9104_v1 = vld [vmem:[#allocation3 + $0x2b0] sm:$0xff]  ;;  %v9106_v7 = vld [vmem:[#allocation3 + $0x2e8] sm:$0xff]  ;;  %12115 = vst [vmem:[#allocation68_spill] sm:$0xff] %v9108_v6 }
 0x5c0   : > { %12113 = vst [vmem:[#allocation66_spill] sm:$0xff] %v9104_v1  ;;  %12114 = vst [vmem:[#allocation67_spill] sm:$0xff] %v9106_v7 }
 0x5c2   : > { %3307 = vmatpush1.bf16.msra.mxu0 %v9090_v14  ;;  %3348 = vmatpush1.bf16.msra.mxu1 %v9092_v8  ;;  %v9114_v8 = vld [vmem:[#allocation3 + $0x2e0] sm:$0xff]  ;;  %v9120_v14 = vld [vmem:[#allocation3 + $0x338] sm:$0xff] }
 0x5c3   : > { %3308 = vmatprep.subr.bf16.mxu0 %v9094_v16  ;;  %3349 = vmatprep.subr.bf16.mxu1 %v9096_v25  ;;  %12116 = vst [vmem:[#allocation69_spill] sm:$0xff] %v9114_v8  ;;  %v9116_v16 = vld [vmem:[#allocation3 + $0x2f0] sm:$0xff]  ;;  %v9118_v25 = vld [vmem:[#allocation3 + $0x328] sm:$0xff]  ;;  %12119 = vst [vmem:[#allocation72_spill] sm:$0xff] %v9120_v14 }
 0x5c4   : > { %12117 = vst [vmem:[#allocation70_spill] sm:$0xff] %v9116_v16  ;;  %12118 = vst [vmem:[#allocation71_spill] sm:$0xff] %v9118_v25 }
 0x5c6   : > { %3309 = vmatpush1.bf16.msra.mxu0 %v9102_v4  ;;  %3350 = vmatpush1.bf16.msra.mxu1 %v9104_v1  ;;  %v9126_v1 = vld [vmem:[#allocation3 + $0x320] sm:$0xff]  ;;  %v9132_v4 = vld [vmem:[#allocation3 + $0x378] sm:$0xff] }
 0x5c7   : > { %3310 = vmatprep.subr.bf16.mxu0 %v9106_v7  ;;  %3351 = vmatprep.subr.bf16.mxu1 %v9108_v6  ;;  %12120 = vst [vmem:[#allocation73_spill] sm:$0xff] %v9126_v1  ;;  %v9128_v7 = vld [vmem:[#allocation3 + $0x330] sm:$0xff]  ;;  %v9130_v6 = vld [vmem:[#allocation3 + $0x368] sm:$0xff]  ;;  %12123 = vst [vmem:[#allocation76_spill] sm:$0xff] %v9132_v4 }
 0x5c8   : > { %12121 = vst [vmem:[#allocation74_spill] sm:$0xff] %v9128_v7  ;;  %12122 = vst [vmem:[#allocation75_spill] sm:$0xff] %v9130_v6 }
 0x5ca   : > { %3311 = vmatpush1.bf16.msra.mxu0 %v9114_v8  ;;  %3352 = vmatpush1.bf16.msra.mxu1 %v9116_v16  ;;  %v9138_v16 = vld [vmem:[#allocation3 + $0x360] sm:$0xff]  ;;  %v9144_v8 = vld [vmem:[#allocation3 + $0x3b8] sm:$0xff] }
 0x5cb   : > { %3312 = vmatprep.subr.bf16.mxu0 %v9118_v25  ;;  %3353 = vmatprep.subr.bf16.mxu1 %v9120_v14  ;;  %v9140_v25 = vld [vmem:[#allocation3 + $0x370] sm:$0xff]  ;;  %v9142_v14 = vld [vmem:[#allocation3 + $0x3a8] sm:$0xff] }
 0x5cc   : > { %12124 = vst [vmem:[#allocation77_spill] sm:$0xff] %v9140_v25  ;;  %12125 = vst [vmem:[#allocation78_spill] sm:$0xff] %v9142_v14 }
 0x5ce   : > { %3313 = vmatpush1.bf16.msra.mxu0 %v9126_v1  ;;  %3354 = vmatpush1.bf16.msra.mxu1 %v9128_v7  ;;  %v9150_v7 = vld [vmem:[#allocation3 + $0x3a0] sm:$0xff]  ;;  %v9156_v1 = vld [vmem:[#allocation3 + $0x3f8] sm:$0xff] }
 0x5cf   : > { %3314 = vmatprep.subr.bf16.mxu0 %v9130_v6  ;;  %3355 = vmatprep.subr.bf16.mxu1 %v9132_v4  ;;  %v9152_v6 = vld [vmem:[#allocation3 + $0x3b0] sm:$0xff]  ;;  %v9154_v4 = vld [vmem:[#allocation3 + $0x3e8] sm:$0xff] }
 0x5d2   : > { %3315 = vmatpush1.bf16.msra.mxu0 %v9138_v16  ;;  %3356 = vmatpush1.bf16.msra.mxu1 %v9140_v25  ;;  %v9162_v25 = vld [vmem:[#allocation3 + $0x3e0] sm:$0xff] }
 0x5d3   : > { %3316 = vmatprep.subr.bf16.mxu0 %v9142_v14  ;;  %3357 = vmatprep.subr.bf16.mxu1 %v9144_v8  ;;  %v9164_v14 = vld [vmem:[#allocation3 + $0x3f0] sm:$0xff] }
 0x5d6   : > { %3317 = vmatpush1.bf16.msra.mxu0 %v9150_v7  ;;  %3358 = vmatpush1.bf16.msra.mxu1 %v9152_v6 }
 0x5d7   : > { %3318 = vmatprep.subr.bf16.mxu0 %v9154_v4  ;;  %3359 = vmatprep.subr.bf16.mxu1 %v9156_v1 }
 0x5da   : > { %3319 = vmatpush1.bf16.msra.mxu0 %v9162_v25  ;;  %3360 = vmatpush1.bf16.msra.mxu1 %v9164_v14 }
 0x5db   : > { %3597 = vmatprep.subr.bf16.mxu0 %v8770_v15  ;;  %3638 = vmatprep.subr.bf16.mxu1 %v8772_v26  ;;  %v12126_v15 = vld [vmem:[#allocation12_spill] sm:$0xff]  ;;  %v12127_v26 = vld [vmem:[#allocation13_spill] sm:$0xff] }
 0x5dd   : > { %3321 = vmatmul.mubr.bf16.vlgmr.msra.gmra.mrb[20].mxu0 %v8977_v57  ;;  %3362 = vmatmul.mubr.bf16.vlgmr.msra.gmra.mrb[20].mxu1 %v8977_v57 }
 0x5de   : > { %3598 = vmatpush1.bf16.msra.mxu0 %v8774_v10  ;;  %3639 = vmatpush1.bf16.msra.mxu1 %v8778_v11  ;;  %v12128_v10 = vld [vmem:[#allocation14_spill] sm:$0xff]  ;;  %v12129_v11 = vld [vmem:[#allocation15_spill] sm:$0xff] }
 0x5df   : > { %3599 = vmatprep.subr.bf16.mxu0 %v8780_v60  ;;  %3640 = vmatprep.subr.bf16.mxu1 %v8782_v23  ;;  %v12130_v60 = vld [vmem:[#allocation16_spill] sm:$0xff]  ;;  %v12131_v23 = vld [vmem:[#allocation17_spill] sm:$0xff] }
 0x5e2   : > { %3600 = vmatpush1.bf16.msra.mxu0 %v8788_v9  ;;  %3641 = vmatpush1.bf16.msra.mxu1 %v8790_v61  ;;  %v12132_v9 = vld [vmem:[#allocation18_spill] sm:$0xff]  ;;  %v12133_v61 = vld [vmem:[#allocation19_spill] sm:$0xff] }
 0x5e3   : > { %3601 = vmatprep.subr.bf16.mxu0 %v8792_v12  ;;  %3642 = vmatprep.subr.bf16.mxu1 %v8794_v24  ;;  %v12134_v12 = vld [vmem:[#allocation20_spill] sm:$0xff]  ;;  %v12135_v24 = vld [vmem:[#allocation21_spill] sm:$0xff] }
 0x5e6   : > { %3602 = vmatpush1.bf16.msra.mxu0 %v8800_v27  ;;  %3643 = vmatpush1.bf16.msra.mxu1 %v8802_v28  ;;  %v12136_v27 = vld [vmem:[#allocation22_spill] sm:$0xff]  ;;  %v12137_v28 = vld [vmem:[#allocation23_spill] sm:$0xff] }
 0x5e7   : > { %3603 = vmatprep.subr.bf16.mxu0 %v8804_v29  ;;  %3644 = vmatprep.subr.bf16.mxu1 %v8806_v30  ;;  %v12138_v29 = vld [vmem:[#allocation24_spill] sm:$0xff]  ;;  %v12139_v30 = vld [vmem:[#allocation25_spill] sm:$0xff] }
 0x5ea   : > { %3604 = vmatpush1.bf16.msra.mxu0 %v8812_v31  ;;  %3645 = vmatpush1.bf16.msra.mxu1 %v8814_v32  ;;  %v12140_v31 = vld [vmem:[#allocation26_spill] sm:$0xff]  ;;  %v12141_v32 = vld [vmem:[#allocation27_spill] sm:$0xff] }
 0x5eb   : > { %3605 = vmatprep.subr.bf16.mxu0 %v8816_v33  ;;  %3646 = vmatprep.subr.bf16.mxu1 %v8818_v34  ;;  %v12142_v33 = vld [vmem:[#allocation28_spill] sm:$0xff]  ;;  %v12143_v34 = vld [vmem:[#allocation29_spill] sm:$0xff] }
 0x5ee   : > { %3606 = vmatpush1.bf16.msra.mxu0 %v8824_v36  ;;  %3647 = vmatpush1.bf16.msra.mxu1 %v8826_v37  ;;  %v12144_v36 = vld [vmem:[#allocation30_spill] sm:$0xff]  ;;  %v12145_v37 = vld [vmem:[#allocation31_spill] sm:$0xff] }
 0x5ef   : > { %3607 = vmatprep.subr.bf16.mxu0 %v8830_v38  ;;  %3648 = vmatprep.subr.bf16.mxu1 %v8832_v39  ;;  %v12146_v38 = vld [vmem:[#allocation32_spill] sm:$0xff]  ;;  %v12147_v39 = vld [vmem:[#allocation33_spill] sm:$0xff] }
 0x5f2   : > { %3608 = vmatpush1.bf16.msra.mxu0 %v8836_v40  ;;  %3649 = vmatpush1.bf16.msra.mxu1 %v8838_v41  ;;  %v12148_v40 = vld [vmem:[#allocation34_spill] sm:$0xff]  ;;  %v12149_v41 = vld [vmem:[#allocation35_spill] sm:$0xff] }
 0x5f3   : > { %3609 = vmatprep.subr.bf16.mxu0 %v8842_v42  ;;  %3650 = vmatprep.subr.bf16.mxu1 %v8844_v43  ;;  %v12150_v42 = vld [vmem:[#allocation36_spill] sm:$0xff] }
 0x5f6   : > { %3610 = vmatpush1.bf16.msra.mxu0 %v8848_v44  ;;  %3651 = vmatpush1.bf16.msra.mxu1 %v8850_v45 }
 0x5f7   : > { %3611 = vmatprep.subr.bf16.mxu0 %v8854_v46  ;;  %3652 = vmatprep.subr.bf16.mxu1 %v8856_v47 }
 0x5fa   : > { %3612 = vmatpush1.bf16.msra.mxu0 %v8860_v48  ;;  %3653 = vmatpush1.bf16.msra.mxu1 %v8862_v49 }
 0x5fb   : > { %3613 = vmatprep.subr.bf16.mxu0 %v8866_v50  ;;  %3654 = vmatprep.subr.bf16.mxu1 %v8868_v51 }
 0x5fe   : > { %3614 = vmatpush1.bf16.msra.mxu0 %v8872_v52  ;;  %3655 = vmatpush1.bf16.msra.mxu1 %v8874_v53 }
 0x5ff   : > { %3615 = vmatprep.subr.bf16.mxu0 %v8878_v54  ;;  %3656 = vmatprep.subr.bf16.mxu1 %v8880_v55 }
 0x602   : > { %3616 = vmatpush1.bf16.msra.mxu0 %v8884_v58  ;;  %3657 = vmatpush1.bf16.msra.mxu1 %v8886_v62  ;;  %v3076_v58 = vld [vmem:[#allocation2 + $0x20] sm:$0xff] }
 0x603   : > { %3617 = vmatprep.subr.bf16.mxu0 %v8890_v63  ;;  %3658 = vmatprep.subr.bf16.mxu1 %v12126_v15 }
 0x606   : > { %3618 = vmatpush1.bf16.msra.mxu0 %v12127_v26  ;;  %3659 = vmatpush1.bf16.msra.mxu1 %v12128_v10 }
 0x607   : > { %3619 = vmatprep.subr.bf16.mxu0 %v12129_v11  ;;  %3660 = vmatprep.subr.bf16.mxu1 %v12130_v60 }
 0x60a   : > { %3620 = vmatpush1.bf16.msra.mxu0 %v12131_v23  ;;  %3661 = vmatpush1.bf16.msra.mxu1 %v12132_v9 }
 0x60b   : > { %3621 = vmatprep.subr.bf16.mxu0 %v12133_v61  ;;  %3662 = vmatprep.subr.bf16.mxu1 %v12134_v12 }
 0x60e   : > { %3622 = vmatpush1.bf16.msra.mxu0 %v12135_v24  ;;  %3663 = vmatpush1.bf16.msra.mxu1 %v12136_v27 }
 0x60f   : > { %3623 = vmatprep.subr.bf16.mxu0 %v12137_v28  ;;  %3664 = vmatprep.subr.bf16.mxu1 %v12138_v29 }
 0x612   : > { %3624 = vmatpush1.bf16.msra.mxu0 %v12139_v30  ;;  %3665 = vmatpush1.bf16.msra.mxu1 %v12140_v31 }
 0x613   : > { %3625 = vmatprep.subr.bf16.mxu0 %v12141_v32  ;;  %3666 = vmatprep.subr.bf16.mxu1 %v12142_v33 }
 0x616   : > { %3626 = vmatpush1.bf16.msra.mxu0 %v12143_v34  ;;  %3667 = vmatpush1.bf16.msra.mxu1 %v12144_v36  ;;  %v3077_v34 = vld [vmem:[#allocation2 + $0x28] sm:$0xff] }
 0x617   : > { %3627 = vmatprep.subr.bf16.mxu0 %v12145_v37  ;;  %3668 = vmatprep.subr.bf16.mxu1 %v12146_v38 }
 0x61a   : > { %3628 = vmatpush1.bf16.msra.mxu0 %v12147_v39  ;;  %3669 = vmatpush1.bf16.msra.mxu1 %v12148_v40 }
 0x61b   : > { %3679 = vmatprep.subr.bf16.mxu0 %v12149_v41  ;;  %3720 = vmatprep.subr.bf16.mxu1 %v12150_v42 }
 0x670   : > { %v3240_v43 = vpop.f32.mrb[16].mxu0  ;;  %v3281_v44 = vpop.f32.mrb[16].mxu1 }
 0x671   : > { %v3242_v45 = vpop.f32.mrb[17].mxu0  ;;  %v3283_v46 = vpop.f32.mrb[17].mxu1 }
 0x672   : > { %v3378_v47 = vcombine.low %v3240_v43, %v3242_v45  ;;  %v3379_v48 = vcombine.low %v3281_v44, %v3283_v46  ;;  %v3244_v49 = vpop.f32.mrb[18].mxu0  ;;  %v3285_v50 = vpop.f32.mrb[18].mxu1 }
 0x673   : > { %v3245_v51 = vpop.f32.mrb[19].mxu0  ;;  %v3286_v52 = vpop.f32.mrb[19].mxu1 }
 0x674   : > { %v3386_v53 = vrot.slane %v3378_v47, %v12004_v35  ;;  %v3393_v54 = vrot.slane %v3379_v48, %v12004_v35 }
 0x676   : > { %v3394_v55 = vcombine.low %v3386_v53, %v3393_v54 }
 0x678   : > { %v3414_v62 = vadd.f32 %v3394_v55, %v3076_v58  ;;  %v12163_v58 = vld [vmem:[#allocation49_spill] sm:$0xff] }
 0x67a   : > { %v3423_v63 = vrot.slane %v3414_v62, 4  ;;  %v7319_v15 = vmul.f32 -1.442695, %v3414_v62  ;;  %v12164_v62 = vld [vmem:[#allocation50_spill] sm:$0xff] }
 0x67c   : > { %v7320_v57 = vmul.f32 -1.442695, %v3423_v63  ;;  %v12165_v63 = vld [vmem:[#allocation51_spill] sm:$0xff] }
 0x67e   : > { %7533 = vpow2.f32 %v7320_v57  ;;  %v12166_v57 = vld [vmem:[#allocation52_spill] sm:$0xff] }
 0x67f   : > { %7535 = vpow2.f32 %v7319_v15  ;;  %v12167_v15 = vld [vmem:[#allocation53_spill] sm:$0xff] }
 0x688   : > { %v7534_v11 = vpop.eup %7533 }
 0x689   : > { %v7536_v9 = vpop.eup %7535  ;;  %v3428_v30 = vadd.f32 1.0, %v7534_v11  ;;  %v12170_v11 = vld [vmem:[#allocation56_spill] sm:$0xff] }
 0x68a   : > { %v3419_v33 = vadd.f32 1.0, %v7536_v9  ;;  %v12173_v9 = vld [vmem:[#allocation59_spill] sm:$0xff] }
 0x68b   : > { %7537 = vrcp.f32 %v3428_v30  ;;  %v12180_v30 = vld [vmem:[#allocation66_spill] sm:$0xff] }
 0x68c   : > { %7539 = vrcp.f32 %v3419_v33  ;;  %v12183_v33 = vld [vmem:[#allocation69_spill] sm:$0xff] }
 0x695   : > { %v7538_v40 = vpop.eup %7537 }
 0x696   : > { %v7540_v41 = vpop.eup %7539  ;;  %v3441_v43 = vmul.f32 %v7538_v40, %v8973_v22  ;;  %v12189_v40 = vld [vmem:[#allocation75_spill] sm:$0xff] }
 0x6b0   : > { %v3322_v26 = vpop.f32.mrb[20].mxu0  ;;  %v3363_v10 = vpop.f32.mrb[20].mxu1 }
 0x6b1   : > { %v3324_v60 = vpop.f32.mrb[21].mxu0  ;;  %v3365_v23 = vpop.f32.mrb[21].mxu1 }
 0x6b2   : > { %v3395_v61 = vcombine.low %v3322_v26, %v3324_v60  ;;  %v3396_v12 = vcombine.low %v3363_v10, %v3365_v23  ;;  %v3326_v24 = vpop.f32.mrb[22].mxu0  ;;  %v3367_v27 = vpop.f32.mrb[22].mxu1  ;;  %v12168_v26 = vld [vmem:[#allocation54_spill] sm:$0xff]  ;;  %v12169_v10 = vld [vmem:[#allocation55_spill] sm:$0xff]  ;;  %v12171_v60 = vld [vmem:[#allocation57_spill] sm:$0xff] }
 0x6b3   : > { %v3327_v28 = vpop.f32.mrb[23].mxu0  ;;  %v3368_v29 = vpop.f32.mrb[23].mxu1  ;;  %v12172_v23 = vld [vmem:[#allocation58_spill] sm:$0xff]  ;;  %v12177_v27 = vld [vmem:[#allocation63_spill] sm:$0xff] }
 0x6b4   : > { %v3403_v31 = vrot.slane %v3395_v61, %v12004_v35  ;;  %v3410_v32 = vrot.slane %v3396_v12, %v12004_v35  ;;  %v12174_v61 = vld [vmem:[#allocation60_spill] sm:$0xff]  ;;  %v12175_v12 = vld [vmem:[#allocation61_spill] sm:$0xff]  ;;  %v12176_v24 = vld [vmem:[#allocation62_spill] sm:$0xff] }
 0x6b5   : > { %v12178_v28 = vld [vmem:[#allocation64_spill] sm:$0xff]  ;;  %v12179_v29 = vld [vmem:[#allocation65_spill] sm:$0xff] }
 0x6b6   : > { %v3411_v36 = vcombine.low %v3403_v31, %v3410_v32  ;;  %v12181_v31 = vld [vmem:[#allocation67_spill] sm:$0xff]  ;;  %v12182_v32 = vld [vmem:[#allocation68_spill] sm:$0xff] }
 0x6b8   : > { %v3415_v37 = vadd.f32 %v3411_v36, %v3077_v34  ;;  %v12184_v34 = vld [vmem:[#allocation70_spill] sm:$0xff]  ;;  %v12185_v36 = vld [vmem:[#allocation71_spill] sm:$0xff] }
 0x6ba   : > { %7541 = vtanh.f32 %v3415_v37  ;;  %v3433_v38 = vrot.slane %v3415_v37, 4  ;;  %v12186_v37 = vld [vmem:[#allocation72_spill] sm:$0xff] }
 0x6bc   : > { %v7321_v39 = vmul.f32 -1.442695, %v3433_v38  ;;  %v12187_v38 = vld [vmem:[#allocation73_spill] sm:$0xff] }
 0x6be   : > { %7543 = vpow2.f32 %v7321_v39  ;;  %v12188_v39 = vld [vmem:[#allocation74_spill] sm:$0xff] }
 0x6c4   : > { %v7542_v42 = vpop.eup %7541 }
 0x6c5   : > { %v3442_v44 = vmul.f32 %v7542_v42, %v7540_v41  ;;  %v12190_v41 = vld [vmem:[#allocation76_spill] sm:$0xff]  ;;  %v12191_v42 = vld [vmem:[#allocation77_spill] sm:$0xff] }
 0x6c7   : > { %v9241_v45 = vadd.f32 %v3442_v44, %v3441_v43  ;;  %v12192_v43 = vld [vmem:[#allocation78_spill] sm:$0xff] }
 0x6c8   : > { %v7544_v46 = vpop.eup %7543  ;;  %v9316_v44 = vld [vmem:[#allocation3 + $0x18] sm:$0xff] }
 0x6c9   : > { %v3438_v47 = vadd.f32 1.0, %v7544_v46  ;;  %7545 = vtanh.f32 %v9241_v45  ;;  %v9338_v46 = vld [vmem:[#allocation3 + $0x98] sm:$0xff] }
 0x6cb   : > { %7547 = vrcp.f32 %v3438_v47  ;;  %v9344_v47 = vld [vmem:[#allocation3 + $0x80] sm:$0xff] }
 0x6d3   : > { %v7546_v48 = vpop.eup %7545 }
 0x6d5   : > { %v7548_v49 = vpop.eup %7547 }
 0x6d6   : > { %v3445_v50 = vmul.f32 %v7548_v49, %v7546_v48  ;;  %v9346_v48 = vld [vmem:[#allocation3 + $0x90] sm:$0xff]  ;;  %v9348_v49 = vld [vmem:[#allocation3 + $0xc8] sm:$0xff] }
 0x6d8   : > { %v3453_v51 = vrot.slane %v3445_v50, %v12004_v35  ;;  %v9350_v50 = vld [vmem:[#allocation3 + $0xd8] sm:$0xff] }
 0x6da   : > { %v3454_v52 = vcombine.high %v3453_v51, %v3453_v51  ;;  %v9245_v55 = vpack.c.bf16 %v3453_v51, %v3453_v51 }
 0x6dc   : > { %v3458_v53 = vpack.c.bf16 %v3454_v52, %v3454_v52  ;;  %v7369_v54 = vpack.c.bf16 %v3454_v52, %v3453_v51  ;;  %v9356_v51 = vld [vmem:[#allocation3 + $0xc0] sm:$0xff]  ;;  %v9358_v52 = vld [vmem:[#allocation3 + $0xd0] sm:$0xff] }
 0x6de   : > { %v3464_v22 = vrot.slane %v7369_v54, 6  ;;  %3629 = vmatprep.mubr.bf16.mxu0 %v3458_v53  ;;  %3670 = vmatprep.mubr.bf16.mxu1 %v3458_v53  ;;  %v9362_v54 = vld [vmem:[#allocation3 + $0x118] sm:$0xff] }
 0x6df   : > { %3630 = vmatmul.mubr.bf16.vlgmr.msra.gmra.mrb[24].mxu0 %v9245_v55  ;;  %3671 = vmatmul.mubr.bf16.vlgmr.msra.gmra.mrb[24].mxu1 %v9245_v55 }
 0x6e0   : > { %3466 = vst [vmem:[%s8005_s27] sm:$0x44] %v3464_v22  ;;  %3680 = vmatpush1.bf16.msra.mxu0 %v8979_v13  ;;  %3721 = vmatpush1.bf16.msra.mxu1 %v8981_v5  ;;  %v12151_v13 = vld [vmem:[#allocation37_spill] sm:$0xff]  ;;  %v12152_v5 = vld [vmem:[#allocation38_spill] sm:$0xff] }
 0x6e1   : > { %3711 = vmatprep.mubr.bf16.mxu0 %v3458_v53  ;;  %3752 = vmatprep.mubr.bf16.mxu1 %v3458_v53  ;;  %v9360_v53 = vld [vmem:[#allocation3 + $0x108] sm:$0xff]  ;;  %v9370_v22 = vld [vmem:[#allocation3 + $0x110] sm:$0xff] }
 0x6e2   : > { %3681 = vmatprep.subr.bf16.mxu0 %v8985_v17  ;;  %3722 = vmatprep.subr.bf16.mxu1 %v8987_v19  ;;  %v12153_v17 = vld [vmem:[#allocation39_spill] sm:$0xff]  ;;  %v12154_v19 = vld [vmem:[#allocation40_spill] sm:$0xff] }
 0x6e4   : > { %3682 = vmatpush1.bf16.msra.mxu0 %v8992_v0  ;;  %3723 = vmatpush1.bf16.msra.mxu1 %v8994_v2  ;;  %v12155_v0 = vld [vmem:[#allocation41_spill] sm:$0xff]  ;;  %v12156_v2 = vld [vmem:[#allocation42_spill] sm:$0xff] }
 0x6e5   : > { %3683 = vmatprep.subr.bf16.mxu0 %v8998_v3  ;;  %3724 = vmatprep.subr.bf16.mxu1 %v9000_v21  ;;  %v12157_v3 = vld [vmem:[#allocation43_spill] sm:$0xff]  ;;  %v12158_v21 = vld [vmem:[#allocation44_spill] sm:$0xff] }
 0x6e8   : > { %3684 = vmatpush1.bf16.msra.mxu0 %v9006_v56  ;;  %3725 = vmatpush1.bf16.msra.mxu1 %v9008_v20  ;;  %v12159_v56 = vld [vmem:[#allocation45_spill] sm:$0xff]  ;;  %v12160_v20 = vld [vmem:[#allocation46_spill] sm:$0xff] }
 0x6e9   : > { %3685 = vmatprep.subr.bf16.mxu0 %v9010_v59  ;;  %3726 = vmatprep.subr.bf16.mxu1 %v9012_v18  ;;  %v12161_v59 = vld [vmem:[#allocation47_spill] sm:$0xff]  ;;  %v12162_v18 = vld [vmem:[#allocation48_spill] sm:$0xff] }
 0x6ec   : > { %3686 = vmatpush1.bf16.msra.mxu0 %v12151_v13  ;;  %3727 = vmatpush1.bf16.msra.mxu1 %v12152_v5  ;;  %v9374_v13 = vld [vmem:[#allocation3 + $0x148] sm:$0xff]  ;;  %v9376_v5 = vld [vmem:[#allocation3 + $0x158] sm:$0xff] }
 0x6ed   : > { %3687 = vmatprep.subr.bf16.mxu0 %v12153_v17  ;;  %3728 = vmatprep.subr.bf16.mxu1 %v12154_v19  ;;  %v9380_v17 = vld [vmem:[#allocation3 + $0x140] sm:$0xff]  ;;  %v9382_v19 = vld [vmem:[#allocation3 + $0x150] sm:$0xff] }
 0x6f0   : > { %3688 = vmatpush1.bf16.msra.mxu0 %v12155_v0  ;;  %3729 = vmatpush1.bf16.msra.mxu1 %v12156_v2  ;;  %v9386_v0 = vld [vmem:[#allocation3 + $0x188] sm:$0xff]  ;;  %v9388_v2 = vld [vmem:[#allocation3 + $0x198] sm:$0xff] }
 0x6f1   : > { %3689 = vmatprep.subr.bf16.mxu0 %v12157_v3  ;;  %3730 = vmatprep.subr.bf16.mxu1 %v12158_v21  ;;  %v9392_v3 = vld [vmem:[#allocation3 + $0x180] sm:$0xff]  ;;  %v9394_v21 = vld [vmem:[#allocation3 + $0x190] sm:$0xff] }
 0x6f4   : > { %3690 = vmatpush1.bf16.msra.mxu0 %v12159_v56  ;;  %3731 = vmatpush1.bf16.msra.mxu1 %v12160_v20  ;;  %v9398_v56 = vld [vmem:[#allocation3 + $0x1c8] sm:$0xff]  ;;  %v9400_v20 = vld [vmem:[#allocation3 + $0x1d8] sm:$0xff] }
 0x6f5   : > { %3691 = vmatprep.subr.bf16.mxu0 %v12161_v59  ;;  %3732 = vmatprep.subr.bf16.mxu1 %v12162_v18  ;;  %v9404_v59 = vld [vmem:[#allocation3 + $0x1c0] sm:$0xff]  ;;  %v9406_v18 = vld [vmem:[#allocation3 + $0x1d0] sm:$0xff] }
 0x6f8   : > { %3692 = vmatpush1.bf16.msra.mxu0 %v12163_v58  ;;  %3733 = vmatpush1.bf16.msra.mxu1 %v12164_v62  ;;  %v9410_v58 = vld [vmem:[#allocation3 + $0x208] sm:$0xff]  ;;  %v9412_v62 = vld [vmem:[#allocation3 + $0x218] sm:$0xff] }
 0x6f9   : > { %3693 = vmatprep.subr.bf16.mxu0 %v12165_v63  ;;  %3734 = vmatprep.subr.bf16.mxu1 %v12166_v57  ;;  %v9416_v63 = vld [vmem:[#allocation3 + $0x200] sm:$0xff]  ;;  %v9418_v57 = vld [vmem:[#allocation3 + $0x210] sm:$0xff] }
 0x6fc   : > { %3694 = vmatpush1.bf16.msra.mxu0 %v12167_v15  ;;  %3735 = vmatpush1.bf16.msra.mxu1 %v12168_v26  ;;  %v9422_v15 = vld [vmem:[#allocation3 + $0x248] sm:$0xff]  ;;  %v9424_v26 = vld [vmem:[#allocation3 + $0x258] sm:$0xff] }
 0x6fd   : > { %3695 = vmatprep.subr.bf16.mxu0 %v12169_v10  ;;  %3736 = vmatprep.subr.bf16.mxu1 %v12170_v11  ;;  %v9428_v10 = vld [vmem:[#allocation3 + $0x240] sm:$0xff]  ;;  %v9430_v11 = vld [vmem:[#allocation3 + $0x250] sm:$0xff] }
 0x700   : > { %3696 = vmatpush1.bf16.msra.mxu0 %v12171_v60  ;;  %3737 = vmatpush1.bf16.msra.mxu1 %v12172_v23  ;;  %v9434_v60 = vld [vmem:[#allocation3 + $0x288] sm:$0xff]  ;;  %v9436_v23 = vld [vmem:[#allocation3 + $0x298] sm:$0xff] }
 0x701   : > { %3697 = vmatprep.subr.bf16.mxu0 %v12173_v9  ;;  %3738 = vmatprep.subr.bf16.mxu1 %v12174_v61  ;;  %12193 = vst [vmem:[#allocation12_spill] sm:$0xff] %v9436_v23  ;;  %v9440_v9 = vld [vmem:[#allocation3 + $0x280] sm:$0xff]  ;;  %v9442_v61 = vld [vmem:[#allocation3 + $0x290] sm:$0xff] }
 0x702   : > { %12194 = vst [vmem:[#allocation13_spill] sm:$0xff] %v9440_v9  ;;  %12195 = vst [vmem:[#allocation14_spill] sm:$0xff] %v9442_v61 }
 0x704   : > { %3698 = vmatpush1.bf16.msra.mxu0 %v12175_v12  ;;  %3739 = vmatpush1.bf16.msra.mxu1 %v12176_v24  ;;  %v9446_v12 = vld [vmem:[#allocation3 + $0x2c8] sm:$0xff]  ;;  %v9448_v24 = vld [vmem:[#allocation3 + $0x2d8] sm:$0xff] }
 0x705   : > { %3699 = vmatprep.subr.bf16.mxu0 %v12177_v27  ;;  %3740 = vmatprep.subr.bf16.mxu1 %v12178_v28  ;;  %12196 = vst [vmem:[#allocation15_spill] sm:$0xff] %v9446_v12  ;;  %12197 = vst [vmem:[#allocation16_spill] sm:$0xff] %v9448_v24  ;;  %v9452_v27 = vld [vmem:[#allocation3 + $0x2c0] sm:$0xff]  ;;  %v9454_v28 = vld [vmem:[#allocation3 + $0x2d0] sm:$0xff] }
 0x706   : > { %12198 = vst [vmem:[#allocation17_spill] sm:$0xff] %v9452_v27  ;;  %12199 = vst [vmem:[#allocation18_spill] sm:$0xff] %v9454_v28 }
 0x708   : > { %3700 = vmatpush1.bf16.msra.mxu0 %v12179_v29  ;;  %3741 = vmatpush1.bf16.msra.mxu1 %v12180_v30  ;;  %v9458_v29 = vld [vmem:[#allocation3 + $0x308] sm:$0xff]  ;;  %v9460_v30 = vld [vmem:[#allocation3 + $0x318] sm:$0xff] }
 0x709   : > { %3701 = vmatprep.subr.bf16.mxu0 %v12181_v31  ;;  %3742 = vmatprep.subr.bf16.mxu1 %v12182_v32  ;;  %12200 = vst [vmem:[#allocation19_spill] sm:$0xff] %v9458_v29  ;;  %12201 = vst [vmem:[#allocation20_spill] sm:$0xff] %v9460_v30  ;;  %v9464_v31 = vld [vmem:[#allocation3 + $0x300] sm:$0xff]  ;;  %v9466_v32 = vld [vmem:[#allocation3 + $0x310] sm:$0xff] }
 0x70a   : > { %12202 = vst [vmem:[#allocation21_spill] sm:$0xff] %v9464_v31  ;;  %12203 = vst [vmem:[#allocation22_spill] sm:$0xff] %v9466_v32 }
 0x70c   : > { %3702 = vmatpush1.bf16.msra.mxu0 %v12183_v33  ;;  %3743 = vmatpush1.bf16.msra.mxu1 %v12184_v34  ;;  %v9468_v33 = vld [vmem:[#allocation3 + $0x348] sm:$0xff]  ;;  %v9470_v34 = vld [vmem:[#allocation3 + $0x358] sm:$0xff] }
 0x70d   : > { %3703 = vmatprep.subr.bf16.mxu0 %v12185_v36  ;;  %3744 = vmatprep.subr.bf16.mxu1 %v12186_v37  ;;  %12204 = vst [vmem:[#allocation23_spill] sm:$0xff] %v9468_v33  ;;  %12205 = vst [vmem:[#allocation24_spill] sm:$0xff] %v9470_v34  ;;  %v9476_v36 = vld [vmem:[#allocation3 + $0x340] sm:$0xff]  ;;  %v9478_v37 = vld [vmem:[#allocation3 + $0x350] sm:$0xff] }
 0x70e   : > { %12206 = vst [vmem:[#allocation25_spill] sm:$0xff] %v9476_v36  ;;  %12207 = vst [vmem:[#allocation26_spill] sm:$0xff] %v9478_v37 }
 0x710   : > { %3704 = vmatpush1.bf16.msra.mxu0 %v12187_v38  ;;  %3745 = vmatpush1.bf16.msra.mxu1 %v12188_v39  ;;  %v9480_v38 = vld [vmem:[#allocation3 + $0x388] sm:$0xff]  ;;  %v9482_v39 = vld [vmem:[#allocation3 + $0x398] sm:$0xff] }
 0x711   : > { %3705 = vmatprep.subr.bf16.mxu0 %v12189_v40  ;;  %3746 = vmatprep.subr.bf16.mxu1 %v12190_v41  ;;  %12208 = vst [vmem:[#allocation27_spill] sm:$0xff] %v9480_v38  ;;  %12209 = vst [vmem:[#allocation28_spill] sm:$0xff] %v9482_v39  ;;  %v9488_v40 = vld [vmem:[#allocation3 + $0x380] sm:$0xff]  ;;  %v9490_v41 = vld [vmem:[#allocation3 + $0x390] sm:$0xff] }
 0x712   : > { %12210 = vst [vmem:[#allocation29_spill] sm:$0xff] %v9488_v40  ;;  %12211 = vst [vmem:[#allocation30_spill] sm:$0xff] %v9490_v41 }
 0x714   : > { %3706 = vmatpush1.bf16.msra.mxu0 %v9138_v16  ;;  %3747 = vmatpush1.bf16.msra.mxu1 %v12191_v42  ;;  %v9314_v16 = vld [vmem:[#allocation3 + $0x8] sm:$0xff] }
 0x715   : > { %3707 = vmatprep.subr.bf16.mxu0 %v12192_v43  ;;  %3748 = vmatprep.subr.bf16.mxu1 %v9144_v8  ;;  %v9318_v8 = vld [vmem:[#allocation3] sm:$0xff]  ;;  %v9492_v42 = vld [vmem:[#allocation3 + $0x3c8] sm:$0xff]  ;;  %v9494_v43 = vld [vmem:[#allocation3 + $0x3d8] sm:$0xff] }
 0x716   : > { %12212 = vst [vmem:[#allocation31_spill] sm:$0xff] %v9492_v42  ;;  %12213 = vst [vmem:[#allocation32_spill] sm:$0xff] %v9494_v43 }
 0x718   : > { %3708 = vmatpush1.bf16.msra.mxu0 %v9150_v7  ;;  %3749 = vmatpush1.bf16.msra.mxu1 %v9152_v6  ;;  %v9322_v7 = vld [vmem:[#allocation3 + $0x10] sm:$0xff] }
 0x719   : > { %3709 = vmatprep.subr.bf16.mxu0 %v9154_v4  ;;  %3750 = vmatprep.subr.bf16.mxu1 %v9156_v1  ;;  %v9324_v1 = vld [vmem:[#allocation3 + $0x48] sm:$0xff]  ;;  %v9334_v6 = vld [vmem:[#allocation3 + $0x50] sm:$0xff] }
 0x71a   : > { %v9336_v4 = vld [vmem:[#allocation3 + $0x88] sm:$0xff] }
 0x71c   : > { %3710 = vmatpush1.bf16.msra.mxu0 %v9162_v25  ;;  %3751 = vmatpush1.bf16.msra.mxu1 %v9164_v14  ;;  %v9326_v25 = vld [vmem:[#allocation3 + $0x58] sm:$0xff]  ;;  %v9332_v14 = vld [vmem:[#allocation3 + $0x40] sm:$0xff] }
 0x71d   : > { %3988 = vmatprep.subr.bf16.mxu0 %v9314_v16  ;;  %4029 = vmatprep.subr.bf16.mxu1 %v9316_v44 }
 0x71f   : > { %3712 = vmatmul.mubr.bf16.vlgmr.msra.gmra.mrb[28].mxu0 %v9245_v55  ;;  %3753 = vmatmul.mubr.bf16.vlgmr.msra.gmra.mrb[28].mxu1 %v9245_v55  ;;  %v9368_v55 = vld [vmem:[#allocation3 + $0x100] sm:$0xff] }
 0x720   : > { %3989 = vmatpush1.bf16.msra.mxu0 %v9318_v8  ;;  %4030 = vmatpush1.bf16.msra.mxu1 %v9322_v7 }
 0x721   : > { %3990 = vmatprep.subr.bf16.mxu0 %v9324_v1  ;;  %4031 = vmatprep.subr.bf16.mxu1 %v9326_v25 }
 0x724   : > { %3991 = vmatpush1.bf16.msra.mxu0 %v9332_v14  ;;  %4032 = vmatpush1.bf16.msra.mxu1 %v9334_v6 }
 0x725   : > { %3992 = vmatprep.subr.bf16.mxu0 %v9336_v4  ;;  %4033 = vmatprep.subr.bf16.mxu1 %v9338_v46 }
 0x728   : > { %3993 = vmatpush1.bf16.msra.mxu0 %v9344_v47  ;;  %4034 = vmatpush1.bf16.msra.mxu1 %v9346_v48 }
 0x729   : > { %3994 = vmatprep.subr.bf16.mxu0 %v9348_v49  ;;  %4035 = vmatprep.subr.bf16.mxu1 %v9350_v50 }
 0x72c   : > { %3995 = vmatpush1.bf16.msra.mxu0 %v9356_v51  ;;  %4036 = vmatpush1.bf16.msra.mxu1 %v9358_v52 }
 0x72d   : > { %3996 = vmatprep.subr.bf16.mxu0 %v9360_v53  ;;  %4037 = vmatprep.subr.bf16.mxu1 %v9362_v54 }
 0x730   : > { %3997 = vmatpush1.bf16.msra.mxu0 %v9368_v55  ;;  %4038 = vmatpush1.bf16.msra.mxu1 %v9370_v22 }
 0x731   : > { %3998 = vmatprep.subr.bf16.mxu0 %v9374_v13  ;;  %4039 = vmatprep.subr.bf16.mxu1 %v9376_v5 }
 0x734   : > { %3999 = vmatpush1.bf16.msra.mxu0 %v9380_v17  ;;  %4040 = vmatpush1.bf16.msra.mxu1 %v9382_v19 }
 0x735   : > { %4000 = vmatprep.subr.bf16.mxu0 %v9386_v0  ;;  %4041 = vmatprep.subr.bf16.mxu1 %v9388_v2 }
 0x738   : > { %4001 = vmatpush1.bf16.msra.mxu0 %v9392_v3  ;;  %4042 = vmatpush1.bf16.msra.mxu1 %v9394_v21 }
 0x739   : > { %4002 = vmatprep.subr.bf16.mxu0 %v9398_v56  ;;  %4043 = vmatprep.subr.bf16.mxu1 %v9400_v20 }
 0x73c   : > { %4003 = vmatpush1.bf16.msra.mxu0 %v9404_v59  ;;  %4044 = vmatpush1.bf16.msra.mxu1 %v9406_v18 }
 0x73d   : > { %4004 = vmatprep.subr.bf16.mxu0 %v9410_v58  ;;  %4045 = vmatprep.subr.bf16.mxu1 %v9412_v62 }
 0x740   : > { %4005 = vmatpush1.bf16.msra.mxu0 %v9416_v63  ;;  %4046 = vmatpush1.bf16.msra.mxu1 %v9418_v57 }
 0x741   : > { %4006 = vmatprep.subr.bf16.mxu0 %v9422_v15  ;;  %4047 = vmatprep.subr.bf16.mxu1 %v9424_v26 }
 0x744   : > { %4007 = vmatpush1.bf16.msra.mxu0 %v9428_v10  ;;  %4048 = vmatpush1.bf16.msra.mxu1 %v9430_v11 }
 0x745   : > { %4008 = vmatprep.subr.bf16.mxu0 %v9434_v60  ;;  %4049 = vmatprep.subr.bf16.mxu1 %v9436_v23 }
 0x748   : > { %4009 = vmatpush1.bf16.msra.mxu0 %v9440_v9  ;;  %4050 = vmatpush1.bf16.msra.mxu1 %v9442_v61 }
 0x749   : > { %4010 = vmatprep.subr.bf16.mxu0 %v9446_v12  ;;  %4051 = vmatprep.subr.bf16.mxu1 %v9448_v24 }
 0x74c   : > { %4011 = vmatpush1.bf16.msra.mxu0 %v9452_v27  ;;  %4052 = vmatpush1.bf16.msra.mxu1 %v9454_v28  ;;  %v3467_v27 = vld [vmem:[#allocation2 + $0x30] sm:$0xff] }
 0x74d   : > { %4012 = vmatprep.subr.bf16.mxu0 %v9458_v29  ;;  %4053 = vmatprep.subr.bf16.mxu1 %v9460_v30 }
 0x750   : > { %4013 = vmatpush1.bf16.msra.mxu0 %v9464_v31  ;;  %4054 = vmatpush1.bf16.msra.mxu1 %v9466_v32 }
 0x751   : > { %4014 = vmatprep.subr.bf16.mxu0 %v9468_v33  ;;  %4055 = vmatprep.subr.bf16.mxu1 %v9470_v34 }
 0x754   : > { %4015 = vmatpush1.bf16.msra.mxu0 %v9476_v36  ;;  %4056 = vmatpush1.bf16.msra.mxu1 %v9478_v37  ;;  %v9500_v37 = vld [vmem:[#allocation3 + $0x3c0] sm:$0xff]  ;;  %v9508_v36 = vld [vmem:[#allocation3 + $0x38] sm:$0xff] }
 0x755   : > { %4016 = vmatprep.subr.bf16.mxu0 %v9480_v38  ;;  %4057 = vmatprep.subr.bf16.mxu1 %v9482_v39  ;;  %12214 = vst [vmem:[#allocation33_spill] sm:$0xff] %v9500_v37  ;;  %v9502_v38 = vld [vmem:[#allocation3 + $0x3d0] sm:$0xff]  ;;  %v9506_v39 = vld [vmem:[#allocation3 + $0x28] sm:$0xff]  ;;  %12217 = vst [vmem:[#allocation36_spill] sm:$0xff] %v9508_v36 }
 0x756   : > { %12215 = vst [vmem:[#allocation34_spill] sm:$0xff] %v9502_v38  ;;  %12216 = vst [vmem:[#allocation35_spill] sm:$0xff] %v9506_v39 }
 0x758   : > { %4017 = vmatpush1.bf16.msra.mxu0 %v9488_v40  ;;  %4058 = vmatpush1.bf16.msra.mxu1 %v9490_v41 }
 0x759   : > { %4018 = vmatprep.subr.bf16.mxu0 %v9492_v42  ;;  %4059 = vmatprep.subr.bf16.mxu1 %v9494_v43 }
 0x75c   : > { %4019 = vmatpush1.bf16.msra.mxu0 %v9500_v37  ;;  %4060 = vmatpush1.bf16.msra.mxu1 %v9502_v38 }
 0x75d   : > { %4070 = vmatprep.subr.bf16.mxu0 %v9506_v39  ;;  %4111 = vmatprep.subr.bf16.mxu1 %v9508_v36 }
 0x7b2   : > { %v3631_v41 = vpop.f32.mrb[24].mxu0  ;;  %v3672_v42 = vpop.f32.mrb[24].mxu1 }
 0x7b3   : > { %v3633_v40 = vpop.f32.mrb[25].mxu0  ;;  %v3674_v43 = vpop.f32.mrb[25].mxu1 }
 0x7b4   : > { %v3769_v34 = vcombine.low %v3631_v41, %v3633_v40  ;;  %v3770_v33 = vcombine.low %v3672_v42, %v3674_v43  ;;  %v3635_v32 = vpop.f32.mrb[26].mxu0  ;;  %v3676_v31 = vpop.f32.mrb[26].mxu1 }
 0x7b5   : > { %v3636_v30 = vpop.f32.mrb[27].mxu0  ;;  %v3677_v37 = vpop.f32.mrb[27].mxu1 }
 0x7b6   : > { %v3777_v38 = vrot.slane %v3769_v34, %v12004_v35  ;;  %v3784_v29 = vrot.slane %v3770_v33, %v12004_v35 }
 0x7b8   : > { %v3785_v28 = vcombine.low %v3777_v38, %v3784_v29 }
 0x7ba   : > { %v3805_v24 = vadd.f32 %v3785_v28, %v3467_v27 }
 0x7bc   : > { %v3814_v39 = vrot.slane %v3805_v24, 4  ;;  %v7323_v36 = vmul.f32 -1.442695, %v3805_v24 }
 0x7be   : > { %v7324_v12 = vmul.f32 -1.442695, %v3814_v39 }
 0x7c0   : > { %7549 = vpow2.f32 %v7324_v12  ;;  %v3468_v12 = vld [vmem:[#allocation2 + $0x38] sm:$0xff] }
 0x7c1   : > { %7551 = vpow2.f32 %v7323_v36 }
 0x7ca   : > { %v7550_v40 = vpop.eup %7549 }
 0x7cb   : > { %v7552_v31 = vpop.eup %7551  ;;  %v3819_v29 = vadd.f32 1.0, %v7550_v40 }
 0x7cc   : > { %v3810_v24 = vadd.f32 1.0, %v7552_v31 }
 0x7cd   : > { %7553 = vrcp.f32 %v3819_v29 }
 0x7ce   : > { %7555 = vrcp.f32 %v3810_v24  ;;  %v9525_v24 = vld [vmem:[#allocation3 + $0x30] sm:$0xff] }
 0x7f2   : > { %v3713_v61 = vpop.f32.mrb[28].mxu0  ;;  %v3754_v9 = vpop.f32.mrb[28].mxu1 }
 0x7f3   : > { %v3715_v41 = vpop.f32.mrb[29].mxu0  ;;  %v3756_v32 = vpop.f32.mrb[29].mxu1 }
 0x7f4   : > { %v3786_v30 = vcombine.low %v3713_v61, %v3715_v41  ;;  %v3787_v37 = vcombine.low %v3754_v9, %v3756_v32  ;;  %v3717_v42 = vpop.f32.mrb[30].mxu0  ;;  %v3758_v34 = vpop.f32.mrb[30].mxu1 }
 0x7f5   : > { %v3718_v43 = vpop.f32.mrb[31].mxu0  ;;  %v3759_v33 = vpop.f32.mrb[31].mxu1 }
 0x7f6   : > { %v3794_v27 = vrot.slane %v3786_v30, %v12004_v35  ;;  %v3801_v28 = vrot.slane %v3787_v37, %v12004_v35  ;;  %v7554_v9 = vpop.eup %7553 }
 0x7f7   : > { %v7556_v61 = vpop.eup %7555  ;;  %v3832_v32 = vmul.f32 %v7554_v9, %v9241_v45  ;;  %v9523_v45 = vld [vmem:[#allocation3 + $0x20] sm:$0xff]  ;;  %v9538_v9 = vld [vmem:[#allocation3 + $0x70] sm:$0xff] }
 0x7f8   : > { %v3802_v36 = vcombine.low %v3794_v27, %v3801_v28 }
 0x7fa   : > { %v3806_v38 = vadd.f32 %v3802_v36, %v3468_v12  ;;  %v9529_v36 = vld [vmem:[#allocation3 + $0x68] sm:$0xff] }
 0x7fc   : > { %7557 = vtanh.f32 %v3806_v38  ;;  %v3824_v39 = vrot.slane %v3806_v38, 4  ;;  %v9531_v38 = vld [vmem:[#allocation3 + $0x78] sm:$0xff] }
 0x7fe   : > { %v7325_v23 = vmul.f32 -1.442695, %v3824_v39  ;;  %v9536_v39 = vld [vmem:[#allocation3 + $0x60] sm:$0xff] }
 0x800   : > { %7559 = vpow2.f32 %v7325_v23 }
 0x806   : > { %v7558_v41 = vpop.eup %7557 }
 0x807   : > { %v3833_v40 = vmul.f32 %v7558_v41, %v7556_v61  ;;  %v9542_v61 = vld [vmem:[#allocation3 + $0xa8] sm:$0xff]  ;;  %v9544_v41 = vld [vmem:[#allocation3 + $0xb8] sm:$0xff] }
 0x809   : > { %v9517_v42 = vadd.f32 %v3833_v40, %v3832_v32  ;;  %v9550_v32 = vld [vmem:[#allocation3 + $0xa0] sm:$0xff]  ;;  %v9552_v40 = vld [vmem:[#allocation3 + $0xb0] sm:$0xff] }
 0x80a   : > { %v7560_v30 = vpop.eup %7559 }
 0x80b   : > { %v3829_v37 = vadd.f32 1.0, %v7560_v30  ;;  %7561 = vtanh.f32 %v9517_v42  ;;  %v9554_v30 = vld [vmem:[#allocation3 + $0xe8] sm:$0xff] }
 0x80d   : > { %7563 = vrcp.f32 %v3829_v37  ;;  %v9556_v37 = vld [vmem:[#allocation3 + $0xf8] sm:$0xff] }
 0x815   : > { %v7562_v31 = vpop.eup %7561 }
 0x817   : > { %v7564_v34 = vpop.eup %7563 }
 0x818   : > { %v3836_v43 = vmul.f32 %v7564_v34, %v7562_v31  ;;  %v9562_v31 = vld [vmem:[#allocation3 + $0xe0] sm:$0xff]  ;;  %v9564_v34 = vld [vmem:[#allocation3 + $0xf0] sm:$0xff] }
 0x819   : > { %12218 = vst [vmem:[#allocation37_spill] sm:$0xff] %v9562_v31  ;;  %12219 = vst [vmem:[#allocation38_spill] sm:$0xff] %v9564_v34 }
 0x81a   : > { %v3844_v33 = vrot.slane %v3836_v43, %v12004_v35  ;;  %v9566_v43 = vld [vmem:[#allocation3 + $0x128] sm:$0xff] }
 0x81b   : > { %12220 = vst [vmem:[#allocation39_spill] sm:$0xff] %v9566_v43 }
 0x81c   : > { %v3845_v23 = vcombine.high %v3844_v33, %v3844_v33  ;;  %v9521_v28 = vpack.c.bf16 %v3844_v33, %v3844_v33 }
 0x81e   : > { %v3849_v29 = vpack.c.bf16 %v3845_v23, %v3845_v23  ;;  %v7370_v27 = vpack.c.bf16 %v3845_v23, %v3844_v33  ;;  %v9568_v33 = vld [vmem:[#allocation3 + $0x138] sm:$0xff]  ;;  %v9574_v23 = vld [vmem:[#allocation3 + $0x120] sm:$0xff] }
 0x81f   : > { %12221 = vst [vmem:[#allocation40_spill] sm:$0xff] %v9568_v33  ;;  %12222 = vst [vmem:[#allocation41_spill] sm:$0xff] %v9574_v23 }
 0x820   : > { %v3855_v12 = vrot.slane %v7370_v27, 5  ;;  %4020 = vmatprep.mubr.bf16.mxu0 %v3849_v29  ;;  %4061 = vmatprep.mubr.bf16.mxu1 %v3849_v29  ;;  %v9578_v27 = vld [vmem:[#allocation3 + $0x168] sm:$0xff] }
 0x821   : > { %4021 = vmatmul.mubr.bf16.vlgmr.msra.gmra.mrb[32].mxu0 %v9521_v28  ;;  %4062 = vmatmul.mubr.bf16.vlgmr.msra.gmra.mrb[32].mxu1 %v9521_v28  ;;  %12224 = vst [vmem:[#allocation43_spill] sm:$0xff] %v9578_v27 }
 0x822   : > { %3857 = vst [vmem:[%s8005_s27] sm:$0x88] %v3855_v12  ;;  %4071 = vmatpush1.bf16.msra.mxu0 %v9523_v45  ;;  %4112 = vmatpush1.bf16.msra.mxu1 %v9525_v24  ;;  %v9580_v12 = vld [vmem:[#allocation3 + $0x178] sm:$0xff] }
 0x823   : > { %4102 = vmatprep.mubr.bf16.mxu0 %v3849_v29  ;;  %4143 = vmatprep.mubr.bf16.mxu1 %v3849_v29  ;;  %v9576_v29 = vld [vmem:[#allocation3 + $0x130] sm:$0xff]  ;;  %12225 = vst [vmem:[#allocation44_spill] sm:$0xff] %v9580_v12 }
 0x824   : > { %4072 = vmatprep.subr.bf16.mxu0 %v9529_v36  ;;  %4113 = vmatprep.subr.bf16.mxu1 %v9531_v38  ;;  %12223 = vst [vmem:[#allocation42_spill] sm:$0xff] %v9576_v29 }
 0x826   : > { %4073 = vmatpush1.bf16.msra.mxu0 %v9536_v39  ;;  %4114 = vmatpush1.bf16.msra.mxu1 %v9538_v9 }
 0x827   : > { %4074 = vmatprep.subr.bf16.mxu0 %v9542_v61  ;;  %4115 = vmatprep.subr.bf16.mxu1 %v9544_v41 }
 0x82a   : > { %4075 = vmatpush1.bf16.msra.mxu0 %v9550_v32  ;;  %4116 = vmatpush1.bf16.msra.mxu1 %v9552_v40 }
 0x82b   : > { %4076 = vmatprep.subr.bf16.mxu0 %v9554_v30  ;;  %4117 = vmatprep.subr.bf16.mxu1 %v9556_v37 }
 0x82e   : > { %4077 = vmatpush1.bf16.msra.mxu0 %v9562_v31  ;;  %4118 = vmatpush1.bf16.msra.mxu1 %v9564_v34  ;;  %v9586_v34 = vld [vmem:[#allocation3 + $0x160] sm:$0xff]  ;;  %v9592_v31 = vld [vmem:[#allocation3 + $0x1b8] sm:$0xff] }
 0x82f   : > { %4078 = vmatprep.subr.bf16.mxu0 %v9566_v43  ;;  %4119 = vmatprep.subr.bf16.mxu1 %v9568_v33  ;;  %12226 = vst [vmem:[#allocation45_spill] sm:$0xff] %v9586_v34  ;;  %v9588_v43 = vld [vmem:[#allocation3 + $0x170] sm:$0xff]  ;;  %v9590_v33 = vld [vmem:[#allocation3 + $0x1a8] sm:$0xff]  ;;  %12229 = vst [vmem:[#allocation48_spill] sm:$0xff] %v9592_v31 }
 0x830   : > { %12227 = vst [vmem:[#allocation46_spill] sm:$0xff] %v9588_v43  ;;  %12228 = vst [vmem:[#allocation47_spill] sm:$0xff] %v9590_v33 }
 0x832   : > { %4079 = vmatpush1.bf16.msra.mxu0 %v9574_v23  ;;  %4120 = vmatpush1.bf16.msra.mxu1 %v9576_v29  ;;  %v9598_v29 = vld [vmem:[#allocation3 + $0x1a0] sm:$0xff]  ;;  %v9604_v23 = vld [vmem:[#allocation3 + $0x1f8] sm:$0xff] }
 0x833   : > { %4080 = vmatprep.subr.bf16.mxu0 %v9578_v27  ;;  %4121 = vmatprep.subr.bf16.mxu1 %v9580_v12  ;;  %12230 = vst [vmem:[#allocation49_spill] sm:$0xff] %v9598_v29  ;;  %v9600_v27 = vld [vmem:[#allocation3 + $0x1b0] sm:$0xff]  ;;  %v9602_v12 = vld [vmem:[#allocation3 + $0x1e8] sm:$0xff]  ;;  %12233 = vst [vmem:[#allocation52_spill] sm:$0xff] %v9604_v23 }
 0x834   : > { %12231 = vst [vmem:[#allocation50_spill] sm:$0xff] %v9600_v27  ;;  %12232 = vst [vmem:[#allocation51_spill] sm:$0xff] %v9602_v12 }
 0x836   : > { %4081 = vmatpush1.bf16.msra.mxu0 %v9586_v34  ;;  %4122 = vmatpush1.bf16.msra.mxu1 %v9588_v43  ;;  %v9610_v43 = vld [vmem:[#allocation3 + $0x1e0] sm:$0xff]  ;;  %v9616_v34 = vld [vmem:[#allocation3 + $0x238] sm:$0xff] }
 0x837   : > { %4082 = vmatprep.subr.bf16.mxu0 %v9590_v33  ;;  %4123 = vmatprep.subr.bf16.mxu1 %v9592_v31  ;;  %12234 = vst [vmem:[#allocation53_spill] sm:$0xff] %v9610_v43  ;;  %v9612_v33 = vld [vmem:[#allocation3 + $0x1f0] sm:$0xff]  ;;  %v9614_v31 = vld [vmem:[#allocation3 + $0x228] sm:$0xff]  ;;  %12237 = vst [vmem:[#allocation56_spill] sm:$0xff] %v9616_v34 }
 0x838   : > { %12235 = vst [vmem:[#allocation54_spill] sm:$0xff] %v9612_v33  ;;  %12236 = vst [vmem:[#allocation55_spill] sm:$0xff] %v9614_v31 }
 0x83a   : > { %4083 = vmatpush1.bf16.msra.mxu0 %v9598_v29  ;;  %4124 = vmatpush1.bf16.msra.mxu1 %v9600_v27  ;;  %v9622_v27 = vld [vmem:[#allocation3 + $0x220] sm:$0xff]  ;;  %v9628_v29 = vld [vmem:[#allocation3 + $0x278] sm:$0xff] }
 0x83b   : > { %4084 = vmatprep.subr.bf16.mxu0 %v9602_v12  ;;  %4125 = vmatprep.subr.bf16.mxu1 %v9604_v23  ;;  %12238 = vst [vmem:[#allocation57_spill] sm:$0xff] %v9622_v27  ;;  %v9624_v12 = vld [vmem:[#allocation3 + $0x230] sm:$0xff]  ;;  %v9626_v23 = vld [vmem:[#allocation3 + $0x268] sm:$0xff]  ;;  %12241 = vst [vmem:[#allocation60_spill] sm:$0xff] %v9628_v29 }
 0x83c   : > { %12239 = vst [vmem:[#allocation58_spill] sm:$0xff] %v9624_v12  ;;  %12240 = vst [vmem:[#allocation59_spill] sm:$0xff] %v9626_v23 }
 0x83e   : > { %4085 = vmatpush1.bf16.msra.mxu0 %v9610_v43  ;;  %4126 = vmatpush1.bf16.msra.mxu1 %v9612_v33  ;;  %v9634_v33 = vld [vmem:[#allocation3 + $0x260] sm:$0xff]  ;;  %v9640_v43 = vld [vmem:[#allocation3 + $0x2b8] sm:$0xff] }
 0x83f   : > { %4086 = vmatprep.subr.bf16.mxu0 %v9614_v31  ;;  %4127 = vmatprep.subr.bf16.mxu1 %v9616_v34  ;;  %12242 = vst [vmem:[#allocation61_spill] sm:$0xff] %v9634_v33  ;;  %v9636_v31 = vld [vmem:[#allocation3 + $0x270] sm:$0xff]  ;;  %v9638_v34 = vld [vmem:[#allocation3 + $0x2a8] sm:$0xff]  ;;  %12245 = vst [vmem:[#allocation64_spill] sm:$0xff] %v9640_v43 }
 0x840   : > { %12243 = vst [vmem:[#allocation62_spill] sm:$0xff] %v9636_v31  ;;  %12244 = vst [vmem:[#allocation63_spill] sm:$0xff] %v9638_v34 }
 0x842   : > { %4087 = vmatpush1.bf16.msra.mxu0 %v9622_v27  ;;  %4128 = vmatpush1.bf16.msra.mxu1 %v9624_v12  ;;  %v9646_v12 = vld [vmem:[#allocation3 + $0x2a0] sm:$0xff]  ;;  %v9652_v27 = vld [vmem:[#allocation3 + $0x2f8] sm:$0xff] }
 0x843   : > { %4088 = vmatprep.subr.bf16.mxu0 %v9626_v23  ;;  %4129 = vmatprep.subr.bf16.mxu1 %v9628_v29  ;;  %12246 = vst [vmem:[#allocation65_spill] sm:$0xff] %v9646_v12  ;;  %v9648_v23 = vld [vmem:[#allocation3 + $0x2b0] sm:$0xff]  ;;  %v9650_v29 = vld [vmem:[#allocation3 + $0x2e8] sm:$0xff]  ;;  %12249 = vst [vmem:[#allocation68_spill] sm:$0xff] %v9652_v27 }
 0x844   : > { %12247 = vst [vmem:[#allocation66_spill] sm:$0xff] %v9648_v23  ;;  %12248 = vst [vmem:[#allocation67_spill] sm:$0xff] %v9650_v29 }
 0x846   : > { %4089 = vmatpush1.bf16.msra.mxu0 %v9634_v33  ;;  %4130 = vmatpush1.bf16.msra.mxu1 %v9636_v31  ;;  %v9658_v31 = vld [vmem:[#allocation3 + $0x2e0] sm:$0xff]  ;;  %v9664_v33 = vld [vmem:[#allocation3 + $0x338] sm:$0xff] }
 0x847   : > { %4090 = vmatprep.subr.bf16.mxu0 %v9638_v34  ;;  %4131 = vmatprep.subr.bf16.mxu1 %v9640_v43  ;;  %12250 = vst [vmem:[#allocation69_spill] sm:$0xff] %v9658_v31  ;;  %v9660_v34 = vld [vmem:[#allocation3 + $0x2f0] sm:$0xff]  ;;  %v9662_v43 = vld [vmem:[#allocation3 + $0x328] sm:$0xff]  ;;  %12253 = vst [vmem:[#allocation72_spill] sm:$0xff] %v9664_v33 }
 0x848   : > { %12251 = vst [vmem:[#allocation70_spill] sm:$0xff] %v9660_v34  ;;  %12252 = vst [vmem:[#allocation71_spill] sm:$0xff] %v9662_v43 }
 0x84a   : > { %4091 = vmatpush1.bf16.msra.mxu0 %v9646_v12  ;;  %4132 = vmatpush1.bf16.msra.mxu1 %v9648_v23  ;;  %v9670_v23 = vld [vmem:[#allocation3 + $0x320] sm:$0xff]  ;;  %v9676_v12 = vld [vmem:[#allocation3 + $0x378] sm:$0xff] }
 0x84b   : > { %4092 = vmatprep.subr.bf16.mxu0 %v9650_v29  ;;  %4133 = vmatprep.subr.bf16.mxu1 %v9652_v27  ;;  %12254 = vst [vmem:[#allocation73_spill] sm:$0xff] %v9670_v23  ;;  %v9672_v29 = vld [vmem:[#allocation3 + $0x330] sm:$0xff]  ;;  %v9674_v27 = vld [vmem:[#allocation3 + $0x368] sm:$0xff]  ;;  %12257 = vst [vmem:[#allocation76_spill] sm:$0xff] %v9676_v12 }
 0x84c   : > { %12255 = vst [vmem:[#allocation74_spill] sm:$0xff] %v9672_v29  ;;  %12256 = vst [vmem:[#allocation75_spill] sm:$0xff] %v9674_v27 }
 0x84e   : > { %4093 = vmatpush1.bf16.msra.mxu0 %v9658_v31  ;;  %4134 = vmatpush1.bf16.msra.mxu1 %v9660_v34  ;;  %v9682_v34 = vld [vmem:[#allocation3 + $0x360] sm:$0xff]  ;;  %v9688_v31 = vld [vmem:[#allocation3 + $0x3b8] sm:$0xff] }
 0x84f   : > { %4094 = vmatprep.subr.bf16.mxu0 %v9662_v43  ;;  %4135 = vmatprep.subr.bf16.mxu1 %v9664_v33  ;;  %v9684_v43 = vld [vmem:[#allocation3 + $0x370] sm:$0xff]  ;;  %v9686_v33 = vld [vmem:[#allocation3 + $0x3a8] sm:$0xff] }
 0x850   : > { %12258 = vst [vmem:[#allocation77_spill] sm:$0xff] %v9684_v43  ;;  %12259 = vst [vmem:[#allocation78_spill] sm:$0xff] %v9686_v33 }
 0x852   : > { %4095 = vmatpush1.bf16.msra.mxu0 %v9670_v23  ;;  %4136 = vmatpush1.bf16.msra.mxu1 %v9672_v29  ;;  %v9694_v29 = vld [vmem:[#allocation3 + $0x3a0] sm:$0xff]  ;;  %v9700_v23 = vld [vmem:[#allocation3 + $0x3f8] sm:$0xff] }
 0x853   : > { %4096 = vmatprep.subr.bf16.mxu0 %v9674_v27  ;;  %4137 = vmatprep.subr.bf16.mxu1 %v9676_v12  ;;  %v9696_v27 = vld [vmem:[#allocation3 + $0x3b0] sm:$0xff]  ;;  %v9698_v12 = vld [vmem:[#allocation3 + $0x3e8] sm:$0xff] }
 0x856   : > { %4097 = vmatpush1.bf16.msra.mxu0 %v9682_v34  ;;  %4138 = vmatpush1.bf16.msra.mxu1 %v9684_v43  ;;  %v9706_v43 = vld [vmem:[#allocation3 + $0x3e0] sm:$0xff] }
 0x857   : > { %4098 = vmatprep.subr.bf16.mxu0 %v9686_v33  ;;  %4139 = vmatprep.subr.bf16.mxu1 %v9688_v31  ;;  %v9708_v33 = vld [vmem:[#allocation3 + $0x3f0] sm:$0xff] }
 0x85a   : > { %4099 = vmatpush1.bf16.msra.mxu0 %v9694_v29  ;;  %4140 = vmatpush1.bf16.msra.mxu1 %v9696_v27 }
 0x85b   : > { %4100 = vmatprep.subr.bf16.mxu0 %v9698_v12  ;;  %4141 = vmatprep.subr.bf16.mxu1 %v9700_v23 }
 0x85e   : > { %4101 = vmatpush1.bf16.msra.mxu0 %v9706_v43  ;;  %4142 = vmatpush1.bf16.msra.mxu1 %v9708_v33 }
 0x85f   : > { %4378 = vmatprep.subr.bf16.mxu0 %v9314_v16  ;;  %4419 = vmatprep.subr.bf16.mxu1 %v9316_v44  ;;  %v12260_v16 = vld [vmem:[#allocation12_spill] sm:$0xff]  ;;  %v12261_v44 = vld [vmem:[#allocation13_spill] sm:$0xff] }
 0x861   : > { %4103 = vmatmul.mubr.bf16.vlgmr.msra.gmra.mrb[36].mxu0 %v9521_v28  ;;  %4144 = vmatmul.mubr.bf16.vlgmr.msra.gmra.mrb[36].mxu1 %v9521_v28 }
 0x862   : > { %4379 = vmatpush1.bf16.msra.mxu0 %v9318_v8  ;;  %4420 = vmatpush1.bf16.msra.mxu1 %v9322_v7  ;;  %v12262_v8 = vld [vmem:[#allocation14_spill] sm:$0xff]  ;;  %v12263_v7 = vld [vmem:[#allocation15_spill] sm:$0xff] }
 0x863   : > { %4380 = vmatprep.subr.bf16.mxu0 %v9324_v1  ;;  %4421 = vmatprep.subr.bf16.mxu1 %v9326_v25  ;;  %v12264_v1 = vld [vmem:[#allocation16_spill] sm:$0xff]  ;;  %v12265_v25 = vld [vmem:[#allocation17_spill] sm:$0xff] }
 0x866   : > { %4381 = vmatpush1.bf16.msra.mxu0 %v9332_v14  ;;  %4422 = vmatpush1.bf16.msra.mxu1 %v9334_v6  ;;  %v12266_v14 = vld [vmem:[#allocation18_spill] sm:$0xff]  ;;  %v12267_v6 = vld [vmem:[#allocation19_spill] sm:$0xff] }
 0x867   : > { %4382 = vmatprep.subr.bf16.mxu0 %v9336_v4  ;;  %4423 = vmatprep.subr.bf16.mxu1 %v9338_v46  ;;  %v12268_v4 = vld [vmem:[#allocation20_spill] sm:$0xff]  ;;  %v12269_v46 = vld [vmem:[#allocation21_spill] sm:$0xff] }
 0x86a   : > { %4383 = vmatpush1.bf16.msra.mxu0 %v9344_v47  ;;  %4424 = vmatpush1.bf16.msra.mxu1 %v9346_v48  ;;  %v12270_v47 = vld [vmem:[#allocation22_spill] sm:$0xff]  ;;  %v12271_v48 = vld [vmem:[#allocation23_spill] sm:$0xff] }
 0x86b   : > { %4384 = vmatprep.subr.bf16.mxu0 %v9348_v49  ;;  %4425 = vmatprep.subr.bf16.mxu1 %v9350_v50  ;;  %v12272_v49 = vld [vmem:[#allocation24_spill] sm:$0xff]  ;;  %v12273_v50 = vld [vmem:[#allocation25_spill] sm:$0xff] }
 0x86e   : > { %4385 = vmatpush1.bf16.msra.mxu0 %v9356_v51  ;;  %4426 = vmatpush1.bf16.msra.mxu1 %v9358_v52  ;;  %v12274_v51 = vld [vmem:[#allocation26_spill] sm:$0xff]  ;;  %v12275_v52 = vld [vmem:[#allocation27_spill] sm:$0xff] }
 0x86f   : > { %4386 = vmatprep.subr.bf16.mxu0 %v9360_v53  ;;  %4427 = vmatprep.subr.bf16.mxu1 %v9362_v54  ;;  %v12276_v53 = vld [vmem:[#allocation28_spill] sm:$0xff]  ;;  %v12277_v54 = vld [vmem:[#allocation29_spill] sm:$0xff] }
 0x872   : > { %4387 = vmatpush1.bf16.msra.mxu0 %v9368_v55  ;;  %4428 = vmatpush1.bf16.msra.mxu1 %v9370_v22  ;;  %v12278_v55 = vld [vmem:[#allocation30_spill] sm:$0xff]  ;;  %v12279_v22 = vld [vmem:[#allocation31_spill] sm:$0xff] }
 0x873   : > { %4388 = vmatprep.subr.bf16.mxu0 %v9374_v13  ;;  %4429 = vmatprep.subr.bf16.mxu1 %v9376_v5  ;;  %v12280_v13 = vld [vmem:[#allocation32_spill] sm:$0xff]  ;;  %v12281_v5 = vld [vmem:[#allocation33_spill] sm:$0xff] }
 0x876   : > { %4389 = vmatpush1.bf16.msra.mxu0 %v9380_v17  ;;  %4430 = vmatpush1.bf16.msra.mxu1 %v9382_v19  ;;  %v12282_v17 = vld [vmem:[#allocation34_spill] sm:$0xff]  ;;  %v12283_v19 = vld [vmem:[#allocation35_spill] sm:$0xff] }
 0x877   : > { %4390 = vmatprep.subr.bf16.mxu0 %v9386_v0  ;;  %4431 = vmatprep.subr.bf16.mxu1 %v9388_v2  ;;  %v12284_v0 = vld [vmem:[#allocation36_spill] sm:$0xff] }
 0x87a   : > { %4391 = vmatpush1.bf16.msra.mxu0 %v9392_v3  ;;  %4432 = vmatpush1.bf16.msra.mxu1 %v9394_v21 }
 0x87b   : > { %4392 = vmatprep.subr.bf16.mxu0 %v9398_v56  ;;  %4433 = vmatprep.subr.bf16.mxu1 %v9400_v20 }
 0x87e   : > { %4393 = vmatpush1.bf16.msra.mxu0 %v9404_v59  ;;  %4434 = vmatpush1.bf16.msra.mxu1 %v9406_v18 }
 0x87f   : > { %4394 = vmatprep.subr.bf16.mxu0 %v9410_v58  ;;  %4435 = vmatprep.subr.bf16.mxu1 %v9412_v62 }
 0x882   : > { %4395 = vmatpush1.bf16.msra.mxu0 %v9416_v63  ;;  %4436 = vmatpush1.bf16.msra.mxu1 %v9418_v57 }
 0x883   : > { %4396 = vmatprep.subr.bf16.mxu0 %v9422_v15  ;;  %4437 = vmatprep.subr.bf16.mxu1 %v9424_v26 }
 0x886   : > { %4397 = vmatpush1.bf16.msra.mxu0 %v9428_v10  ;;  %4438 = vmatpush1.bf16.msra.mxu1 %v9430_v11  ;;  %v3858_v10 = vld [vmem:[#allocation2 + $0x40] sm:$0xff] }
 0x887   : > { %4398 = vmatprep.subr.bf16.mxu0 %v9434_v60  ;;  %4439 = vmatprep.subr.bf16.mxu1 %v12260_v16 }
 0x88a   : > { %4399 = vmatpush1.bf16.msra.mxu0 %v12261_v44  ;;  %4440 = vmatpush1.bf16.msra.mxu1 %v12262_v8 }
 0x88b   : > { %4400 = vmatprep.subr.bf16.mxu0 %v12263_v7  ;;  %4441 = vmatprep.subr.bf16.mxu1 %v12264_v1 }
 0x88e   : > { %4401 = vmatpush1.bf16.msra.mxu0 %v12265_v25  ;;  %4442 = vmatpush1.bf16.msra.mxu1 %v12266_v14 }
 0x88f   : > { %4402 = vmatprep.subr.bf16.mxu0 %v12267_v6  ;;  %4443 = vmatprep.subr.bf16.mxu1 %v12268_v4 }
 0x892   : > { %4403 = vmatpush1.bf16.msra.mxu0 %v12269_v46  ;;  %4444 = vmatpush1.bf16.msra.mxu1 %v12270_v47 }
 0x893   : > { %4404 = vmatprep.subr.bf16.mxu0 %v12271_v48  ;;  %4445 = vmatprep.subr.bf16.mxu1 %v12272_v49 }
 0x896   : > { %4405 = vmatpush1.bf16.msra.mxu0 %v12273_v50  ;;  %4446 = vmatpush1.bf16.msra.mxu1 %v12274_v51 }
 0x897   : > { %4406 = vmatprep.subr.bf16.mxu0 %v12275_v52  ;;  %4447 = vmatprep.subr.bf16.mxu1 %v12276_v53 }
 0x89a   : > { %4407 = vmatpush1.bf16.msra.mxu0 %v12277_v54  ;;  %4448 = vmatpush1.bf16.msra.mxu1 %v12278_v55  ;;  %v3859_v54 = vld [vmem:[#allocation2 + $0x48] sm:$0xff] }
 0x89b   : > { %4408 = vmatprep.subr.bf16.mxu0 %v12279_v22  ;;  %4449 = vmatprep.subr.bf16.mxu1 %v12280_v13 }
 0x89e   : > { %4409 = vmatpush1.bf16.msra.mxu0 %v12281_v5  ;;  %4450 = vmatpush1.bf16.msra.mxu1 %v12282_v17 }
 0x89f   : > { %4460 = vmatprep.subr.bf16.mxu0 %v12283_v19  ;;  %4501 = vmatprep.subr.bf16.mxu1 %v12284_v0 }
 0x8f4   : > { %v4022_v2 = vpop.f32.mrb[32].mxu0  ;;  %v4063_v3 = vpop.f32.mrb[32].mxu1 }
 0x8f5   : > { %v4024_v21 = vpop.f32.mrb[33].mxu0  ;;  %v4065_v56 = vpop.f32.mrb[33].mxu1 }
 0x8f6   : > { %v4160_v20 = vcombine.low %v4022_v2, %v4024_v21  ;;  %v4161_v59 = vcombine.low %v4063_v3, %v4065_v56  ;;  %v4026_v18 = vpop.f32.mrb[34].mxu0  ;;  %v4067_v58 = vpop.f32.mrb[34].mxu1 }
 0x8f7   : > { %v4027_v62 = vpop.f32.mrb[35].mxu0  ;;  %v4068_v63 = vpop.f32.mrb[35].mxu1 }
 0x8f8   : > { %v4168_v57 = vrot.slane %v4160_v20, %v12004_v35  ;;  %v4175_v15 = vrot.slane %v4161_v59, %v12004_v35 }
 0x8fa   : > { %v4176_v26 = vcombine.low %v4168_v57, %v4175_v15 }
 0x8fc   : > { %v4196_v11 = vadd.f32 %v4176_v26, %v3858_v10  ;;  %v12298_v10 = vld [vmem:[#allocation50_spill] sm:$0xff] }
 0x8fe   : > { %v4205_v60 = vrot.slane %v4196_v11, 4  ;;  %v7327_v16 = vmul.f32 -1.442695, %v4196_v11  ;;  %v12299_v11 = vld [vmem:[#allocation51_spill] sm:$0xff] }
 0x900   : > { %v7328_v28 = vmul.f32 -1.442695, %v4205_v60  ;;  %v12300_v60 = vld [vmem:[#allocation52_spill] sm:$0xff] }
 0x902   : > { %7565 = vpow2.f32 %v7328_v28  ;;  %v12301_v28 = vld [vmem:[#allocation53_spill] sm:$0xff] }
 0x903   : > { %7567 = vpow2.f32 %v7327_v16  ;;  %v12302_v16 = vld [vmem:[#allocation54_spill] sm:$0xff] }
 0x90c   : > { %v7566_v7 = vpop.eup %7565 }
 0x90d   : > { %v7568_v14 = vpop.eup %7567  ;;  %v4210_v50 = vadd.f32 1.0, %v7566_v7  ;;  %v12305_v7 = vld [vmem:[#allocation57_spill] sm:$0xff] }
 0x90e   : > { %v4201_v53 = vadd.f32 1.0, %v7568_v14  ;;  %v12308_v14 = vld [vmem:[#allocation60_spill] sm:$0xff] }
 0x90f   : > { %7569 = vrcp.f32 %v4210_v50  ;;  %v12315_v50 = vld [vmem:[#allocation67_spill] sm:$0xff] }
 0x910   : > { %7571 = vrcp.f32 %v4201_v53  ;;  %v12318_v53 = vld [vmem:[#allocation70_spill] sm:$0xff] }
 0x919   : > { %v7570_v17 = vpop.eup %7569 }
 0x91a   : > { %v7572_v19 = vpop.eup %7571  ;;  %v4223_v2 = vmul.f32 %v7570_v17, %v9517_v42  ;;  %v12285_v42 = vld [vmem:[#allocation37_spill] sm:$0xff]  ;;  %v12324_v17 = vld [vmem:[#allocation76_spill] sm:$0xff] }
 0x934   : > { %v4104_v44 = vpop.f32.mrb[36].mxu0  ;;  %v4145_v8 = vpop.f32.mrb[36].mxu1 }
 0x935   : > { %v4106_v1 = vpop.f32.mrb[37].mxu0  ;;  %v4147_v25 = vpop.f32.mrb[37].mxu1 }
 0x936   : > { %v4177_v6 = vcombine.low %v4104_v44, %v4106_v1  ;;  %v4178_v4 = vcombine.low %v4145_v8, %v4147_v25  ;;  %v4108_v46 = vpop.f32.mrb[38].mxu0  ;;  %v4149_v47 = vpop.f32.mrb[38].mxu1  ;;  %v12303_v44 = vld [vmem:[#allocation55_spill] sm:$0xff]  ;;  %v12304_v8 = vld [vmem:[#allocation56_spill] sm:$0xff]  ;;  %v12306_v1 = vld [vmem:[#allocation58_spill] sm:$0xff] }
 0x937   : > { %v4109_v48 = vpop.f32.mrb[39].mxu0  ;;  %v4150_v49 = vpop.f32.mrb[39].mxu1  ;;  %v12307_v25 = vld [vmem:[#allocation59_spill] sm:$0xff]  ;;  %v12312_v47 = vld [vmem:[#allocation64_spill] sm:$0xff] }
 0x938   : > { %v4185_v51 = vrot.slane %v4177_v6, %v12004_v35  ;;  %v4192_v52 = vrot.slane %v4178_v4, %v12004_v35  ;;  %v12309_v6 = vld [vmem:[#allocation61_spill] sm:$0xff]  ;;  %v12310_v4 = vld [vmem:[#allocation62_spill] sm:$0xff]  ;;  %v12311_v46 = vld [vmem:[#allocation63_spill] sm:$0xff] }
 0x939   : > { %v12313_v48 = vld [vmem:[#allocation65_spill] sm:$0xff]  ;;  %v12314_v49 = vld [vmem:[#allocation66_spill] sm:$0xff] }
 0x93a   : > { %v4193_v55 = vcombine.low %v4185_v51, %v4192_v52  ;;  %v12316_v51 = vld [vmem:[#allocation68_spill] sm:$0xff]  ;;  %v12317_v52 = vld [vmem:[#allocation69_spill] sm:$0xff] }
 0x93c   : > { %v4197_v22 = vadd.f32 %v4193_v55, %v3859_v54  ;;  %v12319_v54 = vld [vmem:[#allocation71_spill] sm:$0xff]  ;;  %v12320_v55 = vld [vmem:[#allocation72_spill] sm:$0xff] }
 0x93e   : > { %7573 = vtanh.f32 %v4197_v22  ;;  %v4215_v13 = vrot.slane %v4197_v22, 4  ;;  %v12321_v22 = vld [vmem:[#allocation73_spill] sm:$0xff] }
 0x940   : > { %v7329_v5 = vmul.f32 -1.442695, %v4215_v13  ;;  %v12322_v13 = vld [vmem:[#allocation74_spill] sm:$0xff] }
 0x942   : > { %7575 = vpow2.f32 %v7329_v5  ;;  %v12323_v5 = vld [vmem:[#allocation75_spill] sm:$0xff] }
 0x948   : > { %v7574_v0 = vpop.eup %7573 }
 0x949   : > { %v4224_v3 = vmul.f32 %v7574_v0, %v7572_v19  ;;  %v12325_v19 = vld [vmem:[#allocation77_spill] sm:$0xff]  ;;  %v12326_v0 = vld [vmem:[#allocation78_spill] sm:$0xff] }
 0x94b   : > { %v9785_v21 = vadd.f32 %v4224_v3, %v4223_v2 }
 0x94c   : > { %v7576_v56 = vpop.eup %7575 }
 0x94d   : > { %v4220_v20 = vadd.f32 1.0, %v7576_v56  ;;  %7577 = vtanh.f32 %v9785_v21 }
 0x94f   : > { %7579 = vrcp.f32 %v4220_v20 }
 0x957   : > { %v7578_v59 = vpop.eup %7577 }
 0x959   : > { %v7580_v18 = vpop.eup %7579 }
 0x95a   : > { %v4227_v58 = vmul.f32 %v7580_v18, %v7578_v59 }
 0x95c   : > { %v4235_v62 = vrot.slane %v4227_v58, %v12004_v35 }
 0x95e   : > { %v4236_v63 = vcombine.high %v4235_v62, %v4235_v62  ;;  %v9789_v26 = vpack.c.bf16 %v4235_v62, %v4235_v62 }
 0x960   : > { %v4240_v57 = vpack.c.bf16 %v4236_v63, %v4236_v63  ;;  %v7371_v15 = vpack.c.bf16 %v4236_v63, %v4235_v62 }
 0x962   : > { %4247 = vst [vmem:[%s8005_s27 + $0x8] sm:$0x11] %v7371_v15  ;;  %4410 = vmatprep.mubr.bf16.mxu0 %v4240_v57  ;;  %4451 = vmatprep.mubr.bf16.mxu1 %v4240_v57 }
 0x963   : > { %4411 = vmatmul.mubr.bf16.vlgmr.msra.gmra.mrb[40].mxu0 %v9789_v26  ;;  %4452 = vmatmul.mubr.bf16.vlgmr.msra.gmra.mrb[40].mxu1 %v9789_v26 }
 0x964   : > { %4461 = vmatpush1.bf16.msra.mxu0 %v9523_v45  ;;  %4502 = vmatpush1.bf16.msra.mxu1 %v9525_v24  ;;  %v12286_v45 = vld [vmem:[#allocation38_spill] sm:$0xff]  ;;  %v12287_v24 = vld [vmem:[#allocation39_spill] sm:$0xff] }
 0x965   : > { %4492 = vmatprep.mubr.bf16.mxu0 %v4240_v57  ;;  %4533 = vmatprep.mubr.bf16.mxu1 %v4240_v57 }
 0x966   : > { %4462 = vmatprep.subr.bf16.mxu0 %v9529_v36  ;;  %4503 = vmatprep.subr.bf16.mxu1 %v9531_v38  ;;  %v12288_v36 = vld [vmem:[#allocation40_spill] sm:$0xff]  ;;  %v12289_v38 = vld [vmem:[#allocation41_spill] sm:$0xff] }
 0x968   : > { %4463 = vmatpush1.bf16.msra.mxu0 %v9536_v39  ;;  %4504 = vmatpush1.bf16.msra.mxu1 %v9538_v9  ;;  %v12290_v39 = vld [vmem:[#allocation42_spill] sm:$0xff]  ;;  %v12291_v9 = vld [vmem:[#allocation43_spill] sm:$0xff] }
 0x969   : > { %4464 = vmatprep.subr.bf16.mxu0 %v9542_v61  ;;  %4505 = vmatprep.subr.bf16.mxu1 %v9544_v41  ;;  %v12292_v61 = vld [vmem:[#allocation44_spill] sm:$0xff]  ;;  %v12293_v41 = vld [vmem:[#allocation45_spill] sm:$0xff] }
 0x96c   : > { %4465 = vmatpush1.bf16.msra.mxu0 %v9550_v32  ;;  %4506 = vmatpush1.bf16.msra.mxu1 %v9552_v40  ;;  %v12294_v32 = vld [vmem:[#allocation46_spill] sm:$0xff]  ;;  %v12295_v40 = vld [vmem:[#allocation47_spill] sm:$0xff] }
 0x96d   : > { %4466 = vmatprep.subr.bf16.mxu0 %v9554_v30  ;;  %4507 = vmatprep.subr.bf16.mxu1 %v9556_v37  ;;  %v12296_v30 = vld [vmem:[#allocation48_spill] sm:$0xff]  ;;  %v12297_v37 = vld [vmem:[#allocation49_spill] sm:$0xff] }
 0x970   : > { %4467 = vmatpush1.bf16.msra.mxu0 %v12285_v42  ;;  %4508 = vmatpush1.bf16.msra.mxu1 %v12286_v45 }
 0x971   : > { %4468 = vmatprep.subr.bf16.mxu0 %v12287_v24  ;;  %4509 = vmatprep.subr.bf16.mxu1 %v12288_v36 }
 0x974   : > { %4469 = vmatpush1.bf16.msra.mxu0 %v12289_v38  ;;  %4510 = vmatpush1.bf16.msra.mxu1 %v12290_v39 }
 0x975   : > { %4470 = vmatprep.subr.bf16.mxu0 %v12291_v9  ;;  %4511 = vmatprep.subr.bf16.mxu1 %v12292_v61 }
 0x978   : > { %4471 = vmatpush1.bf16.msra.mxu0 %v12293_v41  ;;  %4512 = vmatpush1.bf16.msra.mxu1 %v12294_v32 }
 0x979   : > { %4472 = vmatprep.subr.bf16.mxu0 %v12295_v40  ;;  %4513 = vmatprep.subr.bf16.mxu1 %v12296_v30 }
 0x97c   : > { %4473 = vmatpush1.bf16.msra.mxu0 %v12297_v37  ;;  %4514 = vmatpush1.bf16.msra.mxu1 %v12298_v10 }
 0x97d   : > { %4474 = vmatprep.subr.bf16.mxu0 %v12299_v11  ;;  %4515 = vmatprep.subr.bf16.mxu1 %v12300_v60  ;;  %v4249_v11 = vld [vmem:[#allocation2 + $0x58] sm:$0xff] }
 0x980   : > { %4475 = vmatpush1.bf16.msra.mxu0 %v12301_v28  ;;  %4516 = vmatpush1.bf16.msra.mxu1 %v12302_v16 }
 0x981   : > { %4476 = vmatprep.subr.bf16.mxu0 %v12303_v44  ;;  %4517 = vmatprep.subr.bf16.mxu1 %v12304_v8 }
 0x984   : > { %4477 = vmatpush1.bf16.msra.mxu0 %v12305_v7  ;;  %4518 = vmatpush1.bf16.msra.mxu1 %v12306_v1 }
 0x985   : > { %4478 = vmatprep.subr.bf16.mxu0 %v12307_v25  ;;  %4519 = vmatprep.subr.bf16.mxu1 %v12308_v14 }
 0x988   : > { %4479 = vmatpush1.bf16.msra.mxu0 %v12309_v6  ;;  %4520 = vmatpush1.bf16.msra.mxu1 %v12310_v4 }
 0x989   : > { %4480 = vmatprep.subr.bf16.mxu0 %v12311_v46  ;;  %4521 = vmatprep.subr.bf16.mxu1 %v12312_v47 }
 0x98c   : > { %4481 = vmatpush1.bf16.msra.mxu0 %v12313_v48  ;;  %4522 = vmatpush1.bf16.msra.mxu1 %v12314_v49 }
 0x98d   : > { %4482 = vmatprep.subr.bf16.mxu0 %v12315_v50  ;;  %4523 = vmatprep.subr.bf16.mxu1 %v12316_v51 }
 0x990   : > { %4483 = vmatpush1.bf16.msra.mxu0 %v12317_v52  ;;  %4524 = vmatpush1.bf16.msra.mxu1 %v12318_v53 }
 0x991   : > { %4484 = vmatprep.subr.bf16.mxu0 %v12319_v54  ;;  %4525 = vmatprep.subr.bf16.mxu1 %v12320_v55 }
 0x994   : > { %4485 = vmatpush1.bf16.msra.mxu0 %v12321_v22  ;;  %4526 = vmatpush1.bf16.msra.mxu1 %v12322_v13 }
 0x995   : > { %4486 = vmatprep.subr.bf16.mxu0 %v12323_v5  ;;  %4527 = vmatprep.subr.bf16.mxu1 %v12324_v17 }
 0x998   : > { %4487 = vmatpush1.bf16.msra.mxu0 %v9682_v34  ;;  %4528 = vmatpush1.bf16.msra.mxu1 %v12325_v19 }
 0x999   : > { %4488 = vmatprep.subr.bf16.mxu0 %v12326_v0  ;;  %4529 = vmatprep.subr.bf16.mxu1 %v9688_v31 }
 0x99c   : > { %4489 = vmatpush1.bf16.msra.mxu0 %v9694_v29  ;;  %4530 = vmatpush1.bf16.msra.mxu1 %v9696_v27 }
 0x99d   : > { %4490 = vmatprep.subr.bf16.mxu0 %v9698_v12  ;;  %4531 = vmatprep.subr.bf16.mxu1 %v9700_v23 }
 0x9a0   : > { %4491 = vmatpush1.bf16.msra.mxu0 %v9706_v43  ;;  %4532 = vmatpush1.bf16.msra.mxu1 %v9708_v33  ;;  %v4248_v33 = vld [vmem:[#allocation2 + $0x50] sm:$0xff] }
 0x9a3   : > { %4493 = vmatmul.mubr.bf16.vlgmr.msra.gmra.mrb[44].mxu0 %v9789_v26  ;;  %4534 = vmatmul.mubr.bf16.vlgmr.msra.gmra.mrb[44].mxu1 %v9789_v26 }
 0xa36   : > { %v4412_v34 = vpop.f32.mrb[40].mxu0  ;;  %v4453_v2 = vpop.f32.mrb[40].mxu1 }
 0xa37   : > { %v4414_v3 = vpop.f32.mrb[41].mxu0  ;;  %v4455_v31 = vpop.f32.mrb[41].mxu1 }
 0xa38   : > { %v4550_v56 = vcombine.low %v4412_v34, %v4414_v3  ;;  %v4551_v29 = vcombine.low %v4453_v2, %v4455_v31  ;;  %v4416_v20 = vpop.f32.mrb[42].mxu0  ;;  %v4457_v27 = vpop.f32.mrb[42].mxu1 }
 0xa39   : > { %v4417_v59 = vpop.f32.mrb[43].mxu0  ;;  %v4458_v12 = vpop.f32.mrb[43].mxu1 }
 0xa3a   : > { %v4558_v23 = vrot.slane %v4550_v56, %v12004_v35  ;;  %v4565_v43 = vrot.slane %v4551_v29, %v12004_v35 }
 0xa3c   : > { %v4566_v18 = vcombine.low %v4558_v23, %v4565_v43 }
 0xa3e   : > { %v4586_v58 = vadd.f32 %v4566_v18, %v4248_v33 }
 0xa40   : > { %v4595_v62 = vrot.slane %v4586_v58, 4  ;;  %v7331_v57 = vmul.f32 -1.442695, %v4586_v58 }
 0xa42   : > { %v7332_v63 = vmul.f32 -1.442695, %v4595_v62 }
 0xa44   : > { %7581 = vpow2.f32 %v7332_v63 }
 0xa45   : > { %7583 = vpow2.f32 %v7331_v57 }
 0xa4e   : > { %v7582_v42 = vpop.eup %7581 }
 0xa4f   : > { %v7584_v36 = vpop.eup %7583  ;;  %v4600_v40 = vadd.f32 1.0, %v7582_v42 }
 0xa50   : > { %v4591_v10 = vadd.f32 1.0, %v7584_v36 }
 0xa51   : > { %7585 = vrcp.f32 %v4600_v40 }
 0xa52   : > { %7587 = vrcp.f32 %v4591_v10 }
 0xa5b   : > { %v7586_v8 = vpop.eup %7585 }
 0xa5c   : > { %v7588_v7 = vpop.eup %7587  ;;  %v4613_v25 = vmul.f32 %v7586_v8, %v9785_v21 }
 0xa76   : > { %v4494_v15 = vpop.f32.mrb[44].mxu0  ;;  %v4535_v26 = vpop.f32.mrb[44].mxu1 }
 0xa77   : > { %v4496_v45 = vpop.f32.mrb[45].mxu0  ;;  %v4537_v24 = vpop.f32.mrb[45].mxu1 }
 0xa78   : > { %v4567_v38 = vcombine.low %v4494_v15, %v4496_v45  ;;  %v4568_v39 = vcombine.low %v4535_v26, %v4537_v24  ;;  %v4498_v9 = vpop.f32.mrb[46].mxu0  ;;  %v4539_v61 = vpop.f32.mrb[46].mxu1 }
 0xa79   : > { %v4499_v41 = vpop.f32.mrb[47].mxu0  ;;  %v4540_v32 = vpop.f32.mrb[47].mxu1 }
 0xa7a   : > { %v4575_v30 = vrot.slane %v4567_v38, %v12004_v35  ;;  %v4582_v37 = vrot.slane %v4568_v39, %v12004_v35 }
 0xa7c   : > { %v4583_v60 = vcombine.low %v4575_v30, %v4582_v37 }
 0xa7e   : > { %v4587_v28 = vadd.f32 %v4583_v60, %v4249_v11 }
 0xa80   : > { %7589 = vtanh.f32 %v4587_v28  ;;  %v4605_v16 = vrot.slane %v4587_v28, 4 }
 0xa82   : > { %v7333_v44 = vmul.f32 -1.442695, %v4605_v16 }
 0xa84   : > { %7591 = vpow2.f32 %v7333_v44 }
 0xa8a   : > { %v7590_v1 = vpop.eup %7589 }
 0xa8b   : > { %v4614_v14 = vmul.f32 %v7590_v1, %v7588_v7 }
 0xa8d   : > { %v4615_v6 = vadd.f32 %v4614_v14, %v4613_v25 }
 0xa8e   : > { %v7592_v4 = vpop.eup %7591 }
 0xa8f   : > { %v4610_v46 = vadd.f32 1.0, %v7592_v4  ;;  %7593 = vtanh.f32 %v4615_v6 }
 0xa91   : > { %7595 = vrcp.f32 %v4610_v46 }
 0xa99   : > { %v7594_v47 = vpop.eup %7593 }
 0xa9b   : > { %v7596_v48 = vpop.eup %7595 }
 0xa9c   : > { %v4617_v49 = vmul.f32 %v7596_v48, %v7594_v47 }
 0xa9e   : > { %v4625_v50 = vrot.slane %v4617_v49, %v12004_v35 }
 0xaa0   : > { %v4626_v51 = vcombine.high %v4625_v50, %v4625_v50 }
 0xaa2   : > { %v7372_v52 = vpack.c.bf16 %v4626_v51, %v4625_v50 }
 0xaa4   : > { %v4636_v53 = vrot.slane %v7372_v52, 7 }
 0xaa6   : > { %4638 = vst [vmem:[%s8005_s27 + $0x8] sm:$0x22] %v4636_v53 }
 0xaa7 PF: > { %p7335_p9 = scmp.ne.s32.totalorder %s7842_s9, 1 }
 0xaa9   : > { %4642 = sbr.rel (%p7335_p9) target bundleno = 4733 (0x127d), region = 60 }
 0xab0   : > { %v9866_v21 = vld [vmem:[#allocation3 + $0x8] sm:$0xff]  ;;  %v9868_v54 = vld [vmem:[#allocation3 + $0x18] sm:$0xff]  ;;  %v9870_v55 = vld [vmem:[#allocation3] sm:$0xff]  ;;  %v11722_v34 = vmov 0  }
 0xab1   : > { %4773 = vmatprep.subr.bf16.mxu0 %v9866_v21  ;;  %4814 = vmatprep.subr.bf16.mxu1 %v9868_v54  ;;  %v9874_v22 = vld [vmem:[#allocation3 + $0x10] sm:$0xff]  ;;  %v9876_v35 = vld [vmem:[#allocation3 + $0x48] sm:$0xff]  ;;  %v9878_v13 = vld [vmem:[#allocation3 + $0x58] sm:$0xff] }
 0xab2   : > { %4774 = vmatpush1.bf16.msra.mxu0 %v9870_v55  ;;  %4815 = vmatpush1.bf16.msra.mxu1 %v9874_v22  ;;  %v9884_v5 = vld [vmem:[#allocation3 + $0x40] sm:$0xff]  ;;  %v9886_v17 = vld [vmem:[#allocation3 + $0x50] sm:$0xff]  ;;  %v9888_v19 = vld [vmem:[#allocation3 + $0x88] sm:$0xff] }
 0xab3   : > { %4775 = vmatprep.subr.bf16.mxu0 %v9876_v35  ;;  %4816 = vmatprep.subr.bf16.mxu1 %v9878_v13  ;;  %v9890_v0 = vld [vmem:[#allocation3 + $0x98] sm:$0xff]  ;;  %v9898_v2 = vld [vmem:[#allocation3 + $0x80] sm:$0xff]  ;;  %v9900_v3 = vld [vmem:[#allocation3 + $0x90] sm:$0xff] }
 0xab4   : > { %4805 = vmatprep.mubr.bf16.mxu0 %v11722_v34  ;;  %4846 = vmatprep.mubr.bf16.mxu1 %v11722_v34  ;;  %v9902_v31 = vld [vmem:[#allocation3 + $0xc8] sm:$0xff]  ;;  %v9904_v56 = vld [vmem:[#allocation3 + $0xd8] sm:$0xff]  ;;  %v9910_v29 = vld [vmem:[#allocation3 + $0xc0] sm:$0xff] }
 0xab5   : > { %v9912_v20 = vld [vmem:[#allocation3 + $0xd0] sm:$0xff]  ;;  %v9914_v27 = vld [vmem:[#allocation3 + $0x108] sm:$0xff]  ;;  %v9916_v59 = vld [vmem:[#allocation3 + $0x118] sm:$0xff] }
 0xab6   : > { %4776 = vmatpush1.bf16.msra.mxu0 %v9884_v5  ;;  %4817 = vmatpush1.bf16.msra.mxu1 %v9886_v17  ;;  %v9922_v12 = vld [vmem:[#allocation3 + $0x100] sm:$0xff]  ;;  %v9924_v23 = vld [vmem:[#allocation3 + $0x110] sm:$0xff]  ;;  %v9926_v43 = vld [vmem:[#allocation3 + $0x148] sm:$0xff] }
 0xab7   : > { %4777 = vmatprep.subr.bf16.mxu0 %v9888_v19  ;;  %4818 = vmatprep.subr.bf16.mxu1 %v9890_v0  ;;  %v9928_v18 = vld [vmem:[#allocation3 + $0x158] sm:$0xff]  ;;  %v9934_v33 = vld [vmem:[#allocation3 + $0x140] sm:$0xff]  ;;  %v9936_v58 = vld [vmem:[#allocation3 + $0x150] sm:$0xff] }
 0xab8   : > { %v9938_v62 = vld [vmem:[#allocation3 + $0x188] sm:$0xff]  ;;  %v9940_v63 = vld [vmem:[#allocation3 + $0x198] sm:$0xff]  ;;  %v9946_v57 = vld [vmem:[#allocation3 + $0x180] sm:$0xff] }
 0xab9   : > { %v9948_v15 = vld [vmem:[#allocation3 + $0x190] sm:$0xff]  ;;  %v9950_v26 = vld [vmem:[#allocation3 + $0x1c8] sm:$0xff]  ;;  %v9952_v42 = vld [vmem:[#allocation3 + $0x1d8] sm:$0xff] }
 0xaba   : > { %4778 = vmatpush1.bf16.msra.mxu0 %v9898_v2  ;;  %4819 = vmatpush1.bf16.msra.mxu1 %v9900_v3  ;;  %v9958_v45 = vld [vmem:[#allocation3 + $0x1c0] sm:$0xff]  ;;  %v9960_v24 = vld [vmem:[#allocation3 + $0x1d0] sm:$0xff]  ;;  %v9962_v36 = vld [vmem:[#allocation3 + $0x208] sm:$0xff] }
 0xabb   : > { %4779 = vmatprep.subr.bf16.mxu0 %v9902_v31  ;;  %4820 = vmatprep.subr.bf16.mxu1 %v9904_v56  ;;  %v9964_v38 = vld [vmem:[#allocation3 + $0x218] sm:$0xff]  ;;  %v9970_v39 = vld [vmem:[#allocation3 + $0x200] sm:$0xff]  ;;  %v9972_v9 = vld [vmem:[#allocation3 + $0x210] sm:$0xff] }
 0xabc   : > { %v9974_v61 = vld [vmem:[#allocation3 + $0x248] sm:$0xff]  ;;  %v9976_v41 = vld [vmem:[#allocation3 + $0x258] sm:$0xff]  ;;  %v9982_v32 = vld [vmem:[#allocation3 + $0x240] sm:$0xff] }
 0xabd   : > { %v9984_v40 = vld [vmem:[#allocation3 + $0x250] sm:$0xff]  ;;  %v9986_v30 = vld [vmem:[#allocation3 + $0x288] sm:$0xff]  ;;  %v9988_v37 = vld [vmem:[#allocation3 + $0x298] sm:$0xff] }
 0xabe   : > { %4780 = vmatpush1.bf16.msra.mxu0 %v9910_v29  ;;  %4821 = vmatpush1.bf16.msra.mxu1 %v9912_v20  ;;  %v9994_v10 = vld [vmem:[#allocation3 + $0x280] sm:$0xff]  ;;  %v9996_v11 = vld [vmem:[#allocation3 + $0x290] sm:$0xff]  ;;  %v9998_v60 = vld [vmem:[#allocation3 + $0x2c8] sm:$0xff] }
 0xabf   : > { %4781 = vmatprep.subr.bf16.mxu0 %v9914_v27  ;;  %4822 = vmatprep.subr.bf16.mxu1 %v9916_v59  ;;  %v10000_v28 = vld [vmem:[#allocation3 + $0x2d8] sm:$0xff]  ;;  %v10006_v16 = vld [vmem:[#allocation3 + $0x2c0] sm:$0xff]  ;;  %v10008_v44 = vld [vmem:[#allocation3 + $0x2d0] sm:$0xff] }
 0xac0   : > { %v10010_v8 = vld [vmem:[#allocation3 + $0x308] sm:$0xff]  ;;  %v10012_v7 = vld [vmem:[#allocation3 + $0x318] sm:$0xff]  ;;  %v10018_v1 = vld [vmem:[#allocation3 + $0x300] sm:$0xff] }
 0xac1   : > { %v10020_v25 = vld [vmem:[#allocation3 + $0x310] sm:$0xff]  ;;  %v10022_v14 = vld [vmem:[#allocation3 + $0x348] sm:$0xff]  ;;  %v10024_v6 = vld [vmem:[#allocation3 + $0x358] sm:$0xff] }
 0xac2   : > { %4782 = vmatpush1.bf16.msra.mxu0 %v9922_v12  ;;  %4823 = vmatpush1.bf16.msra.mxu1 %v9924_v23  ;;  %v10030_v4 = vld [vmem:[#allocation3 + $0x340] sm:$0xff]  ;;  %v10032_v46 = vld [vmem:[#allocation3 + $0x350] sm:$0xff]  ;;  %v10034_v47 = vld [vmem:[#allocation3 + $0x388] sm:$0xff] }
 0xac3   : > { %4783 = vmatprep.subr.bf16.mxu0 %v9926_v43  ;;  %4824 = vmatprep.subr.bf16.mxu1 %v9928_v18  ;;  %12327 = vst [vmem:[#allocation79_spill] sm:$0xff] %v10032_v46  ;;  %12328 = vst [vmem:[#allocation80_spill] sm:$0xff] %v10034_v47  ;;  %v10036_v48 = vld [vmem:[#allocation3 + $0x398] sm:$0xff]  ;;  %v10042_v49 = vld [vmem:[#allocation3 + $0x380] sm:$0xff] }
 0xac4   : > { %12329 = vst [vmem:[#allocation81_spill] sm:$0xff] %v10036_v48  ;;  %12330 = vst [vmem:[#allocation82_spill] sm:$0xff] %v10042_v49  ;;  %v10044_v50 = vld [vmem:[#allocation3 + $0x390] sm:$0xff]  ;;  %v10046_v51 = vld [vmem:[#allocation3 + $0x3c8] sm:$0xff] }
 0xac5   : > { %12331 = vst [vmem:[#allocation83_spill] sm:$0xff] %v10044_v50  ;;  %12332 = vst [vmem:[#allocation84_spill] sm:$0xff] %v10046_v51  ;;  %v10048_v52 = vld [vmem:[#allocation3 + $0x3d8] sm:$0xff]  ;;  %v10054_v53 = vld [vmem:[#allocation3 + $0x3c0] sm:$0xff] }
 0xac6   : > { %4784 = vmatpush1.bf16.msra.mxu0 %v9934_v33  ;;  %4825 = vmatpush1.bf16.msra.mxu1 %v9936_v58  ;;  %12333 = vst [vmem:[#allocation85_spill] sm:$0xff] %v10048_v52  ;;  %12334 = vst [vmem:[#allocation86_spill] sm:$0xff] %v10054_v53  ;;  %v10056_v34 = vld [vmem:[#allocation3 + $0x3d0] sm:$0xff] }
 0xac7   : > { %4785 = vmatprep.subr.bf16.mxu0 %v9938_v62  ;;  %4826 = vmatprep.subr.bf16.mxu1 %v9940_v63  ;;  %12335 = vst [vmem:[#allocation87_spill] sm:$0xff] %v10056_v34 }
 0xaca   : > { %4786 = vmatpush1.bf16.msra.mxu0 %v9946_v57  ;;  %4827 = vmatpush1.bf16.msra.mxu1 %v9948_v15 }
 0xacb   : > { %4787 = vmatprep.subr.bf16.mxu0 %v9950_v26  ;;  %4828 = vmatprep.subr.bf16.mxu1 %v9952_v42 }
 0xace   : > { %4788 = vmatpush1.bf16.msra.mxu0 %v9958_v45  ;;  %4829 = vmatpush1.bf16.msra.mxu1 %v9960_v24 }
 0xacf   : > { %4789 = vmatprep.subr.bf16.mxu0 %v9962_v36  ;;  %4830 = vmatprep.subr.bf16.mxu1 %v9964_v38 }
 0xad2   : > { %4790 = vmatpush1.bf16.msra.mxu0 %v9970_v39  ;;  %4831 = vmatpush1.bf16.msra.mxu1 %v9972_v9 }
 0xad3   : > { %4791 = vmatprep.subr.bf16.mxu0 %v9974_v61  ;;  %4832 = vmatprep.subr.bf16.mxu1 %v9976_v41 }
 0xad6   : > { %4792 = vmatpush1.bf16.msra.mxu0 %v9982_v32  ;;  %4833 = vmatpush1.bf16.msra.mxu1 %v9984_v40 }
 0xad7   : > { %4793 = vmatprep.subr.bf16.mxu0 %v9986_v30  ;;  %4834 = vmatprep.subr.bf16.mxu1 %v9988_v37 }
 0xada   : > { %4794 = vmatpush1.bf16.msra.mxu0 %v9994_v10  ;;  %4835 = vmatpush1.bf16.msra.mxu1 %v9996_v11 }
 0xadb   : > { %4795 = vmatprep.subr.bf16.mxu0 %v9998_v60  ;;  %4836 = vmatprep.subr.bf16.mxu1 %v10000_v28 }
 0xade   : > { %4796 = vmatpush1.bf16.msra.mxu0 %v10006_v16  ;;  %4837 = vmatpush1.bf16.msra.mxu1 %v10008_v44 }
 0xadf   : > { %4797 = vmatprep.subr.bf16.mxu0 %v10010_v8  ;;  %4838 = vmatprep.subr.bf16.mxu1 %v10012_v7 }
 0xae2   : > { %4798 = vmatpush1.bf16.msra.mxu0 %v10018_v1  ;;  %4839 = vmatpush1.bf16.msra.mxu1 %v10020_v25 }
 0xae3   : > { %4799 = vmatprep.subr.bf16.mxu0 %v10022_v14  ;;  %4840 = vmatprep.subr.bf16.mxu1 %v10024_v6 }
 0xae6   : > { %4800 = vmatpush1.bf16.msra.mxu0 %v10030_v4  ;;  %4841 = vmatpush1.bf16.msra.mxu1 %v10032_v46  ;;  %v12342_v46 = vmov 0  }
 0xae7   : > { %4801 = vmatprep.subr.bf16.mxu0 %v10034_v47  ;;  %4842 = vmatprep.subr.bf16.mxu1 %v10036_v48  ;;  %v10058_v48 = vld [vmem:[#allocation3 + $0x28] sm:$0xff]  ;;  %v10060_v47 = vld [vmem:[#allocation3 + $0x38] sm:$0xff] }
 0xae8   : > { %12336 = vst [vmem:[#allocation88_spill] sm:$0xff] %v10058_v48  ;;  %12337 = vst [vmem:[#allocation89_spill] sm:$0xff] %v10060_v47 }
 0xaea   : > { %4802 = vmatpush1.bf16.msra.mxu0 %v10042_v49  ;;  %4843 = vmatpush1.bf16.msra.mxu1 %v10044_v50  ;;  %v10066_v50 = vld [vmem:[#allocation3 + $0x20] sm:$0xff]  ;;  %v10072_v49 = vld [vmem:[#allocation3 + $0x78] sm:$0xff] }
 0xaeb   : > { %4803 = vmatprep.subr.bf16.mxu0 %v10046_v51  ;;  %4844 = vmatprep.subr.bf16.mxu1 %v10048_v52  ;;  %12338 = vst [vmem:[#allocation90_spill] sm:$0xff] %v10066_v50  ;;  %v10068_v51 = vld [vmem:[#allocation3 + $0x30] sm:$0xff]  ;;  %v10070_v52 = vld [vmem:[#allocation3 + $0x68] sm:$0xff]  ;;  %12341 = vst [vmem:[#allocation93_spill] sm:$0xff] %v10072_v49 }
 0xaec   : > { %12339 = vst [vmem:[#allocation91_spill] sm:$0xff] %v10068_v51  ;;  %12340 = vst [vmem:[#allocation92_spill] sm:$0xff] %v10070_v52 }
 0xaee   : > { %4804 = vmatpush1.bf16.msra.mxu0 %v10054_v53  ;;  %4845 = vmatpush1.bf16.msra.mxu1 %v10056_v34  ;;  %v10084_v34 = vld [vmem:[#allocation3 + $0xa8] sm:$0xff]  ;;  %v10086_v53 = vld [vmem:[#allocation3 + $0xb8] sm:$0xff] }
 0xaef   : > { %4855 = vmatprep.subr.bf16.mxu0 %v10058_v48  ;;  %4896 = vmatprep.subr.bf16.mxu1 %v10060_v47  ;;  %v10080_v47 = vld [vmem:[#allocation3 + $0x60] sm:$0xff]  ;;  %v10082_v48 = vld [vmem:[#allocation3 + $0x70] sm:$0xff]  ;;  %12345 = vst [vmem:[#allocation96_spill] sm:$0xff] %v10084_v34  ;;  %12346 = vst [vmem:[#allocation97_spill] sm:$0xff] %v10086_v53 }
 0xaf0   : > { %12343 = vst [vmem:[#allocation94_spill] sm:$0xff] %v10080_v47  ;;  %12344 = vst [vmem:[#allocation95_spill] sm:$0xff] %v10082_v48 }
 0xaf1   : > { %4806 = vmatmul.mubr.bf16.vlgmr.msra.gmra.mrb[0].mxu0 %v12342_v46  ;;  %4847 = vmatmul.mubr.bf16.vlgmr.msra.gmra.mrb[0].mxu1 %v12342_v46 }
 0xaf2   : > { %4856 = vmatpush1.bf16.msra.mxu0 %v10066_v50  ;;  %4897 = vmatpush1.bf16.msra.mxu1 %v10068_v51  ;;  %v10098_v51 = vld [vmem:[#allocation3 + $0xe8] sm:$0xff]  ;;  %v10100_v50 = vld [vmem:[#allocation3 + $0xf8] sm:$0xff] }
 0xaf3   : > { %4857 = vmatprep.subr.bf16.mxu0 %v10070_v52  ;;  %4898 = vmatprep.subr.bf16.mxu1 %v10072_v49  ;;  %v10094_v49 = vld [vmem:[#allocation3 + $0xa0] sm:$0xff]  ;;  %v10096_v52 = vld [vmem:[#allocation3 + $0xb0] sm:$0xff]  ;;  %12349 = vst [vmem:[#allocation100_spill] sm:$0xff] %v10098_v51  ;;  %12350 = vst [vmem:[#allocation101_spill] sm:$0xff] %v10100_v50 }
 0xaf4   : > { %4887 = vmatprep.mubr.bf16.mxu0 %v12342_v46  ;;  %4928 = vmatprep.mubr.bf16.mxu1 %v12342_v46  ;;  %12347 = vst [vmem:[#allocation98_spill] sm:$0xff] %v10094_v49  ;;  %12348 = vst [vmem:[#allocation99_spill] sm:$0xff] %v10096_v52 }
 0xaf6   : > { %4858 = vmatpush1.bf16.msra.mxu0 %v10080_v47  ;;  %4899 = vmatpush1.bf16.msra.mxu1 %v10082_v48  ;;  %v10106_v48 = vld [vmem:[#allocation3 + $0xe0] sm:$0xff]  ;;  %v10112_v47 = vld [vmem:[#allocation3 + $0x138] sm:$0xff] }
 0xaf7   : > { %4859 = vmatprep.subr.bf16.mxu0 %v10084_v34  ;;  %4900 = vmatprep.subr.bf16.mxu1 %v10086_v53  ;;  %12351 = vst [vmem:[#allocation102_spill] sm:$0xff] %v10106_v48  ;;  %v10108_v34 = vld [vmem:[#allocation3 + $0xf0] sm:$0xff]  ;;  %v10110_v53 = vld [vmem:[#allocation3 + $0x128] sm:$0xff]  ;;  %12354 = vst [vmem:[#allocation105_spill] sm:$0xff] %v10112_v47 }
 0xaf8   : > { %12352 = vst [vmem:[#allocation103_spill] sm:$0xff] %v10108_v34  ;;  %12353 = vst [vmem:[#allocation104_spill] sm:$0xff] %v10110_v53 }
 0xafa   : > { %4860 = vmatpush1.bf16.msra.mxu0 %v10094_v49  ;;  %4901 = vmatpush1.bf16.msra.mxu1 %v10096_v52  ;;  %v10118_v52 = vld [vmem:[#allocation3 + $0x120] sm:$0xff]  ;;  %v10124_v49 = vld [vmem:[#allocation3 + $0x178] sm:$0xff] }
 0xafb   : > { %4861 = vmatprep.subr.bf16.mxu0 %v10098_v51  ;;  %4902 = vmatprep.subr.bf16.mxu1 %v10100_v50  ;;  %12355 = vst [vmem:[#allocation106_spill] sm:$0xff] %v10118_v52  ;;  %v10120_v51 = vld [vmem:[#allocation3 + $0x130] sm:$0xff]  ;;  %v10122_v50 = vld [vmem:[#allocation3 + $0x168] sm:$0xff]  ;;  %12358 = vst [vmem:[#allocation109_spill] sm:$0xff] %v10124_v49 }
 0xafc   : > { %12356 = vst [vmem:[#allocation107_spill] sm:$0xff] %v10120_v51  ;;  %12357 = vst [vmem:[#allocation108_spill] sm:$0xff] %v10122_v50 }
 0xafe   : > { %4862 = vmatpush1.bf16.msra.mxu0 %v10106_v48  ;;  %4903 = vmatpush1.bf16.msra.mxu1 %v10108_v34  ;;  %v10130_v34 = vld [vmem:[#allocation3 + $0x160] sm:$0xff]  ;;  %v10136_v48 = vld [vmem:[#allocation3 + $0x1b8] sm:$0xff] }
 0xaff   : > { %4863 = vmatprep.subr.bf16.mxu0 %v10110_v53  ;;  %4904 = vmatprep.subr.bf16.mxu1 %v10112_v47  ;;  %12359 = vst [vmem:[#allocation110_spill] sm:$0xff] %v10130_v34  ;;  %v10132_v53 = vld [vmem:[#allocation3 + $0x170] sm:$0xff]  ;;  %v10134_v47 = vld [vmem:[#allocation3 + $0x1a8] sm:$0xff]  ;;  %12362 = vst [vmem:[#allocation113_spill] sm:$0xff] %v10136_v48 }
 0xb00   : > { %12360 = vst [vmem:[#allocation111_spill] sm:$0xff] %v10132_v53  ;;  %12361 = vst [vmem:[#allocation112_spill] sm:$0xff] %v10134_v47 }
 0xb02   : > { %4864 = vmatpush1.bf16.msra.mxu0 %v10118_v52  ;;  %4905 = vmatpush1.bf16.msra.mxu1 %v10120_v51  ;;  %v10142_v51 = vld [vmem:[#allocation3 + $0x1a0] sm:$0xff]  ;;  %v10148_v52 = vld [vmem:[#allocation3 + $0x1f8] sm:$0xff] }
 0xb03   : > { %4865 = vmatprep.subr.bf16.mxu0 %v10122_v50  ;;  %4906 = vmatprep.subr.bf16.mxu1 %v10124_v49  ;;  %12363 = vst [vmem:[#allocation114_spill] sm:$0xff] %v10142_v51  ;;  %v10144_v50 = vld [vmem:[#allocation3 + $0x1b0] sm:$0xff]  ;;  %v10146_v49 = vld [vmem:[#allocation3 + $0x1e8] sm:$0xff]  ;;  %12366 = vst [vmem:[#allocation117_spill] sm:$0xff] %v10148_v52 }
 0xb04   : > { %12364 = vst [vmem:[#allocation115_spill] sm:$0xff] %v10144_v50  ;;  %12365 = vst [vmem:[#allocation116_spill] sm:$0xff] %v10146_v49 }
 0xb06   : > { %4866 = vmatpush1.bf16.msra.mxu0 %v10130_v34  ;;  %4907 = vmatpush1.bf16.msra.mxu1 %v10132_v53  ;;  %v10154_v53 = vld [vmem:[#allocation3 + $0x1e0] sm:$0xff]  ;;  %v10160_v34 = vld [vmem:[#allocation3 + $0x238] sm:$0xff] }
 0xb07   : > { %4867 = vmatprep.subr.bf16.mxu0 %v10134_v47  ;;  %4908 = vmatprep.subr.bf16.mxu1 %v10136_v48  ;;  %12367 = vst [vmem:[#allocation118_spill] sm:$0xff] %v10154_v53  ;;  %v10156_v47 = vld [vmem:[#allocation3 + $0x1f0] sm:$0xff]  ;;  %v10158_v48 = vld [vmem:[#allocation3 + $0x228] sm:$0xff]  ;;  %12370 = vst [vmem:[#allocation121_spill] sm:$0xff] %v10160_v34 }
 0xb08   : > { %12368 = vst [vmem:[#allocation119_spill] sm:$0xff] %v10156_v47  ;;  %12369 = vst [vmem:[#allocation120_spill] sm:$0xff] %v10158_v48 }
 0xb0a   : > { %4868 = vmatpush1.bf16.msra.mxu0 %v10142_v51  ;;  %4909 = vmatpush1.bf16.msra.mxu1 %v10144_v50  ;;  %v10166_v50 = vld [vmem:[#allocation3 + $0x220] sm:$0xff]  ;;  %v10172_v51 = vld [vmem:[#allocation3 + $0x278] sm:$0xff] }
 0xb0b   : > { %4869 = vmatprep.subr.bf16.mxu0 %v10146_v49  ;;  %4910 = vmatprep.subr.bf16.mxu1 %v10148_v52  ;;  %12371 = vst [vmem:[#allocation122_spill] sm:$0xff] %v10166_v50  ;;  %v10168_v49 = vld [vmem:[#allocation3 + $0x230] sm:$0xff]  ;;  %v10170_v52 = vld [vmem:[#allocation3 + $0x268] sm:$0xff]  ;;  %12374 = vst [vmem:[#allocation125_spill] sm:$0xff] %v10172_v51 }
 0xb0c   : > { %12372 = vst [vmem:[#allocation123_spill] sm:$0xff] %v10168_v49  ;;  %12373 = vst [vmem:[#allocation124_spill] sm:$0xff] %v10170_v52 }
 0xb0e   : > { %4870 = vmatpush1.bf16.msra.mxu0 %v10154_v53  ;;  %4911 = vmatpush1.bf16.msra.mxu1 %v10156_v47  ;;  %v10178_v47 = vld [vmem:[#allocation3 + $0x260] sm:$0xff]  ;;  %v10184_v53 = vld [vmem:[#allocation3 + $0x2b8] sm:$0xff] }
 0xb0f   : > { %4871 = vmatprep.subr.bf16.mxu0 %v10158_v48  ;;  %4912 = vmatprep.subr.bf16.mxu1 %v10160_v34  ;;  %12375 = vst [vmem:[#allocation126_spill] sm:$0xff] %v10178_v47  ;;  %v10180_v48 = vld [vmem:[#allocation3 + $0x270] sm:$0xff]  ;;  %v10182_v34 = vld [vmem:[#allocation3 + $0x2a8] sm:$0xff]  ;;  %12378 = vst [vmem:[#allocation129_spill] sm:$0xff] %v10184_v53 }
 0xb10   : > { %12376 = vst [vmem:[#allocation127_spill] sm:$0xff] %v10180_v48  ;;  %12377 = vst [vmem:[#allocation128_spill] sm:$0xff] %v10182_v34 }
 0xb12   : > { %4872 = vmatpush1.bf16.msra.mxu0 %v10166_v50  ;;  %4913 = vmatpush1.bf16.msra.mxu1 %v10168_v49  ;;  %v10190_v49 = vld [vmem:[#allocation3 + $0x2a0] sm:$0xff]  ;;  %v10196_v50 = vld [vmem:[#allocation3 + $0x2f8] sm:$0xff] }
 0xb13   : > { %4873 = vmatprep.subr.bf16.mxu0 %v10170_v52  ;;  %4914 = vmatprep.subr.bf16.mxu1 %v10172_v51  ;;  %12379 = vst [vmem:[#allocation130_spill] sm:$0xff] %v10190_v49  ;;  %v10192_v52 = vld [vmem:[#allocation3 + $0x2b0] sm:$0xff]  ;;  %v10194_v51 = vld [vmem:[#allocation3 + $0x2e8] sm:$0xff]  ;;  %12382 = vst [vmem:[#allocation133_spill] sm:$0xff] %v10196_v50 }
 0xb14   : > { %12380 = vst [vmem:[#allocation131_spill] sm:$0xff] %v10192_v52  ;;  %12381 = vst [vmem:[#allocation132_spill] sm:$0xff] %v10194_v51 }
 0xb16   : > { %4874 = vmatpush1.bf16.msra.mxu0 %v10178_v47  ;;  %4915 = vmatpush1.bf16.msra.mxu1 %v10180_v48  ;;  %v10202_v48 = vld [vmem:[#allocation3 + $0x2e0] sm:$0xff]  ;;  %v10208_v47 = vld [vmem:[#allocation3 + $0x338] sm:$0xff] }
 0xb17   : > { %4875 = vmatprep.subr.bf16.mxu0 %v10182_v34  ;;  %4916 = vmatprep.subr.bf16.mxu1 %v10184_v53  ;;  %12383 = vst [vmem:[#allocation134_spill] sm:$0xff] %v10202_v48  ;;  %v10204_v34 = vld [vmem:[#allocation3 + $0x2f0] sm:$0xff]  ;;  %v10206_v53 = vld [vmem:[#allocation3 + $0x328] sm:$0xff]  ;;  %12386 = vst [vmem:[#allocation137_spill] sm:$0xff] %v10208_v47 }
 0xb18   : > { %12384 = vst [vmem:[#allocation135_spill] sm:$0xff] %v10204_v34  ;;  %12385 = vst [vmem:[#allocation136_spill] sm:$0xff] %v10206_v53 }
 0xb1a   : > { %4876 = vmatpush1.bf16.msra.mxu0 %v10190_v49  ;;  %4917 = vmatpush1.bf16.msra.mxu1 %v10192_v52  ;;  %v10214_v52 = vld [vmem:[#allocation3 + $0x320] sm:$0xff]  ;;  %v10220_v49 = vld [vmem:[#allocation3 + $0x378] sm:$0xff] }
 0xb1b   : > { %4877 = vmatprep.subr.bf16.mxu0 %v10194_v51  ;;  %4918 = vmatprep.subr.bf16.mxu1 %v10196_v50  ;;  %12387 = vst [vmem:[#allocation138_spill] sm:$0xff] %v10214_v52  ;;  %v10216_v51 = vld [vmem:[#allocation3 + $0x330] sm:$0xff]  ;;  %v10218_v50 = vld [vmem:[#allocation3 + $0x368] sm:$0xff]  ;;  %12390 = vst [vmem:[#allocation141_spill] sm:$0xff] %v10220_v49 }
 0xb1c   : > { %12388 = vst [vmem:[#allocation139_spill] sm:$0xff] %v10216_v51  ;;  %12389 = vst [vmem:[#allocation140_spill] sm:$0xff] %v10218_v50 }
 0xb1e   : > { %4878 = vmatpush1.bf16.msra.mxu0 %v10202_v48  ;;  %4919 = vmatpush1.bf16.msra.mxu1 %v10204_v34  ;;  %v10226_v34 = vld [vmem:[#allocation3 + $0x360] sm:$0xff]  ;;  %v10232_v48 = vld [vmem:[#allocation3 + $0x3b8] sm:$0xff] }
 0xb1f   : > { %4879 = vmatprep.subr.bf16.mxu0 %v10206_v53  ;;  %4920 = vmatprep.subr.bf16.mxu1 %v10208_v47  ;;  %v10228_v53 = vld [vmem:[#allocation3 + $0x370] sm:$0xff]  ;;  %v10230_v47 = vld [vmem:[#allocation3 + $0x3a8] sm:$0xff] }
 0xb20   : > { %12391 = vst [vmem:[#allocation142_spill] sm:$0xff] %v10228_v53  ;;  %12392 = vst [vmem:[#allocation143_spill] sm:$0xff] %v10230_v47 }
 0xb22   : > { %4880 = vmatpush1.bf16.msra.mxu0 %v10214_v52  ;;  %4921 = vmatpush1.bf16.msra.mxu1 %v10216_v51  ;;  %v10238_v51 = vld [vmem:[#allocation3 + $0x3a0] sm:$0xff]  ;;  %v10244_v52 = vld [vmem:[#allocation3 + $0x3f8] sm:$0xff] }
 0xb23   : > { %4881 = vmatprep.subr.bf16.mxu0 %v10218_v50  ;;  %4922 = vmatprep.subr.bf16.mxu1 %v10220_v49  ;;  %v10240_v50 = vld [vmem:[#allocation3 + $0x3b0] sm:$0xff]  ;;  %v10242_v49 = vld [vmem:[#allocation3 + $0x3e8] sm:$0xff] }
 0xb26   : > { %4882 = vmatpush1.bf16.msra.mxu0 %v10226_v34  ;;  %4923 = vmatpush1.bf16.msra.mxu1 %v10228_v53  ;;  %v10250_v53 = vld [vmem:[#allocation3 + $0x3e0] sm:$0xff] }
 0xb27   : > { %4883 = vmatprep.subr.bf16.mxu0 %v10230_v47  ;;  %4924 = vmatprep.subr.bf16.mxu1 %v10232_v48  ;;  %v10252_v47 = vld [vmem:[#allocation3 + $0x3f0] sm:$0xff] }
 0xb2a   : > { %4884 = vmatpush1.bf16.msra.mxu0 %v10238_v51  ;;  %4925 = vmatpush1.bf16.msra.mxu1 %v10240_v50 }
 0xb2b   : > { %4885 = vmatprep.subr.bf16.mxu0 %v10242_v49  ;;  %4926 = vmatprep.subr.bf16.mxu1 %v10244_v52 }
 0xb2e   : > { %4886 = vmatpush1.bf16.msra.mxu0 %v10250_v53  ;;  %4927 = vmatpush1.bf16.msra.mxu1 %v10252_v47 }
 0xb2f   : > { %5164 = vmatprep.subr.bf16.mxu0 %v9866_v21  ;;  %5205 = vmatprep.subr.bf16.mxu1 %v9868_v54  ;;  %v12393_v21 = vld [vmem:[#allocation79_spill] sm:$0xff]  ;;  %v12394_v54 = vld [vmem:[#allocation80_spill] sm:$0xff] }
 0xb31   : > { %4888 = vmatmul.mubr.bf16.vlgmr.msra.gmra.mrb[4].mxu0 %v12342_v46  ;;  %4929 = vmatmul.mubr.bf16.vlgmr.msra.gmra.mrb[4].mxu1 %v12342_v46 }
 0xb32   : > { %5165 = vmatpush1.bf16.msra.mxu0 %v9870_v55  ;;  %5206 = vmatpush1.bf16.msra.mxu1 %v9874_v22  ;;  %v12395_v55 = vld [vmem:[#allocation81_spill] sm:$0xff]  ;;  %v12396_v22 = vld [vmem:[#allocation82_spill] sm:$0xff] }
 0xb33   : > { %5166 = vmatprep.subr.bf16.mxu0 %v9876_v35  ;;  %5207 = vmatprep.subr.bf16.mxu1 %v9878_v13  ;;  %v12397_v35 = vld [vmem:[#allocation83_spill] sm:$0xff]  ;;  %v12398_v13 = vld [vmem:[#allocation84_spill] sm:$0xff] }
 0xb36   : > { %5167 = vmatpush1.bf16.msra.mxu0 %v9884_v5  ;;  %5208 = vmatpush1.bf16.msra.mxu1 %v9886_v17  ;;  %v12399_v5 = vld [vmem:[#allocation85_spill] sm:$0xff]  ;;  %v12400_v17 = vld [vmem:[#allocation86_spill] sm:$0xff] }
 0xb37   : > { %5168 = vmatprep.subr.bf16.mxu0 %v9888_v19  ;;  %5209 = vmatprep.subr.bf16.mxu1 %v9890_v0  ;;  %v12401_v19 = vld [vmem:[#allocation87_spill] sm:$0xff]  ;;  %v12402_v0 = vld [vmem:[#allocation88_spill] sm:$0xff] }
 0xb3a   : > { %5169 = vmatpush1.bf16.msra.mxu0 %v9898_v2  ;;  %5210 = vmatpush1.bf16.msra.mxu1 %v9900_v3  ;;  %v12403_v2 = vld [vmem:[#allocation89_spill] sm:$0xff] }
 0xb3b   : > { %5170 = vmatprep.subr.bf16.mxu0 %v9902_v31  ;;  %5211 = vmatprep.subr.bf16.mxu1 %v9904_v56 }
 0xb3e   : > { %5171 = vmatpush1.bf16.msra.mxu0 %v9910_v29  ;;  %5212 = vmatpush1.bf16.msra.mxu1 %v9912_v20 }
 0xb3f   : > { %5172 = vmatprep.subr.bf16.mxu0 %v9914_v27  ;;  %5213 = vmatprep.subr.bf16.mxu1 %v9916_v59 }
 0xb42   : > { %5173 = vmatpush1.bf16.msra.mxu0 %v9922_v12  ;;  %5214 = vmatpush1.bf16.msra.mxu1 %v9924_v23 }
 0xb43   : > { %5174 = vmatprep.subr.bf16.mxu0 %v9926_v43  ;;  %5215 = vmatprep.subr.bf16.mxu1 %v9928_v18  ;;  %v12404_v18 = vld [vmem:[#allocation11_spill] sm:$0xff] }
 0xb46   : > { %5175 = vmatpush1.bf16.msra.mxu0 %v9934_v33  ;;  %5216 = vmatpush1.bf16.msra.mxu1 %v9936_v58 }
 0xb47   : > { %5176 = vmatprep.subr.bf16.mxu0 %v9938_v62  ;;  %5217 = vmatprep.subr.bf16.mxu1 %v9940_v63  ;;  %v4643_v63 = vld [vmem:[#allocation2 + $0x50] sm:$0xff] }
 0xb4a   : > { %5177 = vmatpush1.bf16.msra.mxu0 %v9946_v57  ;;  %5218 = vmatpush1.bf16.msra.mxu1 %v9948_v15 }
 0xb4b   : > { %5178 = vmatprep.subr.bf16.mxu0 %v9950_v26  ;;  %5219 = vmatprep.subr.bf16.mxu1 %v9952_v42 }
 0xb4e   : > { %5179 = vmatpush1.bf16.msra.mxu0 %v9958_v45  ;;  %5220 = vmatpush1.bf16.msra.mxu1 %v9960_v24 }
 0xb4f   : > { %5180 = vmatprep.subr.bf16.mxu0 %v9962_v36  ;;  %5221 = vmatprep.subr.bf16.mxu1 %v9964_v38 }
 0xb52   : > { %5181 = vmatpush1.bf16.msra.mxu0 %v9970_v39  ;;  %5222 = vmatpush1.bf16.msra.mxu1 %v9972_v9 }
 0xb53   : > { %5182 = vmatprep.subr.bf16.mxu0 %v9974_v61  ;;  %5223 = vmatprep.subr.bf16.mxu1 %v9976_v41 }
 0xb56   : > { %5183 = vmatpush1.bf16.msra.mxu0 %v9982_v32  ;;  %5224 = vmatpush1.bf16.msra.mxu1 %v9984_v40 }
 0xb57   : > { %5184 = vmatprep.subr.bf16.mxu0 %v9986_v30  ;;  %5225 = vmatprep.subr.bf16.mxu1 %v9988_v37 }
 0xb5a   : > { %5185 = vmatpush1.bf16.msra.mxu0 %v9994_v10  ;;  %5226 = vmatpush1.bf16.msra.mxu1 %v9996_v11 }
 0xb5b   : > { %5186 = vmatprep.subr.bf16.mxu0 %v9998_v60  ;;  %5227 = vmatprep.subr.bf16.mxu1 %v10000_v28 }
 0xb5e   : > { %5187 = vmatpush1.bf16.msra.mxu0 %v10006_v16  ;;  %5228 = vmatpush1.bf16.msra.mxu1 %v10008_v44  ;;  %v4644_v16 = vld [vmem:[#allocation2 + $0x58] sm:$0xff] }
 0xb5f   : > { %5188 = vmatprep.subr.bf16.mxu0 %v10010_v8  ;;  %5229 = vmatprep.subr.bf16.mxu1 %v10012_v7 }
 0xb62   : > { %5189 = vmatpush1.bf16.msra.mxu0 %v10018_v1  ;;  %5230 = vmatpush1.bf16.msra.mxu1 %v10020_v25 }
 0xb63   : > { %5190 = vmatprep.subr.bf16.mxu0 %v10022_v14  ;;  %5231 = vmatprep.subr.bf16.mxu1 %v10024_v6 }
 0xb66   : > { %5191 = vmatpush1.bf16.msra.mxu0 %v10030_v4  ;;  %5232 = vmatpush1.bf16.msra.mxu1 %v12393_v21 }
 0xb67   : > { %5192 = vmatprep.subr.bf16.mxu0 %v12394_v54  ;;  %5233 = vmatprep.subr.bf16.mxu1 %v12395_v55 }
 0xb6a   : > { %5193 = vmatpush1.bf16.msra.mxu0 %v12396_v22  ;;  %5234 = vmatpush1.bf16.msra.mxu1 %v12397_v35 }
 0xb6b   : > { %5194 = vmatprep.subr.bf16.mxu0 %v12398_v13  ;;  %5235 = vmatprep.subr.bf16.mxu1 %v12399_v5 }
 0xb6e   : > { %5195 = vmatpush1.bf16.msra.mxu0 %v12400_v17  ;;  %5236 = vmatpush1.bf16.msra.mxu1 %v12401_v19 }
 0xb6f   : > { %5246 = vmatprep.subr.bf16.mxu0 %v12402_v0  ;;  %5287 = vmatprep.subr.bf16.mxu1 %v12403_v2 }
 0xbc4   : > { %v4807_v3 = vpop.f32.mrb[0].mxu0  ;;  %v4848_v31 = vpop.f32.mrb[0].mxu1 }
 0xbc5   : > { %v4809_v56 = vpop.f32.mrb[1].mxu0  ;;  %v4850_v29 = vpop.f32.mrb[1].mxu1 }
 0xbc6   : > { %v4945_v20 = vcombine.low %v4807_v3, %v4809_v56  ;;  %v4946_v27 = vcombine.low %v4848_v31, %v4850_v29  ;;  %v4811_v59 = vpop.f32.mrb[2].mxu0  ;;  %v4852_v12 = vpop.f32.mrb[2].mxu1  ;;  %v12405_v31 = vld [vmem:[#allocation90_spill] sm:$0xff]  ;;  %v12406_v56 = vld [vmem:[#allocation91_spill] sm:$0xff]  ;;  %v12407_v29 = vld [vmem:[#allocation92_spill] sm:$0xff] }
 0xbc7   : > { %v4812_v23 = vpop.f32.mrb[3].mxu0  ;;  %v4853_v43 = vpop.f32.mrb[3].mxu1  ;;  %v12410_v59 = vld [vmem:[#allocation95_spill] sm:$0xff]  ;;  %v12411_v12 = vld [vmem:[#allocation96_spill] sm:$0xff] }
 0xbc8   : > { %v4953_v33 = vrot.slane %v4945_v20, %v12404_v18  ;;  %v4960_v58 = vrot.slane %v4946_v27, %v12404_v18  ;;  %v12408_v20 = vld [vmem:[#allocation93_spill] sm:$0xff]  ;;  %v12409_v27 = vld [vmem:[#allocation94_spill] sm:$0xff] }
 0xbc9   : > { %v12412_v23 = vld [vmem:[#allocation97_spill] sm:$0xff]  ;;  %v12413_v43 = vld [vmem:[#allocation98_spill] sm:$0xff] }
 0xbca   : > { %v4961_v62 = vcombine.low %v4953_v33, %v4960_v58  ;;  %v12414_v33 = vld [vmem:[#allocation99_spill] sm:$0xff]  ;;  %v12415_v58 = vld [vmem:[#allocation100_spill] sm:$0xff] }
 0xbcc   : > { %v4981_v57 = vadd.f32 %v4961_v62, %v4643_v63  ;;  %v12416_v62 = vld [vmem:[#allocation101_spill] sm:$0xff]  ;;  %v12417_v63 = vld [vmem:[#allocation102_spill] sm:$0xff] }
 0xbce   : > { %v4990_v15 = vrot.slane %v4981_v57, 4  ;;  %v7336_v42 = vmul.f32 -1.442695, %v4981_v57  ;;  %v12418_v57 = vld [vmem:[#allocation103_spill] sm:$0xff] }
 0xbd0   : > { %v7337_v26 = vmul.f32 -1.442695, %v4990_v15  ;;  %v12419_v15 = vld [vmem:[#allocation104_spill] sm:$0xff] }
 0xbd2   : > { %7597 = vpow2.f32 %v7337_v26  ;;  %v12420_v26 = vld [vmem:[#allocation105_spill] sm:$0xff] }
 0xbd3   : > { %7599 = vpow2.f32 %v7336_v42  ;;  %v12421_v42 = vld [vmem:[#allocation106_spill] sm:$0xff] }
 0xbdc   : > { %v7598_v36 = vpop.eup %7597 }
 0xbdd   : > { %v7600_v9 = vpop.eup %7599  ;;  %v4995_v10 = vadd.f32 1.0, %v7598_v36  ;;  %v12424_v36 = vld [vmem:[#allocation109_spill] sm:$0xff] }
 0xbde   : > { %v4986_v28 = vadd.f32 1.0, %v7600_v9  ;;  %v12427_v9 = vld [vmem:[#allocation112_spill] sm:$0xff] }
 0xbdf   : > { %7601 = vrcp.f32 %v4995_v10  ;;  %v12434_v10 = vld [vmem:[#allocation119_spill] sm:$0xff] }
 0xbe0   : > { %7603 = vrcp.f32 %v4986_v28  ;;  %v12437_v28 = vld [vmem:[#allocation122_spill] sm:$0xff] }
 0xbe9   : > { %v7602_v25 = vpop.eup %7601 }
 0xbea   : > { %v7604_v14 = vpop.eup %7603  ;;  %v5008_v4 = vmul.f32 0.0, %v7602_v25  ;;  %v12443_v25 = vld [vmem:[#allocation128_spill] sm:$0xff] }
 0xc04   : > { %v4889_v45 = vpop.f32.mrb[4].mxu0  ;;  %v4930_v24 = vpop.f32.mrb[4].mxu1 }
 0xc05   : > { %v4891_v38 = vpop.f32.mrb[5].mxu0  ;;  %v4932_v39 = vpop.f32.mrb[5].mxu1 }
 0xc06   : > { %v4962_v61 = vcombine.low %v4889_v45, %v4891_v38  ;;  %v4963_v41 = vcombine.low %v4930_v24, %v4932_v39  ;;  %v4893_v32 = vpop.f32.mrb[6].mxu0  ;;  %v4934_v40 = vpop.f32.mrb[6].mxu1  ;;  %v12422_v45 = vld [vmem:[#allocation107_spill] sm:$0xff]  ;;  %v12423_v24 = vld [vmem:[#allocation108_spill] sm:$0xff]  ;;  %v12425_v38 = vld [vmem:[#allocation110_spill] sm:$0xff] }
 0xc07   : > { %v4894_v30 = vpop.f32.mrb[7].mxu0  ;;  %v4935_v37 = vpop.f32.mrb[7].mxu1  ;;  %v12426_v39 = vld [vmem:[#allocation111_spill] sm:$0xff]  ;;  %v12431_v40 = vld [vmem:[#allocation116_spill] sm:$0xff] }
 0xc08   : > { %v4970_v11 = vrot.slane %v4962_v61, %v12404_v18  ;;  %v4977_v60 = vrot.slane %v4963_v41, %v12404_v18  ;;  %v12428_v61 = vld [vmem:[#allocation113_spill] sm:$0xff]  ;;  %v12429_v41 = vld [vmem:[#allocation114_spill] sm:$0xff]  ;;  %v12430_v32 = vld [vmem:[#allocation115_spill] sm:$0xff] }
 0xc09   : > { %v12432_v30 = vld [vmem:[#allocation117_spill] sm:$0xff]  ;;  %v12433_v37 = vld [vmem:[#allocation118_spill] sm:$0xff] }
 0xc0a   : > { %v4978_v44 = vcombine.low %v4970_v11, %v4977_v60  ;;  %v12435_v11 = vld [vmem:[#allocation120_spill] sm:$0xff]  ;;  %v12436_v60 = vld [vmem:[#allocation121_spill] sm:$0xff] }
 0xc0c   : > { %v4982_v8 = vadd.f32 %v4978_v44, %v4644_v16  ;;  %v12438_v16 = vld [vmem:[#allocation123_spill] sm:$0xff]  ;;  %v12439_v44 = vld [vmem:[#allocation124_spill] sm:$0xff] }
 0xc0e   : > { %7605 = vtanh.f32 %v4982_v8  ;;  %v5000_v7 = vrot.slane %v4982_v8, 4  ;;  %v12440_v8 = vld [vmem:[#allocation125_spill] sm:$0xff] }
 0xc10   : > { %v7338_v1 = vmul.f32 -1.442695, %v5000_v7  ;;  %v12441_v7 = vld [vmem:[#allocation126_spill] sm:$0xff] }
 0xc12   : > { %7607 = vpow2.f32 %v7338_v1  ;;  %v12442_v1 = vld [vmem:[#allocation127_spill] sm:$0xff] }
 0xc18   : > { %v7606_v6 = vpop.eup %7605 }
 0xc19   : > { %v5009_v46 = vmul.f32 %v7606_v6, %v7604_v14  ;;  %v12444_v14 = vld [vmem:[#allocation129_spill] sm:$0xff]  ;;  %v12445_v6 = vld [vmem:[#allocation130_spill] sm:$0xff] }
 0xc1b   : > { %v10328_v21 = vadd.f32 %v5009_v46, %v5008_v4  ;;  %v12446_v4 = vld [vmem:[#allocation131_spill] sm:$0xff]  ;;  %v12447_v46 = vld [vmem:[#allocation132_spill] sm:$0xff] }
 0xc1c   : > { %v7608_v54 = vpop.eup %7607 }
 0xc1d   : > { %v5005_v55 = vadd.f32 1.0, %v7608_v54  ;;  %7609 = vtanh.f32 %v10328_v21  ;;  %v12448_v54 = vld [vmem:[#allocation133_spill] sm:$0xff] }
 0xc1f   : > { %7611 = vrcp.f32 %v5005_v55  ;;  %v12449_v55 = vld [vmem:[#allocation134_spill] sm:$0xff] }
 0xc27   : > { %v7610_v22 = vpop.eup %7609 }
 0xc29   : > { %v7612_v35 = vpop.eup %7611 }
 0xc2a   : > { %v5012_v13 = vmul.f32 %v7612_v35, %v7610_v22  ;;  %v12450_v22 = vld [vmem:[#allocation135_spill] sm:$0xff]  ;;  %v12451_v35 = vld [vmem:[#allocation136_spill] sm:$0xff] }
 0xc2c   : > { %v5020_v5 = vrot.slane %v5012_v13, %v12404_v18  ;;  %v12452_v13 = vld [vmem:[#allocation137_spill] sm:$0xff] }
 0xc2e   : > { %v5021_v17 = vcombine.high %v5020_v5, %v5020_v5  ;;  %v10332_v2 = vpack.c.bf16 %v5020_v5, %v5020_v5 }
 0xc30   : > { %v5025_v19 = vpack.c.bf16 %v5021_v17, %v5021_v17  ;;  %v7373_v0 = vpack.c.bf16 %v5021_v17, %v5020_v5  ;;  %v12453_v5 = vld [vmem:[#allocation138_spill] sm:$0xff]  ;;  %v12454_v17 = vld [vmem:[#allocation139_spill] sm:$0xff] }
 0xc32   : > { %v5031_v3 = vrot.slane %v7373_v0, 7  ;;  %5196 = vmatprep.mubr.bf16.mxu0 %v5025_v19  ;;  %5237 = vmatprep.mubr.bf16.mxu1 %v5025_v19  ;;  %v12456_v0 = vld [vmem:[#allocation141_spill] sm:$0xff] }
 0xc33   : > { %5197 = vmatmul.mubr.bf16.vlgmr.msra.gmra.mrb[8].mxu0 %v10332_v2  ;;  %5238 = vmatmul.mubr.bf16.vlgmr.msra.gmra.mrb[8].mxu1 %v10332_v2 }
 0xc34   : > { %5033 = vst [vmem:[%s8005_s27 + $0x8] sm:$0x22] %v5031_v3  ;;  %5247 = vmatpush1.bf16.msra.mxu0 %v12405_v31  ;;  %5288 = vmatpush1.bf16.msra.mxu1 %v12406_v56  ;;  %v12457_v3 = vld [vmem:[#allocation142_spill] sm:$0xff]  ;;  %v12458_v31 = vld [vmem:[#allocation143_spill] sm:$0xff]  ;;  %v10403_v56 = vld [vmem:[#allocation3 + $0x18] sm:$0xff] }
 0xc35   : > { %5278 = vmatprep.mubr.bf16.mxu0 %v5025_v19  ;;  %5319 = vmatprep.mubr.bf16.mxu1 %v5025_v19  ;;  %v12455_v19 = vld [vmem:[#allocation140_spill] sm:$0xff] }
 0xc36   : > { %5248 = vmatprep.subr.bf16.mxu0 %v12407_v29  ;;  %5289 = vmatprep.subr.bf16.mxu1 %v12408_v20  ;;  %v10431_v29 = vld [vmem:[#allocation3 + $0x80] sm:$0xff]  ;;  %v10433_v20 = vld [vmem:[#allocation3 + $0x90] sm:$0xff] }
 0xc38   : > { %5249 = vmatpush1.bf16.msra.mxu0 %v12409_v27  ;;  %5290 = vmatpush1.bf16.msra.mxu1 %v12410_v59  ;;  %v10435_v27 = vld [vmem:[#allocation3 + $0xc8] sm:$0xff]  ;;  %v10437_v59 = vld [vmem:[#allocation3 + $0xd8] sm:$0xff] }
 0xc39   : > { %5250 = vmatprep.subr.bf16.mxu0 %v12411_v12  ;;  %5291 = vmatprep.subr.bf16.mxu1 %v12412_v23  ;;  %v10443_v12 = vld [vmem:[#allocation3 + $0xc0] sm:$0xff]  ;;  %v10445_v23 = vld [vmem:[#allocation3 + $0xd0] sm:$0xff] }
 0xc3c   : > { %5251 = vmatpush1.bf16.msra.mxu0 %v12413_v43  ;;  %5292 = vmatpush1.bf16.msra.mxu1 %v12414_v33  ;;  %v10447_v43 = vld [vmem:[#allocation3 + $0x108] sm:$0xff]  ;;  %v10449_v33 = vld [vmem:[#allocation3 + $0x118] sm:$0xff] }
 0xc3d   : > { %5252 = vmatprep.subr.bf16.mxu0 %v12415_v58  ;;  %5293 = vmatprep.subr.bf16.mxu1 %v12416_v62  ;;  %v10455_v58 = vld [vmem:[#allocation3 + $0x100] sm:$0xff]  ;;  %v10457_v62 = vld [vmem:[#allocation3 + $0x110] sm:$0xff] }
 0xc40   : > { %5253 = vmatpush1.bf16.msra.mxu0 %v12417_v63  ;;  %5294 = vmatpush1.bf16.msra.mxu1 %v12418_v57  ;;  %v10461_v63 = vld [vmem:[#allocation3 + $0x148] sm:$0xff]  ;;  %v10463_v57 = vld [vmem:[#allocation3 + $0x158] sm:$0xff] }
 0xc41   : > { %5254 = vmatprep.subr.bf16.mxu0 %v12419_v15  ;;  %5295 = vmatprep.subr.bf16.mxu1 %v12420_v26  ;;  %v10467_v15 = vld [vmem:[#allocation3 + $0x140] sm:$0xff]  ;;  %v10469_v26 = vld [vmem:[#allocation3 + $0x150] sm:$0xff] }
 0xc44   : > { %5255 = vmatpush1.bf16.msra.mxu0 %v12421_v42  ;;  %5296 = vmatpush1.bf16.msra.mxu1 %v12422_v45  ;;  %v10473_v42 = vld [vmem:[#allocation3 + $0x188] sm:$0xff]  ;;  %v10475_v45 = vld [vmem:[#allocation3 + $0x198] sm:$0xff] }
 0xc45   : > { %5256 = vmatprep.subr.bf16.mxu0 %v12423_v24  ;;  %5297 = vmatprep.subr.bf16.mxu1 %v12424_v36  ;;  %v10479_v24 = vld [vmem:[#allocation3 + $0x180] sm:$0xff]  ;;  %v10481_v36 = vld [vmem:[#allocation3 + $0x190] sm:$0xff] }
 0xc48   : > { %5257 = vmatpush1.bf16.msra.mxu0 %v12425_v38  ;;  %5298 = vmatpush1.bf16.msra.mxu1 %v12426_v39  ;;  %v10485_v38 = vld [vmem:[#allocation3 + $0x1c8] sm:$0xff]  ;;  %v10487_v39 = vld [vmem:[#allocation3 + $0x1d8] sm:$0xff] }
 0xc49   : > { %5258 = vmatprep.subr.bf16.mxu0 %v12427_v9  ;;  %5299 = vmatprep.subr.bf16.mxu1 %v12428_v61  ;;  %v10491_v9 = vld [vmem:[#allocation3 + $0x1c0] sm:$0xff]  ;;  %v10493_v61 = vld [vmem:[#allocation3 + $0x1d0] sm:$0xff] }
 0xc4c   : > { %5259 = vmatpush1.bf16.msra.mxu0 %v12429_v41  ;;  %5300 = vmatpush1.bf16.msra.mxu1 %v12430_v32  ;;  %v10497_v41 = vld [vmem:[#allocation3 + $0x208] sm:$0xff]  ;;  %v10499_v32 = vld [vmem:[#allocation3 + $0x218] sm:$0xff] }
 0xc4d   : > { %5260 = vmatprep.subr.bf16.mxu0 %v12431_v40  ;;  %5301 = vmatprep.subr.bf16.mxu1 %v12432_v30  ;;  %v10503_v40 = vld [vmem:[#allocation3 + $0x200] sm:$0xff]  ;;  %v10505_v30 = vld [vmem:[#allocation3 + $0x210] sm:$0xff] }
 0xc50   : > { %5261 = vmatpush1.bf16.msra.mxu0 %v12433_v37  ;;  %5302 = vmatpush1.bf16.msra.mxu1 %v12434_v10  ;;  %v10509_v37 = vld [vmem:[#allocation3 + $0x248] sm:$0xff]  ;;  %v10511_v10 = vld [vmem:[#allocation3 + $0x258] sm:$0xff] }
 0xc51   : > { %5262 = vmatprep.subr.bf16.mxu0 %v12435_v11  ;;  %5303 = vmatprep.subr.bf16.mxu1 %v12436_v60  ;;  %v10515_v11 = vld [vmem:[#allocation3 + $0x240] sm:$0xff]  ;;  %v10517_v60 = vld [vmem:[#allocation3 + $0x250] sm:$0xff] }
 0xc54   : > { %5263 = vmatpush1.bf16.msra.mxu0 %v12437_v28  ;;  %5304 = vmatpush1.bf16.msra.mxu1 %v12438_v16  ;;  %v10521_v28 = vld [vmem:[#allocation3 + $0x288] sm:$0xff]  ;;  %v10523_v16 = vld [vmem:[#allocation3 + $0x298] sm:$0xff] }
 0xc55   : > { %5264 = vmatprep.subr.bf16.mxu0 %v12439_v44  ;;  %5305 = vmatprep.subr.bf16.mxu1 %v12440_v8  ;;  %12459 = vst [vmem:[#allocation79_spill] sm:$0xff] %v10523_v16  ;;  %v10527_v44 = vld [vmem:[#allocation3 + $0x280] sm:$0xff]  ;;  %v10529_v8 = vld [vmem:[#allocation3 + $0x290] sm:$0xff] }
 0xc56   : > { %12460 = vst [vmem:[#allocation80_spill] sm:$0xff] %v10527_v44  ;;  %12461 = vst [vmem:[#allocation81_spill] sm:$0xff] %v10529_v8 }
 0xc58   : > { %5265 = vmatpush1.bf16.msra.mxu0 %v12441_v7  ;;  %5306 = vmatpush1.bf16.msra.mxu1 %v12442_v1  ;;  %v10533_v7 = vld [vmem:[#allocation3 + $0x2c8] sm:$0xff]  ;;  %v10535_v1 = vld [vmem:[#allocation3 + $0x2d8] sm:$0xff] }
 0xc59   : > { %5266 = vmatprep.subr.bf16.mxu0 %v12443_v25  ;;  %5307 = vmatprep.subr.bf16.mxu1 %v12444_v14  ;;  %12462 = vst [vmem:[#allocation82_spill] sm:$0xff] %v10533_v7  ;;  %12463 = vst [vmem:[#allocation83_spill] sm:$0xff] %v10535_v1  ;;  %v10539_v25 = vld [vmem:[#allocation3 + $0x2c0] sm:$0xff]  ;;  %v10541_v14 = vld [vmem:[#allocation3 + $0x2d0] sm:$0xff] }
 0xc5a   : > { %12464 = vst [vmem:[#allocation84_spill] sm:$0xff] %v10539_v25  ;;  %12465 = vst [vmem:[#allocation85_spill] sm:$0xff] %v10541_v14 }
 0xc5c   : > { %5267 = vmatpush1.bf16.msra.mxu0 %v12445_v6  ;;  %5308 = vmatpush1.bf16.msra.mxu1 %v12446_v4  ;;  %v10545_v6 = vld [vmem:[#allocation3 + $0x308] sm:$0xff]  ;;  %v10547_v4 = vld [vmem:[#allocation3 + $0x318] sm:$0xff] }
 0xc5d   : > { %5268 = vmatprep.subr.bf16.mxu0 %v12447_v46  ;;  %5309 = vmatprep.subr.bf16.mxu1 %v12448_v54  ;;  %12466 = vst [vmem:[#allocation86_spill] sm:$0xff] %v10545_v6  ;;  %12467 = vst [vmem:[#allocation87_spill] sm:$0xff] %v10547_v4  ;;  %v10551_v46 = vld [vmem:[#allocation3 + $0x300] sm:$0xff]  ;;  %v10553_v54 = vld [vmem:[#allocation3 + $0x310] sm:$0xff] }
 0xc5e   : > { %12468 = vst [vmem:[#allocation88_spill] sm:$0xff] %v10551_v46  ;;  %12469 = vst [vmem:[#allocation89_spill] sm:$0xff] %v10553_v54 }
 0xc60   : > { %5269 = vmatpush1.bf16.msra.mxu0 %v12449_v55  ;;  %5310 = vmatpush1.bf16.msra.mxu1 %v12450_v22  ;;  %v10555_v55 = vld [vmem:[#allocation3 + $0x348] sm:$0xff]  ;;  %v10557_v22 = vld [vmem:[#allocation3 + $0x358] sm:$0xff] }
 0xc61   : > { %5270 = vmatprep.subr.bf16.mxu0 %v12451_v35  ;;  %5311 = vmatprep.subr.bf16.mxu1 %v12452_v13  ;;  %12470 = vst [vmem:[#allocation90_spill] sm:$0xff] %v10555_v55  ;;  %12471 = vst [vmem:[#allocation91_spill] sm:$0xff] %v10557_v22  ;;  %v10563_v35 = vld [vmem:[#allocation3 + $0x340] sm:$0xff]  ;;  %v10565_v13 = vld [vmem:[#allocation3 + $0x350] sm:$0xff] }
 0xc62   : > { %12472 = vst [vmem:[#allocation92_spill] sm:$0xff] %v10563_v35  ;;  %12473 = vst [vmem:[#allocation93_spill] sm:$0xff] %v10565_v13 }
 0xc64   : > { %5271 = vmatpush1.bf16.msra.mxu0 %v12453_v5  ;;  %5312 = vmatpush1.bf16.msra.mxu1 %v12454_v17  ;;  %v10567_v5 = vld [vmem:[#allocation3 + $0x388] sm:$0xff]  ;;  %v10569_v17 = vld [vmem:[#allocation3 + $0x398] sm:$0xff] }
 0xc65   : > { %5272 = vmatprep.subr.bf16.mxu0 %v12455_v19  ;;  %5313 = vmatprep.subr.bf16.mxu1 %v12456_v0  ;;  %12474 = vst [vmem:[#allocation94_spill] sm:$0xff] %v10567_v5  ;;  %12475 = vst [vmem:[#allocation95_spill] sm:$0xff] %v10569_v17  ;;  %v10575_v19 = vld [vmem:[#allocation3 + $0x380] sm:$0xff]  ;;  %v10577_v0 = vld [vmem:[#allocation3 + $0x390] sm:$0xff] }
 0xc66   : > { %12476 = vst [vmem:[#allocation96_spill] sm:$0xff] %v10575_v19  ;;  %12477 = vst [vmem:[#allocation97_spill] sm:$0xff] %v10577_v0 }
 0xc68   : > { %5273 = vmatpush1.bf16.msra.mxu0 %v10226_v34  ;;  %5314 = vmatpush1.bf16.msra.mxu1 %v12457_v3  ;;  %v10401_v34 = vld [vmem:[#allocation3 + $0x8] sm:$0xff] }
 0xc69   : > { %5274 = vmatprep.subr.bf16.mxu0 %v12458_v31  ;;  %5315 = vmatprep.subr.bf16.mxu1 %v10232_v48  ;;  %v10405_v48 = vld [vmem:[#allocation3] sm:$0xff]  ;;  %v10579_v3 = vld [vmem:[#allocation3 + $0x3c8] sm:$0xff]  ;;  %v10581_v31 = vld [vmem:[#allocation3 + $0x3d8] sm:$0xff] }
 0xc6a   : > { %12478 = vst [vmem:[#allocation98_spill] sm:$0xff] %v10579_v3  ;;  %12479 = vst [vmem:[#allocation99_spill] sm:$0xff] %v10581_v31 }
 0xc6c   : > { %5275 = vmatpush1.bf16.msra.mxu0 %v10238_v51  ;;  %5316 = vmatpush1.bf16.msra.mxu1 %v10240_v50  ;;  %v10411_v50 = vld [vmem:[#allocation3 + $0x48] sm:$0xff]  ;;  %v10413_v51 = vld [vmem:[#allocation3 + $0x58] sm:$0xff] }
 0xc6d   : > { %5276 = vmatprep.subr.bf16.mxu0 %v10242_v49  ;;  %5317 = vmatprep.subr.bf16.mxu1 %v10244_v52  ;;  %v10409_v49 = vld [vmem:[#allocation3 + $0x10] sm:$0xff] }
 0xc6e   : > { %v10421_v52 = vld [vmem:[#allocation3 + $0x50] sm:$0xff] }
 0xc70   : > { %5277 = vmatpush1.bf16.msra.mxu0 %v10250_v53  ;;  %5318 = vmatpush1.bf16.msra.mxu1 %v10252_v47  ;;  %v10419_v47 = vld [vmem:[#allocation3 + $0x40] sm:$0xff]  ;;  %v10423_v53 = vld [vmem:[#allocation3 + $0x88] sm:$0xff] }
 0xc71   : > { %5554 = vmatprep.subr.bf16.mxu0 %v10401_v34  ;;  %5595 = vmatprep.subr.bf16.mxu1 %v10403_v56 }
 0xc73   : > { %5279 = vmatmul.mubr.bf16.vlgmr.msra.gmra.mrb[12].mxu0 %v10332_v2  ;;  %5320 = vmatmul.mubr.bf16.vlgmr.msra.gmra.mrb[12].mxu1 %v10332_v2  ;;  %v10425_v2 = vld [vmem:[#allocation3 + $0x98] sm:$0xff] }
 0xc74   : > { %5555 = vmatpush1.bf16.msra.mxu0 %v10405_v48  ;;  %5596 = vmatpush1.bf16.msra.mxu1 %v10409_v49 }
 0xc75   : > { %5556 = vmatprep.subr.bf16.mxu0 %v10411_v50  ;;  %5597 = vmatprep.subr.bf16.mxu1 %v10413_v51 }
 0xc78   : > { %5557 = vmatpush1.bf16.msra.mxu0 %v10419_v47  ;;  %5598 = vmatpush1.bf16.msra.mxu1 %v10421_v52 }
 0xc79   : > { %5558 = vmatprep.subr.bf16.mxu0 %v10423_v53  ;;  %5599 = vmatprep.subr.bf16.mxu1 %v10425_v2 }
 0xc7c   : > { %5559 = vmatpush1.bf16.msra.mxu0 %v10431_v29  ;;  %5600 = vmatpush1.bf16.msra.mxu1 %v10433_v20 }
 0xc7d   : > { %5560 = vmatprep.subr.bf16.mxu0 %v10435_v27  ;;  %5601 = vmatprep.subr.bf16.mxu1 %v10437_v59 }
 0xc80   : > { %5561 = vmatpush1.bf16.msra.mxu0 %v10443_v12  ;;  %5602 = vmatpush1.bf16.msra.mxu1 %v10445_v23 }
 0xc81   : > { %5562 = vmatprep.subr.bf16.mxu0 %v10447_v43  ;;  %5603 = vmatprep.subr.bf16.mxu1 %v10449_v33 }
 0xc84   : > { %5563 = vmatpush1.bf16.msra.mxu0 %v10455_v58  ;;  %5604 = vmatpush1.bf16.msra.mxu1 %v10457_v62 }
 0xc85   : > { %5564 = vmatprep.subr.bf16.mxu0 %v10461_v63  ;;  %5605 = vmatprep.subr.bf16.mxu1 %v10463_v57 }
 0xc88   : > { %5565 = vmatpush1.bf16.msra.mxu0 %v10467_v15  ;;  %5606 = vmatpush1.bf16.msra.mxu1 %v10469_v26 }
 0xc89   : > { %5566 = vmatprep.subr.bf16.mxu0 %v10473_v42  ;;  %5607 = vmatprep.subr.bf16.mxu1 %v10475_v45 }
 0xc8c   : > { %5567 = vmatpush1.bf16.msra.mxu0 %v10479_v24  ;;  %5608 = vmatpush1.bf16.msra.mxu1 %v10481_v36 }
 0xc8d   : > { %5568 = vmatprep.subr.bf16.mxu0 %v10485_v38  ;;  %5609 = vmatprep.subr.bf16.mxu1 %v10487_v39 }
 0xc90   : > { %5569 = vmatpush1.bf16.msra.mxu0 %v10491_v9  ;;  %5610 = vmatpush1.bf16.msra.mxu1 %v10493_v61 }
 0xc91   : > { %5570 = vmatprep.subr.bf16.mxu0 %v10497_v41  ;;  %5611 = vmatprep.subr.bf16.mxu1 %v10499_v32 }
 0xc94   : > { %5571 = vmatpush1.bf16.msra.mxu0 %v10503_v40  ;;  %5612 = vmatpush1.bf16.msra.mxu1 %v10505_v30 }
 0xc95   : > { %5572 = vmatprep.subr.bf16.mxu0 %v10509_v37  ;;  %5613 = vmatprep.subr.bf16.mxu1 %v10511_v10 }
 0xc98   : > { %5573 = vmatpush1.bf16.msra.mxu0 %v10515_v11  ;;  %5614 = vmatpush1.bf16.msra.mxu1 %v10517_v60 }
 0xc99   : > { %5574 = vmatprep.subr.bf16.mxu0 %v10521_v28  ;;  %5615 = vmatprep.subr.bf16.mxu1 %v10523_v16 }
 0xc9c   : > { %5575 = vmatpush1.bf16.msra.mxu0 %v10527_v44  ;;  %5616 = vmatpush1.bf16.msra.mxu1 %v10529_v8 }
 0xc9d   : > { %5576 = vmatprep.subr.bf16.mxu0 %v10533_v7  ;;  %5617 = vmatprep.subr.bf16.mxu1 %v10535_v1 }
 0xca0   : > { %5577 = vmatpush1.bf16.msra.mxu0 %v10539_v25  ;;  %5618 = vmatpush1.bf16.msra.mxu1 %v10541_v14  ;;  %v5034_v25 = vld [vmem:[#allocation2 + $0x40] sm:$0xff] }
 0xca1   : > { %5578 = vmatprep.subr.bf16.mxu0 %v10545_v6  ;;  %5619 = vmatprep.subr.bf16.mxu1 %v10547_v4 }
 0xca4   : > { %5579 = vmatpush1.bf16.msra.mxu0 %v10551_v46  ;;  %5620 = vmatpush1.bf16.msra.mxu1 %v10553_v54 }
 0xca5   : > { %5580 = vmatprep.subr.bf16.mxu0 %v10555_v55  ;;  %5621 = vmatprep.subr.bf16.mxu1 %v10557_v22 }
 0xca8   : > { %5581 = vmatpush1.bf16.msra.mxu0 %v10563_v35  ;;  %5622 = vmatpush1.bf16.msra.mxu1 %v10565_v13  ;;  %v10587_v13 = vld [vmem:[#allocation3 + $0x3c0] sm:$0xff]  ;;  %v10595_v35 = vld [vmem:[#allocation3 + $0x38] sm:$0xff] }
 0xca9   : > { %5582 = vmatprep.subr.bf16.mxu0 %v10567_v5  ;;  %5623 = vmatprep.subr.bf16.mxu1 %v10569_v17  ;;  %12480 = vst [vmem:[#allocation100_spill] sm:$0xff] %v10587_v13  ;;  %v10589_v5 = vld [vmem:[#allocation3 + $0x3d0] sm:$0xff]  ;;  %v10593_v17 = vld [vmem:[#allocation3 + $0x28] sm:$0xff]  ;;  %12483 = vst [vmem:[#allocation103_spill] sm:$0xff] %v10595_v35 }
 0xcaa   : > { %12481 = vst [vmem:[#allocation101_spill] sm:$0xff] %v10589_v5  ;;  %12482 = vst [vmem:[#allocation102_spill] sm:$0xff] %v10593_v17 }
 0xcac   : > { %5583 = vmatpush1.bf16.msra.mxu0 %v10575_v19  ;;  %5624 = vmatpush1.bf16.msra.mxu1 %v10577_v0 }
 0xcad   : > { %5584 = vmatprep.subr.bf16.mxu0 %v10579_v3  ;;  %5625 = vmatprep.subr.bf16.mxu1 %v10581_v31 }
 0xcb0   : > { %5585 = vmatpush1.bf16.msra.mxu0 %v10587_v13  ;;  %5626 = vmatpush1.bf16.msra.mxu1 %v10589_v5 }
 0xcb1   : > { %5636 = vmatprep.subr.bf16.mxu0 %v10593_v17  ;;  %5677 = vmatprep.subr.bf16.mxu1 %v10595_v35 }
 0xd06   : > { %v5198_v0 = vpop.f32.mrb[8].mxu0  ;;  %v5239_v3 = vpop.f32.mrb[8].mxu1 }
 0xd07   : > { %v5200_v19 = vpop.f32.mrb[9].mxu0  ;;  %v5241_v31 = vpop.f32.mrb[9].mxu1 }
 0xd08   : > { %v5336_v22 = vcombine.low %v5198_v0, %v5200_v19  ;;  %v5337_v55 = vcombine.low %v5239_v3, %v5241_v31  ;;  %v5202_v54 = vpop.f32.mrb[10].mxu0  ;;  %v5243_v46 = vpop.f32.mrb[10].mxu1 }
 0xd09   : > { %v5203_v4 = vpop.f32.mrb[11].mxu0  ;;  %v5244_v13 = vpop.f32.mrb[11].mxu1 }
 0xd0a   : > { %v5344_v5 = vrot.slane %v5336_v22, %v12404_v18  ;;  %v5351_v6 = vrot.slane %v5337_v55, %v12404_v18 }
 0xd0c   : > { %v5352_v14 = vcombine.low %v5344_v5, %v5351_v6 }
 0xd0e   : > { %v5372_v1 = vadd.f32 %v5352_v14, %v5034_v25 }
 0xd10   : > { %v5381_v17 = vrot.slane %v5372_v1, 4  ;;  %v7340_v35 = vmul.f32 -1.442695, %v5372_v1 }
 0xd12   : > { %v7341_v7 = vmul.f32 -1.442695, %v5381_v17 }
 0xd14   : > { %7613 = vpow2.f32 %v7341_v7  ;;  %v5035_v7 = vld [vmem:[#allocation2 + $0x48] sm:$0xff] }
 0xd15   : > { %7615 = vpow2.f32 %v7340_v35 }
 0xd1e   : > { %v7614_v19 = vpop.eup %7613 }
 0xd1f   : > { %v7616_v46 = vpop.eup %7615  ;;  %v5386_v6 = vadd.f32 1.0, %v7614_v19 }
 0xd20   : > { %v5377_v1 = vadd.f32 1.0, %v7616_v46 }
 0xd21   : > { %7617 = vrcp.f32 %v5386_v6 }
 0xd22   : > { %7619 = vrcp.f32 %v5377_v1  ;;  %v10612_v1 = vld [vmem:[#allocation3 + $0x30] sm:$0xff] }
 0xd46   : > { %v5280_v8 = vpop.f32.mrb[12].mxu0  ;;  %v5321_v44 = vpop.f32.mrb[12].mxu1 }
 0xd47   : > { %v5282_v0 = vpop.f32.mrb[13].mxu0  ;;  %v5323_v54 = vpop.f32.mrb[13].mxu1 }
 0xd48   : > { %v5353_v4 = vcombine.low %v5280_v8, %v5282_v0  ;;  %v5354_v13 = vcombine.low %v5321_v44, %v5323_v54  ;;  %v5284_v3 = vpop.f32.mrb[14].mxu0  ;;  %v5325_v22 = vpop.f32.mrb[14].mxu1 }
 0xd49   : > { %v5285_v31 = vpop.f32.mrb[15].mxu0  ;;  %v5326_v55 = vpop.f32.mrb[15].mxu1 }
 0xd4a   : > { %v5361_v25 = vrot.slane %v5353_v4, %v12404_v18  ;;  %v5368_v14 = vrot.slane %v5354_v13, %v12404_v18  ;;  %v7618_v44 = vpop.eup %7617 }
 0xd4b   : > { %v7620_v8 = vpop.eup %7619  ;;  %v5399_v54 = vmul.f32 %v7618_v44, %v10328_v21  ;;  %v10610_v21 = vld [vmem:[#allocation3 + $0x20] sm:$0xff]  ;;  %v10629_v44 = vld [vmem:[#allocation3 + $0xa8] sm:$0xff] }
 0xd4c   : > { %v5369_v35 = vcombine.low %v5361_v25, %v5368_v14 }
 0xd4e   : > { %v5373_v5 = vadd.f32 %v5369_v35, %v5035_v7  ;;  %v10617_v7 = vld [vmem:[#allocation3 + $0x68] sm:$0xff]  ;;  %v10619_v35 = vld [vmem:[#allocation3 + $0x78] sm:$0xff] }
 0xd50   : > { %7621 = vtanh.f32 %v5373_v5  ;;  %v5391_v17 = vrot.slane %v5373_v5, 4  ;;  %v10623_v5 = vld [vmem:[#allocation3 + $0x60] sm:$0xff] }
 0xd52   : > { %v7342_v16 = vmul.f32 -1.442695, %v5391_v17  ;;  %v10625_v17 = vld [vmem:[#allocation3 + $0x70] sm:$0xff] }
 0xd54   : > { %7623 = vpow2.f32 %v7342_v16 }
 0xd5a   : > { %v7622_v0 = vpop.eup %7621 }
 0xd5b   : > { %v5400_v19 = vmul.f32 %v7622_v0, %v7620_v8  ;;  %v10631_v8 = vld [vmem:[#allocation3 + $0xb8] sm:$0xff]  ;;  %v10637_v0 = vld [vmem:[#allocation3 + $0xa0] sm:$0xff] }
 0xd5d   : > { %v10604_v4 = vadd.f32 %v5400_v19, %v5399_v54  ;;  %v10639_v54 = vld [vmem:[#allocation3 + $0xb0] sm:$0xff]  ;;  %v10641_v19 = vld [vmem:[#allocation3 + $0xe8] sm:$0xff] }
 0xd5e   : > { %v7624_v13 = vpop.eup %7623 }
 0xd5f   : > { %v5396_v46 = vadd.f32 1.0, %v7624_v13  ;;  %7625 = vtanh.f32 %v10604_v4  ;;  %v10643_v13 = vld [vmem:[#allocation3 + $0xf8] sm:$0xff] }
 0xd61   : > { %7627 = vrcp.f32 %v5396_v46  ;;  %v10649_v46 = vld [vmem:[#allocation3 + $0xe0] sm:$0xff] }
 0xd62   : > { %12484 = vst [vmem:[#allocation104_spill] sm:$0xff] %v10649_v46 }
 0xd69   : > { %v7626_v3 = vpop.eup %7625 }
 0xd6b   : > { %v7628_v22 = vpop.eup %7627 }
 0xd6c   : > { %v5403_v31 = vmul.f32 %v7628_v22, %v7626_v3  ;;  %v10651_v3 = vld [vmem:[#allocation3 + $0xf0] sm:$0xff]  ;;  %v10653_v22 = vld [vmem:[#allocation3 + $0x128] sm:$0xff] }
 0xd6d   : > { %12485 = vst [vmem:[#allocation105_spill] sm:$0xff] %v10651_v3  ;;  %12486 = vst [vmem:[#allocation106_spill] sm:$0xff] %v10653_v22 }
 0xd6e   : > { %v5411_v55 = vrot.slane %v5403_v31, %v12404_v18  ;;  %v10655_v31 = vld [vmem:[#allocation3 + $0x138] sm:$0xff] }
 0xd6f   : > { %12487 = vst [vmem:[#allocation107_spill] sm:$0xff] %v10655_v31 }
 0xd70   : > { %v5412_v16 = vcombine.high %v5411_v55, %v5411_v55  ;;  %v10608_v14 = vpack.c.bf16 %v5411_v55, %v5411_v55 }
 0xd72   : > { %v5416_v6 = vpack.c.bf16 %v5412_v16, %v5412_v16  ;;  %v7374_v25 = vpack.c.bf16 %v5412_v16, %v5411_v55  ;;  %v10661_v55 = vld [vmem:[#allocation3 + $0x120] sm:$0xff]  ;;  %v10663_v16 = vld [vmem:[#allocation3 + $0x130] sm:$0xff] }
 0xd73   : > { %12488 = vst [vmem:[#allocation108_spill] sm:$0xff] %v10661_v55  ;;  %12489 = vst [vmem:[#allocation109_spill] sm:$0xff] %v10663_v16 }
 0xd74   : > { %5423 = vst [vmem:[%s8005_s27 + $0x8] sm:$0x11] %v7374_v25  ;;  %5586 = vmatprep.mubr.bf16.mxu0 %v5416_v6  ;;  %5627 = vmatprep.mubr.bf16.mxu1 %v5416_v6  ;;  %v10667_v25 = vld [vmem:[#allocation3 + $0x178] sm:$0xff] }
 0xd75   : > { %5587 = vmatmul.mubr.bf16.vlgmr.msra.gmra.mrb[16].mxu0 %v10608_v14  ;;  %5628 = vmatmul.mubr.bf16.vlgmr.msra.gmra.mrb[16].mxu1 %v10608_v14  ;;  %12491 = vst [vmem:[#allocation111_spill] sm:$0xff] %v10667_v25 }
 0xd76   : > { %5637 = vmatpush1.bf16.msra.mxu0 %v10610_v21  ;;  %5678 = vmatpush1.bf16.msra.mxu1 %v10612_v1 }
 0xd77   : > { %5668 = vmatprep.mubr.bf16.mxu0 %v5416_v6  ;;  %5709 = vmatprep.mubr.bf16.mxu1 %v5416_v6  ;;  %v10665_v6 = vld [vmem:[#allocation3 + $0x168] sm:$0xff] }
 0xd78   : > { %5638 = vmatprep.subr.bf16.mxu0 %v10617_v7  ;;  %5679 = vmatprep.subr.bf16.mxu1 %v10619_v35  ;;  %12490 = vst [vmem:[#allocation110_spill] sm:$0xff] %v10665_v6 }
 0xd7a   : > { %5639 = vmatpush1.bf16.msra.mxu0 %v10623_v5  ;;  %5680 = vmatpush1.bf16.msra.mxu1 %v10625_v17 }
 0xd7b   : > { %5640 = vmatprep.subr.bf16.mxu0 %v10629_v44  ;;  %5681 = vmatprep.subr.bf16.mxu1 %v10631_v8 }
 0xd7e   : > { %5641 = vmatpush1.bf16.msra.mxu0 %v10637_v0  ;;  %5682 = vmatpush1.bf16.msra.mxu1 %v10639_v54 }
 0xd7f   : > { %5642 = vmatprep.subr.bf16.mxu0 %v10641_v19  ;;  %5683 = vmatprep.subr.bf16.mxu1 %v10643_v13 }
 0xd82   : > { %5643 = vmatpush1.bf16.msra.mxu0 %v10649_v46  ;;  %5684 = vmatpush1.bf16.msra.mxu1 %v10651_v3  ;;  %v10673_v3 = vld [vmem:[#allocation3 + $0x160] sm:$0xff]  ;;  %v10679_v46 = vld [vmem:[#allocation3 + $0x1b8] sm:$0xff] }
 0xd83   : > { %5644 = vmatprep.subr.bf16.mxu0 %v10653_v22  ;;  %5685 = vmatprep.subr.bf16.mxu1 %v10655_v31  ;;  %12492 = vst [vmem:[#allocation112_spill] sm:$0xff] %v10673_v3  ;;  %v10675_v22 = vld [vmem:[#allocation3 + $0x170] sm:$0xff]  ;;  %v10677_v31 = vld [vmem:[#allocation3 + $0x1a8] sm:$0xff]  ;;  %12495 = vst [vmem:[#allocation115_spill] sm:$0xff] %v10679_v46 }
 0xd84   : > { %12493 = vst [vmem:[#allocation113_spill] sm:$0xff] %v10675_v22  ;;  %12494 = vst [vmem:[#allocation114_spill] sm:$0xff] %v10677_v31 }
 0xd86   : > { %5645 = vmatpush1.bf16.msra.mxu0 %v10661_v55  ;;  %5686 = vmatpush1.bf16.msra.mxu1 %v10663_v16  ;;  %v10685_v16 = vld [vmem:[#allocation3 + $0x1a0] sm:$0xff]  ;;  %v10691_v55 = vld [vmem:[#allocation3 + $0x1f8] sm:$0xff] }
 0xd87   : > { %5646 = vmatprep.subr.bf16.mxu0 %v10665_v6  ;;  %5687 = vmatprep.subr.bf16.mxu1 %v10667_v25  ;;  %12496 = vst [vmem:[#allocation116_spill] sm:$0xff] %v10685_v16  ;;  %v10687_v6 = vld [vmem:[#allocation3 + $0x1b0] sm:$0xff]  ;;  %v10689_v25 = vld [vmem:[#allocation3 + $0x1e8] sm:$0xff]  ;;  %12499 = vst [vmem:[#allocation119_spill] sm:$0xff] %v10691_v55 }
 0xd88   : > { %12497 = vst [vmem:[#allocation117_spill] sm:$0xff] %v10687_v6  ;;  %12498 = vst [vmem:[#allocation118_spill] sm:$0xff] %v10689_v25 }
 0xd8a   : > { %5647 = vmatpush1.bf16.msra.mxu0 %v10673_v3  ;;  %5688 = vmatpush1.bf16.msra.mxu1 %v10675_v22  ;;  %v10697_v22 = vld [vmem:[#allocation3 + $0x1e0] sm:$0xff]  ;;  %v10703_v3 = vld [vmem:[#allocation3 + $0x238] sm:$0xff] }
 0xd8b   : > { %5648 = vmatprep.subr.bf16.mxu0 %v10677_v31  ;;  %5689 = vmatprep.subr.bf16.mxu1 %v10679_v46  ;;  %12500 = vst [vmem:[#allocation120_spill] sm:$0xff] %v10697_v22  ;;  %v10699_v31 = vld [vmem:[#allocation3 + $0x1f0] sm:$0xff]  ;;  %v10701_v46 = vld [vmem:[#allocation3 + $0x228] sm:$0xff]  ;;  %12503 = vst [vmem:[#allocation123_spill] sm:$0xff] %v10703_v3 }
 0xd8c   : > { %12501 = vst [vmem:[#allocation121_spill] sm:$0xff] %v10699_v31  ;;  %12502 = vst [vmem:[#allocation122_spill] sm:$0xff] %v10701_v46 }
 0xd8e   : > { %5649 = vmatpush1.bf16.msra.mxu0 %v10685_v16  ;;  %5690 = vmatpush1.bf16.msra.mxu1 %v10687_v6  ;;  %v10709_v6 = vld [vmem:[#allocation3 + $0x220] sm:$0xff]  ;;  %v10715_v16 = vld [vmem:[#allocation3 + $0x278] sm:$0xff] }
 0xd8f   : > { %5650 = vmatprep.subr.bf16.mxu0 %v10689_v25  ;;  %5691 = vmatprep.subr.bf16.mxu1 %v10691_v55  ;;  %12504 = vst [vmem:[#allocation124_spill] sm:$0xff] %v10709_v6  ;;  %v10711_v25 = vld [vmem:[#allocation3 + $0x230] sm:$0xff]  ;;  %v10713_v55 = vld [vmem:[#allocation3 + $0x268] sm:$0xff]  ;;  %12507 = vst [vmem:[#allocation127_spill] sm:$0xff] %v10715_v16 }
 0xd90   : > { %12505 = vst [vmem:[#allocation125_spill] sm:$0xff] %v10711_v25  ;;  %12506 = vst [vmem:[#allocation126_spill] sm:$0xff] %v10713_v55 }
 0xd92   : > { %5651 = vmatpush1.bf16.msra.mxu0 %v10697_v22  ;;  %5692 = vmatpush1.bf16.msra.mxu1 %v10699_v31  ;;  %v10721_v31 = vld [vmem:[#allocation3 + $0x260] sm:$0xff]  ;;  %v10727_v22 = vld [vmem:[#allocation3 + $0x2b8] sm:$0xff] }
 0xd93   : > { %5652 = vmatprep.subr.bf16.mxu0 %v10701_v46  ;;  %5693 = vmatprep.subr.bf16.mxu1 %v10703_v3  ;;  %12508 = vst [vmem:[#allocation128_spill] sm:$0xff] %v10721_v31  ;;  %v10723_v46 = vld [vmem:[#allocation3 + $0x270] sm:$0xff]  ;;  %v10725_v3 = vld [vmem:[#allocation3 + $0x2a8] sm:$0xff]  ;;  %12511 = vst [vmem:[#allocation131_spill] sm:$0xff] %v10727_v22 }
 0xd94   : > { %12509 = vst [vmem:[#allocation129_spill] sm:$0xff] %v10723_v46  ;;  %12510 = vst [vmem:[#allocation130_spill] sm:$0xff] %v10725_v3 }
 0xd96   : > { %5653 = vmatpush1.bf16.msra.mxu0 %v10709_v6  ;;  %5694 = vmatpush1.bf16.msra.mxu1 %v10711_v25  ;;  %v10733_v25 = vld [vmem:[#allocation3 + $0x2a0] sm:$0xff]  ;;  %v10739_v6 = vld [vmem:[#allocation3 + $0x2f8] sm:$0xff] }
 0xd97   : > { %5654 = vmatprep.subr.bf16.mxu0 %v10713_v55  ;;  %5695 = vmatprep.subr.bf16.mxu1 %v10715_v16  ;;  %12512 = vst [vmem:[#allocation132_spill] sm:$0xff] %v10733_v25  ;;  %v10735_v55 = vld [vmem:[#allocation3 + $0x2b0] sm:$0xff]  ;;  %v10737_v16 = vld [vmem:[#allocation3 + $0x2e8] sm:$0xff]  ;;  %12515 = vst [vmem:[#allocation135_spill] sm:$0xff] %v10739_v6 }
 0xd98   : > { %12513 = vst [vmem:[#allocation133_spill] sm:$0xff] %v10735_v55  ;;  %12514 = vst [vmem:[#allocation134_spill] sm:$0xff] %v10737_v16 }
 0xd9a   : > { %5655 = vmatpush1.bf16.msra.mxu0 %v10721_v31  ;;  %5696 = vmatpush1.bf16.msra.mxu1 %v10723_v46  ;;  %v10745_v46 = vld [vmem:[#allocation3 + $0x2e0] sm:$0xff]  ;;  %v10751_v31 = vld [vmem:[#allocation3 + $0x338] sm:$0xff] }
 0xd9b   : > { %5656 = vmatprep.subr.bf16.mxu0 %v10725_v3  ;;  %5697 = vmatprep.subr.bf16.mxu1 %v10727_v22  ;;  %12516 = vst [vmem:[#allocation136_spill] sm:$0xff] %v10745_v46  ;;  %v10747_v3 = vld [vmem:[#allocation3 + $0x2f0] sm:$0xff]  ;;  %v10749_v22 = vld [vmem:[#allocation3 + $0x328] sm:$0xff]  ;;  %12519 = vst [vmem:[#allocation139_spill] sm:$0xff] %v10751_v31 }
 0xd9c   : > { %12517 = vst [vmem:[#allocation137_spill] sm:$0xff] %v10747_v3  ;;  %12518 = vst [vmem:[#allocation138_spill] sm:$0xff] %v10749_v22 }
 0xd9e   : > { %5657 = vmatpush1.bf16.msra.mxu0 %v10733_v25  ;;  %5698 = vmatpush1.bf16.msra.mxu1 %v10735_v55  ;;  %v10757_v55 = vld [vmem:[#allocation3 + $0x320] sm:$0xff]  ;;  %v10763_v25 = vld [vmem:[#allocation3 + $0x378] sm:$0xff] }
 0xd9f   : > { %5658 = vmatprep.subr.bf16.mxu0 %v10737_v16  ;;  %5699 = vmatprep.subr.bf16.mxu1 %v10739_v6  ;;  %12520 = vst [vmem:[#allocation140_spill] sm:$0xff] %v10757_v55  ;;  %v10759_v16 = vld [vmem:[#allocation3 + $0x330] sm:$0xff]  ;;  %v10761_v6 = vld [vmem:[#allocation3 + $0x368] sm:$0xff]  ;;  %12523 = vst [vmem:[#allocation143_spill] sm:$0xff] %v10763_v25 }
 0xda0   : > { %12521 = vst [vmem:[#allocation141_spill] sm:$0xff] %v10759_v16  ;;  %12522 = vst [vmem:[#allocation142_spill] sm:$0xff] %v10761_v6 }
 0xda2   : > { %5659 = vmatpush1.bf16.msra.mxu0 %v10745_v46  ;;  %5700 = vmatpush1.bf16.msra.mxu1 %v10747_v3  ;;  %v10769_v3 = vld [vmem:[#allocation3 + $0x360] sm:$0xff]  ;;  %v10775_v46 = vld [vmem:[#allocation3 + $0x3b8] sm:$0xff] }
 0xda3   : > { %5660 = vmatprep.subr.bf16.mxu0 %v10749_v22  ;;  %5701 = vmatprep.subr.bf16.mxu1 %v10751_v31  ;;  %v10771_v22 = vld [vmem:[#allocation3 + $0x370] sm:$0xff]  ;;  %v10773_v31 = vld [vmem:[#allocation3 + $0x3a8] sm:$0xff] }
 0xda4   : > { %12524 = vst [vmem:[#allocation144_spill] sm:$0xff] %v10771_v22  ;;  %12525 = vst [vmem:[#allocation145_spill] sm:$0xff] %v10773_v31 }
 0xda6   : > { %5661 = vmatpush1.bf16.msra.mxu0 %v10757_v55  ;;  %5702 = vmatpush1.bf16.msra.mxu1 %v10759_v16  ;;  %v10781_v16 = vld [vmem:[#allocation3 + $0x3a0] sm:$0xff]  ;;  %v10787_v55 = vld [vmem:[#allocation3 + $0x3f8] sm:$0xff] }
 0xda7   : > { %5662 = vmatprep.subr.bf16.mxu0 %v10761_v6  ;;  %5703 = vmatprep.subr.bf16.mxu1 %v10763_v25  ;;  %v10783_v6 = vld [vmem:[#allocation3 + $0x3b0] sm:$0xff]  ;;  %v10785_v25 = vld [vmem:[#allocation3 + $0x3e8] sm:$0xff] }
 0xdaa   : > { %5663 = vmatpush1.bf16.msra.mxu0 %v10769_v3  ;;  %5704 = vmatpush1.bf16.msra.mxu1 %v10771_v22  ;;  %v10793_v22 = vld [vmem:[#allocation3 + $0x3e0] sm:$0xff] }
 0xdab   : > { %5664 = vmatprep.subr.bf16.mxu0 %v10773_v31  ;;  %5705 = vmatprep.subr.bf16.mxu1 %v10775_v46  ;;  %v10795_v31 = vld [vmem:[#allocation3 + $0x3f0] sm:$0xff] }
 0xdae   : > { %5665 = vmatpush1.bf16.msra.mxu0 %v10781_v16  ;;  %5706 = vmatpush1.bf16.msra.mxu1 %v10783_v6 }
 0xdaf   : > { %5666 = vmatprep.subr.bf16.mxu0 %v10785_v25  ;;  %5707 = vmatprep.subr.bf16.mxu1 %v10787_v55 }
 0xdb2   : > { %5667 = vmatpush1.bf16.msra.mxu0 %v10793_v22  ;;  %5708 = vmatpush1.bf16.msra.mxu1 %v10795_v31 }
 0xdb3   : > { %5945 = vmatprep.subr.bf16.mxu0 %v10401_v34  ;;  %5986 = vmatprep.subr.bf16.mxu1 %v10403_v56  ;;  %v12526_v34 = vld [vmem:[#allocation79_spill] sm:$0xff]  ;;  %v12527_v56 = vld [vmem:[#allocation80_spill] sm:$0xff] }
 0xdb5   : > { %5669 = vmatmul.mubr.bf16.vlgmr.msra.gmra.mrb[20].mxu0 %v10608_v14  ;;  %5710 = vmatmul.mubr.bf16.vlgmr.msra.gmra.mrb[20].mxu1 %v10608_v14 }
 0xdb6   : > { %5946 = vmatpush1.bf16.msra.mxu0 %v10405_v48  ;;  %5987 = vmatpush1.bf16.msra.mxu1 %v10409_v49  ;;  %v12528_v48 = vld [vmem:[#allocation81_spill] sm:$0xff]  ;;  %v12529_v49 = vld [vmem:[#allocation82_spill] sm:$0xff] }
 0xdb7   : > { %5947 = vmatprep.subr.bf16.mxu0 %v10411_v50  ;;  %5988 = vmatprep.subr.bf16.mxu1 %v10413_v51  ;;  %v12530_v50 = vld [vmem:[#allocation83_spill] sm:$0xff]  ;;  %v12531_v51 = vld [vmem:[#allocation84_spill] sm:$0xff] }
 0xdba   : > { %5948 = vmatpush1.bf16.msra.mxu0 %v10419_v47  ;;  %5989 = vmatpush1.bf16.msra.mxu1 %v10421_v52  ;;  %v12532_v47 = vld [vmem:[#allocation85_spill] sm:$0xff]  ;;  %v12533_v52 = vld [vmem:[#allocation86_spill] sm:$0xff] }
 0xdbb   : > { %5949 = vmatprep.subr.bf16.mxu0 %v10423_v53  ;;  %5990 = vmatprep.subr.bf16.mxu1 %v10425_v2  ;;  %v12534_v53 = vld [vmem:[#allocation87_spill] sm:$0xff]  ;;  %v12535_v2 = vld [vmem:[#allocation88_spill] sm:$0xff] }
 0xdbe   : > { %5950 = vmatpush1.bf16.msra.mxu0 %v10431_v29  ;;  %5991 = vmatpush1.bf16.msra.mxu1 %v10433_v20  ;;  %v12536_v29 = vld [vmem:[#allocation89_spill] sm:$0xff]  ;;  %v12537_v20 = vld [vmem:[#allocation90_spill] sm:$0xff] }
 0xdbf   : > { %5951 = vmatprep.subr.bf16.mxu0 %v10435_v27  ;;  %5992 = vmatprep.subr.bf16.mxu1 %v10437_v59  ;;  %v12538_v27 = vld [vmem:[#allocation91_spill] sm:$0xff]  ;;  %v12539_v59 = vld [vmem:[#allocation92_spill] sm:$0xff] }
 0xdc2   : > { %5952 = vmatpush1.bf16.msra.mxu0 %v10443_v12  ;;  %5993 = vmatpush1.bf16.msra.mxu1 %v10445_v23  ;;  %v12540_v12 = vld [vmem:[#allocation93_spill] sm:$0xff]  ;;  %v12541_v23 = vld [vmem:[#allocation94_spill] sm:$0xff] }
 0xdc3   : > { %5953 = vmatprep.subr.bf16.mxu0 %v10447_v43  ;;  %5994 = vmatprep.subr.bf16.mxu1 %v10449_v33  ;;  %v12542_v43 = vld [vmem:[#allocation95_spill] sm:$0xff]  ;;  %v12543_v33 = vld [vmem:[#allocation96_spill] sm:$0xff] }
 0xdc6   : > { %5954 = vmatpush1.bf16.msra.mxu0 %v10455_v58  ;;  %5995 = vmatpush1.bf16.msra.mxu1 %v10457_v62  ;;  %v12544_v58 = vld [vmem:[#allocation97_spill] sm:$0xff]  ;;  %v12545_v62 = vld [vmem:[#allocation98_spill] sm:$0xff] }
 0xdc7   : > { %5955 = vmatprep.subr.bf16.mxu0 %v10461_v63  ;;  %5996 = vmatprep.subr.bf16.mxu1 %v10463_v57  ;;  %v12546_v63 = vld [vmem:[#allocation99_spill] sm:$0xff]  ;;  %v12547_v57 = vld [vmem:[#allocation100_spill] sm:$0xff] }
 0xdca   : > { %5956 = vmatpush1.bf16.msra.mxu0 %v10467_v15  ;;  %5997 = vmatpush1.bf16.msra.mxu1 %v10469_v26  ;;  %v12548_v15 = vld [vmem:[#allocation101_spill] sm:$0xff]  ;;  %v12549_v26 = vld [vmem:[#allocation102_spill] sm:$0xff] }
 0xdcb   : > { %5957 = vmatprep.subr.bf16.mxu0 %v10473_v42  ;;  %5998 = vmatprep.subr.bf16.mxu1 %v10475_v45  ;;  %v12550_v42 = vld [vmem:[#allocation103_spill] sm:$0xff] }
 0xdce   : > { %5958 = vmatpush1.bf16.msra.mxu0 %v10479_v24  ;;  %5999 = vmatpush1.bf16.msra.mxu1 %v10481_v36 }
 0xdcf   : > { %5959 = vmatprep.subr.bf16.mxu0 %v10485_v38  ;;  %6000 = vmatprep.subr.bf16.mxu1 %v10487_v39 }
 0xdd2   : > { %5960 = vmatpush1.bf16.msra.mxu0 %v10491_v9  ;;  %6001 = vmatpush1.bf16.msra.mxu1 %v10493_v61 }
 0xdd3   : > { %5961 = vmatprep.subr.bf16.mxu0 %v10497_v41  ;;  %6002 = vmatprep.subr.bf16.mxu1 %v10499_v32 }
 0xdd6   : > { %5962 = vmatpush1.bf16.msra.mxu0 %v10503_v40  ;;  %6003 = vmatpush1.bf16.msra.mxu1 %v10505_v30 }
 0xdd7   : > { %5963 = vmatprep.subr.bf16.mxu0 %v10509_v37  ;;  %6004 = vmatprep.subr.bf16.mxu1 %v10511_v10 }
 0xdda   : > { %5964 = vmatpush1.bf16.msra.mxu0 %v10515_v11  ;;  %6005 = vmatpush1.bf16.msra.mxu1 %v10517_v60  ;;  %v5424_v11 = vld [vmem:[#allocation2 + $0x30] sm:$0xff] }
 0xddb   : > { %5965 = vmatprep.subr.bf16.mxu0 %v10521_v28  ;;  %6006 = vmatprep.subr.bf16.mxu1 %v12526_v34 }
 0xdde   : > { %5966 = vmatpush1.bf16.msra.mxu0 %v12527_v56  ;;  %6007 = vmatpush1.bf16.msra.mxu1 %v12528_v48 }
 0xddf   : > { %5967 = vmatprep.subr.bf16.mxu0 %v12529_v49  ;;  %6008 = vmatprep.subr.bf16.mxu1 %v12530_v50 }
 0xde2   : > { %5968 = vmatpush1.bf16.msra.mxu0 %v12531_v51  ;;  %6009 = vmatpush1.bf16.msra.mxu1 %v12532_v47 }
 0xde3   : > { %5969 = vmatprep.subr.bf16.mxu0 %v12533_v52  ;;  %6010 = vmatprep.subr.bf16.mxu1 %v12534_v53 }
 0xde6   : > { %5970 = vmatpush1.bf16.msra.mxu0 %v12535_v2  ;;  %6011 = vmatpush1.bf16.msra.mxu1 %v12536_v29 }
 0xde7   : > { %5971 = vmatprep.subr.bf16.mxu0 %v12537_v20  ;;  %6012 = vmatprep.subr.bf16.mxu1 %v12538_v27 }
 0xdea   : > { %5972 = vmatpush1.bf16.msra.mxu0 %v12539_v59  ;;  %6013 = vmatpush1.bf16.msra.mxu1 %v12540_v12 }
 0xdeb   : > { %5973 = vmatprep.subr.bf16.mxu0 %v12541_v23  ;;  %6014 = vmatprep.subr.bf16.mxu1 %v12542_v43 }
 0xdee   : > { %5974 = vmatpush1.bf16.msra.mxu0 %v12543_v33  ;;  %6015 = vmatpush1.bf16.msra.mxu1 %v12544_v58  ;;  %v5425_v33 = vld [vmem:[#allocation2 + $0x38] sm:$0xff] }
 0xdef   : > { %5975 = vmatprep.subr.bf16.mxu0 %v12545_v62  ;;  %6016 = vmatprep.subr.bf16.mxu1 %v12546_v63 }
 0xdf2   : > { %5976 = vmatpush1.bf16.msra.mxu0 %v12547_v57  ;;  %6017 = vmatpush1.bf16.msra.mxu1 %v12548_v15 }
 0xdf3   : > { %6027 = vmatprep.subr.bf16.mxu0 %v12549_v26  ;;  %6068 = vmatprep.subr.bf16.mxu1 %v12550_v42 }
 0xe48   : > { %v5588_v45 = vpop.f32.mrb[16].mxu0  ;;  %v5629_v24 = vpop.f32.mrb[16].mxu1 }
 0xe49   : > { %v5590_v36 = vpop.f32.mrb[17].mxu0  ;;  %v5631_v38 = vpop.f32.mrb[17].mxu1 }
 0xe4a   : > { %v5726_v39 = vcombine.low %v5588_v45, %v5590_v36  ;;  %v5727_v9 = vcombine.low %v5629_v24, %v5631_v38  ;;  %v5592_v61 = vpop.f32.mrb[18].mxu0  ;;  %v5633_v41 = vpop.f32.mrb[18].mxu1 }
 0xe4b   : > { %v5593_v32 = vpop.f32.mrb[19].mxu0  ;;  %v5634_v40 = vpop.f32.mrb[19].mxu1 }
 0xe4c   : > { %v5734_v30 = vrot.slane %v5726_v39, %v12404_v18  ;;  %v5741_v37 = vrot.slane %v5727_v9, %v12404_v18 }
 0xe4e   : > { %v5742_v10 = vcombine.low %v5734_v30, %v5741_v37 }
 0xe50   : > { %v5762_v60 = vadd.f32 %v5742_v10, %v5424_v11  ;;  %v12563_v11 = vld [vmem:[#allocation116_spill] sm:$0xff] }
 0xe52   : > { %v5771_v28 = vrot.slane %v5762_v60, 4  ;;  %v7344_v34 = vmul.f32 -1.442695, %v5762_v60  ;;  %v12564_v60 = vld [vmem:[#allocation117_spill] sm:$0xff] }
 0xe54   : > { %v7345_v14 = vmul.f32 -1.442695, %v5771_v28  ;;  %v12565_v28 = vld [vmem:[#allocation118_spill] sm:$0xff] }
 0xe56   : > { %7629 = vpow2.f32 %v7345_v14  ;;  %v12566_v14 = vld [vmem:[#allocation119_spill] sm:$0xff] }
 0xe57   : > { %7631 = vpow2.f32 %v7344_v34  ;;  %v12567_v34 = vld [vmem:[#allocation120_spill] sm:$0xff] }
 0xe60   : > { %v7630_v49 = vpop.eup %7629 }
 0xe61   : > { %v7632_v47 = vpop.eup %7631  ;;  %v5776_v59 = vadd.f32 1.0, %v7630_v49  ;;  %v12570_v49 = vld [vmem:[#allocation123_spill] sm:$0xff] }
 0xe62   : > { %v5767_v43 = vadd.f32 1.0, %v7632_v47  ;;  %v12573_v47 = vld [vmem:[#allocation126_spill] sm:$0xff] }
 0xe63   : > { %7633 = vrcp.f32 %v5776_v59  ;;  %v12580_v59 = vld [vmem:[#allocation133_spill] sm:$0xff] }
 0xe64   : > { %7635 = vrcp.f32 %v5767_v43  ;;  %v12583_v43 = vld [vmem:[#allocation136_spill] sm:$0xff] }
 0xe6d   : > { %v7634_v15 = vpop.eup %7633 }
 0xe6e   : > { %v7636_v26 = vpop.eup %7635  ;;  %v5789_v45 = vmul.f32 %v7634_v15, %v10604_v4  ;;  %v12589_v15 = vld [vmem:[#allocation142_spill] sm:$0xff] }
 0xe88   : > { %v5670_v56 = vpop.f32.mrb[20].mxu0  ;;  %v5711_v48 = vpop.f32.mrb[20].mxu1 }
 0xe89   : > { %v5672_v50 = vpop.f32.mrb[21].mxu0  ;;  %v5713_v51 = vpop.f32.mrb[21].mxu1 }
 0xe8a   : > { %v5743_v52 = vcombine.low %v5670_v56, %v5672_v50  ;;  %v5744_v53 = vcombine.low %v5711_v48, %v5713_v51  ;;  %v5674_v2 = vpop.f32.mrb[22].mxu0  ;;  %v5715_v29 = vpop.f32.mrb[22].mxu1  ;;  %v12568_v56 = vld [vmem:[#allocation121_spill] sm:$0xff]  ;;  %v12569_v48 = vld [vmem:[#allocation122_spill] sm:$0xff]  ;;  %v12571_v50 = vld [vmem:[#allocation124_spill] sm:$0xff] }
 0xe8b   : > { %v5675_v20 = vpop.f32.mrb[23].mxu0  ;;  %v5716_v27 = vpop.f32.mrb[23].mxu1  ;;  %v12572_v51 = vld [vmem:[#allocation125_spill] sm:$0xff]  ;;  %v12577_v29 = vld [vmem:[#allocation130_spill] sm:$0xff] }
 0xe8c   : > { %v5751_v12 = vrot.slane %v5743_v52, %v12404_v18  ;;  %v5758_v23 = vrot.slane %v5744_v53, %v12404_v18  ;;  %v12574_v52 = vld [vmem:[#allocation127_spill] sm:$0xff]  ;;  %v12575_v53 = vld [vmem:[#allocation128_spill] sm:$0xff]  ;;  %v12576_v2 = vld [vmem:[#allocation129_spill] sm:$0xff] }
 0xe8d   : > { %v12578_v20 = vld [vmem:[#allocation131_spill] sm:$0xff]  ;;  %v12579_v27 = vld [vmem:[#allocation132_spill] sm:$0xff] }
 0xe8e   : > { %v5759_v58 = vcombine.low %v5751_v12, %v5758_v23  ;;  %v12581_v12 = vld [vmem:[#allocation134_spill] sm:$0xff]  ;;  %v12582_v23 = vld [vmem:[#allocation135_spill] sm:$0xff] }
 0xe90   : > { %v5763_v62 = vadd.f32 %v5759_v58, %v5425_v33  ;;  %v12584_v33 = vld [vmem:[#allocation137_spill] sm:$0xff]  ;;  %v12585_v58 = vld [vmem:[#allocation138_spill] sm:$0xff] }
 0xe92   : > { %7637 = vtanh.f32 %v5763_v62  ;;  %v5781_v63 = vrot.slane %v5763_v62, 4  ;;  %v12586_v62 = vld [vmem:[#allocation139_spill] sm:$0xff] }
 0xe94   : > { %v7346_v57 = vmul.f32 -1.442695, %v5781_v63  ;;  %v12587_v63 = vld [vmem:[#allocation140_spill] sm:$0xff] }
 0xe96   : > { %7639 = vpow2.f32 %v7346_v57  ;;  %v12588_v57 = vld [vmem:[#allocation141_spill] sm:$0xff] }
 0xe9c   : > { %v7638_v42 = vpop.eup %7637 }
 0xe9d   : > { %v5790_v24 = vmul.f32 %v7638_v42, %v7636_v26  ;;  %v12590_v26 = vld [vmem:[#allocation143_spill] sm:$0xff]  ;;  %v12591_v42 = vld [vmem:[#allocation144_spill] sm:$0xff] }
 0xe9f   : > { %v10872_v36 = vadd.f32 %v5790_v24, %v5789_v45  ;;  %v12592_v45 = vld [vmem:[#allocation145_spill] sm:$0xff] }
 0xea0   : > { %v7640_v38 = vpop.eup %7639  ;;  %v10947_v24 = vld [vmem:[#allocation3 + $0x18] sm:$0xff] }
 0xea1   : > { %v5786_v39 = vadd.f32 1.0, %v7640_v38  ;;  %7641 = vtanh.f32 %v10872_v36  ;;  %v10969_v38 = vld [vmem:[#allocation3 + $0x98] sm:$0xff] }
 0xea3   : > { %7643 = vrcp.f32 %v5786_v39  ;;  %v10975_v39 = vld [vmem:[#allocation3 + $0x80] sm:$0xff] }
 0xeab   : > { %v7642_v9 = vpop.eup %7641 }
 0xead   : > { %v7644_v61 = vpop.eup %7643 }
 0xeae   : > { %v5793_v41 = vmul.f32 %v7644_v61, %v7642_v9  ;;  %v10977_v9 = vld [vmem:[#allocation3 + $0x90] sm:$0xff]  ;;  %v10979_v61 = vld [vmem:[#allocation3 + $0xc8] sm:$0xff] }
 0xeb0   : > { %v5801_v32 = vrot.slane %v5793_v41, %v12404_v18  ;;  %v10981_v41 = vld [vmem:[#allocation3 + $0xd8] sm:$0xff] }
 0xeb2   : > { %v5802_v40 = vcombine.high %v5801_v32, %v5801_v32  ;;  %v10876_v10 = vpack.c.bf16 %v5801_v32, %v5801_v32 }
 0xeb4   : > { %v5806_v30 = vpack.c.bf16 %v5802_v40, %v5802_v40  ;;  %v7375_v37 = vpack.c.bf16 %v5802_v40, %v5801_v32  ;;  %v10987_v32 = vld [vmem:[#allocation3 + $0xc0] sm:$0xff]  ;;  %v10989_v40 = vld [vmem:[#allocation3 + $0xd0] sm:$0xff] }
 0xeb6   : > { %v5812_v4 = vrot.slane %v7375_v37, 5  ;;  %5977 = vmatprep.mubr.bf16.mxu0 %v5806_v30  ;;  %6018 = vmatprep.mubr.bf16.mxu1 %v5806_v30  ;;  %v10993_v37 = vld [vmem:[#allocation3 + $0x118] sm:$0xff] }
 0xeb7   : > { %5978 = vmatmul.mubr.bf16.vlgmr.msra.gmra.mrb[24].mxu0 %v10876_v10  ;;  %6019 = vmatmul.mubr.bf16.vlgmr.msra.gmra.mrb[24].mxu1 %v10876_v10 }
 0xeb8   : > { %5814 = vst [vmem:[%s8005_s27] sm:$0x88] %v5812_v4  ;;  %6028 = vmatpush1.bf16.msra.mxu0 %v10610_v21  ;;  %6069 = vmatpush1.bf16.msra.mxu1 %v10612_v1  ;;  %v12551_v21 = vld [vmem:[#allocation104_spill] sm:$0xff]  ;;  %v12552_v1 = vld [vmem:[#allocation105_spill] sm:$0xff] }
 0xeb9   : > { %6059 = vmatprep.mubr.bf16.mxu0 %v5806_v30  ;;  %6100 = vmatprep.mubr.bf16.mxu1 %v5806_v30  ;;  %v10991_v30 = vld [vmem:[#allocation3 + $0x108] sm:$0xff]  ;;  %v11001_v4 = vld [vmem:[#allocation3 + $0x110] sm:$0xff] }
 0xeba   : > { %6029 = vmatprep.subr.bf16.mxu0 %v10617_v7  ;;  %6070 = vmatprep.subr.bf16.mxu1 %v10619_v35  ;;  %v12553_v7 = vld [vmem:[#allocation106_spill] sm:$0xff]  ;;  %v12554_v35 = vld [vmem:[#allocation107_spill] sm:$0xff] }
 0xebc   : > { %6030 = vmatpush1.bf16.msra.mxu0 %v10623_v5  ;;  %6071 = vmatpush1.bf16.msra.mxu1 %v10625_v17  ;;  %v12555_v5 = vld [vmem:[#allocation108_spill] sm:$0xff]  ;;  %v12556_v17 = vld [vmem:[#allocation109_spill] sm:$0xff] }
 0xebd   : > { %6031 = vmatprep.subr.bf16.mxu0 %v10629_v44  ;;  %6072 = vmatprep.subr.bf16.mxu1 %v10631_v8  ;;  %v12557_v44 = vld [vmem:[#allocation110_spill] sm:$0xff]  ;;  %v12558_v8 = vld [vmem:[#allocation111_spill] sm:$0xff] }
 0xec0   : > { %6032 = vmatpush1.bf16.msra.mxu0 %v10637_v0  ;;  %6073 = vmatpush1.bf16.msra.mxu1 %v10639_v54  ;;  %v12559_v0 = vld [vmem:[#allocation112_spill] sm:$0xff]  ;;  %v12560_v54 = vld [vmem:[#allocation113_spill] sm:$0xff] }
 0xec1   : > { %6033 = vmatprep.subr.bf16.mxu0 %v10641_v19  ;;  %6074 = vmatprep.subr.bf16.mxu1 %v10643_v13  ;;  %v12561_v19 = vld [vmem:[#allocation114_spill] sm:$0xff]  ;;  %v12562_v13 = vld [vmem:[#allocation115_spill] sm:$0xff] }
 0xec4   : > { %6034 = vmatpush1.bf16.msra.mxu0 %v12551_v21  ;;  %6075 = vmatpush1.bf16.msra.mxu1 %v12552_v1  ;;  %v11005_v21 = vld [vmem:[#allocation3 + $0x148] sm:$0xff]  ;;  %v11007_v1 = vld [vmem:[#allocation3 + $0x158] sm:$0xff] }
 0xec5   : > { %6035 = vmatprep.subr.bf16.mxu0 %v12553_v7  ;;  %6076 = vmatprep.subr.bf16.mxu1 %v12554_v35  ;;  %v11011_v7 = vld [vmem:[#allocation3 + $0x140] sm:$0xff]  ;;  %v11013_v35 = vld [vmem:[#allocation3 + $0x150] sm:$0xff] }
 0xec8   : > { %6036 = vmatpush1.bf16.msra.mxu0 %v12555_v5  ;;  %6077 = vmatpush1.bf16.msra.mxu1 %v12556_v17  ;;  %v11017_v5 = vld [vmem:[#allocation3 + $0x188] sm:$0xff]  ;;  %v11019_v17 = vld [vmem:[#allocation3 + $0x198] sm:$0xff] }
 0xec9   : > { %6037 = vmatprep.subr.bf16.mxu0 %v12557_v44  ;;  %6078 = vmatprep.subr.bf16.mxu1 %v12558_v8  ;;  %v11023_v44 = vld [vmem:[#allocation3 + $0x180] sm:$0xff]  ;;  %v11025_v8 = vld [vmem:[#allocation3 + $0x190] sm:$0xff] }
 0xecc   : > { %6038 = vmatpush1.bf16.msra.mxu0 %v12559_v0  ;;  %6079 = vmatpush1.bf16.msra.mxu1 %v12560_v54  ;;  %v11029_v0 = vld [vmem:[#allocation3 + $0x1c8] sm:$0xff]  ;;  %v11031_v54 = vld [vmem:[#allocation3 + $0x1d8] sm:$0xff] }
 0xecd   : > { %6039 = vmatprep.subr.bf16.mxu0 %v12561_v19  ;;  %6080 = vmatprep.subr.bf16.mxu1 %v12562_v13  ;;  %v11035_v19 = vld [vmem:[#allocation3 + $0x1c0] sm:$0xff]  ;;  %v11037_v13 = vld [vmem:[#allocation3 + $0x1d0] sm:$0xff] }
 0xed0   : > { %6040 = vmatpush1.bf16.msra.mxu0 %v12563_v11  ;;  %6081 = vmatpush1.bf16.msra.mxu1 %v12564_v60  ;;  %v11041_v11 = vld [vmem:[#allocation3 + $0x208] sm:$0xff]  ;;  %v11043_v60 = vld [vmem:[#allocation3 + $0x218] sm:$0xff] }
 0xed1   : > { %6041 = vmatprep.subr.bf16.mxu0 %v12565_v28  ;;  %6082 = vmatprep.subr.bf16.mxu1 %v12566_v14  ;;  %v11047_v28 = vld [vmem:[#allocation3 + $0x200] sm:$0xff]  ;;  %v11049_v14 = vld [vmem:[#allocation3 + $0x210] sm:$0xff] }
 0xed4   : > { %6042 = vmatpush1.bf16.msra.mxu0 %v12567_v34  ;;  %6083 = vmatpush1.bf16.msra.mxu1 %v12568_v56  ;;  %v11053_v34 = vld [vmem:[#allocation3 + $0x248] sm:$0xff]  ;;  %v11055_v56 = vld [vmem:[#allocation3 + $0x258] sm:$0xff] }
 0xed5   : > { %6043 = vmatprep.subr.bf16.mxu0 %v12569_v48  ;;  %6084 = vmatprep.subr.bf16.mxu1 %v12570_v49  ;;  %v11059_v48 = vld [vmem:[#allocation3 + $0x240] sm:$0xff]  ;;  %v11061_v49 = vld [vmem:[#allocation3 + $0x250] sm:$0xff] }
 0xed8   : > { %6044 = vmatpush1.bf16.msra.mxu0 %v12571_v50  ;;  %6085 = vmatpush1.bf16.msra.mxu1 %v12572_v51  ;;  %v11065_v50 = vld [vmem:[#allocation3 + $0x288] sm:$0xff]  ;;  %v11067_v51 = vld [vmem:[#allocation3 + $0x298] sm:$0xff] }
 0xed9   : > { %6045 = vmatprep.subr.bf16.mxu0 %v12573_v47  ;;  %6086 = vmatprep.subr.bf16.mxu1 %v12574_v52  ;;  %12593 = vst [vmem:[#allocation79_spill] sm:$0xff] %v11067_v51  ;;  %v11071_v47 = vld [vmem:[#allocation3 + $0x280] sm:$0xff]  ;;  %v11073_v52 = vld [vmem:[#allocation3 + $0x290] sm:$0xff] }
 0xeda   : > { %12594 = vst [vmem:[#allocation80_spill] sm:$0xff] %v11071_v47  ;;  %12595 = vst [vmem:[#allocation81_spill] sm:$0xff] %v11073_v52 }
 0xedc   : > { %6046 = vmatpush1.bf16.msra.mxu0 %v12575_v53  ;;  %6087 = vmatpush1.bf16.msra.mxu1 %v12576_v2  ;;  %v11077_v53 = vld [vmem:[#allocation3 + $0x2c8] sm:$0xff]  ;;  %v11079_v2 = vld [vmem:[#allocation3 + $0x2d8] sm:$0xff] }
 0xedd   : > { %6047 = vmatprep.subr.bf16.mxu0 %v12577_v29  ;;  %6088 = vmatprep.subr.bf16.mxu1 %v12578_v20  ;;  %12596 = vst [vmem:[#allocation82_spill] sm:$0xff] %v11077_v53  ;;  %12597 = vst [vmem:[#allocation83_spill] sm:$0xff] %v11079_v2  ;;  %v11083_v29 = vld [vmem:[#allocation3 + $0x2c0] sm:$0xff]  ;;  %v11085_v20 = vld [vmem:[#allocation3 + $0x2d0] sm:$0xff] }
 0xede   : > { %12598 = vst [vmem:[#allocation84_spill] sm:$0xff] %v11083_v29  ;;  %12599 = vst [vmem:[#allocation85_spill] sm:$0xff] %v11085_v20 }
 0xee0   : > { %6048 = vmatpush1.bf16.msra.mxu0 %v12579_v27  ;;  %6089 = vmatpush1.bf16.msra.mxu1 %v12580_v59  ;;  %v11089_v27 = vld [vmem:[#allocation3 + $0x308] sm:$0xff]  ;;  %v11091_v59 = vld [vmem:[#allocation3 + $0x318] sm:$0xff] }
 0xee1   : > { %6049 = vmatprep.subr.bf16.mxu0 %v12581_v12  ;;  %6090 = vmatprep.subr.bf16.mxu1 %v12582_v23  ;;  %12600 = vst [vmem:[#allocation86_spill] sm:$0xff] %v11089_v27  ;;  %12601 = vst [vmem:[#allocation87_spill] sm:$0xff] %v11091_v59  ;;  %v11095_v12 = vld [vmem:[#allocation3 + $0x300] sm:$0xff]  ;;  %v11097_v23 = vld [vmem:[#allocation3 + $0x310] sm:$0xff] }
 0xee2   : > { %12602 = vst [vmem:[#allocation88_spill] sm:$0xff] %v11095_v12  ;;  %12603 = vst [vmem:[#allocation89_spill] sm:$0xff] %v11097_v23 }
 0xee4   : > { %6050 = vmatpush1.bf16.msra.mxu0 %v12583_v43  ;;  %6091 = vmatpush1.bf16.msra.mxu1 %v12584_v33  ;;  %v11099_v43 = vld [vmem:[#allocation3 + $0x348] sm:$0xff]  ;;  %v11101_v33 = vld [vmem:[#allocation3 + $0x358] sm:$0xff] }
 0xee5   : > { %6051 = vmatprep.subr.bf16.mxu0 %v12585_v58  ;;  %6092 = vmatprep.subr.bf16.mxu1 %v12586_v62  ;;  %12604 = vst [vmem:[#allocation90_spill] sm:$0xff] %v11099_v43  ;;  %12605 = vst [vmem:[#allocation91_spill] sm:$0xff] %v11101_v33  ;;  %v11107_v58 = vld [vmem:[#allocation3 + $0x340] sm:$0xff]  ;;  %v11109_v62 = vld [vmem:[#allocation3 + $0x350] sm:$0xff] }
 0xee6   : > { %12606 = vst [vmem:[#allocation92_spill] sm:$0xff] %v11107_v58  ;;  %12607 = vst [vmem:[#allocation93_spill] sm:$0xff] %v11109_v62 }
 0xee8   : > { %6052 = vmatpush1.bf16.msra.mxu0 %v12587_v63  ;;  %6093 = vmatpush1.bf16.msra.mxu1 %v12588_v57  ;;  %v11111_v63 = vld [vmem:[#allocation3 + $0x388] sm:$0xff]  ;;  %v11113_v57 = vld [vmem:[#allocation3 + $0x398] sm:$0xff] }
 0xee9   : > { %6053 = vmatprep.subr.bf16.mxu0 %v12589_v15  ;;  %6094 = vmatprep.subr.bf16.mxu1 %v12590_v26  ;;  %12608 = vst [vmem:[#allocation94_spill] sm:$0xff] %v11111_v63  ;;  %12609 = vst [vmem:[#allocation95_spill] sm:$0xff] %v11113_v57  ;;  %v11119_v15 = vld [vmem:[#allocation3 + $0x380] sm:$0xff]  ;;  %v11121_v26 = vld [vmem:[#allocation3 + $0x390] sm:$0xff] }
 0xeea   : > { %12610 = vst [vmem:[#allocation96_spill] sm:$0xff] %v11119_v15  ;;  %12611 = vst [vmem:[#allocation97_spill] sm:$0xff] %v11121_v26 }
 0xeec   : > { %6054 = vmatpush1.bf16.msra.mxu0 %v10769_v3  ;;  %6095 = vmatpush1.bf16.msra.mxu1 %v12591_v42  ;;  %v10945_v3 = vld [vmem:[#allocation3 + $0x8] sm:$0xff] }
 0xeed   : > { %6055 = vmatprep.subr.bf16.mxu0 %v12592_v45  ;;  %6096 = vmatprep.subr.bf16.mxu1 %v10775_v46  ;;  %v10949_v46 = vld [vmem:[#allocation3] sm:$0xff]  ;;  %v11123_v42 = vld [vmem:[#allocation3 + $0x3c8] sm:$0xff]  ;;  %v11125_v45 = vld [vmem:[#allocation3 + $0x3d8] sm:$0xff] }
 0xeee   : > { %12612 = vst [vmem:[#allocation98_spill] sm:$0xff] %v11123_v42  ;;  %12613 = vst [vmem:[#allocation99_spill] sm:$0xff] %v11125_v45 }
 0xef0   : > { %6056 = vmatpush1.bf16.msra.mxu0 %v10781_v16  ;;  %6097 = vmatpush1.bf16.msra.mxu1 %v10783_v6  ;;  %v10953_v16 = vld [vmem:[#allocation3 + $0x10] sm:$0xff] }
 0xef1   : > { %6057 = vmatprep.subr.bf16.mxu0 %v10785_v25  ;;  %6098 = vmatprep.subr.bf16.mxu1 %v10787_v55  ;;  %v10955_v55 = vld [vmem:[#allocation3 + $0x48] sm:$0xff]  ;;  %v10965_v6 = vld [vmem:[#allocation3 + $0x50] sm:$0xff] }
 0xef2   : > { %v10967_v25 = vld [vmem:[#allocation3 + $0x88] sm:$0xff] }
 0xef4   : > { %6058 = vmatpush1.bf16.msra.mxu0 %v10793_v22  ;;  %6099 = vmatpush1.bf16.msra.mxu1 %v10795_v31  ;;  %v10957_v22 = vld [vmem:[#allocation3 + $0x58] sm:$0xff]  ;;  %v10963_v31 = vld [vmem:[#allocation3 + $0x40] sm:$0xff] }
 0xef5   : > { %6336 = vmatprep.subr.bf16.mxu0 %v10945_v3  ;;  %6377 = vmatprep.subr.bf16.mxu1 %v10947_v24 }
 0xef7   : > { %6060 = vmatmul.mubr.bf16.vlgmr.msra.gmra.mrb[28].mxu0 %v10876_v10  ;;  %6101 = vmatmul.mubr.bf16.vlgmr.msra.gmra.mrb[28].mxu1 %v10876_v10  ;;  %v10999_v10 = vld [vmem:[#allocation3 + $0x100] sm:$0xff] }
 0xef8   : > { %6337 = vmatpush1.bf16.msra.mxu0 %v10949_v46  ;;  %6378 = vmatpush1.bf16.msra.mxu1 %v10953_v16 }
 0xef9   : > { %6338 = vmatprep.subr.bf16.mxu0 %v10955_v55  ;;  %6379 = vmatprep.subr.bf16.mxu1 %v10957_v22 }
 0xefc   : > { %6339 = vmatpush1.bf16.msra.mxu0 %v10963_v31  ;;  %6380 = vmatpush1.bf16.msra.mxu1 %v10965_v6 }
 0xefd   : > { %6340 = vmatprep.subr.bf16.mxu0 %v10967_v25  ;;  %6381 = vmatprep.subr.bf16.mxu1 %v10969_v38 }
 0xf00   : > { %6341 = vmatpush1.bf16.msra.mxu0 %v10975_v39  ;;  %6382 = vmatpush1.bf16.msra.mxu1 %v10977_v9 }
 0xf01   : > { %6342 = vmatprep.subr.bf16.mxu0 %v10979_v61  ;;  %6383 = vmatprep.subr.bf16.mxu1 %v10981_v41 }
 0xf04   : > { %6343 = vmatpush1.bf16.msra.mxu0 %v10987_v32  ;;  %6384 = vmatpush1.bf16.msra.mxu1 %v10989_v40 }
 0xf05   : > { %6344 = vmatprep.subr.bf16.mxu0 %v10991_v30  ;;  %6385 = vmatprep.subr.bf16.mxu1 %v10993_v37 }
 0xf08   : > { %6345 = vmatpush1.bf16.msra.mxu0 %v10999_v10  ;;  %6386 = vmatpush1.bf16.msra.mxu1 %v11001_v4 }
 0xf09   : > { %6346 = vmatprep.subr.bf16.mxu0 %v11005_v21  ;;  %6387 = vmatprep.subr.bf16.mxu1 %v11007_v1 }
 0xf0c   : > { %6347 = vmatpush1.bf16.msra.mxu0 %v11011_v7  ;;  %6388 = vmatpush1.bf16.msra.mxu1 %v11013_v35 }
 0xf0d   : > { %6348 = vmatprep.subr.bf16.mxu0 %v11017_v5  ;;  %6389 = vmatprep.subr.bf16.mxu1 %v11019_v17 }
 0xf10   : > { %6349 = vmatpush1.bf16.msra.mxu0 %v11023_v44  ;;  %6390 = vmatpush1.bf16.msra.mxu1 %v11025_v8 }
 0xf11   : > { %6350 = vmatprep.subr.bf16.mxu0 %v11029_v0  ;;  %6391 = vmatprep.subr.bf16.mxu1 %v11031_v54 }
 0xf14   : > { %6351 = vmatpush1.bf16.msra.mxu0 %v11035_v19  ;;  %6392 = vmatpush1.bf16.msra.mxu1 %v11037_v13 }
 0xf15   : > { %6352 = vmatprep.subr.bf16.mxu0 %v11041_v11  ;;  %6393 = vmatprep.subr.bf16.mxu1 %v11043_v60 }
 0xf18   : > { %6353 = vmatpush1.bf16.msra.mxu0 %v11047_v28  ;;  %6394 = vmatpush1.bf16.msra.mxu1 %v11049_v14 }
 0xf19   : > { %6354 = vmatprep.subr.bf16.mxu0 %v11053_v34  ;;  %6395 = vmatprep.subr.bf16.mxu1 %v11055_v56 }
 0xf1c   : > { %6355 = vmatpush1.bf16.msra.mxu0 %v11059_v48  ;;  %6396 = vmatpush1.bf16.msra.mxu1 %v11061_v49 }
 0xf1d   : > { %6356 = vmatprep.subr.bf16.mxu0 %v11065_v50  ;;  %6397 = vmatprep.subr.bf16.mxu1 %v11067_v51 }
 0xf20   : > { %6357 = vmatpush1.bf16.msra.mxu0 %v11071_v47  ;;  %6398 = vmatpush1.bf16.msra.mxu1 %v11073_v52 }
 0xf21   : > { %6358 = vmatprep.subr.bf16.mxu0 %v11077_v53  ;;  %6399 = vmatprep.subr.bf16.mxu1 %v11079_v2 }
 0xf24   : > { %6359 = vmatpush1.bf16.msra.mxu0 %v11083_v29  ;;  %6400 = vmatpush1.bf16.msra.mxu1 %v11085_v20  ;;  %v5815_v29 = vld [vmem:[#allocation2 + $0x20] sm:$0xff] }
 0xf25   : > { %6360 = vmatprep.subr.bf16.mxu0 %v11089_v27  ;;  %6401 = vmatprep.subr.bf16.mxu1 %v11091_v59 }
 0xf28   : > { %6361 = vmatpush1.bf16.msra.mxu0 %v11095_v12  ;;  %6402 = vmatpush1.bf16.msra.mxu1 %v11097_v23 }
 0xf29   : > { %6362 = vmatprep.subr.bf16.mxu0 %v11099_v43  ;;  %6403 = vmatprep.subr.bf16.mxu1 %v11101_v33 }
 0xf2c   : > { %6363 = vmatpush1.bf16.msra.mxu0 %v11107_v58  ;;  %6404 = vmatpush1.bf16.msra.mxu1 %v11109_v62  ;;  %v11131_v62 = vld [vmem:[#allocation3 + $0x3c0] sm:$0xff]  ;;  %v11139_v58 = vld [vmem:[#allocation3 + $0x38] sm:$0xff] }
 0xf2d   : > { %6364 = vmatprep.subr.bf16.mxu0 %v11111_v63  ;;  %6405 = vmatprep.subr.bf16.mxu1 %v11113_v57  ;;  %12614 = vst [vmem:[#allocation100_spill] sm:$0xff] %v11131_v62  ;;  %v11133_v63 = vld [vmem:[#allocation3 + $0x3d0] sm:$0xff]  ;;  %v11137_v57 = vld [vmem:[#allocation3 + $0x28] sm:$0xff]  ;;  %12617 = vst [vmem:[#allocation103_spill] sm:$0xff] %v11139_v58 }
 0xf2e   : > { %12615 = vst [vmem:[#allocation101_spill] sm:$0xff] %v11133_v63  ;;  %12616 = vst [vmem:[#allocation102_spill] sm:$0xff] %v11137_v57 }
 0xf30   : > { %6365 = vmatpush1.bf16.msra.mxu0 %v11119_v15  ;;  %6406 = vmatpush1.bf16.msra.mxu1 %v11121_v26 }
 0xf31   : > { %6366 = vmatprep.subr.bf16.mxu0 %v11123_v42  ;;  %6407 = vmatprep.subr.bf16.mxu1 %v11125_v45 }
 0xf34   : > { %6367 = vmatpush1.bf16.msra.mxu0 %v11131_v62  ;;  %6408 = vmatpush1.bf16.msra.mxu1 %v11133_v63 }
 0xf35   : > { %6418 = vmatprep.subr.bf16.mxu0 %v11137_v57  ;;  %6459 = vmatprep.subr.bf16.mxu1 %v11139_v58 }
 0xf8a   : > { %v5979_v26 = vpop.f32.mrb[24].mxu0  ;;  %v6020_v42 = vpop.f32.mrb[24].mxu1 }
 0xf8b   : > { %v5981_v15 = vpop.f32.mrb[25].mxu0  ;;  %v6022_v45 = vpop.f32.mrb[25].mxu1 }
 0xf8c   : > { %v6117_v33 = vcombine.low %v5979_v26, %v5981_v15  ;;  %v6118_v43 = vcombine.low %v6020_v42, %v6022_v45  ;;  %v5983_v23 = vpop.f32.mrb[26].mxu0  ;;  %v6024_v12 = vpop.f32.mrb[26].mxu1 }
 0xf8d   : > { %v5984_v59 = vpop.f32.mrb[27].mxu0  ;;  %v6025_v62 = vpop.f32.mrb[27].mxu1 }
 0xf8e   : > { %v6125_v63 = vrot.slane %v6117_v33, %v12404_v18  ;;  %v6132_v27 = vrot.slane %v6118_v43, %v12404_v18 }
 0xf90   : > { %v6133_v20 = vcombine.low %v6125_v63, %v6132_v27 }
 0xf92   : > { %v6153_v2 = vadd.f32 %v6133_v20, %v5815_v29 }
 0xf94   : > { %v6162_v57 = vrot.slane %v6153_v2, 4  ;;  %v7348_v58 = vmul.f32 -1.442695, %v6153_v2 }
 0xf96   : > { %v7349_v53 = vmul.f32 -1.442695, %v6162_v57 }
 0xf98   : > { %7645 = vpow2.f32 %v7349_v53  ;;  %v5816_v53 = vld [vmem:[#allocation2 + $0x28] sm:$0xff] }
 0xf99   : > { %7647 = vpow2.f32 %v7348_v58 }
 0xfa2   : > { %v7646_v15 = vpop.eup %7645 }
 0xfa3   : > { %v7648_v12 = vpop.eup %7647  ;;  %v6167_v27 = vadd.f32 1.0, %v7646_v15 }
 0xfa4   : > { %v6158_v2 = vadd.f32 1.0, %v7648_v12 }
 0xfa5   : > { %7649 = vrcp.f32 %v6167_v27 }
 0xfa6   : > { %7651 = vrcp.f32 %v6158_v2  ;;  %v11156_v2 = vld [vmem:[#allocation3 + $0x30] sm:$0xff] }
 0xfca   : > { %v6061_v52 = vpop.f32.mrb[28].mxu0  ;;  %v6102_v47 = vpop.f32.mrb[28].mxu1 }
 0xfcb   : > { %v6063_v26 = vpop.f32.mrb[29].mxu0  ;;  %v6104_v23 = vpop.f32.mrb[29].mxu1 }
 0xfcc   : > { %v6134_v59 = vcombine.low %v6061_v52, %v6063_v26  ;;  %v6135_v62 = vcombine.low %v6102_v47, %v6104_v23  ;;  %v6065_v42 = vpop.f32.mrb[30].mxu0  ;;  %v6106_v33 = vpop.f32.mrb[30].mxu1 }
 0xfcd   : > { %v6066_v45 = vpop.f32.mrb[31].mxu0  ;;  %v6107_v43 = vpop.f32.mrb[31].mxu1 }
 0xfce   : > { %v6142_v29 = vrot.slane %v6134_v59, %v12404_v18  ;;  %v6149_v20 = vrot.slane %v6135_v62, %v12404_v18  ;;  %v7650_v47 = vpop.eup %7649 }
 0xfcf   : > { %v7652_v52 = vpop.eup %7651  ;;  %v6180_v23 = vmul.f32 %v7650_v47, %v10872_v36  ;;  %v11154_v36 = vld [vmem:[#allocation3 + $0x20] sm:$0xff]  ;;  %v11169_v47 = vld [vmem:[#allocation3 + $0x70] sm:$0xff] }
 0xfd0   : > { %v6150_v58 = vcombine.low %v6142_v29, %v6149_v20 }
 0xfd2   : > { %v6154_v63 = vadd.f32 %v6150_v58, %v5816_v53  ;;  %v11160_v58 = vld [vmem:[#allocation3 + $0x68] sm:$0xff] }
 0xfd4   : > { %7653 = vtanh.f32 %v6154_v63  ;;  %v6172_v57 = vrot.slane %v6154_v63, 4  ;;  %v11162_v63 = vld [vmem:[#allocation3 + $0x78] sm:$0xff] }
 0xfd6   : > { %v7350_v51 = vmul.f32 -1.442695, %v6172_v57  ;;  %v11167_v57 = vld [vmem:[#allocation3 + $0x60] sm:$0xff] }
 0xfd8   : > { %7655 = vpow2.f32 %v7350_v51 }
 0xfde   : > { %v7654_v26 = vpop.eup %7653 }
 0xfdf   : > { %v6181_v15 = vmul.f32 %v7654_v26, %v7652_v52  ;;  %v11173_v52 = vld [vmem:[#allocation3 + $0xa8] sm:$0xff]  ;;  %v11175_v26 = vld [vmem:[#allocation3 + $0xb8] sm:$0xff] }
 0xfe1   : > { %v11148_v42 = vadd.f32 %v6181_v15, %v6180_v23  ;;  %v11181_v23 = vld [vmem:[#allocation3 + $0xa0] sm:$0xff]  ;;  %v11183_v15 = vld [vmem:[#allocation3 + $0xb0] sm:$0xff] }
 0xfe2   : > { %v7656_v59 = vpop.eup %7655 }
 0xfe3   : > { %v6177_v62 = vadd.f32 1.0, %v7656_v59  ;;  %7657 = vtanh.f32 %v11148_v42  ;;  %v11185_v59 = vld [vmem:[#allocation3 + $0xe8] sm:$0xff] }
 0xfe5   : > { %7659 = vrcp.f32 %v6177_v62  ;;  %v11187_v62 = vld [vmem:[#allocation3 + $0xf8] sm:$0xff] }
 0xfed   : > { %v7658_v12 = vpop.eup %7657 }
 0xfef   : > { %v7660_v33 = vpop.eup %7659 }
 0xff0   : > { %v6184_v45 = vmul.f32 %v7660_v33, %v7658_v12  ;;  %v11193_v12 = vld [vmem:[#allocation3 + $0xe0] sm:$0xff]  ;;  %v11195_v33 = vld [vmem:[#allocation3 + $0xf0] sm:$0xff] }
 0xff1   : > { %12618 = vst [vmem:[#allocation104_spill] sm:$0xff] %v11193_v12  ;;  %12619 = vst [vmem:[#allocation105_spill] sm:$0xff] %v11195_v33 }
 0xff2   : > { %v6192_v43 = vrot.slane %v6184_v45, %v12404_v18  ;;  %v11197_v45 = vld [vmem:[#allocation3 + $0x128] sm:$0xff] }
 0xff3   : > { %12620 = vst [vmem:[#allocation106_spill] sm:$0xff] %v11197_v45 }
 0xff4   : > { %v6193_v51 = vcombine.high %v6192_v43, %v6192_v43  ;;  %v11152_v20 = vpack.c.bf16 %v6192_v43, %v6192_v43 }
 0xff6   : > { %v6197_v27 = vpack.c.bf16 %v6193_v51, %v6193_v51  ;;  %v7376_v29 = vpack.c.bf16 %v6193_v51, %v6192_v43  ;;  %v11199_v43 = vld [vmem:[#allocation3 + $0x138] sm:$0xff]  ;;  %v11205_v51 = vld [vmem:[#allocation3 + $0x120] sm:$0xff] }
 0xff7   : > { %12621 = vst [vmem:[#allocation107_spill] sm:$0xff] %v11199_v43  ;;  %12622 = vst [vmem:[#allocation108_spill] sm:$0xff] %v11205_v51 }
 0xff8   : > { %v6203_v53 = vrot.slane %v7376_v29, 6  ;;  %6368 = vmatprep.mubr.bf16.mxu0 %v6197_v27  ;;  %6409 = vmatprep.mubr.bf16.mxu1 %v6197_v27  ;;  %v11209_v29 = vld [vmem:[#allocation3 + $0x168] sm:$0xff] }
 0xff9   : > { %6369 = vmatmul.mubr.bf16.vlgmr.msra.gmra.mrb[32].mxu0 %v11152_v20  ;;  %6410 = vmatmul.mubr.bf16.vlgmr.msra.gmra.mrb[32].mxu1 %v11152_v20  ;;  %12624 = vst [vmem:[#allocation110_spill] sm:$0xff] %v11209_v29 }
 0xffa   : > { %6205 = vst [vmem:[%s8005_s27] sm:$0x44] %v6203_v53  ;;  %6419 = vmatpush1.bf16.msra.mxu0 %v11154_v36  ;;  %6460 = vmatpush1.bf16.msra.mxu1 %v11156_v2  ;;  %v11211_v53 = vld [vmem:[#allocation3 + $0x178] sm:$0xff] }
 0xffb   : > { %6450 = vmatprep.mubr.bf16.mxu0 %v6197_v27  ;;  %6491 = vmatprep.mubr.bf16.mxu1 %v6197_v27  ;;  %v11207_v27 = vld [vmem:[#allocation3 + $0x130] sm:$0xff]  ;;  %12625 = vst [vmem:[#allocation111_spill] sm:$0xff] %v11211_v53 }
 0xffc   : > { %6420 = vmatprep.subr.bf16.mxu0 %v11160_v58  ;;  %6461 = vmatprep.subr.bf16.mxu1 %v11162_v63  ;;  %12623 = vst [vmem:[#allocation109_spill] sm:$0xff] %v11207_v27 }
 0xffe   : > { %6421 = vmatpush1.bf16.msra.mxu0 %v11167_v57  ;;  %6462 = vmatpush1.bf16.msra.mxu1 %v11169_v47 }
 0xfff   : > { %6422 = vmatprep.subr.bf16.mxu0 %v11173_v52  ;;  %6463 = vmatprep.subr.bf16.mxu1 %v11175_v26 }
0x1002   : > { %6423 = vmatpush1.bf16.msra.mxu0 %v11181_v23  ;;  %6464 = vmatpush1.bf16.msra.mxu1 %v11183_v15 }
0x1003   : > { %6424 = vmatprep.subr.bf16.mxu0 %v11185_v59  ;;  %6465 = vmatprep.subr.bf16.mxu1 %v11187_v62 }
0x1006   : > { %6425 = vmatpush1.bf16.msra.mxu0 %v11193_v12  ;;  %6466 = vmatpush1.bf16.msra.mxu1 %v11195_v33  ;;  %v11217_v33 = vld [vmem:[#allocation3 + $0x160] sm:$0xff]  ;;  %v11223_v12 = vld [vmem:[#allocation3 + $0x1b8] sm:$0xff] }
0x1007   : > { %6426 = vmatprep.subr.bf16.mxu0 %v11197_v45  ;;  %6467 = vmatprep.subr.bf16.mxu1 %v11199_v43  ;;  %12626 = vst [vmem:[#allocation112_spill] sm:$0xff] %v11217_v33  ;;  %v11219_v45 = vld [vmem:[#allocation3 + $0x170] sm:$0xff]  ;;  %v11221_v43 = vld [vmem:[#allocation3 + $0x1a8] sm:$0xff]  ;;  %12629 = vst [vmem:[#allocation115_spill] sm:$0xff] %v11223_v12 }
0x1008   : > { %12627 = vst [vmem:[#allocation113_spill] sm:$0xff] %v11219_v45  ;;  %12628 = vst [vmem:[#allocation114_spill] sm:$0xff] %v11221_v43 }
0x100a   : > { %6427 = vmatpush1.bf16.msra.mxu0 %v11205_v51  ;;  %6468 = vmatpush1.bf16.msra.mxu1 %v11207_v27  ;;  %v11229_v27 = vld [vmem:[#allocation3 + $0x1a0] sm:$0xff]  ;;  %v11235_v51 = vld [vmem:[#allocation3 + $0x1f8] sm:$0xff] }
0x100b   : > { %6428 = vmatprep.subr.bf16.mxu0 %v11209_v29  ;;  %6469 = vmatprep.subr.bf16.mxu1 %v11211_v53  ;;  %12630 = vst [vmem:[#allocation116_spill] sm:$0xff] %v11229_v27  ;;  %v11231_v29 = vld [vmem:[#allocation3 + $0x1b0] sm:$0xff]  ;;  %v11233_v53 = vld [vmem:[#allocation3 + $0x1e8] sm:$0xff]  ;;  %12633 = vst [vmem:[#allocation119_spill] sm:$0xff] %v11235_v51 }
0x100c   : > { %12631 = vst [vmem:[#allocation117_spill] sm:$0xff] %v11231_v29  ;;  %12632 = vst [vmem:[#allocation118_spill] sm:$0xff] %v11233_v53 }
0x100e   : > { %6429 = vmatpush1.bf16.msra.mxu0 %v11217_v33  ;;  %6470 = vmatpush1.bf16.msra.mxu1 %v11219_v45  ;;  %v11241_v45 = vld [vmem:[#allocation3 + $0x1e0] sm:$0xff]  ;;  %v11247_v33 = vld [vmem:[#allocation3 + $0x238] sm:$0xff] }
0x100f   : > { %6430 = vmatprep.subr.bf16.mxu0 %v11221_v43  ;;  %6471 = vmatprep.subr.bf16.mxu1 %v11223_v12  ;;  %12634 = vst [vmem:[#allocation120_spill] sm:$0xff] %v11241_v45  ;;  %v11243_v43 = vld [vmem:[#allocation3 + $0x1f0] sm:$0xff]  ;;  %v11245_v12 = vld [vmem:[#allocation3 + $0x228] sm:$0xff]  ;;  %12637 = vst [vmem:[#allocation123_spill] sm:$0xff] %v11247_v33 }
0x1010   : > { %12635 = vst [vmem:[#allocation121_spill] sm:$0xff] %v11243_v43  ;;  %12636 = vst [vmem:[#allocation122_spill] sm:$0xff] %v11245_v12 }
0x1012   : > { %6431 = vmatpush1.bf16.msra.mxu0 %v11229_v27  ;;  %6472 = vmatpush1.bf16.msra.mxu1 %v11231_v29  ;;  %v11253_v29 = vld [vmem:[#allocation3 + $0x220] sm:$0xff]  ;;  %v11259_v27 = vld [vmem:[#allocation3 + $0x278] sm:$0xff] }
0x1013   : > { %6432 = vmatprep.subr.bf16.mxu0 %v11233_v53  ;;  %6473 = vmatprep.subr.bf16.mxu1 %v11235_v51  ;;  %12638 = vst [vmem:[#allocation124_spill] sm:$0xff] %v11253_v29  ;;  %v11255_v53 = vld [vmem:[#allocation3 + $0x230] sm:$0xff]  ;;  %v11257_v51 = vld [vmem:[#allocation3 + $0x268] sm:$0xff]  ;;  %12641 = vst [vmem:[#allocation127_spill] sm:$0xff] %v11259_v27 }
0x1014   : > { %12639 = vst [vmem:[#allocation125_spill] sm:$0xff] %v11255_v53  ;;  %12640 = vst [vmem:[#allocation126_spill] sm:$0xff] %v11257_v51 }
0x1016   : > { %6433 = vmatpush1.bf16.msra.mxu0 %v11241_v45  ;;  %6474 = vmatpush1.bf16.msra.mxu1 %v11243_v43  ;;  %v11265_v43 = vld [vmem:[#allocation3 + $0x260] sm:$0xff]  ;;  %v11271_v45 = vld [vmem:[#allocation3 + $0x2b8] sm:$0xff] }
0x1017   : > { %6434 = vmatprep.subr.bf16.mxu0 %v11245_v12  ;;  %6475 = vmatprep.subr.bf16.mxu1 %v11247_v33  ;;  %12642 = vst [vmem:[#allocation128_spill] sm:$0xff] %v11265_v43  ;;  %v11267_v12 = vld [vmem:[#allocation3 + $0x270] sm:$0xff]  ;;  %v11269_v33 = vld [vmem:[#allocation3 + $0x2a8] sm:$0xff]  ;;  %12645 = vst [vmem:[#allocation131_spill] sm:$0xff] %v11271_v45 }
0x1018   : > { %12643 = vst [vmem:[#allocation129_spill] sm:$0xff] %v11267_v12  ;;  %12644 = vst [vmem:[#allocation130_spill] sm:$0xff] %v11269_v33 }
0x101a   : > { %6435 = vmatpush1.bf16.msra.mxu0 %v11253_v29  ;;  %6476 = vmatpush1.bf16.msra.mxu1 %v11255_v53  ;;  %v11277_v53 = vld [vmem:[#allocation3 + $0x2a0] sm:$0xff]  ;;  %v11283_v29 = vld [vmem:[#allocation3 + $0x2f8] sm:$0xff] }
0x101b   : > { %6436 = vmatprep.subr.bf16.mxu0 %v11257_v51  ;;  %6477 = vmatprep.subr.bf16.mxu1 %v11259_v27  ;;  %12646 = vst [vmem:[#allocation132_spill] sm:$0xff] %v11277_v53  ;;  %v11279_v51 = vld [vmem:[#allocation3 + $0x2b0] sm:$0xff]  ;;  %v11281_v27 = vld [vmem:[#allocation3 + $0x2e8] sm:$0xff]  ;;  %12649 = vst [vmem:[#allocation135_spill] sm:$0xff] %v11283_v29 }
0x101c   : > { %12647 = vst [vmem:[#allocation133_spill] sm:$0xff] %v11279_v51  ;;  %12648 = vst [vmem:[#allocation134_spill] sm:$0xff] %v11281_v27 }
0x101e   : > { %6437 = vmatpush1.bf16.msra.mxu0 %v11265_v43  ;;  %6478 = vmatpush1.bf16.msra.mxu1 %v11267_v12  ;;  %v11289_v12 = vld [vmem:[#allocation3 + $0x2e0] sm:$0xff]  ;;  %v11295_v43 = vld [vmem:[#allocation3 + $0x338] sm:$0xff] }
0x101f   : > { %6438 = vmatprep.subr.bf16.mxu0 %v11269_v33  ;;  %6479 = vmatprep.subr.bf16.mxu1 %v11271_v45  ;;  %12650 = vst [vmem:[#allocation136_spill] sm:$0xff] %v11289_v12  ;;  %v11291_v33 = vld [vmem:[#allocation3 + $0x2f0] sm:$0xff]  ;;  %v11293_v45 = vld [vmem:[#allocation3 + $0x328] sm:$0xff]  ;;  %12653 = vst [vmem:[#allocation139_spill] sm:$0xff] %v11295_v43 }
0x1020   : > { %12651 = vst [vmem:[#allocation137_spill] sm:$0xff] %v11291_v33  ;;  %12652 = vst [vmem:[#allocation138_spill] sm:$0xff] %v11293_v45 }
0x1022   : > { %6439 = vmatpush1.bf16.msra.mxu0 %v11277_v53  ;;  %6480 = vmatpush1.bf16.msra.mxu1 %v11279_v51  ;;  %v11301_v51 = vld [vmem:[#allocation3 + $0x320] sm:$0xff]  ;;  %v11307_v53 = vld [vmem:[#allocation3 + $0x378] sm:$0xff] }
0x1023   : > { %6440 = vmatprep.subr.bf16.mxu0 %v11281_v27  ;;  %6481 = vmatprep.subr.bf16.mxu1 %v11283_v29  ;;  %12654 = vst [vmem:[#allocation140_spill] sm:$0xff] %v11301_v51  ;;  %v11303_v27 = vld [vmem:[#allocation3 + $0x330] sm:$0xff]  ;;  %v11305_v29 = vld [vmem:[#allocation3 + $0x368] sm:$0xff]  ;;  %12657 = vst [vmem:[#allocation143_spill] sm:$0xff] %v11307_v53 }
0x1024   : > { %12655 = vst [vmem:[#allocation141_spill] sm:$0xff] %v11303_v27  ;;  %12656 = vst [vmem:[#allocation142_spill] sm:$0xff] %v11305_v29 }
0x1026   : > { %6441 = vmatpush1.bf16.msra.mxu0 %v11289_v12  ;;  %6482 = vmatpush1.bf16.msra.mxu1 %v11291_v33  ;;  %v11313_v33 = vld [vmem:[#allocation3 + $0x360] sm:$0xff]  ;;  %v11319_v12 = vld [vmem:[#allocation3 + $0x3b8] sm:$0xff] }
0x1027   : > { %6442 = vmatprep.subr.bf16.mxu0 %v11293_v45  ;;  %6483 = vmatprep.subr.bf16.mxu1 %v11295_v43  ;;  %v11315_v45 = vld [vmem:[#allocation3 + $0x370] sm:$0xff]  ;;  %v11317_v43 = vld [vmem:[#allocation3 + $0x3a8] sm:$0xff] }
0x1028   : > { %12658 = vst [vmem:[#allocation144_spill] sm:$0xff] %v11315_v45  ;;  %12659 = vst [vmem:[#allocation145_spill] sm:$0xff] %v11317_v43 }
0x102a   : > { %6443 = vmatpush1.bf16.msra.mxu0 %v11301_v51  ;;  %6484 = vmatpush1.bf16.msra.mxu1 %v11303_v27  ;;  %v11325_v27 = vld [vmem:[#allocation3 + $0x3a0] sm:$0xff]  ;;  %v11331_v51 = vld [vmem:[#allocation3 + $0x3f8] sm:$0xff] }
0x102b   : > { %6444 = vmatprep.subr.bf16.mxu0 %v11305_v29  ;;  %6485 = vmatprep.subr.bf16.mxu1 %v11307_v53  ;;  %v11327_v29 = vld [vmem:[#allocation3 + $0x3b0] sm:$0xff]  ;;  %v11329_v53 = vld [vmem:[#allocation3 + $0x3e8] sm:$0xff] }
0x102e   : > { %6445 = vmatpush1.bf16.msra.mxu0 %v11313_v33  ;;  %6486 = vmatpush1.bf16.msra.mxu1 %v11315_v45  ;;  %v11337_v45 = vld [vmem:[#allocation3 + $0x3e0] sm:$0xff] }
0x102f   : > { %6446 = vmatprep.subr.bf16.mxu0 %v11317_v43  ;;  %6487 = vmatprep.subr.bf16.mxu1 %v11319_v12  ;;  %v11339_v43 = vld [vmem:[#allocation3 + $0x3f0] sm:$0xff] }
0x1032   : > { %6447 = vmatpush1.bf16.msra.mxu0 %v11325_v27  ;;  %6488 = vmatpush1.bf16.msra.mxu1 %v11327_v29 }
0x1033   : > { %6448 = vmatprep.subr.bf16.mxu0 %v11329_v53  ;;  %6489 = vmatprep.subr.bf16.mxu1 %v11331_v51 }
0x1036   : > { %6449 = vmatpush1.bf16.msra.mxu0 %v11337_v45  ;;  %6490 = vmatpush1.bf16.msra.mxu1 %v11339_v43 }
0x1037   : > { %6727 = vmatprep.subr.bf16.mxu0 %v10945_v3  ;;  %6768 = vmatprep.subr.bf16.mxu1 %v10947_v24  ;;  %v12660_v3 = vld [vmem:[#allocation79_spill] sm:$0xff]  ;;  %v12661_v24 = vld [vmem:[#allocation80_spill] sm:$0xff] }
0x1039   : > { %6451 = vmatmul.mubr.bf16.vlgmr.msra.gmra.mrb[36].mxu0 %v11152_v20  ;;  %6492 = vmatmul.mubr.bf16.vlgmr.msra.gmra.mrb[36].mxu1 %v11152_v20 }
0x103a   : > { %6728 = vmatpush1.bf16.msra.mxu0 %v10949_v46  ;;  %6769 = vmatpush1.bf16.msra.mxu1 %v10953_v16  ;;  %v12662_v46 = vld [vmem:[#allocation81_spill] sm:$0xff]  ;;  %v12663_v16 = vld [vmem:[#allocation82_spill] sm:$0xff] }
0x103b   : > { %6729 = vmatprep.subr.bf16.mxu0 %v10955_v55  ;;  %6770 = vmatprep.subr.bf16.mxu1 %v10957_v22  ;;  %v12664_v55 = vld [vmem:[#allocation83_spill] sm:$0xff]  ;;  %v12665_v22 = vld [vmem:[#allocation84_spill] sm:$0xff] }
0x103e   : > { %6730 = vmatpush1.bf16.msra.mxu0 %v10963_v31  ;;  %6771 = vmatpush1.bf16.msra.mxu1 %v10965_v6  ;;  %v12666_v31 = vld [vmem:[#allocation85_spill] sm:$0xff]  ;;  %v12667_v6 = vld [vmem:[#allocation86_spill] sm:$0xff] }
0x103f   : > { %6731 = vmatprep.subr.bf16.mxu0 %v10967_v25  ;;  %6772 = vmatprep.subr.bf16.mxu1 %v10969_v38  ;;  %v12668_v25 = vld [vmem:[#allocation87_spill] sm:$0xff]  ;;  %v12669_v38 = vld [vmem:[#allocation88_spill] sm:$0xff] }
0x1042   : > { %6732 = vmatpush1.bf16.msra.mxu0 %v10975_v39  ;;  %6773 = vmatpush1.bf16.msra.mxu1 %v10977_v9  ;;  %v12670_v39 = vld [vmem:[#allocation89_spill] sm:$0xff]  ;;  %v12671_v9 = vld [vmem:[#allocation90_spill] sm:$0xff] }
0x1043   : > { %6733 = vmatprep.subr.bf16.mxu0 %v10979_v61  ;;  %6774 = vmatprep.subr.bf16.mxu1 %v10981_v41  ;;  %v12672_v61 = vld [vmem:[#allocation91_spill] sm:$0xff]  ;;  %v12673_v41 = vld [vmem:[#allocation92_spill] sm:$0xff] }
0x1046   : > { %6734 = vmatpush1.bf16.msra.mxu0 %v10987_v32  ;;  %6775 = vmatpush1.bf16.msra.mxu1 %v10989_v40  ;;  %v12674_v32 = vld [vmem:[#allocation93_spill] sm:$0xff]  ;;  %v12675_v40 = vld [vmem:[#allocation94_spill] sm:$0xff] }
0x1047   : > { %6735 = vmatprep.subr.bf16.mxu0 %v10991_v30  ;;  %6776 = vmatprep.subr.bf16.mxu1 %v10993_v37  ;;  %v12676_v30 = vld [vmem:[#allocation95_spill] sm:$0xff]  ;;  %v12677_v37 = vld [vmem:[#allocation96_spill] sm:$0xff] }
0x104a   : > { %6736 = vmatpush1.bf16.msra.mxu0 %v10999_v10  ;;  %6777 = vmatpush1.bf16.msra.mxu1 %v11001_v4  ;;  %v12678_v10 = vld [vmem:[#allocation97_spill] sm:$0xff]  ;;  %v12679_v4 = vld [vmem:[#allocation98_spill] sm:$0xff] }
0x104b   : > { %6737 = vmatprep.subr.bf16.mxu0 %v11005_v21  ;;  %6778 = vmatprep.subr.bf16.mxu1 %v11007_v1  ;;  %v12680_v21 = vld [vmem:[#allocation99_spill] sm:$0xff]  ;;  %v12681_v1 = vld [vmem:[#allocation100_spill] sm:$0xff] }
0x104e   : > { %6738 = vmatpush1.bf16.msra.mxu0 %v11011_v7  ;;  %6779 = vmatpush1.bf16.msra.mxu1 %v11013_v35  ;;  %v12682_v7 = vld [vmem:[#allocation101_spill] sm:$0xff]  ;;  %v12683_v35 = vld [vmem:[#allocation102_spill] sm:$0xff] }
0x104f   : > { %6739 = vmatprep.subr.bf16.mxu0 %v11017_v5  ;;  %6780 = vmatprep.subr.bf16.mxu1 %v11019_v17  ;;  %v12684_v5 = vld [vmem:[#allocation103_spill] sm:$0xff] }
0x1052   : > { %6740 = vmatpush1.bf16.msra.mxu0 %v11023_v44  ;;  %6781 = vmatpush1.bf16.msra.mxu1 %v11025_v8 }
0x1053   : > { %6741 = vmatprep.subr.bf16.mxu0 %v11029_v0  ;;  %6782 = vmatprep.subr.bf16.mxu1 %v11031_v54 }
0x1056   : > { %6742 = vmatpush1.bf16.msra.mxu0 %v11035_v19  ;;  %6783 = vmatpush1.bf16.msra.mxu1 %v11037_v13 }
0x1057   : > { %6743 = vmatprep.subr.bf16.mxu0 %v11041_v11  ;;  %6784 = vmatprep.subr.bf16.mxu1 %v11043_v60 }
0x105a   : > { %6744 = vmatpush1.bf16.msra.mxu0 %v11047_v28  ;;  %6785 = vmatpush1.bf16.msra.mxu1 %v11049_v14 }
0x105b   : > { %6745 = vmatprep.subr.bf16.mxu0 %v11053_v34  ;;  %6786 = vmatprep.subr.bf16.mxu1 %v11055_v56 }
0x105e   : > { %6746 = vmatpush1.bf16.msra.mxu0 %v11059_v48  ;;  %6787 = vmatpush1.bf16.msra.mxu1 %v11061_v49  ;;  %v6206_v48 = vld [vmem:[#allocation2 + $0x10] sm:$0xff] }
0x105f   : > { %6747 = vmatprep.subr.bf16.mxu0 %v11065_v50  ;;  %6788 = vmatprep.subr.bf16.mxu1 %v12660_v3 }
0x1062   : > { %6748 = vmatpush1.bf16.msra.mxu0 %v12661_v24  ;;  %6789 = vmatpush1.bf16.msra.mxu1 %v12662_v46 }
0x1063   : > { %6749 = vmatprep.subr.bf16.mxu0 %v12663_v16  ;;  %6790 = vmatprep.subr.bf16.mxu1 %v12664_v55 }
0x1066   : > { %6750 = vmatpush1.bf16.msra.mxu0 %v12665_v22  ;;  %6791 = vmatpush1.bf16.msra.mxu1 %v12666_v31 }
0x1067   : > { %6751 = vmatprep.subr.bf16.mxu0 %v12667_v6  ;;  %6792 = vmatprep.subr.bf16.mxu1 %v12668_v25 }
0x106a   : > { %6752 = vmatpush1.bf16.msra.mxu0 %v12669_v38  ;;  %6793 = vmatpush1.bf16.msra.mxu1 %v12670_v39 }
0x106b   : > { %6753 = vmatprep.subr.bf16.mxu0 %v12671_v9  ;;  %6794 = vmatprep.subr.bf16.mxu1 %v12672_v61 }
0x106e   : > { %6754 = vmatpush1.bf16.msra.mxu0 %v12673_v41  ;;  %6795 = vmatpush1.bf16.msra.mxu1 %v12674_v32 }
0x106f   : > { %6755 = vmatprep.subr.bf16.mxu0 %v12675_v40  ;;  %6796 = vmatprep.subr.bf16.mxu1 %v12676_v30 }
0x1072   : > { %6756 = vmatpush1.bf16.msra.mxu0 %v12677_v37  ;;  %6797 = vmatpush1.bf16.msra.mxu1 %v12678_v10  ;;  %v6207_v37 = vld [vmem:[#allocation2 + $0x18] sm:$0xff] }
0x1073   : > { %6757 = vmatprep.subr.bf16.mxu0 %v12679_v4  ;;  %6798 = vmatprep.subr.bf16.mxu1 %v12680_v21 }
0x1076   : > { %6758 = vmatpush1.bf16.msra.mxu0 %v12681_v1  ;;  %6799 = vmatpush1.bf16.msra.mxu1 %v12682_v7 }
0x1077   : > { %6809 = vmatprep.subr.bf16.mxu0 %v12683_v35  ;;  %6850 = vmatprep.subr.bf16.mxu1 %v12684_v5 }
0x10cc   : > { %v6370_v17 = vpop.f32.mrb[32].mxu0  ;;  %v6411_v44 = vpop.f32.mrb[32].mxu1 }
0x10cd   : > { %v6372_v8 = vpop.f32.mrb[33].mxu0  ;;  %v6413_v0 = vpop.f32.mrb[33].mxu1 }
0x10ce   : > { %v6508_v54 = vcombine.low %v6370_v17, %v6372_v8  ;;  %v6509_v19 = vcombine.low %v6411_v44, %v6413_v0  ;;  %v6374_v13 = vpop.f32.mrb[34].mxu0  ;;  %v6415_v11 = vpop.f32.mrb[34].mxu1 }
0x10cf   : > { %v6375_v60 = vpop.f32.mrb[35].mxu0  ;;  %v6416_v28 = vpop.f32.mrb[35].mxu1 }
0x10d0   : > { %v6516_v14 = vrot.slane %v6508_v54, %v12404_v18  ;;  %v6523_v34 = vrot.slane %v6509_v19, %v12404_v18 }
0x10d2   : > { %v6524_v56 = vcombine.low %v6516_v14, %v6523_v34 }
0x10d4   : > { %v6544_v49 = vadd.f32 %v6524_v56, %v6206_v48  ;;  %v12697_v48 = vld [vmem:[#allocation116_spill] sm:$0xff] }
0x10d6   : > { %v6553_v50 = vrot.slane %v6544_v49, 4  ;;  %v7352_v3 = vmul.f32 -1.442695, %v6544_v49  ;;  %v12698_v49 = vld [vmem:[#allocation117_spill] sm:$0xff] }
0x10d8   : > { %v7353_v20 = vmul.f32 -1.442695, %v6553_v50  ;;  %v12699_v50 = vld [vmem:[#allocation118_spill] sm:$0xff] }
0x10da   : > { %7661 = vpow2.f32 %v7353_v20  ;;  %v12700_v20 = vld [vmem:[#allocation119_spill] sm:$0xff] }
0x10db   : > { %7663 = vpow2.f32 %v7352_v3  ;;  %v12701_v3 = vld [vmem:[#allocation120_spill] sm:$0xff] }
0x10e4   : > { %v7662_v16 = vpop.eup %7661 }
0x10e5   : > { %v7664_v31 = vpop.eup %7663  ;;  %v6558_v41 = vadd.f32 1.0, %v7662_v16  ;;  %v12704_v16 = vld [vmem:[#allocation123_spill] sm:$0xff] }
0x10e6   : > { %v6549_v30 = vadd.f32 1.0, %v7664_v31  ;;  %v12707_v31 = vld [vmem:[#allocation126_spill] sm:$0xff] }
0x10e7   : > { %7665 = vrcp.f32 %v6558_v41  ;;  %v12714_v41 = vld [vmem:[#allocation133_spill] sm:$0xff] }
0x10e8   : > { %7667 = vrcp.f32 %v6549_v30  ;;  %v12717_v30 = vld [vmem:[#allocation136_spill] sm:$0xff] }
0x10f1   : > { %v7666_v7 = vpop.eup %7665 }
0x10f2   : > { %v7668_v35 = vpop.eup %7667  ;;  %v6571_v17 = vmul.f32 %v7666_v7, %v11148_v42  ;;  %v12723_v7 = vld [vmem:[#allocation142_spill] sm:$0xff] }
0x110c   : > { %v6452_v24 = vpop.f32.mrb[36].mxu0  ;;  %v6493_v46 = vpop.f32.mrb[36].mxu1 }
0x110d   : > { %v6454_v55 = vpop.f32.mrb[37].mxu0  ;;  %v6495_v22 = vpop.f32.mrb[37].mxu1 }
0x110e   : > { %v6525_v6 = vcombine.low %v6452_v24, %v6454_v55  ;;  %v6526_v25 = vcombine.low %v6493_v46, %v6495_v22  ;;  %v6456_v38 = vpop.f32.mrb[38].mxu0  ;;  %v6497_v39 = vpop.f32.mrb[38].mxu1  ;;  %v12702_v24 = vld [vmem:[#allocation121_spill] sm:$0xff]  ;;  %v12703_v46 = vld [vmem:[#allocation122_spill] sm:$0xff]  ;;  %v12705_v55 = vld [vmem:[#allocation124_spill] sm:$0xff] }
0x110f   : > { %v6457_v9 = vpop.f32.mrb[39].mxu0  ;;  %v6498_v61 = vpop.f32.mrb[39].mxu1  ;;  %v12706_v22 = vld [vmem:[#allocation125_spill] sm:$0xff]  ;;  %v12711_v39 = vld [vmem:[#allocation130_spill] sm:$0xff] }
0x1110   : > { %v6533_v32 = vrot.slane %v6525_v6, %v12404_v18  ;;  %v6540_v40 = vrot.slane %v6526_v25, %v12404_v18  ;;  %v12708_v6 = vld [vmem:[#allocation127_spill] sm:$0xff]  ;;  %v12709_v25 = vld [vmem:[#allocation128_spill] sm:$0xff]  ;;  %v12710_v38 = vld [vmem:[#allocation129_spill] sm:$0xff] }
0x1111   : > { %v12712_v9 = vld [vmem:[#allocation131_spill] sm:$0xff]  ;;  %v12713_v61 = vld [vmem:[#allocation132_spill] sm:$0xff] }
0x1112   : > { %v6541_v10 = vcombine.low %v6533_v32, %v6540_v40  ;;  %v12715_v32 = vld [vmem:[#allocation134_spill] sm:$0xff]  ;;  %v12716_v40 = vld [vmem:[#allocation135_spill] sm:$0xff] }
0x1114   : > { %v6545_v4 = vadd.f32 %v6541_v10, %v6207_v37  ;;  %v12718_v37 = vld [vmem:[#allocation137_spill] sm:$0xff]  ;;  %v12719_v10 = vld [vmem:[#allocation138_spill] sm:$0xff] }
0x1116   : > { %7669 = vtanh.f32 %v6545_v4  ;;  %v6563_v21 = vrot.slane %v6545_v4, 4  ;;  %v12720_v4 = vld [vmem:[#allocation139_spill] sm:$0xff] }
0x1118   : > { %v7354_v1 = vmul.f32 -1.442695, %v6563_v21  ;;  %v12721_v21 = vld [vmem:[#allocation140_spill] sm:$0xff] }
0x111a   : > { %7671 = vpow2.f32 %v7354_v1  ;;  %v12722_v1 = vld [vmem:[#allocation141_spill] sm:$0xff] }
0x1120   : > { %v7670_v5 = vpop.eup %7669 }
0x1121   : > { %v6572_v44 = vmul.f32 %v7670_v5, %v7668_v35  ;;  %v12724_v35 = vld [vmem:[#allocation143_spill] sm:$0xff]  ;;  %v12725_v5 = vld [vmem:[#allocation144_spill] sm:$0xff] }
0x1123   : > { %v11416_v8 = vadd.f32 %v6572_v44, %v6571_v17  ;;  %v12726_v17 = vld [vmem:[#allocation145_spill] sm:$0xff] }
0x1124   : > { %v7672_v0 = vpop.eup %7671 }
0x1125   : > { %v6568_v54 = vadd.f32 1.0, %v7672_v0  ;;  %7673 = vtanh.f32 %v11416_v8 }
0x1127   : > { %7675 = vrcp.f32 %v6568_v54 }
0x112f   : > { %v7674_v19 = vpop.eup %7673 }
0x1131   : > { %v7676_v13 = vpop.eup %7675 }
0x1132   : > { %v6575_v11 = vmul.f32 %v7676_v13, %v7674_v19 }
0x1134   : > { %v6583_v60 = vrot.slane %v6575_v11, %v12404_v18 }
0x1136   : > { %v6584_v28 = vcombine.high %v6583_v60, %v6583_v60  ;;  %v11420_v56 = vpack.c.bf16 %v6583_v60, %v6583_v60 }
0x1138   : > { %v6588_v14 = vpack.c.bf16 %v6584_v28, %v6584_v28  ;;  %v7377_v34 = vpack.c.bf16 %v6584_v28, %v6583_v60 }
0x113a   : > { %v6594_v42 = vrot.slane %v7377_v34, 7  ;;  %6759 = vmatprep.mubr.bf16.mxu0 %v6588_v14  ;;  %6800 = vmatprep.mubr.bf16.mxu1 %v6588_v14 }
0x113b   : > { %6760 = vmatmul.mubr.bf16.vlgmr.msra.gmra.mrb[40].mxu0 %v11420_v56  ;;  %6801 = vmatmul.mubr.bf16.vlgmr.msra.gmra.mrb[40].mxu1 %v11420_v56 }
0x113c   : > { %6596 = vst [vmem:[%s8005_s27] sm:$0x22] %v6594_v42  ;;  %6810 = vmatpush1.bf16.msra.mxu0 %v11154_v36  ;;  %6851 = vmatpush1.bf16.msra.mxu1 %v11156_v2  ;;  %v12685_v36 = vld [vmem:[#allocation104_spill] sm:$0xff]  ;;  %v12686_v2 = vld [vmem:[#allocation105_spill] sm:$0xff] }
0x113d   : > { %6841 = vmatprep.mubr.bf16.mxu0 %v6588_v14  ;;  %6882 = vmatprep.mubr.bf16.mxu1 %v6588_v14 }
0x113e   : > { %6811 = vmatprep.subr.bf16.mxu0 %v11160_v58  ;;  %6852 = vmatprep.subr.bf16.mxu1 %v11162_v63  ;;  %v12687_v58 = vld [vmem:[#allocation106_spill] sm:$0xff]  ;;  %v12688_v63 = vld [vmem:[#allocation107_spill] sm:$0xff] }
0x1140   : > { %6812 = vmatpush1.bf16.msra.mxu0 %v11167_v57  ;;  %6853 = vmatpush1.bf16.msra.mxu1 %v11169_v47  ;;  %v12689_v57 = vld [vmem:[#allocation108_spill] sm:$0xff]  ;;  %v12690_v47 = vld [vmem:[#allocation109_spill] sm:$0xff] }
0x1141   : > { %6813 = vmatprep.subr.bf16.mxu0 %v11173_v52  ;;  %6854 = vmatprep.subr.bf16.mxu1 %v11175_v26  ;;  %v12691_v52 = vld [vmem:[#allocation110_spill] sm:$0xff]  ;;  %v12692_v26 = vld [vmem:[#allocation111_spill] sm:$0xff] }
0x1144   : > { %6814 = vmatpush1.bf16.msra.mxu0 %v11181_v23  ;;  %6855 = vmatpush1.bf16.msra.mxu1 %v11183_v15  ;;  %v12693_v23 = vld [vmem:[#allocation112_spill] sm:$0xff]  ;;  %v12694_v15 = vld [vmem:[#allocation113_spill] sm:$0xff] }
0x1145   : > { %6815 = vmatprep.subr.bf16.mxu0 %v11185_v59  ;;  %6856 = vmatprep.subr.bf16.mxu1 %v11187_v62  ;;  %v12695_v59 = vld [vmem:[#allocation114_spill] sm:$0xff]  ;;  %v12696_v62 = vld [vmem:[#allocation115_spill] sm:$0xff] }
0x1148   : > { %6816 = vmatpush1.bf16.msra.mxu0 %v12685_v36  ;;  %6857 = vmatpush1.bf16.msra.mxu1 %v12686_v2 }
0x1149   : > { %6817 = vmatprep.subr.bf16.mxu0 %v12687_v58  ;;  %6858 = vmatprep.subr.bf16.mxu1 %v12688_v63 }
0x114c   : > { %6818 = vmatpush1.bf16.msra.mxu0 %v12689_v57  ;;  %6859 = vmatpush1.bf16.msra.mxu1 %v12690_v47 }
0x114d   : > { %6819 = vmatprep.subr.bf16.mxu0 %v12691_v52  ;;  %6860 = vmatprep.subr.bf16.mxu1 %v12692_v26 }
0x1150   : > { %6820 = vmatpush1.bf16.msra.mxu0 %v12693_v23  ;;  %6861 = vmatpush1.bf16.msra.mxu1 %v12694_v15 }
0x1151   : > { %6821 = vmatprep.subr.bf16.mxu0 %v12695_v59  ;;  %6862 = vmatprep.subr.bf16.mxu1 %v12696_v62 }
0x1154   : > { %6822 = vmatpush1.bf16.msra.mxu0 %v12697_v48  ;;  %6863 = vmatpush1.bf16.msra.mxu1 %v12698_v49 }
0x1155   : > { %6823 = vmatprep.subr.bf16.mxu0 %v12699_v50  ;;  %6864 = vmatprep.subr.bf16.mxu1 %v12700_v20  ;;  %v6598_v50 = vld [vmem:[#allocation2 + $0x8] sm:$0xff] }
0x1158   : > { %6824 = vmatpush1.bf16.msra.mxu0 %v12701_v3  ;;  %6865 = vmatpush1.bf16.msra.mxu1 %v12702_v24 }
0x1159   : > { %6825 = vmatprep.subr.bf16.mxu0 %v12703_v46  ;;  %6866 = vmatprep.subr.bf16.mxu1 %v12704_v16 }
0x115c   : > { %6826 = vmatpush1.bf16.msra.mxu0 %v12705_v55  ;;  %6867 = vmatpush1.bf16.msra.mxu1 %v12706_v22 }
0x115d   : > { %6827 = vmatprep.subr.bf16.mxu0 %v12707_v31  ;;  %6868 = vmatprep.subr.bf16.mxu1 %v12708_v6 }
0x1160   : > { %6828 = vmatpush1.bf16.msra.mxu0 %v12709_v25  ;;  %6869 = vmatpush1.bf16.msra.mxu1 %v12710_v38 }
0x1161   : > { %6829 = vmatprep.subr.bf16.mxu0 %v12711_v39  ;;  %6870 = vmatprep.subr.bf16.mxu1 %v12712_v9 }
0x1164   : > { %6830 = vmatpush1.bf16.msra.mxu0 %v12713_v61  ;;  %6871 = vmatpush1.bf16.msra.mxu1 %v12714_v41 }
0x1165   : > { %6831 = vmatprep.subr.bf16.mxu0 %v12715_v32  ;;  %6872 = vmatprep.subr.bf16.mxu1 %v12716_v40 }
0x1168   : > { %6832 = vmatpush1.bf16.msra.mxu0 %v12717_v30  ;;  %6873 = vmatpush1.bf16.msra.mxu1 %v12718_v37 }
0x1169   : > { %6833 = vmatprep.subr.bf16.mxu0 %v12719_v10  ;;  %6874 = vmatprep.subr.bf16.mxu1 %v12720_v4 }
0x116c   : > { %6834 = vmatpush1.bf16.msra.mxu0 %v12721_v21  ;;  %6875 = vmatpush1.bf16.msra.mxu1 %v12722_v1 }
0x116d   : > { %6835 = vmatprep.subr.bf16.mxu0 %v12723_v7  ;;  %6876 = vmatprep.subr.bf16.mxu1 %v12724_v35 }
0x1170   : > { %6836 = vmatpush1.bf16.msra.mxu0 %v11313_v33  ;;  %6877 = vmatpush1.bf16.msra.mxu1 %v12725_v5 }
0x1171   : > { %6837 = vmatprep.subr.bf16.mxu0 %v12726_v17  ;;  %6878 = vmatprep.subr.bf16.mxu1 %v11319_v12 }
0x1174   : > { %6838 = vmatpush1.bf16.msra.mxu0 %v11325_v27  ;;  %6879 = vmatpush1.bf16.msra.mxu1 %v11327_v29 }
0x1175   : > { %6839 = vmatprep.subr.bf16.mxu0 %v11329_v53  ;;  %6880 = vmatprep.subr.bf16.mxu1 %v11331_v51 }
0x1178   : > { %6840 = vmatpush1.bf16.msra.mxu0 %v11337_v45  ;;  %6881 = vmatpush1.bf16.msra.mxu1 %v11339_v43  ;;  %v6597_v43 = vld [vmem:[#allocation2] sm:$0xff] }
0x117b   : > { %6842 = vmatmul.mubr.bf16.vlgmr.msra.gmra.mrb[44].mxu0 %v11420_v56  ;;  %6883 = vmatmul.mubr.bf16.vlgmr.msra.gmra.mrb[44].mxu1 %v11420_v56 }
0x120e   : > { %v6761_v33 = vpop.f32.mrb[40].mxu0  ;;  %v6802_v44 = vpop.f32.mrb[40].mxu1 }
0x120f   : > { %v6763_v0 = vpop.f32.mrb[41].mxu0  ;;  %v6804_v12 = vpop.f32.mrb[41].mxu1 }
0x1210   : > { %v6899_v54 = vcombine.low %v6761_v33, %v6763_v0  ;;  %v6900_v27 = vcombine.low %v6802_v44, %v6804_v12  ;;  %v6765_v19 = vpop.f32.mrb[42].mxu0  ;;  %v6806_v29 = vpop.f32.mrb[42].mxu1 }
0x1211   : > { %v6766_v13 = vpop.f32.mrb[43].mxu0  ;;  %v6807_v53 = vpop.f32.mrb[43].mxu1 }
0x1212   : > { %v6907_v51 = vrot.slane %v6899_v54, %v12404_v18  ;;  %v6914_v45 = vrot.slane %v6900_v27, %v12404_v18 }
0x1214   : > { %v6915_v11 = vcombine.low %v6907_v51, %v6914_v45 }
0x1216   : > { %v6935_v60 = vadd.f32 %v6915_v11, %v6597_v43 }
0x1218   : > { %v6944_v28 = vrot.slane %v6935_v60, 4  ;;  %v7356_v34 = vmul.f32 -1.442695, %v6935_v60 }
0x121a   : > { %v7357_v14 = vmul.f32 -1.442695, %v6944_v28 }
0x121c   : > { %7677 = vpow2.f32 %v7357_v14 }
0x121d   : > { %7679 = vpow2.f32 %v7356_v34 }
0x1226   : > { %v7678_v36 = vpop.eup %7677 }
0x1227   : > { %v7680_v63 = vpop.eup %7679  ;;  %v6949_v59 = vadd.f32 1.0, %v7678_v36 }
0x1228   : > { %v6940_v49 = vadd.f32 1.0, %v7680_v63 }
0x1229   : > { %7681 = vrcp.f32 %v6949_v59 }
0x122a   : > { %7683 = vrcp.f32 %v6940_v49 }
0x1233   : > { %v7682_v16 = vpop.eup %7681 }
0x1234   : > { %v7684_v55 = vpop.eup %7683  ;;  %v6962_v31 = vmul.f32 %v7682_v16, %v11416_v8 }
0x124e   : > { %v6843_v56 = vpop.f32.mrb[44].mxu0  ;;  %v6884_v42 = vpop.f32.mrb[44].mxu1 }
0x124f   : > { %v6845_v2 = vpop.f32.mrb[45].mxu0  ;;  %v6886_v58 = vpop.f32.mrb[45].mxu1 }
0x1250   : > { %v6916_v57 = vcombine.low %v6843_v56, %v6845_v2  ;;  %v6917_v47 = vcombine.low %v6884_v42, %v6886_v58  ;;  %v6847_v52 = vpop.f32.mrb[46].mxu0  ;;  %v6888_v26 = vpop.f32.mrb[46].mxu1 }
0x1251   : > { %v6848_v23 = vpop.f32.mrb[47].mxu0  ;;  %v6889_v15 = vpop.f32.mrb[47].mxu1 }
0x1252   : > { %v6924_v62 = vrot.slane %v6916_v57, %v12404_v18  ;;  %v6931_v48 = vrot.slane %v6917_v47, %v12404_v18 }
0x1254   : > { %v6932_v20 = vcombine.low %v6924_v62, %v6931_v48 }
0x1256   : > { %v6936_v3 = vadd.f32 %v6932_v20, %v6598_v50 }
0x1258   : > { %7685 = vtanh.f32 %v6936_v3  ;;  %v6954_v24 = vrot.slane %v6936_v3, 4 }
0x125a   : > { %v7358_v46 = vmul.f32 -1.442695, %v6954_v24 }
0x125c   : > { %7687 = vpow2.f32 %v7358_v46 }
0x1262   : > { %v7686_v22 = vpop.eup %7685 }
0x1263   : > { %v6963_v6 = vmul.f32 %v7686_v22, %v7684_v55 }
0x1265   : > { %v6964_v25 = vadd.f32 %v6963_v6, %v6962_v31 }
0x1266   : > { %v7688_v38 = vpop.eup %7687 }
0x1267   : > { %v6959_v39 = vadd.f32 1.0, %v7688_v38  ;;  %7689 = vtanh.f32 %v6964_v25 }
0x1269   : > { %7691 = vrcp.f32 %v6959_v39 }
0x1271   : > { %v7690_v9 = vpop.eup %7689 }
0x1273   : > { %v7692_v61 = vpop.eup %7691 }
0x1274   : > { %v6966_v41 = vmul.f32 %v7692_v61, %v7690_v9 }
0x1276   : > { %v6974_v32 = vrot.slane %v6966_v41, %v12404_v18 }
0x1278   : > { %v6975_v40 = vcombine.high %v6974_v32, %v6974_v32 }
0x127a   : > { %v7378_v30 = vpack.c.bf16 %v6975_v40, %v6974_v32 }
0x127c   : > { %6986 = vst [vmem:[%s8005_s27] sm:$0x11] %v7378_v30 }
0x127d PF: > { %p18_p4 = scmp.ge.s32.totalorder %s7845_s10, 4   ;;  %s12727_s27 = smov %s7751_s28 }
0x127e   : > { %s12728_s28 = smov %s7755_s29  ;;  %s12729_s29 = smov %s7855_s13 }
0x127f   : > { %s12730_s30 = smov %s7845_s10  ;;  %20 = sbr.rel (!%p18_p4) target bundleno = 3 (0x3), region = 116 }
0x1286   :  { %7008 = vsyncpa [#allocation6], 1 }
0x1287   :  { %7010 = vsyncpa [#allocation6 + $0x1], 1 }
0x1288   :  { %7011 = vsyncmov [#allocation4] }
0x128b   :  { %s7012_s9 = vpop.sfrf %7011 }
0x128c   :  { %p7362_p5 = scmp.ne.s32.totalorder %s7012_s9, 0 }
0x128e   :  { %7016 = shalt.err (%p7362_p5)  }

</bundles_post_ra>
